<compile_context>
chip_gen: v5e
topology: v5e:2x2
jax: 0.10.0
libtpu: 0.0.40
codegen_flags: <defaults>
</compile_context>

<pallas_src>
from functools import partial

import jax
import jax.numpy as jnp
from jax.experimental import pallas as pl
from jax.experimental.pallas import tpu as pltpu


def _round_up(x, m):
    return (x + m - 1) // m * m


# ----------------------------------------------------------------------------------
# Pallas kernel 1a: single-shot (K collapsed)  out = act(A @ W + b)
# ----------------------------------------------------------------------------------
def _mm_bias_act_kernel(a_ref, w_ref, b_ref, o_ref, *, act):
    out = jnp.dot(a_ref[...], w_ref[...], preferred_element_type=jnp.float32)
    out = out + b_ref[...]
    if act == "relu":
        out = jnp.maximum(out, 0.0)
    elif act == "tanh":
        out = jnp.tanh(out)
    o_ref[...] = out.astype(o_ref.dtype)


# Pallas kernel 1b: K-accumulating fallback (only used when full-K tiles > VMEM budget)
def _mm_bias_act_acc_kernel(a_ref, w_ref, b_ref, o_ref, acc_ref, *, act):
    @pl.when(pl.program_id(2) == 0)
    def _():
        acc_ref[...] = jnp.zeros_like(acc_ref)

    acc_ref[...] += jnp.dot(a_ref[...], w_ref[...], preferred_element_type=jnp.float32)

    @pl.when(pl.program_id(2) == pl.num_programs(2) - 1)
    def _():
        out = acc_ref[...] + b_ref[...]
        if act == "relu":
            out = jnp.maximum(out, 0.0)
        elif act == "tanh":
            out = jnp.tanh(out)
        o_ref[...] = out.astype(o_ref.dtype)


def matmul_bias_act(a, w, b, act="none", *, tm_max=256, tn=128,
                    vmem_budget=12 * 1024 * 1024):
    """a: [M, K] float, w: [Kp, Np] bf16 (pre-packed: Kp >= K, Np % 128 == 0),
    b: [1, Np] f32.  Returns f32 [M, Np] (caller slices valid N columns)."""
    M, K = a.shape
    Kp, Np = w.shape
    assert Kp >= K and Np % tn == 0 and w.dtype == jnp.bfloat16

    a = a.astype(jnp.bfloat16)                     # bf16 staging: half the DMA bytes
    Mp = _round_up(M, 8)
    tm = min(tm_max, Mp)
    Mp = _round_up(Mp, tm)
    if (Mp, Kp) != (M, K):
        a = jnp.pad(a, ((0, Mp - M), (0, Kp - K)))

    # double-buffered bf16 input tiles + f32 output tiles
    fits = 2 * 2 * (tm * Kp + Kp * tn) + 2 * 4 * tm * tn <= vmem_budget

    if fits:
        out = pl.pallas_call(
            partial(_mm_bias_act_kernel, act=act),
            out_shape=jax.ShapeDtypeStruct((Mp, Np), jnp.float32),
            grid=(Mp // tm, Np // tn),
            in_specs=[
                pl.BlockSpec((tm, Kp), lambda i, j: (i, 0)),
                pl.BlockSpec((Kp, tn), lambda i, j: (0, j)),
                pl.BlockSpec((1, tn), lambda i, j: (0, j)),
            ],
            out_specs=pl.BlockSpec((tm, tn), lambda i, j: (i, j)),
            compiler_params=pltpu.CompilerParams(
                dimension_semantics=("parallel", "parallel")),
        )(a, w, b)
    else:
        tk = 512
        Kq = _round_up(Kp, tk)
        a = jnp.pad(a, ((0, 0), (0, Kq - Kp)))
        w = jnp.pad(w, ((0, Kq - Kp), (0, 0)))
        out = pl.pallas_call(
            partial(_mm_bias_act_acc_kernel, act=act),
            out_shape=jax.ShapeDtypeStruct((Mp, Np), jnp.float32),
            grid=(Mp // tm, Np // tn, Kq // tk),
            in_specs=[
                pl.BlockSpec((tm, tk), lambda i, j, k: (i, k)),
                pl.BlockSpec((tk, tn), lambda i, j, k: (k, j)),
                pl.BlockSpec((1, tn), lambda i, j, k: (0, j)),
            ],
            out_specs=pl.BlockSpec((tm, tn), lambda i, j, k: (i, j)),
            scratch_shapes=[pltpu.VMEM((tm, tn), jnp.float32)],
            compiler_params=pltpu.CompilerParams(
                dimension_semantics=("parallel", "parallel", "arbitrary")),
        )(a, w, b)
    return out[:M]


# ----------------------------------------------------------------------------------
# Pallas kernel 2: fused self-attention (qkv projection + softmax(QK^T)V + residual)
# ----------------------------------------------------------------------------------
def _self_attention_kernel(x_ref, w_ref, b_ref, gamma_ref, o_ref, *, cq):
    x = x_ref[0]                                   # [HW, C] f32
    xb = x.astype(jnp.bfloat16)

    # Fused q/k/v 1x1 projections: one lane-dense [C, 2*Cq + C] matmul.
    qkv = jnp.dot(xb, w_ref[...], preferred_element_type=jnp.float32) + b_ref[...]
    q = qkv[:, :cq].astype(jnp.bfloat16)           # [HW, Cq]
    k = qkv[:, cq:2 * cq].astype(jnp.bfloat16)     # [HW, Cq]
    v = qkv[:, 2 * cq:].astype(jnp.bfloat16)       # [HW, C]

    # scores[i, j] = q_i . k_j  (contract last dims of both -> no transpose)
    s = jnp.einsum("qd,kd->qk", q, k, preferred_element_type=jnp.float32)
    s = s - jnp.max(s, axis=-1, keepdims=True)
    p = jnp.exp(s)
    p = p * pl.reciprocal(jnp.sum(p, axis=-1, keepdims=True), approx=True)

    out = jnp.dot(p.astype(jnp.bfloat16), v, preferred_element_type=jnp.float32)
    o_ref[0] = (gamma_ref[0, 0] * out + x).astype(o_ref.dtype)


def self_attention_block(x, w_qkv, b_qkv, gamma):
    """x: [B, H, W, C] NHWC; w_qkv: [C, 2*Cq + C] bf16; b_qkv: [1, 2*Cq + C] f32."""
    B, H, W, C = x.shape
    total = w_qkv.shape[1]
    cq = (total - C) // 2
    HW = H * W
    x_flat = x.reshape(B, HW, C)
    out = pl.pallas_call(
        partial(_self_attention_kernel, cq=cq),
        out_shape=jax.ShapeDtypeStruct((B, HW, C), jnp.float32),
        grid=(B,),
        in_specs=[
            pl.BlockSpec((1, HW, C), lambda b: (b, 0, 0)),
            pl.BlockSpec((C, total), lambda b: (0, 0)),
            pl.BlockSpec((1, total), lambda b: (0, 0)),
            pl.BlockSpec(memory_space=pltpu.MemorySpace.SMEM),
        ],
        out_specs=pl.BlockSpec((1, HW, C), lambda b: (b, 0, 0)),
        compiler_params=pltpu.CompilerParams(dimension_semantics=("parallel",)),
    )(x_flat, w_qkv, b_qkv, gamma)
    return out.reshape(B, H, W, C)


# ----------------------------------------------------------------------------------
# Glue: im2col (plain JAX reshuffles; all FLOPs run in the Pallas matmul kernel)
# ----------------------------------------------------------------------------------
def _im2col(x, kh, kw, stride, pad):
    N, H, W, C = x.shape
    xp = jnp.pad(x, ((0, 0), (pad, pad), (pad, pad), (0, 0)))
    Ho = (H + 2 * pad - kh) // stride + 1
    Wo = (W + 2 * pad - kw) // stride + 1
    cols = []
    for i in range(kh):
        for j in range(kw):
            cols.append(xp[:, i:i + stride * Ho:stride, j:j + stride * Wo:stride, :])
    cols = jnp.stack(cols, axis=3)                 # [N, Ho, Wo, kh*kw, C]
    return cols.reshape(N * Ho * Wo, kh * kw * C), Ho, Wo


def conv2d(x, wm, bm, out_ch, kh, kw, stride, pad, act):
    """x: NHWC; wm/bm: matmul-ready weight/bias from prepare_params."""
    cols, Ho, Wo = _im2col(x, kh, kw, stride, pad)
    out = matmul_bias_act(cols, wm, bm, act)
    return out[:, :out_ch].reshape(x.shape[0], Ho, Wo, out_ch)


def _deconv_shifts(kh, kw, stride, pad):
    s = stride
    dys = sorted({(a + pad - ky) // s for a in range(s) for ky in range(kh)
                  if (a + pad - ky) % s == 0})
    dxs = sorted({(b_ + pad - kx) // s for b_ in range(s) for kx in range(kw)
                  if (b_ + pad - kx) % s == 0})
    return dys, dxs


def conv_transpose2d(x, wm, bm, out_ch, kh, kw, stride, pad, out_pad, act):
    """Sub-pixel ConvTranspose2d as ONE dense matmul + pixel shuffle.

    The s*s output phases are produced as phase-major output columns of a single
    conv over the unstrided input's shift window; a single reshape/transpose
    scatters them to their sub-pixel positions (no strided .at[::s] scatters).
    """
    N, H, W, Cin = x.shape
    s = stride
    Hout = (H - 1) * s - 2 * pad + kh + out_pad
    Wout = (W - 1) * s - 2 * pad + kw + out_pad
    # TODO(synk): general output_padding (Hout % s != 0) not handled by the sub-pixel path.
    assert Hout == s * H and Wout == s * W

    dys, dxs = _deconv_shifts(kh, kw, s, pad)
    lo_y, hi_y = max(0, -dys[0]), max(0, dys[-1])
    lo_x, hi_x = max(0, -dxs[0]), max(0, dxs[-1])
    xp = jnp.pad(x, ((0, 0), (lo_y, hi_y), (lo_x, hi_x), (0, 0)))

    cols = []
    for dy in dys:
        for dx in dxs:
            cols.append(xp[:, lo_y + dy:lo_y + dy + H, lo_x + dx:lo_x + dx + W, :])
    cols = jnp.stack(cols, axis=3).reshape(N * H * W, len(dys) * len(dxs) * Cin)

    out = matmul_bias_act(cols, wm, bm, act)                     # [N*H*W, Np]
    out = out[:, :s * s * out_ch].reshape(N, H, W, s, s, out_ch)
    out = out.transpose(0, 1, 3, 2, 4, 5).reshape(N, Hout, Wout, out_ch)
    return out


# ----------------------------------------------------------------------------------
# One-time weight repacking (hoisted out of the jitted forward)
# ----------------------------------------------------------------------------------
def _prepare_conv(w, b):
    O, I, kh, kw = w.shape
    K = kh * kw * I
    Kp, Np = _round_up(K, 16), _round_up(O, 128)
    wm = jnp.transpose(w, (2, 3, 1, 0)).reshape(K, O)            # (kh,kw,I) row order
    wm = jnp.pad(wm, ((0, Kp - K), (0, Np - O))).astype(jnp.bfloat16)
    bm = jnp.pad(b, (0, Np - O)).reshape(1, Np).astype(jnp.float32)
    return wm, bm


def _prepare_deconv(w, b, stride, pad):
    """PyTorch ConvTranspose2d weight [Cin, Cout, kh, kw] -> [wy*wx*Cin, s*s*Cout]
    matmul weight over the input shift window, phase-major output columns."""
    Cin, Cout, kh, kw = w.shape
    s = stride
    dys, dxs = _deconv_shifts(kh, kw, s, pad)
    wy, wx = len(dys), len(dxs)
    K = wy * wx * Cin
    Kp = _round_up(K, 16)
    Nf = s * s * Cout
    Np = _round_up(Nf, 128)
    Wm = jnp.zeros((Kp, Np), jnp.float32)
    for a in range(s):
        for b_ in range(s):
            c0 = (a * s + b_) * Cout
            for iy, dy in enumerate(dys):
                ky = a + pad - s * dy
                if not (0 <= ky < kh):
                    continue
                for ix, dx in enumerate(dxs):
                    kx = b_ + pad - s * dx
                    if not (0 <= kx < kw):
                        continue
                    r0 = (iy * wx + ix) * Cin
                    Wm = Wm.at[r0:r0 + Cin, c0:c0 + Cout].set(w[:, :, ky, kx])
    bm = jnp.pad(jnp.tile(b, s * s), (0, Np - Nf)).reshape(1, Np).astype(jnp.float32)
    return Wm.astype(jnp.bfloat16), bm


def prepare_params(p):
    pp = {}
    for name in ("e1", "e2", "e3", "d3"):
        pp[name + "_w"], pp[name + "_b"] = _prepare_conv(p[name + "_w"], p[name + "_b"])
    for name in ("d1", "d2"):
        pp[name + "_w"], pp[name + "_b"] = _prepare_deconv(
            p[name + "_w"], p[name + "_b"], stride=2, pad=1)
    # attention: packed qkv weight [C, 2*Cq + C] (no zero-padding of q/k channels)
    C = p["attn_wv"].shape[0]
    Cq = p["attn_wq"].shape[0]
    wq = p["attn_wq"].reshape(Cq, C).T
    wk = p["attn_wk"].reshape(Cq, C).T
    wv = p["attn_wv"].reshape(C, C).T
    pp["attn_w_qkv"] = jnp.concatenate([wq, wk, wv], axis=1).astype(jnp.bfloat16)
    pp["attn_b_qkv"] = jnp.concatenate(
        [p["attn_bq"], p["attn_bk"], p["attn_bv"]]).reshape(1, 2 * Cq + C).astype(jnp.float32)
    pp["attn_gamma"] = p["attn_gamma"].astype(jnp.float32)
    return pp


# ----------------------------------------------------------------------------------
# Generator forward
# ----------------------------------------------------------------------------------
def generator_forward(x_nchw, pp):
    x = jnp.transpose(x_nchw, (0, 2, 3, 1))                     # NCHW -> NHWC

    # encoder
    x = conv2d(x, pp["e1_w"], pp["e1_b"], 64, 7, 7, 1, 3, "relu")    # 3 -> 64
    x = conv2d(x, pp["e2_w"], pp["e2_b"], 128, 3, 3, 2, 1, "relu")   # 64 -> 128, /2
    x = self_attention_block(x, pp["attn_w_qkv"], pp["attn_b_qkv"], pp["attn_gamma"])
    x = conv2d(x, pp["e3_w"], pp["e3_b"], 256, 3, 3, 2, 1, "relu")   # 128 -> 256, /2

    # decoder
    x = conv_transpose2d(x, pp["d1_w"], pp["d1_b"], 128, 3, 3, 2, 1, 1, "relu")
    x = conv_transpose2d(x, pp["d2_w"], pp["d2_b"], 64, 3, 3, 2, 1, 1, "relu")
    x = conv2d(x, pp["d3_w"], pp["d3_b"], 3, 7, 7, 1, 3, "tanh")     # 64 -> 3

    return jnp.transpose(x, (0, 3, 1, 2))                       # NHWC -> NCHW


# ----------------------------------------------------------------------------------
# Deterministic parameter init (shapes follow the PyTorch module; synthetic values)
# ----------------------------------------------------------------------------------
def init_params(key):
    ks = iter(jax.random.split(key, 16))

    def w(shape):
        fan_in = 1
        for d in shape[1:]:
            fan_in *= d
        return (jax.random.normal(next(ks), shape, jnp.float32) * (fan_in ** -0.5)).astype(
            jnp.float32
        )

    p = {
        "e1_w": w((64, 3, 7, 7)), "e1_b": jnp.zeros((64,), jnp.float32),
        "e2_w": w((128, 64, 3, 3)), "e2_b": jnp.zeros((128,), jnp.float32),
        # SelfAttention(128): q/k project to 128 // 8 = 16 channels (1x1 convs)
        "attn_wq": w((16, 128, 1, 1)), "attn_bq": jnp.zeros((16,), jnp.float32),
        "attn_wk": w((16, 128, 1, 1)), "attn_bk": jnp.zeros((16,), jnp.float32),
        "attn_wv": w((128, 128, 1, 1)), "attn_bv": jnp.zeros((128,), jnp.float32),
        "attn_gamma": jnp.zeros((1, 1), jnp.float32),  # torch.zeros(1)
        "e3_w": w((256, 128, 3, 3)), "e3_b": jnp.zeros((256,), jnp.float32),
        # ConvTranspose2d weights are [in, out, kh, kw] in PyTorch
        "d1_w": w((256, 128, 3, 3)), "d1_b": jnp.zeros((128,), jnp.float32),
        "d2_w": w((128, 64, 3, 3)), "d2_b": jnp.zeros((64,), jnp.float32),
        "d3_w": w((3, 64, 7, 7)), "d3_b": jnp.zeros((3,), jnp.float32),
    }
    return p


if __name__ == "__main__":
    key = jax.random.PRNGKey(0)
    pkey, xkey = jax.random.split(key)
    params = init_params(pkey)
    prepped = prepare_params(params)        # one-time weight repack (not re-done per call)

    # small input consistent with the module: NCHW, 3 channels
    x = jax.random.normal(xkey, (2, 3, 16, 16), jnp.float32)

    y = jax.jit(generator_forward)(x, prepped)
    jax.block_until_ready(y)

    assert y.shape == (2, 3, 16, 16), y.shape
    assert bool(jnp.all(jnp.isfinite(y)))
    # tanh output range sanity
    assert bool(jnp.max(jnp.abs(y)) <= 1.0 + 1e-6)
    print("KERNEL_OK")
</pallas_src>

<mosaic_0001>
module attributes {stable_mosaic.version = 11 : i64} {
  func.func @_mm_bias_act_kernel(%arg0: i32, %arg1: i32, %arg2: memref<256x160xbf16, #tpu.memory_space<vmem>>, %arg3: memref<160x128xbf16, #tpu.memory_space<vmem>>, %arg4: memref<1x128xf32, #tpu.memory_space<vmem>>, %arg5: memref<256x128xf32, #tpu.memory_space<vmem>>) attributes {dimension_semantics = [#tpu.dimension_semantics<parallel>, #tpu.dimension_semantics<parallel>], iteration_bounds = array<i64: 2, 1>, scalar_prefetch = 0 : i64, scratch_operands = 0 : i64, tpu.core_type = #tpu.core_type<tc>, window_params = [{transform_indices = @transform_0, window_bounds = array<i64: 256, 160>}, {transform_indices = @transform_1, window_bounds = array<i64: 160, 128>}, {transform_indices = @transform_2, window_bounds = array<i64: 1, 128>}, {transform_indices = @transform_3, window_bounds = array<i64: 256, 128>}]} {
    %c0 = arith.constant 0 : index
    %c0_0 = arith.constant 0 : index
    %0 = vector.load %arg2[%c0, %c0_0] : memref<256x160xbf16, #tpu.memory_space<vmem>>, vector<256x160xbf16>
    %c0_1 = arith.constant 0 : index
    %c0_2 = arith.constant 0 : index
    %1 = vector.load %arg3[%c0_1, %c0_2] : memref<160x128xbf16, #tpu.memory_space<vmem>>, vector<160x128xbf16>
    %cst = arith.constant dense<0.000000e+00> : vector<256x128xf32>
    %2 = tpu.matmul %0, %1, %cst {dimension_numbers = #tpu.dot_dimension_numbers<[1], [0], [0], [1], [0, 0, 1, 1], [], []>} : vector<256x160xbf16>, vector<160x128xbf16>, vector<256x128xf32> -> vector<256x128xf32>
    %c0_3 = arith.constant 0 : index
    %c0_4 = arith.constant 0 : index
    %3 = vector.load %arg4[%c0_3, %c0_4] : memref<1x128xf32, #tpu.memory_space<vmem>>, vector<1x128xf32>
    %4 = vector.broadcast %3 : vector<1x128xf32> to vector<256x128xf32>
    %5 = arith.addf %2, %4 : vector<256x128xf32>
    %cst_5 = arith.constant 0.000000e+00 : f32
    %6 = vector.broadcast %cst_5 : f32 to vector<256x128xf32>
    %7 = arith.maximumf %5, %6 : vector<256x128xf32>
    %c0_6 = arith.constant 0 : index
    %c0_7 = arith.constant 0 : index
    %8 = vector.load %arg5[%c0_6, %c0_7] : memref<256x128xf32, #tpu.memory_space<vmem>>, vector<256x128xf32>
    tpu.vector_store %arg5[%c0_6, %c0_7], %7 {strides = array<i32>} : memref<256x128xf32, #tpu.memory_space<vmem>>, vector<256x128xf32>,
    return
  }
  func.func @transform_0(%arg0: i32, %arg1: i32) -> (i32, i32) {
    %c0_i32 = arith.constant 0 : i32
    %c0_i32_0 = arith.constant 0 : i32
    return %arg0, %c0_i32 : i32, i32
  }
  func.func @transform_1(%arg0: i32, %arg1: i32) -> (i32, i32) {
    %c0_i32 = arith.constant 0 : i32
    %c0_i32_0 = arith.constant 0 : i32
    return %c0_i32, %arg1 : i32, i32
  }
  func.func @transform_2(%arg0: i32, %arg1: i32) -> (i32, i32) {
    %c0_i32 = arith.constant 0 : i32
    %c0_i32_0 = arith.constant 0 : i32
    return %c0_i32, %arg1 : i32, i32
  }
  func.func @transform_3(%arg0: i32, %arg1: i32) -> (i32, i32) {
    %c0_i32 = arith.constant 0 : i32
    return %arg0, %arg1 : i32, i32
  }
}

module attributes {stable_mosaic.version = 11 : i64} {
  func.func @_mm_bias_act_kernel(%arg0: i32, %arg1: i32, %arg2: memref<128x576xbf16, #tpu.memory_space<vmem>>, %arg3: memref<576x128xbf16, #tpu.memory_space<vmem>>, %arg4: memref<1x128xf32, #tpu.memory_space<vmem>>, %arg5: memref<128x128xf32, #tpu.memory_space<vmem>>) attributes {dimension_semantics = [#tpu.dimension_semantics<parallel>, #tpu.dimension_semantics<parallel>], iteration_bounds = array<i64: 1, 1>, scalar_prefetch = 0 : i64, scratch_operands = 0 : i64, tpu.core_type = #tpu.core_type<tc>, window_params = [{transform_indices = @transform_0, window_bounds = array<i64: 128, 576>}, {transform_indices = @transform_1, window_bounds = array<i64: 576, 128>}, {transform_indices = @transform_2, window_bounds = array<i64: 1, 128>}, {transform_indices = @transform_3, window_bounds = array<i64: 128, 128>}]} {
    %c0 = arith.constant 0 : index
    %c0_0 = arith.constant 0 : index
    %0 = vector.load %arg2[%c0, %c0_0] : memref<128x576xbf16, #tpu.memory_space<vmem>>, vector<128x576xbf16>
    %c0_1 = arith.constant 0 : index
    %c0_2 = arith.constant 0 : index
    %1 = vector.load %arg3[%c0_1, %c0_2] : memref<576x128xbf16, #tpu.memory_space<vmem>>, vector<576x128xbf16>
    %cst = arith.constant dense<0.000000e+00> : vector<128x128xf32>
    %2 = tpu.matmul %0, %1, %cst {dimension_numbers = #tpu.dot_dimension_numbers<[1], [0], [0], [1], [0, 0, 1, 1], [], []>} : vector<128x576xbf16>, vector<576x128xbf16>, vector<128x128xf32> -> vector<128x128xf32>
    %c0_3 = arith.constant 0 : index
    %c0_4 = arith.constant 0 : index
    %3 = vector.load %arg4[%c0_3, %c0_4] : memref<1x128xf32, #tpu.memory_space<vmem>>, vector<1x128xf32>
    %4 = vector.broadcast %3 : vector<1x128xf32> to vector<128x128xf32>
    %5 = arith.addf %2, %4 : vector<128x128xf32>
    %cst_5 = arith.constant 0.000000e+00 : f32
    %6 = vector.broadcast %cst_5 : f32 to vector<128x128xf32>
    %7 = arith.maximumf %5, %6 : vector<128x128xf32>
    %c0_6 = arith.constant 0 : index
    %c0_7 = arith.constant 0 : index
    %8 = vector.load %arg5[%c0_6, %c0_7] : memref<128x128xf32, #tpu.memory_space<vmem>>, vector<128x128xf32>
    tpu.vector_store %arg5[%c0_6, %c0_7], %7 {strides = array<i32>} : memref<128x128xf32, #tpu.memory_space<vmem>>, vector<128x128xf32>,
    return
  }
  func.func @transform_0(%arg0: i32, %arg1: i32) -> (i32, i32) {
    %c0_i32 = arith.constant 0 : i32
    %c0_i32_0 = arith.constant 0 : i32
    return %arg0, %c0_i32 : i32, i32
  }
  func.func @transform_1(%arg0: i32, %arg1: i32) -> (i32, i32) {
    %c0_i32 = arith.constant 0 : i32
    %c0_i32_0 = arith.constant 0 : i32
    return %c0_i32, %arg1 : i32, i32
  }
  func.func @transform_2(%arg0: i32, %arg1: i32) -> (i32, i32) {
    %c0_i32 = arith.constant 0 : i32
    %c0_i32_0 = arith.constant 0 : i32
    return %c0_i32, %arg1 : i32, i32
  }
  func.func @transform_3(%arg0: i32, %arg1: i32) -> (i32, i32) {
    %c0_i32 = arith.constant 0 : i32
    return %arg0, %arg1 : i32, i32
  }
}

module attributes {stable_mosaic.version = 11 : i64} {
  func.func @_self_attention_kernel(%arg0: i32, %arg1: memref<1x64x128xf32, #tpu.memory_space<vmem>>, %arg2: memref<128x160xbf16, #tpu.memory_space<vmem>>, %arg3: memref<1x160xf32, #tpu.memory_space<vmem>>, %arg4: memref<1x1xf32, #tpu.memory_space<smem>>, %arg5: memref<1x64x128xf32, #tpu.memory_space<vmem>>) attributes {dimension_semantics = [#tpu.dimension_semantics<parallel>], iteration_bounds = array<i64: 2>, scalar_prefetch = 0 : i64, scratch_operands = 0 : i64, tpu.core_type = #tpu.core_type<tc>, window_params = [{transform_indices = @transform_0, window_bounds = array<i64: 1, 64, 128>}, {pipeline_mode = #tpu.pipeline_mode<synchronous>, transform_indices = @transform_1, window_bounds = array<i64: 128, 160>}, {pipeline_mode = #tpu.pipeline_mode<synchronous>, transform_indices = @transform_2, window_bounds = array<i64: 1, 160>}, {transform_indices = @transform_3, window_bounds = array<i64: 1, 1>}, {transform_indices = @transform_4, window_bounds = array<i64: 1, 64, 128>}]} {
    %c0 = arith.constant 0 : index
    %c0_0 = arith.constant 0 : index
    %c0_1 = arith.constant 0 : index
    %0 = vector.load %arg1[%c0, %c0_0, %c0_1] : memref<1x64x128xf32, #tpu.memory_space<vmem>>, vector<1x64x128xf32>
    %1 = vector.shape_cast %0 : vector<1x64x128xf32> to vector<64x128xf32>
    %2 = arith.truncf %1 : vector<64x128xf32> to vector<64x128xbf16>
    %c0_2 = arith.constant 0 : index
    %c0_3 = arith.constant 0 : index
    %3 = vector.load %arg2[%c0_2, %c0_3] : memref<128x160xbf16, #tpu.memory_space<vmem>>, vector<128x160xbf16>
    %cst = arith.constant dense<0.000000e+00> : vector<64x160xf32>
    %4 = tpu.matmul %2, %3, %cst {dimension_numbers = #tpu.dot_dimension_numbers<[1], [0], [0], [1], [0, 0, 1, 1], [], []>} : vector<64x128xbf16>, vector<128x160xbf16>, vector<64x160xf32> -> vector<64x160xf32>
    %c0_4 = arith.constant 0 : index
    %c0_5 = arith.constant 0 : index
    %5 = vector.load %arg3[%c0_4, %c0_5] : memref<1x160xf32, #tpu.memory_space<vmem>>, vector<1x160xf32>
    %6 = vector.broadcast %5 : vector<1x160xf32> to vector<64x160xf32>
    %7 = arith.addf %4, %6 : vector<64x160xf32>
    %8 = vector.extract_strided_slice %7 {offsets = [0, 0], sizes = [64, 16], strides = [1, 1]} : vector<64x160xf32> to vector<64x16xf32>
    %9 = arith.truncf %8 : vector<64x16xf32> to vector<64x16xbf16>
    %10 = vector.extract_strided_slice %7 {offsets = [0, 16], sizes = [64, 16], strides = [1, 1]} : vector<64x160xf32> to vector<64x16xf32>
    %11 = arith.truncf %10 : vector<64x16xf32> to vector<64x16xbf16>
    %12 = vector.extract_strided_slice %7 {offsets = [0, 32], sizes = [64, 128], strides = [1, 1]} : vector<64x160xf32> to vector<64x128xf32>
    %13 = arith.truncf %12 : vector<64x128xf32> to vector<64x128xbf16>
    "tpu.trace_start"() <{level = 10 : i32, message = "qd,kd->qk"}> : () -> ()
    %cst_6 = arith.constant dense<0.000000e+00> : vector<64x64xf32>
    %14 = tpu.matmul %9, %11, %cst_6 {dimension_numbers = #tpu.dot_dimension_numbers<[1], [1], [0], [0], [0, 0, 1, 0], [], []>} : vector<64x16xbf16>, vector<64x16xbf16>, vector<64x64xf32> -> vector<64x64xf32>
    "tpu.trace_stop"() : () -> ()
    %cst_7 = arith.constant dense<0xFF800000> : vector<64xf32>
    %15 = vector.multi_reduction <maximumf>, %14, %cst_7 [1] : vector<64x64xf32> to vector<64xf32>
    %16 = vector.shape_cast %15 : vector<64xf32> to vector<64x1xf32>
    %17 = vector.broadcast %16 : vector<64x1xf32> to vector<64x64xf32>
    %18 = arith.subf %14, %17 : vector<64x64xf32>
    %19 = math.exp %18 : vector<64x64xf32>
    %cst_8 = arith.constant dense<0.000000e+00> : vector<64xf32>
    %20 = vector.multi_reduction <add>, %19, %cst_8 [1] : vector<64x64xf32> to vector<64xf32>
    %21 = vector.shape_cast %20 : vector<64xf32> to vector<64x1xf32>
    %22 = tpu.reciprocal %21 {approx = true} : vector<64x1xf32> -> vector<64x1xf32>
    %23 = vector.broadcast %22 : vector<64x1xf32> to vector<64x64xf32>
    %24 = arith.mulf %19, %23 : vector<64x64xf32>
    %25 = arith.truncf %24 : vector<64x64xf32> to vector<64x64xbf16>
    %cst_9 = arith.constant dense<0.000000e+00> : vector<64x128xf32>
    %26 = tpu.matmul %25, %13, %cst_9 {dimension_numbers = #tpu.dot_dimension_numbers<[1], [0], [0], [1], [0, 0, 1, 1], [], []>} : vector<64x64xbf16>, vector<64x128xbf16>, vector<64x128xf32> -> vector<64x128xf32>
    %c0_10 = arith.constant 0 : index
    %c0_11 = arith.constant 0 : index
    %27 = memref.load %arg4[%c0_10, %c0_11] : memref<1x1xf32, #tpu.memory_space<smem>>
    %28 = vector.broadcast %27 : f32 to vector<64x128xf32>
    %29 = arith.mulf %28, %26 : vector<64x128xf32>
    %30 = arith.addf %29, %1 : vector<64x128xf32>
    %c0_12 = arith.constant 0 : index
    %c0_13 = arith.constant 0 : index
    %c0_14 = arith.constant 0 : index
    %31 = vector.load %arg5[%c0_12, %c0_13, %c0_14] : memref<1x64x128xf32, #tpu.memory_space<vmem>>, vector<1x64x128xf32>
    %32 = vector.shape_cast %31 : vector<1x64x128xf32> to vector<64x128xf32>
    %33 = vector.shape_cast %30 : vector<64x128xf32> to vector<1x64x128xf32>
    tpu.vector_store %arg5[%c0_12, %c0_13, %c0_14], %33 {strides = array<i32>} : memref<1x64x128xf32, #tpu.memory_space<vmem>>, vector<1x64x128xf32>,
    return
  }
  func.func @transform_0(%arg0: i32) -> (i32, i32, i32) {
    %c0_i32 = arith.constant 0 : i32
    %c0_i32_0 = arith.constant 0 : i32
    %c0_i32_1 = arith.constant 0 : i32
    return %arg0, %c0_i32, %c0_i32_0 : i32, i32, i32
  }
  func.func @transform_1(%arg0: i32) -> (i32, i32) {
    %c0_i32 = arith.constant 0 : i32
    %c0_i32_0 = arith.constant 0 : i32
    %c0_i32_1 = arith.constant 0 : i32
    return %c0_i32, %c0_i32_0 : i32, i32
  }
  func.func @transform_2(%arg0: i32) -> (i32, i32) {
    %c0_i32 = arith.constant 0 : i32
    %c0_i32_0 = arith.constant 0 : i32
    %c0_i32_1 = arith.constant 0 : i32
    return %c0_i32, %c0_i32_0 : i32, i32
  }
  func.func @transform_3(%arg0: i32) -> (i32, i32) {
    %c0_i32 = arith.constant 0 : i32
    %c0_i32_0 = arith.constant 0 : i32
    %c0_i32_1 = arith.constant 0 : i32
    return %c0_i32, %c0_i32_0 : i32, i32
  }
  func.func @transform_4(%arg0: i32) -> (i32, i32, i32) {
    %c0_i32 = arith.constant 0 : i32
    %c0_i32_0 = arith.constant 0 : i32
    %c0_i32_1 = arith.constant 0 : i32
    return %arg0, %c0_i32, %c0_i32_0 : i32, i32, i32
  }
}

module attributes {stable_mosaic.version = 11 : i64} {
  func.func @_mm_bias_act_kernel(%arg0: i32, %arg1: i32, %arg2: memref<32x1152xbf16, #tpu.memory_space<vmem>>, %arg3: memref<1152x128xbf16, #tpu.memory_space<vmem>>, %arg4: memref<1x128xf32, #tpu.memory_space<vmem>>, %arg5: memref<32x128xf32, #tpu.memory_space<vmem>>) attributes {dimension_semantics = [#tpu.dimension_semantics<parallel>, #tpu.dimension_semantics<parallel>], iteration_bounds = array<i64: 1, 2>, scalar_prefetch = 0 : i64, scratch_operands = 0 : i64, tpu.core_type = #tpu.core_type<tc>, window_params = [{transform_indices = @transform_0, window_bounds = array<i64: 32, 1152>}, {transform_indices = @transform_1, window_bounds = array<i64: 1152, 128>}, {transform_indices = @transform_2, window_bounds = array<i64: 1, 128>}, {transform_indices = @transform_3, window_bounds = array<i64: 32, 128>}]} {
    %c0 = arith.constant 0 : index
    %c0_0 = arith.constant 0 : index
    %0 = vector.load %arg2[%c0, %c0_0] : memref<32x1152xbf16, #tpu.memory_space<vmem>>, vector<32x1152xbf16>
    %c0_1 = arith.constant 0 : index
    %c0_2 = arith.constant 0 : index
    %1 = vector.load %arg3[%c0_1, %c0_2] : memref<1152x128xbf16, #tpu.memory_space<vmem>>, vector<1152x128xbf16>
    %cst = arith.constant dense<0.000000e+00> : vector<32x128xf32>
    %2 = tpu.matmul %0, %1, %cst {dimension_numbers = #tpu.dot_dimension_numbers<[1], [0], [0], [1], [0, 0, 1, 1], [], []>} : vector<32x1152xbf16>, vector<1152x128xbf16>, vector<32x128xf32> -> vector<32x128xf32>
    %c0_3 = arith.constant 0 : index
    %c0_4 = arith.constant 0 : index
    %3 = vector.load %arg4[%c0_3, %c0_4] : memref<1x128xf32, #tpu.memory_space<vmem>>, vector<1x128xf32>
    %4 = vector.broadcast %3 : vector<1x128xf32> to vector<32x128xf32>
    %5 = arith.addf %2, %4 : vector<32x128xf32>
    %cst_5 = arith.constant 0.000000e+00 : f32
    %6 = vector.broadcast %cst_5 : f32 to vector<32x128xf32>
    %7 = arith.maximumf %5, %6 : vector<32x128xf32>
    %c0_6 = arith.constant 0 : index
    %c0_7 = arith.constant 0 : index
    %8 = vector.load %arg5[%c0_6, %c0_7] : memref<32x128xf32, #tpu.memory_space<vmem>>, vector<32x128xf32>
    tpu.vector_store %arg5[%c0_6, %c0_7], %7 {strides = array<i32>} : memref<32x128xf32, #tpu.memory_space<vmem>>, vector<32x128xf32>,
    return
  }
  func.func @transform_0(%arg0: i32, %arg1: i32) -> (i32, i32) {
    %c0_i32 = arith.constant 0 : i32
    %c0_i32_0 = arith.constant 0 : i32
    return %arg0, %c0_i32 : i32, i32
  }
  func.func @transform_1(%arg0: i32, %arg1: i32) -> (i32, i32) {
    %c0_i32 = arith.constant 0 : i32
    %c0_i32_0 = arith.constant 0 : i32
    return %c0_i32, %arg1 : i32, i32
  }
  func.func @transform_2(%arg0: i32, %arg1: i32) -> (i32, i32) {
    %c0_i32 = arith.constant 0 : i32
    %c0_i32_0 = arith.constant 0 : i32
    return %c0_i32, %arg1 : i32, i32
  }
  func.func @transform_3(%arg0: i32, %arg1: i32) -> (i32, i32) {
    %c0_i32 = arith.constant 0 : i32
    return %arg0, %arg1 : i32, i32
  }
}

module attributes {stable_mosaic.version = 11 : i64} {
  func.func @_mm_bias_act_kernel(%arg0: i32, %arg1: i32, %arg2: memref<32x1024xbf16, #tpu.memory_space<vmem>>, %arg3: memref<1024x128xbf16, #tpu.memory_space<vmem>>, %arg4: memref<1x128xf32, #tpu.memory_space<vmem>>, %arg5: memref<32x128xf32, #tpu.memory_space<vmem>>) attributes {dimension_semantics = [#tpu.dimension_semantics<parallel>, #tpu.dimension_semantics<parallel>], iteration_bounds = array<i64: 1, 4>, scalar_prefetch = 0 : i64, scratch_operands = 0 : i64, tpu.core_type = #tpu.core_type<tc>, window_params = [{transform_indices = @transform_0, window_bounds = array<i64: 32, 1024>}, {transform_indices = @transform_1, window_bounds = array<i64: 1024, 128>}, {transform_indices = @transform_2, window_bounds = array<i64: 1, 128>}, {transform_indices = @transform_3, window_bounds = array<i64: 32, 128>}]} {
    %c0 = arith.constant 0 : index
    %c0_0 = arith.constant 0 : index
    %0 = vector.load %arg2[%c0, %c0_0] : memref<32x1024xbf16, #tpu.memory_space<vmem>>, vector<32x1024xbf16>
    %c0_1 = arith.constant 0 : index
    %c0_2 = arith.constant 0 : index
    %1 = vector.load %arg3[%c0_1, %c0_2] : memref<1024x128xbf16, #tpu.memory_space<vmem>>, vector<1024x128xbf16>
    %cst = arith.constant dense<0.000000e+00> : vector<32x128xf32>
    %2 = tpu.matmul %0, %1, %cst {dimension_numbers = #tpu.dot_dimension_numbers<[1], [0], [0], [1], [0, 0, 1, 1], [], []>} : vector<32x1024xbf16>, vector<1024x128xbf16>, vector<32x128xf32> -> vector<32x128xf32>
    %c0_3 = arith.constant 0 : index
    %c0_4 = arith.constant 0 : index
    %3 = vector.load %arg4[%c0_3, %c0_4] : memref<1x128xf32, #tpu.memory_space<vmem>>, vector<1x128xf32>
    %4 = vector.broadcast %3 : vector<1x128xf32> to vector<32x128xf32>
    %5 = arith.addf %2, %4 : vector<32x128xf32>
    %cst_5 = arith.constant 0.000000e+00 : f32
    %6 = vector.broadcast %cst_5 : f32 to vector<32x128xf32>
    %7 = arith.maximumf %5, %6 : vector<32x128xf32>
    %c0_6 = arith.constant 0 : index
    %c0_7 = arith.constant 0 : index
    %8 = vector.load %arg5[%c0_6, %c0_7] : memref<32x128xf32, #tpu.memory_space<vmem>>, vector<32x128xf32>
    tpu.vector_store %arg5[%c0_6, %c0_7], %7 {strides = array<i32>} : memref<32x128xf32, #tpu.memory_space<vmem>>, vector<32x128xf32>,
    return
  }
  func.func @transform_0(%arg0: i32, %arg1: i32) -> (i32, i32) {
    %c0_i32 = arith.constant 0 : i32
    %c0_i32_0 = arith.constant 0 : i32
    return %arg0, %c0_i32 : i32, i32
  }
  func.func @transform_1(%arg0: i32, %arg1: i32) -> (i32, i32) {
    %c0_i32 = arith.constant 0 : i32
    %c0_i32_0 = arith.constant 0 : i32
    return %c0_i32, %arg1 : i32, i32
  }
  func.func @transform_2(%arg0: i32, %arg1: i32) -> (i32, i32) {
    %c0_i32 = arith.constant 0 : i32
    %c0_i32_0 = arith.constant 0 : i32
    return %c0_i32, %arg1 : i32, i32
  }
  func.func @transform_3(%arg0: i32, %arg1: i32) -> (i32, i32) {
    %c0_i32 = arith.constant 0 : i32
    return %arg0, %arg1 : i32, i32
  }
}

module attributes {stable_mosaic.version = 11 : i64} {
  func.func @_mm_bias_act_kernel(%arg0: i32, %arg1: i32, %arg2: memref<128x512xbf16, #tpu.memory_space<vmem>>, %arg3: memref<512x128xbf16, #tpu.memory_space<vmem>>, %arg4: memref<1x128xf32, #tpu.memory_space<vmem>>, %arg5: memref<128x128xf32, #tpu.memory_space<vmem>>) attributes {dimension_semantics = [#tpu.dimension_semantics<parallel>, #tpu.dimension_semantics<parallel>], iteration_bounds = array<i64: 1, 2>, scalar_prefetch = 0 : i64, scratch_operands = 0 : i64, tpu.core_type = #tpu.core_type<tc>, window_params = [{transform_indices = @transform_0, window_bounds = array<i64: 128, 512>}, {transform_indices = @transform_1, window_bounds = array<i64: 512, 128>}, {transform_indices = @transform_2, window_bounds = array<i64: 1, 128>}, {transform_indices = @transform_3, window_bounds = array<i64: 128, 128>}]} {
    %c0 = arith.constant 0 : index
    %c0_0 = arith.constant 0 : index
    %0 = vector.load %arg2[%c0, %c0_0] : memref<128x512xbf16, #tpu.memory_space<vmem>>, vector<128x512xbf16>
    %c0_1 = arith.constant 0 : index
    %c0_2 = arith.constant 0 : index
    %1 = vector.load %arg3[%c0_1, %c0_2] : memref<512x128xbf16, #tpu.memory_space<vmem>>, vector<512x128xbf16>
    %cst = arith.constant dense<0.000000e+00> : vector<128x128xf32>
    %2 = tpu.matmul %0, %1, %cst {dimension_numbers = #tpu.dot_dimension_numbers<[1], [0], [0], [1], [0, 0, 1, 1], [], []>} : vector<128x512xbf16>, vector<512x128xbf16>, vector<128x128xf32> -> vector<128x128xf32>
    %c0_3 = arith.constant 0 : index
    %c0_4 = arith.constant 0 : index
    %3 = vector.load %arg4[%c0_3, %c0_4] : memref<1x128xf32, #tpu.memory_space<vmem>>, vector<1x128xf32>
    %4 = vector.broadcast %3 : vector<1x128xf32> to vector<128x128xf32>
    %5 = arith.addf %2, %4 : vector<128x128xf32>
    %cst_5 = arith.constant 0.000000e+00 : f32
    %6 = vector.broadcast %cst_5 : f32 to vector<128x128xf32>
    %7 = arith.maximumf %5, %6 : vector<128x128xf32>
    %c0_6 = arith.constant 0 : index
    %c0_7 = arith.constant 0 : index
    %8 = vector.load %arg5[%c0_6, %c0_7] : memref<128x128xf32, #tpu.memory_space<vmem>>, vector<128x128xf32>
    tpu.vector_store %arg5[%c0_6, %c0_7], %7 {strides = array<i32>} : memref<128x128xf32, #tpu.memory_space<vmem>>, vector<128x128xf32>,
    return
  }
  func.func @transform_0(%arg0: i32, %arg1: i32) -> (i32, i32) {
    %c0_i32 = arith.constant 0 : i32
    %c0_i32_0 = arith.constant 0 : i32
    return %arg0, %c0_i32 : i32, i32
  }
  func.func @transform_1(%arg0: i32, %arg1: i32) -> (i32, i32) {
    %c0_i32 = arith.constant 0 : i32
    %c0_i32_0 = arith.constant 0 : i32
    return %c0_i32, %arg1 : i32, i32
  }
  func.func @transform_2(%arg0: i32, %arg1: i32) -> (i32, i32) {
    %c0_i32 = arith.constant 0 : i32
    %c0_i32_0 = arith.constant 0 : i32
    return %c0_i32, %arg1 : i32, i32
  }
  func.func @transform_3(%arg0: i32, %arg1: i32) -> (i32, i32) {
    %c0_i32 = arith.constant 0 : i32
    return %arg0, %arg1 : i32, i32
  }
}

module attributes {stable_mosaic.version = 11 : i64} {
  func.func @_mm_bias_act_kernel(%arg0: i32, %arg1: i32, %arg2: memref<256x3136xbf16, #tpu.memory_space<vmem>>, %arg3: memref<3136x128xbf16, #tpu.memory_space<vmem>>, %arg4: memref<1x128xf32, #tpu.memory_space<vmem>>, %arg5: memref<256x128xf32, #tpu.memory_space<vmem>>) attributes {dimension_semantics = [#tpu.dimension_semantics<parallel>, #tpu.dimension_semantics<parallel>], iteration_bounds = array<i64: 2, 1>, scalar_prefetch = 0 : i64, scratch_operands = 0 : i64, tpu.core_type = #tpu.core_type<tc>, window_params = [{transform_indices = @transform_0, window_bounds = array<i64: 256, 3136>}, {transform_indices = @transform_1, window_bounds = array<i64: 3136, 128>}, {transform_indices = @transform_2, window_bounds = array<i64: 1, 128>}, {transform_indices = @transform_3, window_bounds = array<i64: 256, 128>}]} {
    %c0 = arith.constant 0 : index
    %c0_0 = arith.constant 0 : index
    %0 = vector.load %arg2[%c0, %c0_0] : memref<256x3136xbf16, #tpu.memory_space<vmem>>, vector<256x3136xbf16>
    %c0_1 = arith.constant 0 : index
    %c0_2 = arith.constant 0 : index
    %1 = vector.load %arg3[%c0_1, %c0_2] : memref<3136x128xbf16, #tpu.memory_space<vmem>>, vector<3136x128xbf16>
    %cst = arith.constant dense<0.000000e+00> : vector<256x128xf32>
    %2 = tpu.matmul %0, %1, %cst {dimension_numbers = #tpu.dot_dimension_numbers<[1], [0], [0], [1], [0, 0, 1, 1], [], []>} : vector<256x3136xbf16>, vector<3136x128xbf16>, vector<256x128xf32> -> vector<256x128xf32>
    %c0_3 = arith.constant 0 : index
    %c0_4 = arith.constant 0 : index
    %3 = vector.load %arg4[%c0_3, %c0_4] : memref<1x128xf32, #tpu.memory_space<vmem>>, vector<1x128xf32>
    %4 = vector.broadcast %3 : vector<1x128xf32> to vector<256x128xf32>
    %5 = arith.addf %2, %4 : vector<256x128xf32>
    %6 = math.tanh %5 : vector<256x128xf32>
    %c0_5 = arith.constant 0 : index
    %c0_6 = arith.constant 0 : index
    %7 = vector.load %arg5[%c0_5, %c0_6] : memref<256x128xf32, #tpu.memory_space<vmem>>, vector<256x128xf32>
    tpu.vector_store %arg5[%c0_5, %c0_6], %6 {strides = array<i32>} : memref<256x128xf32, #tpu.memory_space<vmem>>, vector<256x128xf32>,
    return
  }
  func.func @transform_0(%arg0: i32, %arg1: i32) -> (i32, i32) {
    %c0_i32 = arith.constant 0 : i32
    %c0_i32_0 = arith.constant 0 : i32
    return %arg0, %c0_i32 : i32, i32
  }
  func.func @transform_1(%arg0: i32, %arg1: i32) -> (i32, i32) {
    %c0_i32 = arith.constant 0 : i32
    %c0_i32_0 = arith.constant 0 : i32
    return %c0_i32, %arg1 : i32, i32
  }
  func.func @transform_2(%arg0: i32, %arg1: i32) -> (i32, i32) {
    %c0_i32 = arith.constant 0 : i32
    %c0_i32_0 = arith.constant 0 : i32
    return %c0_i32, %arg1 : i32, i32
  }
  func.func @transform_3(%arg0: i32, %arg1: i32) -> (i32, i32) {
    %c0_i32 = arith.constant 0 : i32
    return %arg0, %arg1 : i32, i32
  }
}

</mosaic_0001>

<bundles_post_ra>
// kernel: generator_forward.7
= control target key start
LH: loop header
LB: loop body
LE: loop exit
PB: predicated region body
PF: predicated region fallthrough
CT: control target
= control target key end

     0   :  { %s1202_s12 = smov 0   ;;  %s1204_s13 = smov 0   ;;  %s1431_s0 = inlined_call_operand.vmem [shape: bf16[512,160], index: 0, kind: input, shape index: {}]   ;;  %s1432_s1 = inlined_call_operand.vmem [shape: bf16[160,128], index: 1, kind: input, shape index: {}]   ;;  %s1433_s2 = inlined_call_operand.vmem [shape: f32[1,128], index: 2, kind: input, shape index: {}]   ;;  %s1434_s3 = inlined_call_operand.vmem [shape: f32[512,128], index: 3, kind: output, shape index: {}]  }
   0x1   :  { %s1206_s14 = smov 0  }
   0x2 LB: > { %s25_s15 = sadd.s32 1, %s1176_s13  ;;  %p888_p0 = scmp.ge.s32.totalorder %s1180_s14, 1  ;;  %s1180_s14 = sphi %s1206_s14, %s13_s14   ;;  %s1176_s13 = sphi %s1204_s13, %s1436_s13   ;;  %s1172_s12 = sphi %s1202_s12, %s1435_s12  }
   0x3   : > { %p27_p1 = scmp.ge.s32.totalorder %s25_s15, 2  ;;  %p170_p2 = scmp.lt.s32.totalorder %s1180_s14, 3 }
   0x5   : > { %s1438_s15 = smov (%p27_p1, %s25_s15), 0  ;;  %p171_p3 = pnand %p888_p0, %p170_p2 }
   0x6   : > { %s889_s20 = sshll.u32 (!%p171_p3), %s1172_s12, 5 }
   0x7   : > { %174 = sbr.rel (%p171_p3) target bundleno = 304 (0x130), region = 32  ;;  %p206_p4 = scmp.lt.s32.totalorder (!%p171_p3), %s889_s20, 63 }
   0xc   : > { %v1120_v0 = vld [vmem:[%s1432_s1 + $0x38] sm:$0xff]  ;;  %v1122_v1 = vld [vmem:[%s1432_s1 + $0x48] sm:$0xff]  ;;  %v1119_v2 = vld [vmem:[%s1432_s1 + $0x30] sm:$0xff]  ;;  %s1440_s20 = smov (!%p206_p4, %s889_s20), 63  ;;  %vm489_vm0 = vcmask 261120  }
   0xd   : > { %538 = vmatpush.bf16.msra.mxu0 %v1120_v0  ;;  %1123 = vmatpush.bf16.msra.mxu2 %v1120_v0  ;;  %v1121_v3 = vld [vmem:[%s1432_s1 + $0x40] sm:$0xff]  ;;  %s1080_s25 = sshll.u32 %s1440_s20, 3  ;;  %v1118_v4 = vld [vmem:[%s1432_s1 + $0x28] sm:$0xff]  ;;  %v1116_v12 = vld [vmem:[%s1432_s1 + $0x18] sm:$0xff] }
   0xe   : > { %633 = vmatpush.bf16.msra.mxu1 %v1122_v1  ;;  %1131 = vmatpush.bf16.msra.mxu3 %v1122_v1  ;;  %s1240_s28 = scalar_lea.vmem %s1431_s0, %s1080_s25  ;;  %v1117_v8 = vld [vmem:[%s1432_s1 + $0x20] sm:$0xff]  ;;  %v1115_v13 = vld [vmem:[%s1432_s1 + $0x10] sm:$0xff]  ;;  %v1114_v17 = vld [vmem:[%s1432_s1 + $0x8] sm:$0xff]  ;;  %s1351_s22 = scalar_lea.vmem %s1434_s3, %s1080_s25 }
   0xf   : > { %v1081_v5 = vld [vmem:[%s1240_s28 + $0x4] sm:$0xf]  ;;  %v898_v6 = vld [vmem:[%s1240_s28 + $0x8] sm:$0xf0]  ;;  %v1099_v9 = vld [vmem:[%s1240_s28 + $0x94] sm:$0xf] }
  0x10   : > { %v901_v7 = vor.u32 %v1081_v5, %v898_v6  ;;  %v970_v10 = vld [vmem:[%s1240_s28 + $0x98] sm:$0xf0]  ;;  %v1083_v14 = vld [vmem:[%s1240_s28 + $0x14] sm:$0xf]  ;;  %v1101_v18 = vld [vmem:[%s1240_s28 + $0xa4] sm:$0xf] }
  0x11   : > { %539 = vmatpush.bf16.msra.mxu0 %v1119_v2  ;;  %1124 = vmatpush.bf16.msra.mxu2 %v1119_v2  ;;  %v973_v11 = vor.u32 %v1099_v9, %v970_v10  ;;  %v906_v15 = vld [vmem:[%s1240_s28 + $0x18] sm:$0xf0]  ;;  %v978_v19 = vld [vmem:[%s1240_s28 + $0xa8] sm:$0xf0]  ;;  %v1113_v20 = vld [vmem:[%s1432_s1] sm:$0xff] }
  0x12   : > { %634 = vmatpush.bf16.msra.mxu1 %v1121_v3  ;;  %1132 = vmatpush.bf16.msra.mxu3 %v1121_v3  ;;  %v909_v16 = vor.u32 %v1083_v14, %v906_v15  ;;  %v896_v21 = vld [vmem:[%s1240_s28] sm:$0xf]  ;;  %v1082_v22 = vld [vmem:[%s1240_s28 + $0x4] sm:$0xf0]  ;;  %v981_v23 = vor.u32 %v1101_v18, %v978_v19  ;;  %v1085_v28 = vld [vmem:[%s1240_s28 + $0x24] sm:$0xf] }
  0x13   : > { %v960_v24 = vld [vmem:[%s1240_s28 + $0x80] sm:$0xf]  ;;  %v1098_v25 = vld [vmem:[%s1240_s28 + $0x84] sm:$0xf0]  ;;  %v897_v26 = vor.u32 %v1082_v22, %v896_v21  ;;  %v914_v29 = vld [vmem:[%s1240_s28 + $0x28] sm:$0xf0] }
  0x14   : > { %v961_v27 = vor.u32 %v1098_v25, %v960_v24  ;;  %v917_v30 = vor.u32 %v1085_v28, %v914_v29  ;;  %v1103_v31 = vld [vmem:[%s1240_s28 + $0xb4] sm:$0xf]  ;;  %v986_v32 = vld [vmem:[%s1240_s28 + $0xb8] sm:$0xf0]  ;;  %v904_v33 = vld [vmem:[%s1240_s28 + $0x10] sm:$0xf] }
  0x15   : > { %1062 = vmatmul.msk.bf16.vlgmr.msra.gmra.mxu1 %vm489_vm0, %v901_v7  ;;  %540 = vmatpush.bf16.msra.mxu0 %v1118_v4  ;;  %v1084_v34 = vld [vmem:[%s1240_s28 + $0x14] sm:$0xf0]  ;;  %v989_v35 = vor.u32 %v1103_v31, %v986_v32  ;;  %v968_v36 = vld [vmem:[%s1240_s28 + $0x90] sm:$0xf]  ;;  %v1087_v40 = vld [vmem:[%s1240_s28 + $0x34] sm:$0xf] }
  0x16   : > { %1125 = vmatpush.bf16.msra.mxu2 %v1118_v4  ;;  %1071 = vmatmul.msk.bf16.vlgmr.msra.gmra.mxu3 %vm489_vm0, %v973_v11  ;;  %v1100_v37 = vld [vmem:[%s1240_s28 + $0x94] sm:$0xf0]  ;;  %v905_v38 = vor.u32 %v1084_v34, %v904_v33  ;;  %v922_v41 = vld [vmem:[%s1240_s28 + $0x38] sm:$0xf0]  ;;  %v1105_v43 = vld [vmem:[%s1240_s28 + $0xc4] sm:$0xf] }
  0x17   : > { %v969_v39 = vor.u32 %v1100_v37, %v968_v36  ;;  %v925_v42 = vor.u32 %v1087_v40, %v922_v41  ;;  %v994_v44 = vld [vmem:[%s1240_s28 + $0xc8] sm:$0xf0]  ;;  %v912_v45 = vld [vmem:[%s1240_s28 + $0x20] sm:$0xf]  ;;  %v1086_v46 = vld [vmem:[%s1240_s28 + $0x24] sm:$0xf0] }
  0x18   : > { %v997_v47 = vor.u32 %v1105_v43, %v994_v44  ;;  %v976_v48 = vld [vmem:[%s1240_s28 + $0xa0] sm:$0xf]  ;;  %v1102_v49 = vld [vmem:[%s1240_s28 + $0xa4] sm:$0xf0]  ;;  %v913_v50 = vor.u32 %v1086_v46, %v912_v45  ;;  %v1089_v52 = vld [vmem:[%s1240_s28 + $0x44] sm:$0xf] }
  0x19   : > { %541 = vmatpush.bf16.msra.mxu0 %v1117_v8  ;;  %v977_v51 = vor.u32 %v1102_v49, %v976_v48  ;;  %v930_v53 = vld [vmem:[%s1240_s28 + $0x48] sm:$0xf0]  ;;  %v1107_v55 = vld [vmem:[%s1240_s28 + $0xd4] sm:$0xf]  ;;  %v1002_v56 = vld [vmem:[%s1240_s28 + $0xd8] sm:$0xf0] }
  0x1a   : > { %1126 = vmatpush.bf16.msra.mxu2 %v1117_v8  ;;  %v933_v54 = vor.u32 %v1089_v52, %v930_v53  ;;  %v920_v57 = vld [vmem:[%s1240_s28 + $0x30] sm:$0xf]  ;;  %v1088_v58 = vld [vmem:[%s1240_s28 + $0x34] sm:$0xf0]  ;;  %v1005_v59 = vor.u32 %v1107_v55, %v1002_v56  ;;  %v1091_v0 = vld [vmem:[%s1240_s28 + $0x54] sm:$0xf] }
  0x1b   : > { %v984_v60 = vld [vmem:[%s1240_s28 + $0xb0] sm:$0xf]  ;;  %v1104_v61 = vld [vmem:[%s1240_s28 + $0xb4] sm:$0xf0]  ;;  %v921_v62 = vor.u32 %v1088_v58, %v920_v57  ;;  %v938_v1 = vld [vmem:[%s1240_s28 + $0x58] sm:$0xf0] }
  0x1c   : > { %v985_v63 = vor.u32 %v1104_v61, %v984_v60  ;;  %v941_v2 = vor.u32 %v1091_v0, %v938_v1  ;;  %v1109_v3 = vld [vmem:[%s1240_s28 + $0xe4] sm:$0xf]  ;;  %v1010_v4 = vld [vmem:[%s1240_s28 + $0xe8] sm:$0xf0]  ;;  %v928_v5 = vld [vmem:[%s1240_s28 + $0x40] sm:$0xf] }
  0x1d   : > { %542 = vmatpush.bf16.msra.mxu0 %v1116_v12  ;;  %v1090_v6 = vld [vmem:[%s1240_s28 + $0x44] sm:$0xf0]  ;;  %v1013_v7 = vor.u32 %v1109_v3, %v1010_v4  ;;  %v992_v8 = vld [vmem:[%s1240_s28 + $0xc0] sm:$0xf]  ;;  %v1111_v15 = vld [vmem:[%s1240_s28 + $0xf4] sm:$0xf] }
  0x1e   : > { %1127 = vmatpush.bf16.msra.mxu2 %v1116_v12  ;;  %v1106_v9 = vld [vmem:[%s1240_s28 + $0xc4] sm:$0xf0]  ;;  %v929_v10 = vor.u32 %v1090_v6, %v928_v5  ;;  %v1093_v12 = vld [vmem:[%s1240_s28 + $0x64] sm:$0xf]  ;;  %v1092_v18 = vld [vmem:[%s1240_s28 + $0x54] sm:$0xf0] }
  0x1f   : > { %v993_v11 = vor.u32 %v1106_v9, %v992_v8  ;;  %v1108_v21 = vld [vmem:[%s1240_s28 + $0xd4] sm:$0xf0]  ;;  %v1095_v24 = vld [vmem:[%s1240_s28 + $0x74] sm:$0xf]  ;;  %v954_v25 = vld [vmem:[%s1240_s28 + $0x78] sm:$0xf0] }
  0x20   : > { %v1094_v28 = vld [vmem:[%s1240_s28 + $0x64] sm:$0xf0]  ;;  %v1008_v29 = vld [vmem:[%s1240_s28 + $0xe0] sm:$0xf]  ;;  %v1097_v33 = vld [vmem:[%s1240_s28 + $0x84] sm:$0xf] }
  0x21   : > { %543 = vmatpush.bf16.msra.mxu0 %v1115_v13  ;;  %v962_v34 = vld [vmem:[%s1240_s28 + $0x88] sm:$0xf0]  ;;  %v952_v37 = vld [vmem:[%s1240_s28 + $0x70] sm:$0xf]  ;;  %v1112_v40 = vld [vmem:[%s1240_s28 + $0xf4] sm:$0xf0] }
  0x22   : > { %1128 = vmatpush.bf16.msra.mxu2 %v1115_v13  ;;  %v946_v13 = vld [vmem:[%s1240_s28 + $0x68] sm:$0xf0]  ;;  %v1343_v45 = vld [vmem:[%s1433_s2] ss:$0 sm:$0xff] }
  0x23   : > { %v949_v14 = vor.u32 %v1093_v12, %v946_v13 }
  0x25   : > { %1063 = vmatmul.msk.bf16.gmra.mxu1 %vm489_vm0, %v909_v16  ;;  %544 = vmatpush.bf16.msra.mxu0 %v1114_v17  ;;  %v1018_v16 = vld [vmem:[%s1240_s28 + $0xf8] sm:$0xf0] }
  0x26   : > { %1129 = vmatpush.bf16.msra.mxu2 %v1114_v17  ;;  %1072 = vmatmul.msk.bf16.gmra.mxu3 %vm489_vm0, %v981_v23  ;;  %v936_v17 = vld [vmem:[%s1240_s28 + $0x50] sm:$0xf]  ;;  %v1021_v19 = vor.u32 %v1111_v15, %v1018_v16 }
  0x27   : > { %v937_v22 = vor.u32 %v1092_v18, %v936_v17 }
  0x29   : > { %545 = vmatpush.bf16.msra.mxu0 %v1113_v20 }
  0x2a   : > { %1130 = vmatpush.bf16.msra.mxu2 %v1113_v20  ;;  %v1000_v20 = vld [vmem:[%s1240_s28 + $0xd0] sm:$0xf] }
  0x2b   : > { %v1001_v23 = vor.u32 %v1108_v21, %v1000_v20 }
  0x2c   : > { %546 = vmatmul.bf16.vlgmr.msra.gmra.mxu0 %v897_v26  ;;  %v957_v26 = vor.u32 %v1095_v24, %v954_v25 }
  0x2d   : > { %586 = vmatmul.bf16.vlgmr.msra.gmra.mxu2 %v961_v27  ;;  %v944_v27 = vld [vmem:[%s1240_s28 + $0x60] sm:$0xf] }
  0x2e   : > { %v945_v31 = vor.u32 %v1094_v28, %v944_v27 }
  0x35   : > { %1064 = vmatmul.msk.bf16.gmra.mxu1 %vm489_vm0, %v917_v30  ;;  %v1110_v30 = vld [vmem:[%s1240_s28 + $0xe4] sm:$0xf0] }
  0x36   : > { %1073 = vmatmul.msk.bf16.gmra.mxu3 %vm489_vm0, %v989_v35  ;;  %v1009_v32 = vor.u32 %v1110_v30, %v1008_v29  ;;  %v965_v35 = vor.u32 %v1097_v33, %v962_v34 }
  0x3c   : > { %551 = vmatmul.bf16.gmra.mxu0 %v905_v38  ;;  %v1096_v38 = vld [vmem:[%s1240_s28 + $0x74] sm:$0xf0] }
  0x3d   : > { %591 = vmatmul.bf16.gmra.mxu2 %v969_v39  ;;  %v1016_v39 = vld [vmem:[%s1240_s28 + $0xf0] sm:$0xf]  ;;  %v953_v41 = vor.u32 %v1096_v38, %v952_v37 }
  0x45   : > { %1065 = vmatmul.msk.bf16.gmra.mxu1 %vm489_vm0, %v925_v42  ;;  %v1017_v42 = vor.u32 %v1112_v40, %v1016_v39 }
  0x46   : > { %1074 = vmatmul.msk.bf16.gmra.mxu3 %vm489_vm0, %v997_v47 }
  0x4c   : > { %556 = vmatmul.bf16.gmra.mxu0 %v913_v50 }
  0x4d   : > { %596 = vmatmul.bf16.gmra.mxu2 %v977_v51 }
  0x55   : > { %1066 = vmatmul.msk.bf16.gmra.mxu1 %vm489_vm0, %v933_v54 }
  0x56   : > { %1075 = vmatmul.msk.bf16.gmra.mxu3 %vm489_vm0, %v1005_v59 }
  0x5c   : > { %561 = vmatmul.bf16.gmra.mxu0 %v921_v62 }
  0x5d   : > { %601 = vmatmul.bf16.gmra.mxu2 %v985_v63 }
  0x65   : > { %1067 = vmatmul.msk.bf16.gmra.mxu1 %vm489_vm0, %v941_v2 }
  0x66   : > { %1076 = vmatmul.msk.bf16.gmra.mxu3 %vm489_vm0, %v1013_v7 }
  0x6c   : > { %566 = vmatmul.bf16.gmra.mxu0 %v929_v10 }
  0x6d   : > { %606 = vmatmul.bf16.gmra.mxu2 %v993_v11 }
  0x75   : > { %1068 = vmatmul.msk.bf16.gmra.mxu1 %vm489_vm0, %v949_v14 }
  0x76   : > { %1077 = vmatmul.msk.bf16.gmra.mxu3 %vm489_vm0, %v1021_v19 }
  0x7c   : > { %571 = vmatmul.bf16.gmra.mxu0 %v937_v22 }
  0x7d   : > { %611 = vmatmul.bf16.gmra.mxu2 %v1001_v23 }
  0x85   : > { %1069 = vmatmul.msk.bf16.gmra.mxu1 %vm489_vm0, %v957_v26 }
  0x8c   : > { %576 = vmatmul.bf16.gmra.mxu0 %v945_v31 }
  0x8d   : > { %616 = vmatmul.bf16.gmra.mxu2 %v1009_v32 }
  0x92   : > { %v636_v36 = vpop.f32.mrf.mxu1 }
  0x95   : > { %1070 = vmatmul.msk.bf16.gmra.mxu1 %vm489_vm0, %v965_v35 }
  0x99   : > { %v681_v46 = vpop.f32.mrf.mxu3 }
  0x9a   : > { %v638_v43 = vpop.f32.mrf.mxu1 }
  0x9c   : > { %581 = vmatmul.bf16.gmra.mxu0 %v953_v41 }
  0x9d   : > { %621 = vmatmul.bf16.gmra.mxu2 %v1017_v42 }
  0xa1   : > { %v683_v56 = vpop.f32.mrf.mxu3 }
  0xa2   : > { %v641_v44 = vpop.f32.mrf.mxu1 }
  0xa9   : > { %v547_v47 = vpop.f32.mrf.mxu0  ;;  %v686_v0 = vpop.f32.mrf.mxu3 }
  0xaa   : > { %v548_v48 = vadd.f32 %v1343_v45, %v547_v47  ;;  %v643_v49 = vpop.f32.mrf.mxu1 }
  0xac   : > { %v637_v50 = vadd.f32 %v636_v36, %v548_v48 }
  0xae   : > { %v716_v51 = vmax.f32 %v637_v50, 0.0 }
  0xb0   : > { %748 = vst [vmem:[%s1351_s22] sm:$0xff] %v716_v51  ;;  %v1354_v52 = vpop.f32.mrf.mxu2 }
  0xb1   : > { %v549_v53 = vpop.f32.mrf.mxu0  ;;  %v688_v11 = vpop.f32.mrf.mxu3 }
  0xb2   : > { %v550_v54 = vadd.f32 %v1343_v45, %v549_v53  ;;  %v646_v55 = vpop.f32.mrf.mxu1 }
  0xb4   : > { %v639_v57 = vadd.f32 %v638_v43, %v550_v54 }
  0xb6   : > { %v717_v58 = vmax.f32 %v639_v57, 0.0 }
  0xb8   : > { %749 = vst [vmem:[%s1351_s22 + $0x8] sm:$0xff] %v717_v58  ;;  %v1358_v59 = vpop.f32.mrf.mxu2 }
  0xb9   : > { %v552_v60 = vpop.f32.mrf.mxu0  ;;  %v691_v22 = vpop.f32.mrf.mxu3 }
  0xba   : > { %v553_v61 = vadd.f32 %v1343_v45, %v552_v60  ;;  %v648_v62 = vpop.f32.mrf.mxu1 }
  0xbc   : > { %v642_v63 = vadd.f32 %v641_v44, %v553_v61 }
  0xbe   : > { %v718_v1 = vmax.f32 %v642_v63, 0.0 }
  0xc0   : > { %750 = vst [vmem:[%s1351_s22 + $0x10] sm:$0xff] %v718_v1  ;;  %v592_v2 = vpop.f32.mrf.mxu2 }
  0xc1   : > { %v593_v3 = vadd.f32 %v1343_v45, %v592_v2  ;;  %v554_v4 = vpop.f32.mrf.mxu0  ;;  %v693_v36 = vpop.f32.mrf.mxu3 }
  0xc2   : > { %v555_v5 = vadd.f32 %v1343_v45, %v554_v4  ;;  %v651_v6 = vpop.f32.mrf.mxu1 }
  0xc3   : > { %v682_v7 = vadd.f32 %v681_v46, %v593_v3 }
  0xc4   : > { %v644_v8 = vadd.f32 %v643_v49, %v555_v5 }
  0xc5   : > { %v734_v9 = vmax.f32 %v682_v7, 0.0 }
  0xc6   : > { %v719_v10 = vmax.f32 %v644_v8, 0.0 }
  0xc7   : > { %766 = vst [vmem:[%s1351_s22 + $0x90] sm:$0xff] %v734_v9 }
  0xc8   : > { %751 = vst [vmem:[%s1351_s22 + $0x18] sm:$0xff] %v719_v10  ;;  %v594_v12 = vpop.f32.mrf.mxu2 }
  0xc9   : > { %v595_v13 = vadd.f32 %v1343_v45, %v594_v12  ;;  %v557_v14 = vpop.f32.mrf.mxu0  ;;  %v696_v49 = vpop.f32.mrf.mxu3 }
  0xca   : > { %v558_v15 = vadd.f32 %v1343_v45, %v557_v14  ;;  %v653_v16 = vpop.f32.mrf.mxu1 }
  0xcb   : > { %v684_v17 = vadd.f32 %v683_v56, %v595_v13 }
  0xcc   : > { %v647_v18 = vadd.f32 %v646_v55, %v558_v15 }
  0xcd   : > { %v735_v19 = vmax.f32 %v684_v17, 0.0 }
  0xce   : > { %v720_v20 = vmax.f32 %v647_v18, 0.0 }
  0xcf   : > { %767 = vst [vmem:[%s1351_s22 + $0x98] sm:$0xff] %v735_v19 }
  0xd0   : > { %752 = vst [vmem:[%s1351_s22 + $0x20] sm:$0xff] %v720_v20  ;;  %v597_v21 = vpop.f32.mrf.mxu2 }
  0xd1   : > { %v598_v23 = vadd.f32 %v1343_v45, %v597_v21  ;;  %v559_v24 = vpop.f32.mrf.mxu0  ;;  %v698_v63 = vpop.f32.mrf.mxu3 }
  0xd2   : > { %v560_v25 = vadd.f32 %v1343_v45, %v559_v24  ;;  %v656_v26 = vpop.f32.mrf.mxu1 }
  0xd3   : > { %v687_v27 = vadd.f32 %v686_v0, %v598_v23 }
  0xd4   : > { %v649_v28 = vadd.f32 %v648_v62, %v560_v25 }
  0xd5   : > { %v736_v29 = vmax.f32 %v687_v27, 0.0 }
  0xd6   : > { %v721_v30 = vmax.f32 %v649_v28, 0.0 }
  0xd7   : > { %768 = vst [vmem:[%s1351_s22 + $0xa0] sm:$0xff] %v736_v29 }
  0xd8   : > { %753 = vst [vmem:[%s1351_s22 + $0x28] sm:$0xff] %v721_v30  ;;  %v599_v31 = vpop.f32.mrf.mxu2 }
  0xd9   : > { %v600_v32 = vadd.f32 %v1343_v45, %v599_v31  ;;  %v562_v33 = vpop.f32.mrf.mxu0  ;;  %v701_v10 = vpop.f32.mrf.mxu3 }
  0xda   : > { %v563_v34 = vadd.f32 %v1343_v45, %v562_v33  ;;  %v658_v35 = vpop.f32.mrf.mxu1 }
  0xdb   : > { %v689_v37 = vadd.f32 %v688_v11, %v600_v32 }
  0xdc   : > { %v652_v38 = vadd.f32 %v651_v6, %v563_v34 }
  0xdd   : > { %v737_v39 = vmax.f32 %v689_v37, 0.0 }
  0xde   : > { %v722_v40 = vmax.f32 %v652_v38, 0.0 }
  0xdf   : > { %769 = vst [vmem:[%s1351_s22 + $0xa8] sm:$0xff] %v737_v39 }
  0xe0   : > { %754 = vst [vmem:[%s1351_s22 + $0x30] sm:$0xff] %v722_v40  ;;  %v602_v41 = vpop.f32.mrf.mxu2  ;;  %v588_v40 = vadd.f32 %v1343_v45, %v1354_v52  ;;  %v590_v52 = vadd.f32 %v1343_v45, %v1358_v59 }
  0xe1   : > { %v603_v42 = vadd.f32 %v1343_v45, %v602_v41  ;;  %v564_v43 = vpop.f32.mrf.mxu0  ;;  %v703_v24 = vpop.f32.mrf.mxu3 }
  0xe2   : > { %v565_v44 = vadd.f32 %v1343_v45, %v564_v43  ;;  %v661_v46 = vpop.f32.mrf.mxu1 }
  0xe3   : > { %v692_v47 = vadd.f32 %v691_v22, %v603_v42 }
  0xe4   : > { %v654_v48 = vadd.f32 %v653_v16, %v565_v44 }
  0xe5   : > { %v738_v50 = vmax.f32 %v692_v47, 0.0 }
  0xe6   : > { %v723_v51 = vmax.f32 %v654_v48, 0.0 }
  0xe7   : > { %770 = vst [vmem:[%s1351_s22 + $0xb0] sm:$0xff] %v738_v50 }
  0xe8   : > { %755 = vst [vmem:[%s1351_s22 + $0x38] sm:$0xff] %v723_v51  ;;  %v604_v53 = vpop.f32.mrf.mxu2 }
  0xe9   : > { %v605_v54 = vadd.f32 %v1343_v45, %v604_v53  ;;  %v567_v55 = vpop.f32.mrf.mxu0 }
  0xea   : > { %v568_v56 = vadd.f32 %v1343_v45, %v567_v55  ;;  %v663_v57 = vpop.f32.mrf.mxu1 }
  0xeb   : > { %v694_v58 = vadd.f32 %v693_v36, %v605_v54  ;;  %v706_v36 = vpop.f32.mrf.mxu3 }
  0xec   : > { %v657_v60 = vadd.f32 %v656_v26, %v568_v56 }
  0xed   : > { %v739_v61 = vmax.f32 %v694_v58, 0.0 }
  0xee   : > { %v724_v62 = vmax.f32 %v657_v60, 0.0 }
  0xef   : > { %771 = vst [vmem:[%s1351_s22 + $0xb8] sm:$0xff] %v739_v61 }
  0xf0   : > { %756 = vst [vmem:[%s1351_s22 + $0x40] sm:$0xff] %v724_v62  ;;  %v607_v0 = vpop.f32.mrf.mxu2 }
  0xf1   : > { %v608_v1 = vadd.f32 %v1343_v45, %v607_v0  ;;  %v569_v2 = vpop.f32.mrf.mxu0 }
  0xf2   : > { %v570_v3 = vadd.f32 %v1343_v45, %v569_v2  ;;  %v666_v4 = vpop.f32.mrf.mxu1 }
  0xf3   : > { %v697_v5 = vadd.f32 %v696_v49, %v608_v1  ;;  %v708_v53 = vpop.f32.mrf.mxu3 }
  0xf4   : > { %v659_v6 = vadd.f32 %v658_v35, %v570_v3 }
  0xf5   : > { %v740_v7 = vmax.f32 %v697_v5, 0.0 }
  0xf6   : > { %v725_v8 = vmax.f32 %v659_v6, 0.0 }
  0xf7   : > { %772 = vst [vmem:[%s1351_s22 + $0xc0] sm:$0xff] %v740_v7 }
  0xf8   : > { %757 = vst [vmem:[%s1351_s22 + $0x48] sm:$0xff] %v725_v8  ;;  %v609_v9 = vpop.f32.mrf.mxu2 }
  0xf9   : > { %v610_v11 = vadd.f32 %v1343_v45, %v609_v9  ;;  %v572_v12 = vpop.f32.mrf.mxu0 }
  0xfa   : > { %v573_v13 = vadd.f32 %v1343_v45, %v572_v12  ;;  %v668_v14 = vpop.f32.mrf.mxu1 }
  0xfb   : > { %v699_v15 = vadd.f32 %v698_v63, %v610_v11  ;;  %v711_v2 = vpop.f32.mrf.mxu3 }
  0xfc   : > { %v662_v16 = vadd.f32 %v661_v46, %v573_v13 }
  0xfd   : > { %v741_v17 = vmax.f32 %v699_v15, 0.0 }
  0xfe   : > { %v726_v18 = vmax.f32 %v662_v16, 0.0 }
  0xff   : > { %773 = vst [vmem:[%s1351_s22 + $0xc8] sm:$0xff] %v741_v17 }
 0x100   : > { %758 = vst [vmem:[%s1351_s22 + $0x50] sm:$0xff] %v726_v18  ;;  %v612_v19 = vpop.f32.mrf.mxu2 }
 0x101   : > { %v613_v20 = vadd.f32 %v1343_v45, %v612_v19  ;;  %v574_v21 = vpop.f32.mrf.mxu0 }
 0x102   : > { %v575_v22 = vadd.f32 %v1343_v45, %v574_v21  ;;  %v671_v23 = vpop.f32.mrf.mxu1 }
 0x103   : > { %v702_v25 = vadd.f32 %v701_v10, %v613_v20  ;;  %v713_v12 = vpop.f32.mrf.mxu3 }
 0x104   : > { %v664_v26 = vadd.f32 %v663_v57, %v575_v22 }
 0x105   : > { %v742_v27 = vmax.f32 %v702_v25, 0.0 }
 0x106   : > { %v727_v28 = vmax.f32 %v664_v26, 0.0 }
 0x107   : > { %774 = vst [vmem:[%s1351_s22 + $0xd0] sm:$0xff] %v742_v27 }
 0x108   : > { %759 = vst [vmem:[%s1351_s22 + $0x58] sm:$0xff] %v727_v28  ;;  %v614_v29 = vpop.f32.mrf.mxu2 }
 0x109   : > { %v615_v30 = vadd.f32 %v1343_v45, %v614_v29  ;;  %v577_v31 = vpop.f32.mrf.mxu0 }
 0x10a   : > { %v578_v32 = vadd.f32 %v1343_v45, %v577_v31  ;;  %v673_v33 = vpop.f32.mrf.mxu1 }
 0x10b   : > { %v704_v34 = vadd.f32 %v703_v24, %v615_v30 }
 0x10c   : > { %v667_v35 = vadd.f32 %v666_v4, %v578_v32 }
 0x10d   : > { %v743_v37 = vmax.f32 %v704_v34, 0.0 }
 0x10e   : > { %v728_v38 = vmax.f32 %v667_v35, 0.0 }
 0x10f   : > { %775 = vst [vmem:[%s1351_s22 + $0xd8] sm:$0xff] %v743_v37 }
 0x110   : > { %760 = vst [vmem:[%s1351_s22 + $0x60] sm:$0xff] %v728_v38  ;;  %v617_v39 = vpop.f32.mrf.mxu2 }
 0x111   : > { %v618_v41 = vadd.f32 %v1343_v45, %v617_v39  ;;  %v579_v42 = vpop.f32.mrf.mxu0 }
 0x112   : > { %v580_v43 = vadd.f32 %v1343_v45, %v579_v42  ;;  %v676_v44 = vpop.f32.mrf.mxu1 }
 0x113   : > { %v707_v46 = vadd.f32 %v706_v36, %v618_v41  ;;  %v677_v47 = vadd.f32 %v676_v44, %v588_v40 }
 0x114   : > { %v669_v48 = vadd.f32 %v668_v14, %v580_v43 }
 0x115   : > { %v744_v49 = vmax.f32 %v707_v46, 0.0  ;;  %v732_v50 = vmax.f32 %v677_v47, 0.0 }
 0x116   : > { %v729_v51 = vmax.f32 %v669_v48, 0.0 }
 0x117   : > { %776 = vst [vmem:[%s1351_s22 + $0xe0] sm:$0xff] %v744_v49 }
 0x118   : > { %761 = vst [vmem:[%s1351_s22 + $0x68] sm:$0xff] %v729_v51  ;;  %v619_v54 = vpop.f32.mrf.mxu2 }
 0x119   : > { %764 = vst [vmem:[%s1351_s22 + $0x80] sm:$0xff] %v732_v50  ;;  %v620_v55 = vadd.f32 %v1343_v45, %v619_v54  ;;  %v582_v56 = vpop.f32.mrf.mxu0 }
 0x11a   : > { %v583_v57 = vadd.f32 %v1343_v45, %v582_v56  ;;  %v678_v58 = vpop.f32.mrf.mxu1 }
 0x11b   : > { %v709_v60 = vadd.f32 %v708_v53, %v620_v55  ;;  %v679_v61 = vadd.f32 %v678_v58, %v590_v52 }
 0x11c   : > { %v672_v62 = vadd.f32 %v671_v23, %v583_v57 }
 0x11d   : > { %v745_v63 = vmax.f32 %v709_v60, 0.0  ;;  %v733_v0 = vmax.f32 %v679_v61, 0.0 }
 0x11e   : > { %v730_v1 = vmax.f32 %v672_v62, 0.0 }
 0x11f   : > { %777 = vst [vmem:[%s1351_s22 + $0xe8] sm:$0xff] %v745_v63 }
 0x120   : > { %762 = vst [vmem:[%s1351_s22 + $0x70] sm:$0xff] %v730_v1  ;;  %v622_v59 = vpop.f32.mrf.mxu2 }
 0x121   : > { %765 = vst [vmem:[%s1351_s22 + $0x88] sm:$0xff] %v733_v0  ;;  %v623_v3 = vadd.f32 %v1343_v45, %v622_v59  ;;  %v584_v4 = vpop.f32.mrf.mxu0 }
 0x122   : > { %v585_v5 = vadd.f32 %v1343_v45, %v584_v4 }
 0x123   : > { %v712_v6 = vadd.f32 %v711_v2, %v623_v3 }
 0x124   : > { %v674_v7 = vadd.f32 %v673_v33, %v585_v5 }
 0x125   : > { %v746_v8 = vmax.f32 %v712_v6, 0.0 }
 0x126   : > { %v731_v9 = vmax.f32 %v674_v7, 0.0 }
 0x127   : > { %778 = vst [vmem:[%s1351_s22 + $0xf0] sm:$0xff] %v746_v8 }
 0x128   : > { %763 = vst [vmem:[%s1351_s22 + $0x78] sm:$0xff] %v731_v9  ;;  %v624_v10 = vpop.f32.mrf.mxu2 }
 0x129   : > { %v625_v11 = vadd.f32 %v1343_v45, %v624_v10 }
 0x12b   : > { %v714_v13 = vadd.f32 %v713_v12, %v625_v11 }
 0x12d   : > { %v747_v14 = vmax.f32 %v714_v13, 0.0 }
 0x12f   : > { %779 = vst [vmem:[%s1351_s22 + $0xf8] sm:$0xff] %v747_v14 }
 0x130 PF: > { %s13_s14 = sadd.s32 1, %s1180_s14   ;;  %s1435_s12 = smov %s1176_s13 }
 0x131   : > { %p10_p5 = scmp.ge.s32.totalorder %s13_s14, 4   ;;  %s1436_s13 = smov %s1438_s15 }
 0x133   :  { %12 = sbr.rel (!%p10_p5) target bundleno = 2 (0x2), region = 68 }

// kernel: generator_forward.8
= control target key start
LH: loop header
LB: loop body
LE: loop exit
PB: predicated region body
PF: predicated region fallthrough
CT: control target
= control target key end

     0   :  { %vm555_vm0 = vcmask 523264   ;;  %s1755_s1 = inlined_call_operand.vmem [shape: bf16[576,128], index: 1, kind: input, shape index: {}]   ;;  %s1756_s2 = inlined_call_operand.vmem [shape: f32[1,128], index: 2, kind: input, shape index: {}]   ;;  %s1757_s0 = inlined_call_operand.vmem [shape: bf16[128,576], index: 0, kind: input, shape index: {}]   ;;  %s1758_s3 = inlined_call_operand.vmem [shape: f32[128,128], index: 3, kind: output, shape index: {}]  }
   0x1   :  { %v1220_v0 = vld [vmem:[%s1755_s1 + $0x38] sm:$0xff]  ;;  %v1219_v1 = vld [vmem:[%s1755_s1 + $0x30] sm:$0xff]  ;;  %v1218_v2 = vld [vmem:[%s1755_s1 + $0x28] sm:$0xff] }
   0x2   :  { %1249 = vmatpush.bf16.msra.mxu1 %v1220_v0  ;;  %1250 = vmatpush.bf16.msra.mxu2 %v1220_v0  ;;  %v1217_v3 = vld [vmem:[%s1755_s1 + $0x20] sm:$0xff]  ;;  %v1216_v4 = vld [vmem:[%s1755_s1 + $0x18] sm:$0xff]  ;;  %v1215_v5 = vld [vmem:[%s1755_s1 + $0x10] sm:$0xff] }
   0x3   :  { %1251 = vmatpush.bf16.msra.mxu3 %v1220_v0  ;;  %580 = vmatpush.bf16.msra.mxu0 %v1220_v0  ;;  %v1214_v6 = vld [vmem:[%s1755_s1 + $0x8] sm:$0xff]  ;;  %v1213_v7 = vld [vmem:[%s1755_s1] sm:$0xff]  ;;  %v903_v8 = vld [vmem:[%s1757_s0 + $0x50] sm:$0xf] }
   0x4   :  { %v1185_v9 = vld [vmem:[%s1757_s0 + $0x60] sm:$0xf0]  ;;  %v943_v10 = vld [vmem:[%s1757_s0 + $0xa0] sm:$0xf]  ;;  %v1195_v11 = vld [vmem:[%s1757_s0 + $0xb0] sm:$0xf0] }
   0x5   :  { %v983_v12 = vld [vmem:[%s1757_s0 + $0xf0] sm:$0xf]  ;;  %v1205_v13 = vld [vmem:[%s1757_s0 + $0x100] sm:$0xf0]  ;;  %v863_v14 = vld [vmem:[%s1757_s0] sm:$0xf]  ;;  %v904_v18 = vor.u32 %v1185_v9, %v903_v8  ;;  %v944_v19 = vor.u32 %v1195_v11, %v943_v10 }
   0x6   :  { %1252 = vmatpush.bf16.msra.mxu1 %v1219_v1  ;;  %1253 = vmatpush.bf16.msra.mxu2 %v1219_v1  ;;  %v1175_v15 = vld [vmem:[%s1757_s0 + $0x10] sm:$0xf0]  ;;  %v1236_v16 = vld [vmem:[%s1755_s1 + $0xb8] sm:$0xff]  ;;  %v984_v20 = vor.u32 %v1205_v13, %v983_v12  ;;  %v1234_v28 = vld [vmem:[%s1755_s1 + $0xa8] sm:$0xff] }
   0x7   :  { %1254 = vmatpush.bf16.msra.mxu3 %v1219_v1  ;;  %581 = vmatpush.bf16.msra.mxu0 %v1219_v1  ;;  %v1228_v17 = vld [vmem:[%s1755_s1 + $0x78] sm:$0xff]  ;;  %v864_v21 = vor.u32 %v1175_v15, %v863_v14  ;;  %v1235_v24 = vld [vmem:[%s1755_s1 + $0xb0] sm:$0xff]  ;;  %v1226_v29 = vld [vmem:[%s1755_s1 + $0x68] sm:$0xff] }
   0x8   :  { %v1244_v22 = vld [vmem:[%s1755_s1 + $0xf8] sm:$0xff]  ;;  %v1227_v25 = vld [vmem:[%s1755_s1 + $0x70] sm:$0xff]  ;;  %v1242_v30 = vld [vmem:[%s1755_s1 + $0xe8] sm:$0xff] }
   0x9   :  { %v1248_v23 = vld [vmem:[%s1755_s1 + $0x118] sm:$0xff]  ;;  %v1243_v26 = vld [vmem:[%s1755_s1 + $0xf0] sm:$0xff]  ;;  %v1246_v31 = vld [vmem:[%s1755_s1 + $0x108] sm:$0xff] }
   0xa   :  { %1255 = vmatpush.bf16.msra.mxu1 %v1218_v2  ;;  %1256 = vmatpush.bf16.msra.mxu2 %v1218_v2  ;;  %v1247_v27 = vld [vmem:[%s1755_s1 + $0x110] sm:$0xff]  ;;  %v1233_v32 = vld [vmem:[%s1755_s1 + $0xa0] sm:$0xff]  ;;  %v923_v35 = vld [vmem:[%s1757_s0 + $0x78] sm:$0xf] }
   0xb   :  { %1257 = vmatpush.bf16.msra.mxu3 %v1218_v2  ;;  %582 = vmatpush.bf16.msra.mxu0 %v1218_v2  ;;  %v1225_v33 = vld [vmem:[%s1755_s1 + $0x60] sm:$0xff]  ;;  %v1190_v36 = vld [vmem:[%s1757_s0 + $0x88] sm:$0xf0]  ;;  %v963_v37 = vld [vmem:[%s1757_s0 + $0xc8] sm:$0xf] }
   0xc   :  { %v1241_v34 = vld [vmem:[%s1755_s1 + $0xe0] sm:$0xff]  ;;  %v1200_v38 = vld [vmem:[%s1757_s0 + $0xd8] sm:$0xf0]  ;;  %v1003_v39 = vld [vmem:[%s1757_s0 + $0x118] sm:$0xf]  ;;  %v924_v46 = vor.u32 %v1190_v36, %v923_v35 }
   0xd   :  { %v1210_v40 = vld [vmem:[%s1757_s0 + $0x128] sm:$0xf0]  ;;  %v883_v41 = vld [vmem:[%s1757_s0 + $0x28] sm:$0xf]  ;;  %v1180_v42 = vld [vmem:[%s1757_s0 + $0x38] sm:$0xf0]  ;;  %v964_v47 = vor.u32 %v1200_v38, %v963_v37 }
   0xe   :  { %1258 = vmatpush.bf16.msra.mxu1 %v1217_v3  ;;  %1259 = vmatpush.bf16.msra.mxu2 %v1217_v3  ;;  %v1245_v43 = vld [vmem:[%s1755_s1 + $0x100] sm:$0xff]  ;;  %v1232_v44 = vld [vmem:[%s1755_s1 + $0x98] sm:$0xff]  ;;  %v1004_v48 = vor.u32 %v1210_v40, %v1003_v39  ;;  %v884_v49 = vor.u32 %v1180_v42, %v883_v41  ;;  %v1231_v51 = vld [vmem:[%s1755_s1 + $0x90] sm:$0xff] }
   0xf   :  { %1260 = vmatpush.bf16.msra.mxu3 %v1217_v3  ;;  %583 = vmatpush.bf16.msra.mxu0 %v1217_v3  ;;  %v1224_v45 = vld [vmem:[%s1755_s1 + $0x58] sm:$0xff]  ;;  %v1223_v52 = vld [vmem:[%s1755_s1 + $0x50] sm:$0xff]  ;;  %v1230_v54 = vld [vmem:[%s1755_s1 + $0x88] sm:$0xff] }
  0x10   :  { %v1240_v50 = vld [vmem:[%s1755_s1 + $0xd8] sm:$0xff]  ;;  %v1239_v53 = vld [vmem:[%s1755_s1 + $0xd0] sm:$0xff]  ;;  %v1222_v55 = vld [vmem:[%s1755_s1 + $0x48] sm:$0xff] }
  0x11   :  { %v1238_v56 = vld [vmem:[%s1755_s1 + $0xc8] sm:$0xff]  ;;  %v1229_v57 = vld [vmem:[%s1755_s1 + $0x80] sm:$0xff]  ;;  %v865_v61 = vld [vmem:[%s1757_s0 + $0x14] sm:$0xf0] }
  0x12   :  { %1261 = vmatpush.bf16.msra.mxu1 %v1216_v4  ;;  %1262 = vmatpush.bf16.msra.mxu2 %v1216_v4  ;;  %v1221_v58 = vld [vmem:[%s1755_s1 + $0x40] sm:$0xff]  ;;  %v871_v62 = vld [vmem:[%s1757_s0 + $0x8] sm:$0xf]  ;;  %v1176_v63 = vld [vmem:[%s1757_s0 + $0x18] sm:$0xf0] }
  0x13   :  { %1263 = vmatpush.bf16.msra.mxu3 %v1216_v4  ;;  %584 = vmatpush.bf16.msra.mxu0 %v1216_v4  ;;  %v1237_v59 = vld [vmem:[%s1755_s1 + $0xc0] sm:$0xff]  ;;  %v1174_v0 = vld [vmem:[%s1757_s0 + $0xc] sm:$0xf]  ;;  %v879_v2 = vld [vmem:[%s1757_s0 + $0x10] sm:$0xf] }
  0x14   :  { %v1173_v60 = vld [vmem:[%s1757_s0 + $0x4] sm:$0xf]  ;;  %v873_v1 = vld [vmem:[%s1757_s0 + $0x1c] sm:$0xf0]  ;;  %v1178_v8 = vld [vmem:[%s1757_s0 + $0x2c] sm:$0xf] }
  0x15   :  { %v1177_v3 = vld [vmem:[%s1757_s0 + $0x20] sm:$0xf0]  ;;  %v868_v4 = vor.u32 %v1173_v60, %v865_v61  ;;  %v885_v9 = vld [vmem:[%s1757_s0 + $0x3c] sm:$0xf0]  ;;  %v891_v10 = vld [vmem:[%s1757_s0 + $0x30] sm:$0xf] }
  0x16   :  { %1264 = vmatpush.bf16.msra.mxu1 %v1215_v5  ;;  %1265 = vmatpush.bf16.msra.mxu2 %v1215_v5  ;;  %v1181_v11 = vld [vmem:[%s1757_s0 + $0x40] sm:$0xf0]  ;;  %v1179_v12 = vld [vmem:[%s1757_s0 + $0x34] sm:$0xf]  ;;  %v893_v13 = vld [vmem:[%s1757_s0 + $0x44] sm:$0xf0] }
  0x17   :  { %1266 = vmatpush.bf16.msra.mxu3 %v1215_v5  ;;  %585 = vmatpush.bf16.msra.mxu0 %v1215_v5  ;;  %v872_v5 = vor.u32 %v1176_v63, %v871_v62  ;;  %v899_v14 = vld [vmem:[%s1757_s0 + $0x38] sm:$0xf]  ;;  %v1182_v15 = vld [vmem:[%s1757_s0 + $0x48] sm:$0xf0]  ;;  %v1191_v35 = vld [vmem:[%s1757_s0 + $0x90] sm:$0xf0] }
  0x18   :  { %v1189_v36 = vld [vmem:[%s1757_s0 + $0x84] sm:$0xf]  ;;  %v933_v37 = vld [vmem:[%s1757_s0 + $0x94] sm:$0xf0]  ;;  %v939_v38 = vld [vmem:[%s1757_s0 + $0x88] sm:$0xf] }
  0x19   :  { %v1192_v39 = vld [vmem:[%s1757_s0 + $0x98] sm:$0xf0]  ;;  %v936_v42 = vor.u32 %v1189_v36, %v933_v37  ;;  %v1199_v60 = vld [vmem:[%s1757_s0 + $0xd4] sm:$0xf]  ;;  %v973_v61 = vld [vmem:[%s1757_s0 + $0xe4] sm:$0xf0] }
  0x1a   :  { %1267 = vmatpush.bf16.msra.mxu1 %v1214_v6  ;;  %1268 = vmatpush.bf16.msra.mxu2 %v1214_v6  ;;  %v979_v62 = vld [vmem:[%s1757_s0 + $0xd8] sm:$0xf]  ;;  %v1202_v63 = vld [vmem:[%s1757_s0 + $0xe8] sm:$0xf0] }
  0x1b   :  { %1269 = vmatpush.bf16.msra.mxu3 %v1214_v6  ;;  %586 = vmatpush.bf16.msra.mxu0 %v1214_v6  ;;  %v876_v6 = vor.u32 %v1174_v0, %v873_v1 }
  0x1e   :  { %1270 = vmatpush.bf16.msra.mxu1 %v1213_v7  ;;  %1271 = vmatpush.bf16.msra.mxu2 %v1213_v7 }
  0x1f   :  { %1272 = vmatpush.bf16.msra.mxu3 %v1213_v7  ;;  %587 = vmatpush.bf16.msra.mxu0 %v1213_v7  ;;  %v880_v7 = vor.u32 %v1177_v3, %v879_v2  ;;  %v976_v2 = vor.u32 %v1199_v60, %v973_v61  ;;  %v980_v3 = vor.u32 %v1202_v63, %v979_v62 }
  0x21   :  { %598 = vmatmul.bf16.vlgmr.msra.gmra.mxu1 %v904_v18  ;;  %608 = vmatmul.bf16.vlgmr.msra.gmra.mxu2 %v944_v19  ;;  %v896_v18 = vor.u32 %v1179_v12, %v893_v13  ;;  %v900_v19 = vor.u32 %v1182_v15, %v899_v14 }
  0x22   :  { %678 = vmatpush.bf16.msrb.mxu2 %v1236_v16  ;;  %629 = vmatpush.bf16.msrb.mxu1 %v1228_v17  ;;  %v888_v16 = vor.u32 %v1178_v8, %v885_v9  ;;  %v892_v17 = vor.u32 %v1181_v11, %v891_v10  ;;  %v1204_v8 = vld [vmem:[%s1757_s0 + $0xfc] sm:$0xf]  ;;  %v993_v9 = vld [vmem:[%s1757_s0 + $0x10c] sm:$0xf0]  ;;  %v999_v10 = vld [vmem:[%s1757_s0 + $0x100] sm:$0xf] }
  0x23   :  { %618 = vmatmul.bf16.vlgmr.msra.gmra.mxu3 %v984_v20  ;;  %588 = vmatmul.bf16.vlgmr.msra.gmra.mxu0 %v864_v21  ;;  %v1183_v20 = vld [vmem:[%s1757_s0 + $0x54] sm:$0xf]  ;;  %v905_v21 = vld [vmem:[%s1757_s0 + $0x64] sm:$0xf0]  ;;  %v996_v15 = vor.u32 %v1204_v8, %v993_v9 }
  0x24   :  { %727 = vmatpush.bf16.msrb.mxu3 %v1244_v22  ;;  %780 = vmatpush.bf16.msrb.mxu0 %v1248_v23  ;;  %v911_v22 = vld [vmem:[%s1757_s0 + $0x58] sm:$0xf]  ;;  %v1186_v23 = vld [vmem:[%s1757_s0 + $0x68] sm:$0xf0]  ;;  %v1207_v11 = vld [vmem:[%s1757_s0 + $0x110] sm:$0xf0] }
  0x26   :  { %679 = vmatpush.bf16.msrb.mxu2 %v1235_v24  ;;  %630 = vmatpush.bf16.msrb.mxu1 %v1227_v25  ;;  %v1184_v24 = vld [vmem:[%s1757_s0 + $0x5c] sm:$0xf]  ;;  %v913_v25 = vld [vmem:[%s1757_s0 + $0x6c] sm:$0xf0] }
  0x28   :  { %728 = vmatpush.bf16.msrb.mxu3 %v1243_v26  ;;  %781 = vmatpush.bf16.msrb.mxu0 %v1247_v27  ;;  %v919_v26 = vld [vmem:[%s1757_s0 + $0x60] sm:$0xf]  ;;  %v1187_v27 = vld [vmem:[%s1757_s0 + $0x70] sm:$0xf0] }
  0x2a   :  { %680 = vmatpush.bf16.msrb.mxu2 %v1234_v28  ;;  %631 = vmatpush.bf16.msrb.mxu1 %v1226_v29  ;;  %v908_v28 = vor.u32 %v1183_v20, %v905_v21  ;;  %v912_v29 = vor.u32 %v1186_v23, %v911_v22 }
  0x2c   :  { %729 = vmatpush.bf16.msrb.mxu3 %v1242_v30  ;;  %782 = vmatpush.bf16.msrb.mxu0 %v1246_v31  ;;  %v916_v30 = vor.u32 %v1184_v24, %v913_v25  ;;  %v920_v31 = vor.u32 %v1187_v27, %v919_v26  ;;  %v1208_v25 = vld [vmem:[%s1757_s0 + $0x11c] sm:$0xf]  ;;  %v1005_v26 = vld [vmem:[%s1757_s0 + $0x12c] sm:$0xf0]  ;;  %v1011_v27 = vld [vmem:[%s1757_s0 + $0x120] sm:$0xf] }
  0x2d   :  { %v1008_v36 = vor.u32 %v1208_v25, %v1005_v26 }
  0x2e   :  { %681 = vmatpush.bf16.msrb.mxu2 %v1233_v32  ;;  %632 = vmatpush.bf16.msrb.mxu1 %v1225_v33  ;;  %v1188_v32 = vld [vmem:[%s1757_s0 + $0x7c] sm:$0xf]  ;;  %v925_v33 = vld [vmem:[%s1757_s0 + $0x8c] sm:$0xf0] }
  0x2f   :  { %v928_v40 = vor.u32 %v1188_v32, %v925_v33  ;;  %v1212_v32 = vld [vmem:[%s1757_s0 + $0x138] sm:$0xf0] }
  0x30   :  { %730 = vmatpush.bf16.msrb.mxu3 %v1241_v34  ;;  %783 = vmatpush.bf16.msrb.mxu0 %v1245_v43  ;;  %v931_v34 = vld [vmem:[%s1757_s0 + $0x80] sm:$0xf]  ;;  %v940_v43 = vor.u32 %v1192_v39, %v939_v38 }
  0x31   :  { %603 = vmatmul.bf16.gmra.mxu1 %v924_v46  ;;  %613 = vmatmul.bf16.gmra.mxu2 %v964_v47  ;;  %v932_v41 = vor.u32 %v1191_v35, %v931_v34  ;;  %v951_v46 = vld [vmem:[%s1757_s0 + $0xa8] sm:$0xf]  ;;  %v1196_v47 = vld [vmem:[%s1757_s0 + $0xb8] sm:$0xf0] }
  0x32   :  { %682 = vmatpush.bf16.msrb.mxu2 %v1232_v44  ;;  %633 = vmatpush.bf16.msrb.mxu1 %v1224_v45  ;;  %v1193_v44 = vld [vmem:[%s1757_s0 + $0xa4] sm:$0xf]  ;;  %v945_v45 = vld [vmem:[%s1757_s0 + $0xb4] sm:$0xf0] }
  0x33   :  { %623 = vmatmul.bf16.gmra.mxu3 %v1004_v48  ;;  %593 = vmatmul.bf16.gmra.mxu0 %v884_v49  ;;  %v1194_v48 = vld [vmem:[%s1757_s0 + $0xac] sm:$0xf]  ;;  %v953_v49 = vld [vmem:[%s1757_s0 + $0xbc] sm:$0xf0] }
  0x34   :  { %731 = vmatpush.bf16.msrb.mxu3 %v1240_v50  ;;  %v959_v50 = vld [vmem:[%s1757_s0 + $0xb0] sm:$0xf] }
  0x36   :  { %683 = vmatpush.bf16.msrb.mxu2 %v1231_v51  ;;  %634 = vmatpush.bf16.msrb.mxu1 %v1223_v52  ;;  %v1197_v51 = vld [vmem:[%s1757_s0 + $0xc0] sm:$0xf0]  ;;  %v948_v52 = vor.u32 %v1193_v44, %v945_v45 }
  0x38   :  { %732 = vmatpush.bf16.msrb.mxu3 %v1239_v53  ;;  %v952_v53 = vor.u32 %v1196_v47, %v951_v46 }
  0x3a   :  { %684 = vmatpush.bf16.msrb.mxu2 %v1230_v54  ;;  %635 = vmatpush.bf16.msrb.mxu1 %v1222_v55  ;;  %v956_v54 = vor.u32 %v1194_v48, %v953_v49  ;;  %v960_v55 = vor.u32 %v1197_v51, %v959_v50 }
  0x3c   :  { %733 = vmatpush.bf16.msrb.mxu3 %v1238_v56  ;;  %v1198_v56 = vld [vmem:[%s1757_s0 + $0xcc] sm:$0xf] }
  0x3e   :  { %685 = vmatpush.bf16.msrb.mxu2 %v1229_v57  ;;  %636 = vmatpush.bf16.msrb.mxu1 %v1221_v58  ;;  %v965_v57 = vld [vmem:[%s1757_s0 + $0xdc] sm:$0xf0]  ;;  %v971_v58 = vld [vmem:[%s1757_s0 + $0xd0] sm:$0xf] }
  0x3f   :  { %v968_v0 = vor.u32 %v1198_v56, %v965_v57 }
  0x40   :  { %734 = vmatpush.bf16.msrb.mxu3 %v1237_v59  ;;  %v1201_v59 = vld [vmem:[%s1757_s0 + $0xe0] sm:$0xf0] }
  0x41   :  { %637 = vmatmul.bf16.vlgmr.msrb.gmra.mxu1 %v868_v4  ;;  %686 = vmatmul.bf16.vlgmr.msrb.gmra.mxu2 %v872_v5  ;;  %v972_v1 = vor.u32 %v1201_v59, %v971_v58  ;;  %v1203_v4 = vld [vmem:[%s1757_s0 + $0xf4] sm:$0xf]  ;;  %v985_v5 = vld [vmem:[%s1757_s0 + $0x104] sm:$0xf0] }
  0x42   :  { %v988_v12 = vor.u32 %v1203_v4, %v985_v5 }
  0x43   :  { %735 = vmatmul.bf16.vlgmr.msrb.gmra.mxu3 %v876_v6  ;;  %1165 = vmatmul.msk.bf16.vlgmr.msrb.gmra.mxu0 %vm555_vm0, %v880_v7  ;;  %v991_v6 = vld [vmem:[%s1757_s0 + $0xf8] sm:$0xf]  ;;  %v1206_v7 = vld [vmem:[%s1757_s0 + $0x108] sm:$0xf0] }
  0x44   :  { %v992_v13 = vor.u32 %v1206_v7, %v991_v6 }
  0x51   :  { %642 = vmatmul.bf16.gmra.mxu1 %v888_v16  ;;  %691 = vmatmul.bf16.gmra.mxu2 %v892_v17  ;;  %v1000_v16 = vor.u32 %v1207_v11, %v999_v10 }
  0x53   :  { %740 = vmatmul.bf16.gmra.mxu3 %v896_v18  ;;  %1166 = vmatmul.msk.bf16.gmra.mxu0 %vm555_vm0, %v900_v19  ;;  %v1630_v18 = vld [vmem:[%s1756_s2] ss:$0 sm:$0xff] }
  0x61   :  { %647 = vmatmul.bf16.gmra.mxu1 %v908_v28  ;;  %696 = vmatmul.bf16.gmra.mxu2 %v912_v29  ;;  %v1211_v28 = vld [vmem:[%s1757_s0 + $0x130] sm:$0xf0]  ;;  %v1209_v29 = vld [vmem:[%s1757_s0 + $0x124] sm:$0xf] }
  0x62   :  { %v1012_v37 = vor.u32 %v1211_v28, %v1011_v27 }
  0x63   :  { %745 = vmatmul.bf16.gmra.mxu3 %v916_v30  ;;  %1167 = vmatmul.msk.bf16.gmra.mxu0 %vm555_vm0, %v920_v31  ;;  %v1013_v30 = vld [vmem:[%s1757_s0 + $0x134] sm:$0xf0]  ;;  %v1019_v31 = vld [vmem:[%s1757_s0 + $0x128] sm:$0xf] }
  0x71   :  { %652 = vmatmul.bf16.gmra.mxu1 %v928_v40  ;;  %701 = vmatmul.bf16.gmra.mxu2 %v932_v41  ;;  %v1016_v40 = vor.u32 %v1209_v29, %v1013_v30  ;;  %v1020_v41 = vor.u32 %v1212_v32, %v1019_v31 }
  0x73   :  { %750 = vmatmul.bf16.gmra.mxu3 %v936_v42  ;;  %1168 = vmatmul.msk.bf16.gmra.mxu0 %vm555_vm0, %v940_v43 }
  0x81   :  { %657 = vmatmul.bf16.gmra.mxu1 %v948_v52  ;;  %706 = vmatmul.bf16.gmra.mxu2 %v952_v53 }
  0x83   :  { %755 = vmatmul.bf16.gmra.mxu3 %v956_v54  ;;  %1169 = vmatmul.msk.bf16.gmra.mxu0 %vm555_vm0, %v960_v55 }
  0x91   :  { %662 = vmatmul.bf16.gmra.mxu1 %v968_v0  ;;  %711 = vmatmul.bf16.gmra.mxu2 %v972_v1 }
  0x93   :  { %760 = vmatmul.bf16.gmra.mxu3 %v976_v2  ;;  %1170 = vmatmul.msk.bf16.gmra.mxu0 %vm555_vm0, %v980_v3 }
  0x9e   :  { %v1624_v14 = vpop.f32.mrf.mxu1 }
  0xa0   :  { %v589_v17 = vpop.f32.mrf.mxu0 }
  0xa1   :  { %667 = vmatmul.bf16.gmra.mxu1 %v988_v12  ;;  %716 = vmatmul.bf16.gmra.mxu2 %v992_v13  ;;  %v590_v55 = vadd.f32 %v1630_v18, %v589_v17 }
  0xa3   :  { %765 = vmatmul.bf16.gmra.mxu3 %v996_v15  ;;  %1171 = vmatmul.msk.bf16.gmra.mxu0 %vm555_vm0, %v1000_v16 }
  0xa4   :  { %v609_v19 = vpop.f32.mrf.mxu2 }
  0xa5   :  { %v1633_v20 = vadd.f32 %v1630_v18, %v609_v19 }
  0xa6   :  { %v619_v21 = vpop.f32.mrf.mxu3  ;;  %v1638_v23 = vpop.f32.mrf.mxu1 }
  0xa7   :  { %v1636_v22 = vadd.f32 %v1630_v18, %v619_v21 }
  0xa8   :  { %v591_v24 = vpop.f32.mrf.mxu0 }
  0xa9   :  { %v592_v63 = vadd.f32 %v1630_v18, %v591_v24 }
  0xac   :  { %v611_v33 = vpop.f32.mrf.mxu2 }
  0xad   :  { %v1665_v34 = vadd.f32 %v1630_v18, %v611_v33 }
  0xae   :  { %v621_v35 = vpop.f32.mrf.mxu3  ;;  %v1670_v39 = vpop.f32.mrf.mxu1 }
  0xaf   :  { %v1668_v38 = vadd.f32 %v1630_v18, %v621_v35  ;;  %v600_v35 = vadd.f32 %v1630_v18, %v1624_v14 }
  0xb0   :  { %v594_v42 = vpop.f32.mrf.mxu0 }
  0xb1   :  { %672 = vmatmul.bf16.gmra.mxu1 %v1008_v36  ;;  %721 = vmatmul.bf16.gmra.mxu2 %v1012_v37  ;;  %v595_v9 = vadd.f32 %v1630_v18, %v594_v42 }
  0xb3   :  { %770 = vmatmul.bf16.gmra.mxu3 %v1016_v40  ;;  %1172 = vmatmul.msk.bf16.gmra.mxu0 %vm555_vm0, %v1020_v41 }
  0xb4   :  { %v614_v43 = vpop.f32.mrf.mxu2 }
  0xb5   :  { %v1674_v44 = vadd.f32 %v1630_v18, %v614_v43 }
  0xb6   :  { %v624_v45 = vpop.f32.mrf.mxu3  ;;  %v1679_v47 = vpop.f32.mrf.mxu1 }
  0xb7   :  { %v1677_v46 = vadd.f32 %v1630_v18, %v624_v45 }
  0xb8   :  { %v596_v48 = vpop.f32.mrf.mxu0 }
  0xb9   :  { %v597_v24 = vadd.f32 %v1630_v18, %v596_v48 }
  0xbc   :  { %v616_v49 = vpop.f32.mrf.mxu2 }
  0xbd   :  { %v1682_v50 = vadd.f32 %v1630_v18, %v616_v49 }
  0xbe   :  { %v626_v51 = vpop.f32.mrf.mxu3  ;;  %v638_v53 = vpop.f32.mrf.mxu1 }
  0xbf   :  { %v1685_v52 = vadd.f32 %v1630_v18, %v626_v51  ;;  %v639_v56 = vadd.f32 %v638_v53, %v590_v55  ;;  %v602_v51 = vadd.f32 %v1630_v18, %v1638_v23 }
  0xc0   :  { %v785_v54 = vpop.f32.mrf.mxu0 }
  0xc4   :  { %v687_v57 = vpop.f32.mrf.mxu2 }
  0xc5   :  { %v688_v58 = vadd.f32 %v687_v57, %v639_v56 }
  0xc6   :  { %v736_v59 = vpop.f32.mrf.mxu3  ;;  %v640_v60 = vpop.f32.mrf.mxu1 }
  0xc7   :  { %v737_v61 = vadd.f32 %v736_v59, %v688_v58  ;;  %v641_v2 = vadd.f32 %v640_v60, %v592_v63 }
  0xc8   :  { %v787_v62 = vpop.f32.mrf.mxu0 }
  0xc9   :  { %v786_v0 = vadd.f32 %v785_v54, %v737_v61  ;;  %v605_v61 = vadd.f32 %v1630_v18, %v1670_v39 }
  0xcb   :  { %v825_v1 = vmax.f32 %v786_v0, 0.0 }
  0xcc   :  { %v689_v3 = vpop.f32.mrf.mxu2 }
  0xcd   :  { %841 = vst [vmem:[%s1758_s3] sm:$0xff] %v825_v1  ;;  %v690_v4 = vadd.f32 %v689_v3, %v641_v2 }
  0xce   :  { %v738_v5 = vpop.f32.mrf.mxu3  ;;  %v643_v6 = vpop.f32.mrf.mxu1 }
  0xcf   :  { %v739_v7 = vadd.f32 %v738_v5, %v690_v4  ;;  %v644_v12 = vadd.f32 %v643_v6, %v595_v9  ;;  %v607_v6 = vadd.f32 %v1630_v18, %v1679_v47 }
  0xd0   :  { %v790_v8 = vpop.f32.mrf.mxu0 }
  0xd1   :  { %v788_v10 = vadd.f32 %v787_v62, %v739_v7 }
  0xd3   :  { %v826_v11 = vmax.f32 %v788_v10, 0.0 }
  0xd4   :  { %v692_v13 = vpop.f32.mrf.mxu2 }
  0xd5   :  { %842 = vst [vmem:[%s1758_s3 + $0x8] sm:$0xff] %v826_v11  ;;  %v693_v15 = vadd.f32 %v692_v13, %v644_v12 }
  0xd6   :  { %v741_v16 = vpop.f32.mrf.mxu3  ;;  %v645_v17 = vpop.f32.mrf.mxu1 }
  0xd7   :  { %v742_v19 = vadd.f32 %v741_v16, %v693_v15  ;;  %v646_v27 = vadd.f32 %v645_v17, %v597_v24 }
  0xd8   :  { %v792_v21 = vpop.f32.mrf.mxu0 }
  0xd9   :  { %v791_v25 = vadd.f32 %v790_v8, %v742_v19 }
  0xdb   :  { %v827_v26 = vmax.f32 %v791_v25, 0.0 }
  0xdc   :  { %v694_v28 = vpop.f32.mrf.mxu2 }
  0xdd   :  { %843 = vst [vmem:[%s1758_s3 + $0x10] sm:$0xff] %v827_v26  ;;  %v695_v29 = vadd.f32 %v694_v28, %v646_v27 }
  0xde   :  { %v743_v30 = vpop.f32.mrf.mxu3  ;;  %v648_v31 = vpop.f32.mrf.mxu1 }
  0xdf   :  { %v744_v32 = vadd.f32 %v743_v30, %v695_v29  ;;  %v649_v40 = vadd.f32 %v648_v31, %v600_v35 }
  0xe0   :  { %v795_v33 = vpop.f32.mrf.mxu0 }
  0xe1   :  { %v793_v36 = vadd.f32 %v792_v21, %v744_v32 }
  0xe3   :  { %v828_v37 = vmax.f32 %v793_v36, 0.0 }
  0xe4   :  { %v697_v41 = vpop.f32.mrf.mxu2 }
  0xe5   :  { %844 = vst [vmem:[%s1758_s3 + $0x18] sm:$0xff] %v828_v37  ;;  %v698_v42 = vadd.f32 %v697_v41, %v649_v40 }
  0xe6   :  { %v746_v43 = vpop.f32.mrf.mxu3  ;;  %v650_v45 = vpop.f32.mrf.mxu1 }
  0xe7   :  { %v747_v48 = vadd.f32 %v746_v43, %v698_v42  ;;  %v651_v55 = vadd.f32 %v650_v45, %v602_v51 }
  0xe8   :  { %v797_v49 = vpop.f32.mrf.mxu0 }
  0xe9   :  { %v796_v53 = vadd.f32 %v795_v33, %v747_v48 }
  0xeb   :  { %v829_v54 = vmax.f32 %v796_v53, 0.0 }
  0xec   :  { %v699_v14 = vpop.f32.mrf.mxu2 }
  0xed   :  { %845 = vst [vmem:[%s1758_s3 + $0x20] sm:$0xff] %v829_v54  ;;  %v700_v56 = vadd.f32 %v699_v14, %v651_v55 }
  0xee   :  { %v748_v57 = vpop.f32.mrf.mxu3  ;;  %v653_v58 = vpop.f32.mrf.mxu1 }
  0xef   :  { %v749_v59 = vadd.f32 %v748_v57, %v700_v56  ;;  %v654_v0 = vadd.f32 %v653_v58, %v605_v61 }
  0xf0   :  { %v800_v60 = vpop.f32.mrf.mxu0 }
  0xf1   :  { %v798_v62 = vadd.f32 %v797_v49, %v749_v59 }
  0xf3   :  { %v830_v63 = vmax.f32 %v798_v62, 0.0 }
  0xf4   :  { %v702_v23 = vpop.f32.mrf.mxu2 }
  0xf5   :  { %846 = vst [vmem:[%s1758_s3 + $0x28] sm:$0xff] %v830_v63  ;;  %v703_v1 = vadd.f32 %v702_v23, %v654_v0 }
  0xf6   :  { %v751_v2 = vpop.f32.mrf.mxu3  ;;  %v655_v3 = vpop.f32.mrf.mxu1 }
  0xf7   :  { %v752_v4 = vadd.f32 %v751_v2, %v703_v1  ;;  %v656_v9 = vadd.f32 %v655_v3, %v607_v6 }
  0xf8   :  { %v802_v5 = vpop.f32.mrf.mxu0 }
  0xf9   :  { %v801_v7 = vadd.f32 %v800_v60, %v752_v4 }
  0xfb   :  { %v831_v8 = vmax.f32 %v801_v7, 0.0 }
  0xfc   :  { %v704_v39 = vpop.f32.mrf.mxu2 }
  0xfd   :  { %847 = vst [vmem:[%s1758_s3 + $0x30] sm:$0xff] %v831_v8  ;;  %v705_v10 = vadd.f32 %v704_v39, %v656_v9 }
  0xfe   :  { %v753_v11 = vpop.f32.mrf.mxu3  ;;  %v658_v12 = vpop.f32.mrf.mxu1 }
  0xff   :  { %v754_v13 = vadd.f32 %v753_v11, %v705_v10  ;;  %v659_v19 = vadd.f32 %v658_v12, %v1633_v20 }
 0x100   :  { %v805_v15 = vpop.f32.mrf.mxu0 }
 0x101   :  { %v803_v16 = vadd.f32 %v802_v5, %v754_v13 }
 0x103   :  { %v832_v17 = vmax.f32 %v803_v16, 0.0 }
 0x104   :  { %v707_v21 = vpop.f32.mrf.mxu2 }
 0x105   :  { %848 = vst [vmem:[%s1758_s3 + $0x38] sm:$0xff] %v832_v17  ;;  %v708_v18 = vadd.f32 %v707_v21, %v659_v19 }
 0x106   :  { %v756_v47 = vpop.f32.mrf.mxu3  ;;  %v660_v24 = vpop.f32.mrf.mxu1 }
 0x107   :  { %v757_v25 = vadd.f32 %v756_v47, %v708_v18  ;;  %v661_v29 = vadd.f32 %v660_v24, %v1665_v34 }
 0x108   :  { %v807_v26 = vpop.f32.mrf.mxu0 }
 0x109   :  { %v806_v27 = vadd.f32 %v805_v15, %v757_v25 }
 0x10b   :  { %v833_v28 = vmax.f32 %v806_v27, 0.0 }
 0x10c   :  { %v709_v30 = vpop.f32.mrf.mxu2 }
 0x10d   :  { %849 = vst [vmem:[%s1758_s3 + $0x40] sm:$0xff] %v833_v28  ;;  %v710_v20 = vadd.f32 %v709_v30, %v661_v29 }
 0x10e   :  { %v758_v31 = vpop.f32.mrf.mxu3  ;;  %v663_v32 = vpop.f32.mrf.mxu1 }
 0x10f   :  { %v759_v33 = vadd.f32 %v758_v31, %v710_v20  ;;  %v664_v40 = vadd.f32 %v663_v32, %v1674_v44 }
 0x110   :  { %v810_v35 = vpop.f32.mrf.mxu0 }
 0x111   :  { %v808_v36 = vadd.f32 %v807_v26, %v759_v33 }
 0x113   :  { %v834_v37 = vmax.f32 %v808_v36, 0.0 }
 0x114   :  { %v712_v41 = vpop.f32.mrf.mxu2 }
 0x115   :  { %850 = vst [vmem:[%s1758_s3 + $0x48] sm:$0xff] %v834_v37  ;;  %v713_v34 = vadd.f32 %v712_v41, %v664_v40 }
 0x116   :  { %v761_v42 = vpop.f32.mrf.mxu3  ;;  %v665_v43 = vpop.f32.mrf.mxu1 }
 0x117   :  { %v762_v45 = vadd.f32 %v761_v42, %v713_v34  ;;  %v666_v53 = vadd.f32 %v665_v43, %v1682_v50 }
 0x118   :  { %v812_v48 = vpop.f32.mrf.mxu0 }
 0x119   :  { %v811_v49 = vadd.f32 %v810_v35, %v762_v45 }
 0x11b   :  { %v835_v51 = vmax.f32 %v811_v49, 0.0 }
 0x11c   :  { %v714_v54 = vpop.f32.mrf.mxu2 }
 0x11d   :  { %851 = vst [vmem:[%s1758_s3 + $0x50] sm:$0xff] %v835_v51  ;;  %v715_v44 = vadd.f32 %v714_v54, %v666_v53 }
 0x11e   :  { %v763_v55 = vpop.f32.mrf.mxu3  ;;  %v668_v14 = vpop.f32.mrf.mxu1 }
 0x11f   :  { %v764_v56 = vadd.f32 %v763_v55, %v715_v44  ;;  %v669_v60 = vadd.f32 %v668_v14, %v1636_v22 }
 0x120   :  { %v815_v58 = vpop.f32.mrf.mxu0 }
 0x121   :  { %v813_v57 = vadd.f32 %v812_v48, %v764_v56 }
 0x123   :  { %v836_v59 = vmax.f32 %v813_v57, 0.0 }
 0x124   :  { %v717_v61 = vpop.f32.mrf.mxu2 }
 0x125   :  { %852 = vst [vmem:[%s1758_s3 + $0x58] sm:$0xff] %v836_v59  ;;  %v718_v50 = vadd.f32 %v717_v61, %v669_v60 }
 0x126   :  { %v766_v62 = vpop.f32.mrf.mxu3  ;;  %v670_v63 = vpop.f32.mrf.mxu1 }
 0x127   :  { %v767_v0 = vadd.f32 %v766_v62, %v718_v50  ;;  %v671_v2 = vadd.f32 %v670_v63, %v1668_v38 }
 0x128   :  { %v817_v3 = vpop.f32.mrf.mxu0 }
 0x129   :  { %v816_v23 = vadd.f32 %v815_v58, %v767_v0 }
 0x12b   :  { %v837_v1 = vmax.f32 %v816_v23, 0.0 }
 0x12c   :  { %v719_v4 = vpop.f32.mrf.mxu2 }
 0x12d   :  { %853 = vst [vmem:[%s1758_s3 + $0x60] sm:$0xff] %v837_v1  ;;  %v720_v22 = vadd.f32 %v719_v4, %v671_v2 }
 0x12e   :  { %v768_v5 = vpop.f32.mrf.mxu3  ;;  %v673_v6 = vpop.f32.mrf.mxu1 }
 0x12f   :  { %v769_v7 = vadd.f32 %v768_v5, %v720_v22  ;;  %v674_v39 = vadd.f32 %v673_v6, %v1677_v46 }
 0x130   :  { %v820_v12 = vpop.f32.mrf.mxu0 }
 0x131   :  { %v818_v8 = vadd.f32 %v817_v3, %v769_v7 }
 0x133   :  { %v838_v9 = vmax.f32 %v818_v8, 0.0 }
 0x134   :  { %v722_v10 = vpop.f32.mrf.mxu2 }
 0x135   :  { %854 = vst [vmem:[%s1758_s3 + $0x68] sm:$0xff] %v838_v9  ;;  %v723_v38 = vadd.f32 %v722_v10, %v674_v39 }
 0x136   :  { %v771_v11 = vpop.f32.mrf.mxu3  ;;  %v675_v15 = vpop.f32.mrf.mxu1 }
 0x137   :  { %v772_v13 = vadd.f32 %v771_v11, %v723_v38  ;;  %v676_v19 = vadd.f32 %v675_v15, %v1685_v52 }
 0x138   :  { %v822_v24 = vpop.f32.mrf.mxu0 }
 0x139   :  { %v821_v16 = vadd.f32 %v820_v12, %v772_v13 }
 0x13b   :  { %v839_v17 = vmax.f32 %v821_v16, 0.0 }
 0x13c   :  { %v724_v21 = vpop.f32.mrf.mxu2 }
 0x13d   :  { %855 = vst [vmem:[%s1758_s3 + $0x70] sm:$0xff] %v839_v17  ;;  %v725_v46 = vadd.f32 %v724_v21, %v676_v19 }
 0x13e   :  { %v773_v18 = vpop.f32.mrf.mxu3 }
 0x13f   :  { %v774_v47 = vadd.f32 %v773_v18, %v725_v46 }
 0x141   :  { %v823_v25 = vadd.f32 %v822_v24, %v774_v47 }
 0x143   :  { %v840_v26 = vmax.f32 %v823_v25, 0.0 }
 0x145   :  { %856 = vst [vmem:[%s1758_s3 + $0x78] sm:$0xff] %v840_v26 }

// kernel: generator_forward.9
= control target key start
LH: loop header
LB: loop body
LE: loop exit
PB: predicated region body
PF: predicated region fallthrough
CT: control target
= control target key end

     0   :  { %s871_s17 = smov 0   ;;  %s1122_s0 = inlined_call_operand.vmem [shape: f32[2,64,128], index: 0, kind: input, shape index: {}]   ;;  %s1123_s1 = inlined_call_operand.vmem [shape: bf16[128,160], index: 1, kind: input, shape index: {}]   ;;  %s1124_s2 = inlined_call_operand.vmem [shape: f32[1,160], index: 2, kind: input, shape index: {}]   ;;  %s1125_s3 = inlined_call_operand.<no memory space> [shape: f32[1,1], index: 3, kind: input, shape index: {}]   ;;  %s1126_s4 = inlined_call_operand.vmem [shape: f32[2,64,128], index: 4, kind: output, shape index: {}]  }
   0x1   :  { %9 = sst [smem:[#allocation2]] %s1125_s3 }
   0x2 LB: > { %s690_s18 = sadd.s32 4294967295, %s839_s17   ;;  %p694_p0 = scmp.ge.s32.totalorder %s839_s17, 1  ;;  %s839_s17 = sphi %s871_s17, %s15_s17  }
   0x3   : > { %p163_p1 = scmp.lt.s32.totalorder %s839_s17, 3 }
   0x5   : > { %p164_p2 = pnand %p694_p0, %p163_p1 }
   0x6   : > { %p189_p3 = scmp.lt.s32.totalorder (!%p164_p2), %s690_s18, 1  ;;  %s841_s12 = smov (!%p164_p2), 112  }
   0x7   : > { %167 = sbr.rel (%p164_p2) target bundleno = 1003 (0x3eb), region = 36  ;;  %s842_s13 = smov (!%p164_p2), 96  }
   0x8   : > { %s609_s14 = sld [smem:[#allocation2]] (!%p164_p2) }
   0xc   : > { %v757_v0 = vld [vmem:[%s1123_s1 + $0x70] sm:$0xf]  ;;  %v790_v1 = vld [vmem:[%s1123_s1 + $0x74] sm:$0xf0]  ;;  %v749_v2 = vld [vmem:[%s1123_s1 + $0x60] sm:$0xf] }
   0xd   : > { %v758_v3 = vor.u32 %v790_v1, %v757_v0  ;;  %v788_v4 = vld [vmem:[%s1123_s1 + $0x64] sm:$0xf0]  ;;  %v789_v6 = vld [vmem:[%s1123_s1 + $0x74] sm:$0xf]  ;;  %v759_v7 = vld [vmem:[%s1123_s1 + $0x78] sm:$0xf0] }
   0xe   : > { %v750_v5 = vor.u32 %v788_v4, %v749_v2  ;;  %v741_v8 = vld [vmem:[%s1123_s1 + $0x50] sm:$0xf]  ;;  %v786_v9 = vld [vmem:[%s1123_s1 + $0x54] sm:$0xf0]  ;;  %v762_v10 = vor.u32 %v789_v6, %v759_v7  ;;  %v787_v11 = vld [vmem:[%s1123_s1 + $0x64] sm:$0xf] }
   0xf   : > { %314 = vmatpush.bf16.msra.mxu0 %v758_v3  ;;  %v751_v12 = vld [vmem:[%s1123_s1 + $0x68] sm:$0xf0]  ;;  %v742_v14 = vor.u32 %v786_v9, %v741_v8  ;;  %v785_v15 = vld [vmem:[%s1123_s1 + $0x54] sm:$0xf]  ;;  %v743_v16 = vld [vmem:[%s1123_s1 + $0x58] sm:$0xf0] }
  0x10   : > { %343 = vmatpush.bf16.msra.mxu1 %v762_v10  ;;  %v754_v13 = vor.u32 %v787_v11, %v751_v12  ;;  %v733_v17 = vld [vmem:[%s1123_s1 + $0x40] sm:$0xf]  ;;  %v784_v18 = vld [vmem:[%s1123_s1 + $0x44] sm:$0xf0]  ;;  %v746_v19 = vor.u32 %v785_v15, %v743_v16  ;;  %v783_v21 = vld [vmem:[%s1123_s1 + $0x44] sm:$0xf] }
  0x11   : > { %v734_v20 = vor.u32 %v784_v18, %v733_v17  ;;  %v735_v22 = vld [vmem:[%s1123_s1 + $0x48] sm:$0xf0]  ;;  %v725_v23 = vld [vmem:[%s1123_s1 + $0x30] sm:$0xf]  ;;  %v782_v24 = vld [vmem:[%s1123_s1 + $0x34] sm:$0xf0] }
  0x12   : > { %v738_v25 = vor.u32 %v783_v21, %v735_v22  ;;  %v726_v26 = vor.u32 %v782_v24, %v725_v23  ;;  %v781_v27 = vld [vmem:[%s1123_s1 + $0x34] sm:$0xf]  ;;  %v727_v28 = vld [vmem:[%s1123_s1 + $0x38] sm:$0xf0]  ;;  %v717_v29 = vld [vmem:[%s1123_s1 + $0x20] sm:$0xf] }
  0x13   : > { %315 = vmatpush.bf16.msra.mxu0 %v750_v5  ;;  %v780_v30 = vld [vmem:[%s1123_s1 + $0x24] sm:$0xf0]  ;;  %s1128_s18 = smov (!%p189_p3, %s690_s18), 1  ;;  %v730_v31 = vor.u32 %v781_v27, %v727_v28  ;;  %v779_v33 = vld [vmem:[%s1123_s1 + $0x24] sm:$0xf]  ;;  %vm392_vm0 = vcmask 130048  }
  0x14   : > { %344 = vmatpush.bf16.msra.mxu1 %v754_v13  ;;  %v718_v32 = vor.u32 %v780_v30, %v717_v29  ;;  %v719_v34 = vld [vmem:[%s1123_s1 + $0x28] sm:$0xf0]  ;;  %v709_v35 = vld [vmem:[%s1123_s1 + $0x10] sm:$0xf]  ;;  %v778_v36 = vld [vmem:[%s1123_s1 + $0x14] sm:$0xf0] }
  0x15   : > { %s773_s3 = sshll.u32 %s1128_s18, 6  ;;  %v722_v37 = vor.u32 %v779_v33, %v719_v34  ;;  %v710_v38 = vor.u32 %v778_v36, %v709_v35  ;;  %v777_v39 = vld [vmem:[%s1123_s1 + $0x14] sm:$0xf]  ;;  %v711_v40 = vld [vmem:[%s1123_s1 + $0x18] sm:$0xf0]  ;;  %vm559_vm1 = vcmask 785408  }
  0x16   : > { %v701_v41 = vld [vmem:[%s1123_s1] sm:$0xf]  ;;  %v776_v42 = vld [vmem:[%s1123_s1 + $0x4] sm:$0xf0]  ;;  %s193_s5 = scalar_lea.vmem %s1122_s0, %s773_s3  ;;  %v714_v43 = vor.u32 %v777_v39, %v711_v40  ;;  %v775_v44 = vld [vmem:[%s1123_s1 + $0x4] sm:$0xf]  ;;  %s198_s19 = scalar_lea.vmem %s1126_s4, %s773_s3 }
  0x17   : > { %316 = vmatpush.bf16.msra.mxu0 %v742_v14  ;;  %v702_v45 = vor.u32 %v776_v42, %v701_v41  ;;  %v984_v46 = vld [vmem:[%s193_s5] sm:$0xff]  ;;  %v986_v47 = vld [vmem:[%s193_s5 + $0x8] sm:$0xff]  ;;  %v993_v51 = vld [vmem:[%s193_s5 + $0x10] sm:$0xff]  ;;  %vm446_vm2 = vcmask 523264  }
  0x18   : > { %345 = vmatpush.bf16.msra.mxu1 %v746_v19  ;;  %v703_v48 = vld [vmem:[%s1123_s1 + $0x8] sm:$0xf0]  ;;  %v208_v49 = vpack.c.bf16 %v986_v47, %v984_v46  ;;  %v995_v52 = vld [vmem:[%s193_s5 + $0x18] sm:$0xff]  ;;  %v999_v54 = vld [vmem:[%s193_s5 + $0x20] sm:$0xff] }
  0x19   : > { %v706_v50 = vor.u32 %v775_v44, %v703_v48  ;;  %v209_v53 = vpack.c.bf16 %v995_v52, %v993_v51  ;;  %v1001_v55 = vld [vmem:[%s193_s5 + $0x28] sm:$0xff]  ;;  %v1005_v57 = vld [vmem:[%s193_s5 + $0x30] sm:$0xff]  ;;  %v1007_v58 = vld [vmem:[%s193_s5 + $0x38] sm:$0xff] }
  0x1a   : > { %v210_v56 = vpack.c.bf16 %v1001_v55, %v999_v54  ;;  %v211_v59 = vpack.c.bf16 %v1007_v58, %v1005_v57  ;;  %v228_v61 = vld [vmem:[%s1124_s2] sm:$0x3] }
  0x1b   : > { %317 = vmatpush.bf16.msra.mxu0 %v734_v20  ;;  %v231_v62 = vperm.slane %v228_v61, 1  ;;  %v230_v8 = vperm.slane %v228_v61, 0 }
  0x1c   : > { %346 = vmatpush.bf16.msra.mxu1 %v738_v25 }
  0x1f   : > { %318 = vmatpush.bf16.msra.mxu0 %v726_v26 }
  0x20   : > { %347 = vmatpush.bf16.msra.mxu1 %v730_v31 }
  0x23   : > { %319 = vmatpush.bf16.msra.mxu0 %v718_v32 }
  0x24   : > { %348 = vmatpush.bf16.msra.mxu1 %v722_v37 }
  0x27   : > { %320 = vmatpush.bf16.msra.mxu0 %v710_v38 }
  0x28   : > { %349 = vmatpush.bf16.msra.mxu1 %v714_v43 }
  0x2b   : > { %321 = vmatpush.bf16.msra.mxu0 %v702_v45 }
  0x2c   : > { %350 = vmatpush.bf16.msra.mxu1 %v706_v50 }
  0x2e   : > { %322 = vmatmul.bf16.vlgmr.msra.gmra.mxu0 %v208_v49 }
  0x2f   : > { %351 = vmatmul.bf16.vlgmr.msra.gmra.mxu1 %v208_v49 }
  0x3e   : > { %327 = vmatmul.bf16.gmra.mxu0 %v209_v53 }
  0x3f   : > { %356 = vmatmul.bf16.gmra.mxu1 %v209_v53 }
  0x4e   : > { %332 = vmatmul.bf16.gmra.mxu0 %v210_v56 }
  0x4f   : > { %361 = vmatmul.bf16.gmra.mxu1 %v210_v56 }
  0x5e   : > { %337 = vmatmul.bf16.gmra.mxu0 %v211_v59 }
  0x5f   : > { %366 = vmatmul.bf16.gmra.mxu1 %v211_v59 }
  0xab   : > { %v323_v60 = vpop.f32.mrf.mxu0 }
  0xac   : > { %v352_v63 = vpop.f32.mrf.mxu1  ;;  %v324_v18 = vadd.f32 %v323_v60, %v230_v8 }
  0xad   : > { %v1014_v0 = vadd.f32 %v352_v63, %v231_v62 }
  0xb3   : > { %v325_v1 = vpop.f32.mrf.mxu0 }
  0xb4   : > { %v354_v2 = vpop.f32.mrf.mxu1  ;;  %v326_v16 = vadd.f32 %v325_v1, %v230_v8 }
  0xb5   : > { %v1016_v3 = vadd.f32 %v354_v2, %v231_v62 }
  0xb6   : > { %v1029_v19 = vpack.c.bf16 %v326_v16, %v324_v18 }
  0xb7   : > { %v376_v4 = vpack.c.bf16 %v1016_v3, %v1014_v0 }
  0xbb   : > { %v328_v5 = vpop.f32.mrf.mxu0 }
  0xbc   : > { %v357_v6 = vpop.f32.mrf.mxu1  ;;  %v329_v10 = vadd.f32 %v328_v5, %v230_v8 }
  0xbd   : > { %v1020_v7 = vadd.f32 %v357_v6, %v231_v62 }
  0xc3   : > { %v330_v9 = vpop.f32.mrf.mxu0 }
  0xc4   : > { %v331_v11 = vadd.f32 %v330_v9, %v230_v8  ;;  %v359_v13 = vpop.f32.mrf.mxu1 }
  0xc5   : > { %v1024_v14 = vadd.f32 %v359_v13, %v231_v62 }
  0xc6   : > { %v1022_v12 = vpack.c.bf16 %v331_v11, %v329_v10 }
  0xc7   : > { %v377_v15 = vpack.c.bf16 %v1024_v14, %v1020_v7 }
  0xc8   : > { %386 = vrot.lane.b32.xlu1 %v1022_v12, %s841_s12 }
  0xcb   : > { %v333_v17 = vpop.f32.mrf.mxu0 }
  0xcc   : > { %v362_v20 = vpop.f32.mrf.mxu1  ;;  %v334_v23 = vadd.f32 %v333_v17, %v230_v8 }
  0xcd   : > { %v1031_v21 = vadd.f32 %v362_v20, %v231_v62 }
  0xd0   : > { %384 = vrot.lane.b32.xlu1 %v1029_v19, %s841_s12 }
  0xd3   : > { %v335_v22 = vpop.f32.mrf.mxu0 }
  0xd4   : > { %v336_v24 = vadd.f32 %v335_v22, %v230_v8  ;;  %v364_v26 = vpop.f32.mrf.mxu1 }
  0xd5   : > { %v1034_v27 = vadd.f32 %v364_v26, %v231_v62 }
  0xd6   : > { %v374_v25 = vpack.c.bf16 %v336_v24, %v334_v23 }
  0xd7   : > { %v378_v28 = vpack.c.bf16 %v1034_v27, %v1031_v21 }
  0xd8   : > { %551 = vrot.lane.b32.xlu2 %v374_v25, %s842_s13 }
  0xdb   : > { %v338_v29 = vpop.f32.mrf.mxu0 }
  0xdc   : > { %v367_v31 = vpop.f32.mrf.mxu1  ;;  %v339_v32 = vadd.f32 %v338_v29, %v230_v8 }
  0xdd   : > { %v368_v36 = vadd.f32 %v367_v31, %v231_v62 }
  0xe3   : > { %v340_v30 = vpop.f32.mrf.mxu0 }
  0xe4   : > { %v341_v33 = vadd.f32 %v340_v30, %v230_v8  ;;  %v369_v35 = vpop.f32.mrf.mxu1 }
  0xe5   : > { %v370_v37 = vadd.f32 %v369_v35, %v231_v62 }
  0xe6   : > { %v375_v34 = vpack.c.bf16 %v341_v33, %v339_v32 }
  0xe7   : > { %v379_v38 = vpack.c.bf16 %v370_v37, %v368_v36 }
  0xe8   : > { %390 = vrot.lane.b32.xlu0 %v375_v34, %s841_s12  ;;  %555 = vrot.lane.b32.xlu2 %v375_v34, %s842_s13 }
  0xf0   : > { %388 = vrot.lane.b32.xlu0 %v374_v25, %s841_s12 }
  0xf8   : > { %557 = vrot.lane.b32.xlu0 %v379_v38, %s842_s13 }
 0x132   : > { %v1042_v41 = vpop.permute.xlu2 %551 }
 0x13a   : > { %v387_v44 = vpop.permute.xlu1 %386 }
 0x13b   : > { %v409_v49 = vsel %vm392_vm0, %v387_v44, 0 }
 0x142   : > { %v556_v45 = vpop.permute.xlu2 %555  ;;  %v385_v53 = vpop.permute.xlu1 %384 }
 0x143   : > { %v406_v56 = vsel %vm392_vm0, %v385_v53, 0 }
 0x15a   : > { %v391_v39 = vpop.permute.xlu0 %390 }
 0x15b   : > { %v415_v40 = vsel %vm392_vm0, %v391_v39, 0 }
 0x15c   : > { %421 = vmatpush.bf16.xpose.msra.mxu2 %v415_v40 }
 0x162   : > { %v389_v42 = vpop.permute.xlu0 %388 }
 0x163   : > { %v412_v43 = vsel %vm392_vm0, %v389_v42, 0 }
 0x164   : > { %422 = vmatpush.bf16.xpose.msra.mxu2 %v412_v43 }
 0x16a   : > { %v558_v48 = vpop.permute.xlu0 %557 }
 0x16b   : > { %v563_v50 = vsel %vm559_vm1, %v556_v45, %v558_v48 }
 0x16c   : > { %423 = vmatpush.bf16.xpose.msra.mxu2 %v409_v49  ;;  %584 = vmatpush.bf16.msra.mxu3 %v563_v50 }
 0x174   : > { %424 = vmatpush.bf16.xpose.msra.mxu2 %v406_v56 }
 0x17b   : > { %763 = vmatmul.msk.bf16.vlgmr.msra.gmra.mxu2 %vm392_vm0, %v1029_v19 }
 0x18b   : > { %764 = vmatmul.msk.bf16.gmra.mxu2 %vm392_vm0, %v1022_v12 }
 0x19b   : > { %765 = vmatmul.msk.bf16.gmra.mxu2 %vm392_vm0, %v374_v25 }
 0x1ab   : > { %766 = vmatmul.msk.bf16.gmra.mxu2 %vm392_vm0, %v375_v34 }
 0x1fe   : > { %v426_v59 = vpop.f32.mrf.mxu2 }
 0x1ff   : > { %v447_v60 = vsel %vm446_vm2, %v426_v59, -inf }
 0x200   : > { %448 = vmax.xlane.f32.xlu2 %v447_v60 }
 0x206   : > { %v428_v61 = vpop.f32.mrf.mxu2 }
 0x207   : > { %v450_v62 = vsel %vm446_vm2, %v428_v61, -inf }
 0x208   : > { %451 = vmax.xlane.f32.xlu2 %v450_v62 }
 0x20e   : > { %v431_v63 = vpop.f32.mrf.mxu2 }
 0x20f   : > { %v453_v1 = vsel %vm446_vm2, %v431_v63, -inf }
 0x210   : > { %454 = vmax.xlane.f32.xlu0 %v453_v1 }
 0x216   : > { %v433_v2 = vpop.f32.mrf.mxu2 }
 0x217   : > { %v456_v5 = vsel %vm446_vm2, %v433_v2, -inf }
 0x218   : > { %457 = vmax.xlane.f32.xlu1 %v456_v5 }
 0x21e   : > { %v436_v6 = vpop.f32.mrf.mxu2 }
 0x21f   : > { %v459_v8 = vsel %vm446_vm2, %v436_v6, -inf }
 0x220   : > { %460 = vmax.xlane.f32.xlu2 %v459_v8 }
 0x224   : > { %547 = vrot.lane.b32.xlu0 %v1022_v12, %s842_s13 }
 0x226   : > { %v438_v9 = vpop.f32.mrf.mxu2 }
 0x227   : > { %v462_v10 = vsel %vm446_vm2, %v438_v9, -inf }
 0x228   : > { %463 = vmax.xlane.f32.xlu2 %v462_v10 }
 0x22c   : > { %543 = vrot.lane.b32.xlu0 %v1029_v19, %s842_s13 }
 0x22e   : > { %v441_v11 = vpop.f32.mrf.mxu2 }
 0x22f   : > { %v465_v13 = vsel %vm446_vm2, %v441_v11, -inf }
 0x230   : > { %466 = vmax.xlane.f32.xlu2 %v465_v13 }
 0x236   : > { %v443_v16 = vpop.f32.mrf.mxu2 }
 0x237   : > { %v468_v17 = vsel %vm446_vm2, %v443_v16, -inf }
 0x238   : > { %469 = vmax.xlane.f32.xlu2 %v468_v17 }
 0x250   : > { %549 = vrot.lane.b32.xlu2 %v377_v15, %s842_s13 }
 0x258   : > { %545 = vrot.lane.b32.xlu2 %v376_v4, %s842_s13 }
 0x273   : > { %v449_v12 = vpop.xlane.xlu2 %448 }
 0x274   : > { %v471_v18 = vsub.f32 %v426_v59, %v449_v12 }
 0x276   : > { %v479_v19 = vmul.f32 1.442695, %v471_v18 }
 0x278   : > { %801 = vpow2.f32 %v479_v19 }
 0x27b   : > { %v452_v20 = vpop.xlane.xlu2 %451 }
 0x27c   : > { %v472_v22 = vsub.f32 %v428_v61, %v452_v20 }
 0x27e   : > { %v1074_v23 = vpop.eup %801  ;;  %v481_v24 = vmul.f32 1.442695, %v472_v22 }
 0x27f   : > { %v495_v25 = vsel %vm446_vm2, %v1074_v23, 0.0 }
 0x280   : > { %803 = vpow2.f32 %v481_v24  ;;  %496 = vadd.xlane.f32.xlu1 %v495_v25 }
 0x283   : > { %v455_v7 = vpop.xlane.xlu0 %454 }
 0x284   : > { %v473_v14 = vsub.f32 %v431_v63, %v455_v7 }
 0x286   : > { %v804_v15 = vpop.eup %803  ;;  %v483_v26 = vmul.f32 1.442695, %v473_v14 }
 0x287   : > { %v498_v0 = vsel %vm446_vm2, %v804_v15, 0.0 }
 0x288   : > { %805 = vpow2.f32 %v483_v26  ;;  %499 = vadd.xlane.f32.xlu1 %v498_v0 }
 0x28b   : > { %v458_v3 = vpop.xlane.xlu1 %457 }
 0x28c   : > { %v474_v4 = vsub.f32 %v433_v2, %v458_v3 }
 0x28e   : > { %v1079_v29 = vpop.eup %805  ;;  %v485_v30 = vmul.f32 1.442695, %v474_v4 }
 0x28f   : > { %v501_v31 = vsel %vm446_vm2, %v1079_v29, 0.0 }
 0x290   : > { %807 = vpow2.f32 %v485_v30  ;;  %502 = vadd.xlane.f32.xlu0 %v501_v31 }
 0x293   : > { %v461_v32 = vpop.xlane.xlu2 %460 }
 0x294   : > { %v475_v48 = vsub.f32 %v436_v6, %v461_v32 }
 0x296   : > { %v808_v33 = vpop.eup %807  ;;  %v487_v49 = vmul.f32 1.442695, %v475_v48  ;;  %v548_v63 = vpop.permute.xlu0 %547 }
 0x297   : > { %v504_v34 = vsel %vm446_vm2, %v808_v33, 0.0 }
 0x298   : > { %505 = vadd.xlane.f32.xlu2 %v504_v34  ;;  %v610_v34 = vstv %s609_s14 }
 0x29b   : > { %v464_v35 = vpop.xlane.xlu2 %463 }
 0x29c   : > { %v476_v36 = vsub.f32 %v438_v9, %v464_v35 }
 0x29e   : > { %v489_v37 = vmul.f32 1.442695, %v476_v36  ;;  %v544_v8 = vpop.permute.xlu0 %543 }
 0x2a0   : > { %809 = vpow2.f32 %v489_v37 }
 0x2a1   : > { %553 = vrot.lane.b32.xlu1 %v378_v28, %s842_s13 }
 0x2a3   : > { %v467_v38 = vpop.xlane.xlu2 %466 }
 0x2a4   : > { %v477_v39 = vsub.f32 %v441_v11, %v467_v38 }
 0x2a6   : > { %v810_v40 = vpop.eup %809  ;;  %v491_v42 = vmul.f32 1.442695, %v477_v39 }
 0x2a7   : > { %v510_v43 = vsel %vm446_vm2, %v810_v40, 0.0 }
 0x2a8   : > { %811 = vpow2.f32 %v491_v42  ;;  %511 = vadd.xlane.f32.xlu0 %v510_v43 }
 0x2a9   : > { %813 = vpow2.f32 %v487_v49 }
 0x2ab   : > { %v470_v50 = vpop.xlane.xlu2 %469 }
 0x2ac   : > { %v478_v21 = vsub.f32 %v443_v16, %v470_v50 }
 0x2ae   : > { %v1089_v44 = vpop.eup %811  ;;  %v493_v27 = vmul.f32 1.442695, %v478_v21 }
 0x2af   : > { %v513_v45 = vsel %vm446_vm2, %v1089_v44, 0.0  ;;  %v814_v28 = vpop.eup %813 }
 0x2b0   : > { %514 = vadd.xlane.f32.xlu2 %v513_v45  ;;  %815 = vpow2.f32 %v493_v27  ;;  %v507_v53 = vsel %vm446_vm2, %v814_v28, 0.0 }
 0x2b3   : > { %v550_v62 = vpop.permute.xlu2 %549 }
 0x2b4   : > { %v561_v9 = vsel %vm559_vm1, %v548_v63, %v550_v62 }
 0x2b6   : > { %v816_v56 = vpop.eup %815 }
 0x2b7   : > { %v516_v59 = vsel %vm446_vm2, %v816_v56, 0.0 }
 0x2bb   : > { %v546_v5 = vpop.permute.xlu2 %545 }
 0x2bc   : > { %v560_v13 = vsel %vm559_vm1, %v544_v8, %v546_v5 }
 0x2cb   : > { %508 = vadd.xlane.f32.xlu1 %v507_v53 }
 0x2d3   : > { %517 = vadd.xlane.f32.xlu1 %v516_v59 }
 0x2f3   : > { %v497_v60 = vpop.xlane.xlu1 %496 }
 0x2fb   : > { %v500_v61 = vpop.xlane.xlu1 %499 }
 0x2fc   : > { %817 = vrcp.f32 %v500_v61 }
 0x2fd   : > { %819 = vrcp.f32 %v497_v60 }
 0x302   : > { %v818_v6 = vpop.eup %817 }
 0x303   : > { %v820_v10 = vpop.eup %819  ;;  %v528_v11 = vmul.f32 %v818_v6, %v804_v15  ;;  %v503_v18 = vpop.xlane.xlu0 %502 }
 0x304   : > { %v527_v16 = vmul.f32 %v820_v10, %v1074_v23 }
 0x306   : > { %v535_v12 = vpack.c.bf16 %v528_v11, %v527_v16 }
 0x30b   : > { %v506_v17 = vpop.xlane.xlu2 %505 }
 0x30c   : > { %821 = vrcp.f32 %v506_v17 }
 0x30d   : > { %823 = vrcp.f32 %v503_v18 }
 0x313   : > { %v554_v1 = vpop.permute.xlu1 %553 }
 0x314   : > { %v562_v2 = vsel %vm559_vm1, %v1042_v41, %v554_v1  ;;  %v822_v41 = vpop.eup %821 }
 0x315   : > { %585 = vmatpush.bf16.msra.mxu3 %v562_v2  ;;  %v824_v19 = vpop.eup %823  ;;  %v530_v20 = vmul.f32 %v822_v41, %v808_v33 }
 0x316   : > { %v529_v22 = vmul.f32 %v824_v19, %v1079_v29 }
 0x318   : > { %v536_v24 = vpack.c.bf16 %v530_v20, %v529_v22 }
 0x319   : > { %586 = vmatpush.bf16.msra.mxu3 %v561_v9 }
 0x31b   : > { %v512_v25 = vpop.xlane.xlu0 %511 }
 0x31c   : > { %825 = vrcp.f32 %v512_v25 }
 0x31d   : > { %587 = vmatpush.bf16.msra.mxu3 %v560_v13 }
 0x320   : > { %767 = vmatmul.msk.bf16.vlgmr.msra.gmra.mxu3 %vm446_vm2, %v535_v12 }
 0x322   : > { %v826_v23 = vpop.eup %825 }
 0x323   : > { %v532_v26 = vmul.f32 %v826_v23, %v810_v40  ;;  %v515_v4 = vpop.xlane.xlu2 %514 }
 0x330   : > { %768 = vmatmul.msk.bf16.gmra.mxu3 %vm446_vm2, %v536_v24 }
 0x33e   : > { %v509_v7 = vpop.xlane.xlu1 %508 }
 0x33f   : > { %827 = vrcp.f32 %v509_v7 }
 0x345   : > { %v828_v14 = vpop.eup %827 }
 0x346   : > { %v531_v15 = vmul.f32 %v828_v14, %v814_v28  ;;  %v518_v0 = vpop.xlane.xlu1 %517 }
 0x347   : > { %829 = vrcp.f32 %v518_v0 }
 0x348   : > { %v537_v3 = vpack.c.bf16 %v532_v26, %v531_v15  ;;  %831 = vrcp.f32 %v515_v4 }
 0x34a   : > { %769 = vmatmul.msk.bf16.gmra.mxu3 %vm446_vm2, %v537_v3 }
 0x34d   : > { %v830_v29 = vpop.eup %829 }
 0x34e   : > { %v832_v30 = vpop.eup %831  ;;  %v534_v31 = vmul.f32 %v830_v29, %v816_v56 }
 0x34f   : > { %v533_v32 = vmul.f32 %v832_v30, %v1089_v44 }
 0x351   : > { %v538_v33 = vpack.c.bf16 %v534_v31, %v533_v32 }
 0x35a   : > { %770 = vmatmul.msk.bf16.gmra.mxu3 %vm446_vm2, %v538_v33 }
 0x3a3   : > { %v589_v35 = vpop.f32.mrf.mxu3 }
 0x3a4   : > { %v611_v36 = vmul.f32 %v610_v34, %v589_v35 }
 0x3a6   : > { %v619_v37 = vadd.f32 %v611_v36, %v984_v46 }
 0x3a8   : > { %627 = vst [vmem:[%s198_s19] sm:$0xff] %v619_v37 }
 0x3ab   : > { %v591_v38 = vpop.f32.mrf.mxu3 }
 0x3ac   : > { %v612_v39 = vmul.f32 %v610_v34, %v591_v38 }
 0x3ae   : > { %v620_v40 = vadd.f32 %v612_v39, %v986_v47 }
 0x3b0   : > { %628 = vst [vmem:[%s198_s19 + $0x8] sm:$0xff] %v620_v40 }
 0x3b3   : > { %v594_v42 = vpop.f32.mrf.mxu3 }
 0x3b4   : > { %v613_v43 = vmul.f32 %v610_v34, %v594_v42 }
 0x3b6   : > { %v621_v44 = vadd.f32 %v613_v43, %v993_v51 }
 0x3b8   : > { %629 = vst [vmem:[%s198_s19 + $0x10] sm:$0xff] %v621_v44 }
 0x3bb   : > { %v596_v45 = vpop.f32.mrf.mxu3 }
 0x3bc   : > { %v614_v48 = vmul.f32 %v610_v34, %v596_v45 }
 0x3be   : > { %v622_v49 = vadd.f32 %v614_v48, %v995_v52 }
 0x3c0   : > { %630 = vst [vmem:[%s198_s19 + $0x18] sm:$0xff] %v622_v49 }
 0x3cd   : > { %v599_v50 = vpop.f32.mrf.mxu3 }
 0x3ce   : > { %v615_v21 = vmul.f32 %v610_v34, %v599_v50 }
 0x3d0   : > { %v623_v46 = vadd.f32 %v615_v21, %v999_v54 }
 0x3d2   : > { %631 = vst [vmem:[%s198_s19 + $0x20] sm:$0xff] %v623_v46 }
 0x3d5   : > { %v601_v27 = vpop.f32.mrf.mxu3 }
 0x3d6   : > { %v616_v28 = vmul.f32 %v610_v34, %v601_v27 }
 0x3d8   : > { %v624_v47 = vadd.f32 %v616_v28, %v1001_v55 }
 0x3da   : > { %632 = vst [vmem:[%s198_s19 + $0x28] sm:$0xff] %v624_v47 }
 0x3dd   : > { %v604_v53 = vpop.f32.mrf.mxu3 }
 0x3de   : > { %v617_v56 = vmul.f32 %v610_v34, %v604_v53 }
 0x3e0   : > { %v625_v51 = vadd.f32 %v617_v56, %v1005_v57 }
 0x3e2   : > { %633 = vst [vmem:[%s198_s19 + $0x30] sm:$0xff] %v625_v51 }
 0x3e5   : > { %v606_v59 = vpop.f32.mrf.mxu3 }
 0x3e6   : > { %v618_v60 = vmul.f32 %v610_v34, %v606_v59 }
 0x3e8   : > { %v626_v52 = vadd.f32 %v618_v60, %v1007_v58 }
 0x3ea   : > { %634 = vst [vmem:[%s198_s19 + $0x38] sm:$0xff] %v626_v52 }
 0x3eb PF: > { %s15_s17 = sadd.s32 1, %s839_s17  }
 0x3ec   : > { %p12_p4 = scmp.ge.s32.totalorder %s15_s17, 4  }
 0x3ee   :  { %14 = sbr.rel (!%p12_p4) target bundleno = 2 (0x2), region = 66 }

// kernel: generator_forward.10
= control target key start
LH: loop header
LB: loop body
LE: loop exit
PB: predicated region body
PF: predicated region fallthrough
CT: control target
= control target key end

     0   :  { %s2426_s12 = smov 0   ;;  %s2428_s13 = smov 0   ;;  %s2989_s0 = inlined_call_operand.vmem [shape: bf16[32,1152], index: 0, kind: input, shape index: {}]   ;;  %s2990_s1 = inlined_call_operand.vmem [shape: bf16[1152,256], index: 1, kind: input, shape index: {}]   ;;  %s2991_s2 = inlined_call_operand.vmem [shape: f32[1,256], index: 2, kind: input, shape index: {}]   ;;  %s2992_s3 = inlined_call_operand.vmem [shape: f32[32,256], index: 3, kind: output, shape index: {}]  }
   0x1   :  { %s2430_s14 = smov 0   ;;  %s2432_s15 = smov 0  }
   0x2   :  { %s2434_s16 = smov 0  }
   0x3 LB: > { %s22_s17 = sadd.s32 1, %s2400_s15  ;;  %s1853_s18 = sadd.s32 4294967295, %s2404_s16   ;;  %s2404_s16 = sphi %s2434_s16, %s13_s16   ;;  %s2400_s15 = sphi %s2432_s15, %s2997_s15   ;;  %s2396_s14 = sphi %s2430_s14, %s2996_s14   ;;  %s2392_s13 = sphi %s2428_s13, %s2995_s13   ;;  %s2388_s12 = sphi %s2426_s12, %s2994_s12  }
   0x4   : > { %p23_p0 = scmp.ge.s32.totalorder %s22_s17, 2  ;;  %p65_p1 = scmp.ne.s32.totalorder %s2392_s13, %s2388_s12 }
   0x5   : > { %p66_p2 = scmp.eq.s32.totalorder %s2404_s16, 0  ;;  %p123_p4 = scmp.eq.s32.totalorder %s1853_s18, 1 }
   0x6   : > { %s2999_s17 = smov (%p23_p0, %s22_s17), 0  ;;  %s58_s20 = sadd.s32 1, %s2392_s13 }
   0x7   : > { %p67_p3 = por %p66_p2, %p65_p1  ;;  %s55_s19 = ssub.s32 %s2400_s15, %s2999_s17 }
   0x8   : > { %p56_p5 = scmp.eq.s32.totalorder %s55_s19, 0  ;;  %p2461_p6 = por %p123_p4, %p65_p1 }
   0x9   : > { %p1857_p7 = scmp.ge.s32.totalorder %s2404_s16, 2 }
   0xa   : > { %s2466_s22 = scalar_select %p56_p5, %s2392_s13, %s58_s20  }
   0xb   : > { %155 = sbr.rel (%p1857_p7) target bundleno = 165 (0xa5), region = 20 }
  0x10   : > { %158 = sbr.rel (!%p67_p3) target bundleno = 165 (0xa5), region = 24  ;;  %s160_s23 = sand.u32 (%p67_p3), 1, %s2392_s13  }
  0x11   : > { %s1858_s24 = sshll.u32 (%p67_p3), %s2400_s15, 2  ;;  %s2323_s25 = smul.u32 (%p67_p3), 576, %s160_s23 }
  0x12   : > { %s2474_s28 = scalar_lea.vmem (%p67_p3), %s2990_s1, %s1858_s24 }
  0x13   : > { %v181_v0 = vld [vmem:[%s2474_s28] sm:$0xf] (%p67_p3)  ;;  %v183_v1 = vld [vmem:[%s2474_s28 + $0x8] sm:$0xf] (%p67_p3)  ;;  %v185_v2 = vld [vmem:[%s2474_s28 + $0x10] sm:$0xf] (%p67_p3) }
  0x14   : > { %s2479_s29 = scalar_lea.vmem (%p67_p3), [#allocation2], %s2323_s25  ;;  %v187_v3 = vld [vmem:[%s2474_s28 + $0x18] sm:$0xf] (%p67_p3)  ;;  %v189_v4 = vld [vmem:[%s2474_s28 + $0x20] sm:$0xf] (%p67_p3) }
  0x15   : > { %182 = vst [vmem:[%s2479_s29] sm:$0xf] %v181_v0  ;;  %v191_v5 = vld [vmem:[%s2474_s28 + $0x28] sm:$0xf]  ;;  %v193_v6 = vld [vmem:[%s2474_s28 + $0x30] sm:$0xf] }
  0x16   : > { %184 = vst [vmem:[%s2479_s29 + $0x4] sm:$0xf] %v183_v1  ;;  %v195_v7 = vld [vmem:[%s2474_s28 + $0x38] sm:$0xf]  ;;  %v197_v8 = vld [vmem:[%s2474_s28 + $0x40] sm:$0xf] }
  0x17   : > { %186 = vst [vmem:[%s2479_s29 + $0x8] sm:$0xf] %v185_v2  ;;  %v199_v9 = vld [vmem:[%s2474_s28 + $0x48] sm:$0xf]  ;;  %v201_v10 = vld [vmem:[%s2474_s28 + $0x50] sm:$0xf] }
  0x18   : > { %188 = vst [vmem:[%s2479_s29 + $0xc] sm:$0xf] %v187_v3  ;;  %v203_v11 = vld [vmem:[%s2474_s28 + $0x58] sm:$0xf]  ;;  %v205_v12 = vld [vmem:[%s2474_s28 + $0x60] sm:$0xf] }
  0x19   : > { %190 = vst [vmem:[%s2479_s29 + $0x10] sm:$0xf] %v189_v4  ;;  %v207_v13 = vld [vmem:[%s2474_s28 + $0x68] sm:$0xf]  ;;  %v209_v14 = vld [vmem:[%s2474_s28 + $0x70] sm:$0xf] }
  0x1a   : > { %192 = vst [vmem:[%s2479_s29 + $0x14] sm:$0xf] %v191_v5  ;;  %v211_v15 = vld [vmem:[%s2474_s28 + $0x78] sm:$0xf]  ;;  %v213_v16 = vld [vmem:[%s2474_s28 + $0x80] sm:$0xf] }
  0x1b   : > { %194 = vst [vmem:[%s2479_s29 + $0x18] sm:$0xf] %v193_v6  ;;  %v215_v17 = vld [vmem:[%s2474_s28 + $0x88] sm:$0xf]  ;;  %v217_v18 = vld [vmem:[%s2474_s28 + $0x90] sm:$0xf] }
  0x1c   : > { %196 = vst [vmem:[%s2479_s29 + $0x1c] sm:$0xf] %v195_v7  ;;  %v219_v19 = vld [vmem:[%s2474_s28 + $0x98] sm:$0xf]  ;;  %v221_v20 = vld [vmem:[%s2474_s28 + $0xa0] sm:$0xf] }
  0x1d   : > { %198 = vst [vmem:[%s2479_s29 + $0x20] sm:$0xf] %v197_v8  ;;  %v223_v21 = vld [vmem:[%s2474_s28 + $0xa8] sm:$0xf]  ;;  %v225_v22 = vld [vmem:[%s2474_s28 + $0xb0] sm:$0xf] }
  0x1e   : > { %200 = vst [vmem:[%s2479_s29 + $0x24] sm:$0xf] %v199_v9  ;;  %v227_v23 = vld [vmem:[%s2474_s28 + $0xb8] sm:$0xf]  ;;  %v229_v24 = vld [vmem:[%s2474_s28 + $0xc0] sm:$0xf] }
  0x1f   : > { %202 = vst [vmem:[%s2479_s29 + $0x28] sm:$0xf] %v201_v10  ;;  %v231_v25 = vld [vmem:[%s2474_s28 + $0xc8] sm:$0xf]  ;;  %v233_v26 = vld [vmem:[%s2474_s28 + $0xd0] sm:$0xf] }
  0x20   : > { %204 = vst [vmem:[%s2479_s29 + $0x2c] sm:$0xf] %v203_v11  ;;  %v235_v27 = vld [vmem:[%s2474_s28 + $0xd8] sm:$0xf]  ;;  %v237_v28 = vld [vmem:[%s2474_s28 + $0xe0] sm:$0xf] }
  0x21   : > { %206 = vst [vmem:[%s2479_s29 + $0x30] sm:$0xf] %v205_v12  ;;  %v239_v29 = vld [vmem:[%s2474_s28 + $0xe8] sm:$0xf]  ;;  %v241_v30 = vld [vmem:[%s2474_s28 + $0xf0] sm:$0xf] }
  0x22   : > { %208 = vst [vmem:[%s2479_s29 + $0x34] sm:$0xf] %v207_v13  ;;  %v243_v31 = vld [vmem:[%s2474_s28 + $0xf8] sm:$0xf]  ;;  %v245_v32 = vld [vmem:[%s2474_s28 + $0x100] sm:$0xf] }
  0x23   : > { %210 = vst [vmem:[%s2479_s29 + $0x38] sm:$0xf] %v209_v14  ;;  %v247_v33 = vld [vmem:[%s2474_s28 + $0x108] sm:$0xf]  ;;  %v249_v34 = vld [vmem:[%s2474_s28 + $0x110] sm:$0xf] }
  0x24   : > { %212 = vst [vmem:[%s2479_s29 + $0x3c] sm:$0xf] %v211_v15  ;;  %v251_v35 = vld [vmem:[%s2474_s28 + $0x118] sm:$0xf]  ;;  %v253_v36 = vld [vmem:[%s2474_s28 + $0x120] sm:$0xf] }
  0x25   : > { %214 = vst [vmem:[%s2479_s29 + $0x40] sm:$0xf] %v213_v16  ;;  %v255_v37 = vld [vmem:[%s2474_s28 + $0x128] sm:$0xf]  ;;  %v257_v38 = vld [vmem:[%s2474_s28 + $0x130] sm:$0xf] }
  0x26   : > { %216 = vst [vmem:[%s2479_s29 + $0x44] sm:$0xf] %v215_v17  ;;  %v259_v39 = vld [vmem:[%s2474_s28 + $0x138] sm:$0xf]  ;;  %v261_v40 = vld [vmem:[%s2474_s28 + $0x140] sm:$0xf] }
  0x27   : > { %218 = vst [vmem:[%s2479_s29 + $0x48] sm:$0xf] %v217_v18  ;;  %v263_v41 = vld [vmem:[%s2474_s28 + $0x148] sm:$0xf]  ;;  %v265_v42 = vld [vmem:[%s2474_s28 + $0x150] sm:$0xf] }
  0x28   : > { %220 = vst [vmem:[%s2479_s29 + $0x4c] sm:$0xf] %v219_v19  ;;  %v267_v43 = vld [vmem:[%s2474_s28 + $0x158] sm:$0xf]  ;;  %v269_v44 = vld [vmem:[%s2474_s28 + $0x160] sm:$0xf] }
  0x29   : > { %222 = vst [vmem:[%s2479_s29 + $0x50] sm:$0xf] %v221_v20  ;;  %v271_v45 = vld [vmem:[%s2474_s28 + $0x168] sm:$0xf]  ;;  %v273_v46 = vld [vmem:[%s2474_s28 + $0x170] sm:$0xf] }
  0x2a   : > { %224 = vst [vmem:[%s2479_s29 + $0x54] sm:$0xf] %v223_v21  ;;  %v275_v47 = vld [vmem:[%s2474_s28 + $0x178] sm:$0xf]  ;;  %v277_v48 = vld [vmem:[%s2474_s28 + $0x180] sm:$0xf] }
  0x2b   : > { %226 = vst [vmem:[%s2479_s29 + $0x58] sm:$0xf] %v225_v22  ;;  %v279_v49 = vld [vmem:[%s2474_s28 + $0x188] sm:$0xf]  ;;  %v281_v50 = vld [vmem:[%s2474_s28 + $0x190] sm:$0xf] }
  0x2c   : > { %228 = vst [vmem:[%s2479_s29 + $0x5c] sm:$0xf] %v227_v23  ;;  %v283_v51 = vld [vmem:[%s2474_s28 + $0x198] sm:$0xf]  ;;  %v285_v52 = vld [vmem:[%s2474_s28 + $0x1a0] sm:$0xf] }
  0x2d   : > { %230 = vst [vmem:[%s2479_s29 + $0x60] sm:$0xf] %v229_v24  ;;  %v287_v53 = vld [vmem:[%s2474_s28 + $0x1a8] sm:$0xf]  ;;  %v289_v54 = vld [vmem:[%s2474_s28 + $0x1b0] sm:$0xf] }
  0x2e   : > { %232 = vst [vmem:[%s2479_s29 + $0x64] sm:$0xf] %v231_v25  ;;  %v291_v55 = vld [vmem:[%s2474_s28 + $0x1b8] sm:$0xf]  ;;  %v293_v56 = vld [vmem:[%s2474_s28 + $0x1c0] sm:$0xf] }
  0x2f   : > { %234 = vst [vmem:[%s2479_s29 + $0x68] sm:$0xf] %v233_v26  ;;  %v295_v57 = vld [vmem:[%s2474_s28 + $0x1c8] sm:$0xf]  ;;  %v297_v58 = vld [vmem:[%s2474_s28 + $0x1d0] sm:$0xf] }
  0x30   : > { %236 = vst [vmem:[%s2479_s29 + $0x6c] sm:$0xf] %v235_v27  ;;  %v299_v59 = vld [vmem:[%s2474_s28 + $0x1d8] sm:$0xf]  ;;  %v301_v60 = vld [vmem:[%s2474_s28 + $0x1e0] sm:$0xf] }
  0x31   : > { %238 = vst [vmem:[%s2479_s29 + $0x70] sm:$0xf] %v237_v28  ;;  %v303_v61 = vld [vmem:[%s2474_s28 + $0x1e8] sm:$0xf]  ;;  %v305_v62 = vld [vmem:[%s2474_s28 + $0x1f0] sm:$0xf] }
  0x32   : > { %240 = vst [vmem:[%s2479_s29 + $0x74] sm:$0xf] %v239_v29  ;;  %v307_v63 = vld [vmem:[%s2474_s28 + $0x1f8] sm:$0xf]  ;;  %v309_v0 = vld [vmem:[%s2474_s28 + $0x200] sm:$0xf] }
  0x33   : > { %242 = vst [vmem:[%s2479_s29 + $0x78] sm:$0xf] %v241_v30  ;;  %v311_v1 = vld [vmem:[%s2474_s28 + $0x208] sm:$0xf]  ;;  %v313_v2 = vld [vmem:[%s2474_s28 + $0x210] sm:$0xf] }
  0x34   : > { %244 = vst [vmem:[%s2479_s29 + $0x7c] sm:$0xf] %v243_v31  ;;  %v315_v3 = vld [vmem:[%s2474_s28 + $0x218] sm:$0xf]  ;;  %v317_v4 = vld [vmem:[%s2474_s28 + $0x220] sm:$0xf] }
  0x35   : > { %246 = vst [vmem:[%s2479_s29 + $0x80] sm:$0xf] %v245_v32  ;;  %v319_v5 = vld [vmem:[%s2474_s28 + $0x228] sm:$0xf]  ;;  %v321_v6 = vld [vmem:[%s2474_s28 + $0x230] sm:$0xf] }
  0x36   : > { %248 = vst [vmem:[%s2479_s29 + $0x84] sm:$0xf] %v247_v33  ;;  %v323_v7 = vld [vmem:[%s2474_s28 + $0x238] sm:$0xf]  ;;  %v325_v8 = vld [vmem:[%s2474_s28 + $0x240] sm:$0xf] }
  0x37   : > { %250 = vst [vmem:[%s2479_s29 + $0x88] sm:$0xf] %v249_v34  ;;  %v327_v9 = vld [vmem:[%s2474_s28 + $0x248] sm:$0xf]  ;;  %v329_v10 = vld [vmem:[%s2474_s28 + $0x250] sm:$0xf] }
  0x38   : > { %252 = vst [vmem:[%s2479_s29 + $0x8c] sm:$0xf] %v251_v35  ;;  %v331_v11 = vld [vmem:[%s2474_s28 + $0x258] sm:$0xf]  ;;  %v333_v12 = vld [vmem:[%s2474_s28 + $0x260] sm:$0xf] }
  0x39   : > { %254 = vst [vmem:[%s2479_s29 + $0x90] sm:$0xf] %v253_v36  ;;  %v335_v13 = vld [vmem:[%s2474_s28 + $0x268] sm:$0xf]  ;;  %v337_v14 = vld [vmem:[%s2474_s28 + $0x270] sm:$0xf] }
  0x3a   : > { %256 = vst [vmem:[%s2479_s29 + $0x94] sm:$0xf] %v255_v37  ;;  %v339_v15 = vld [vmem:[%s2474_s28 + $0x278] sm:$0xf]  ;;  %v341_v16 = vld [vmem:[%s2474_s28 + $0x280] sm:$0xf] }
  0x3b   : > { %258 = vst [vmem:[%s2479_s29 + $0x98] sm:$0xf] %v257_v38  ;;  %v343_v17 = vld [vmem:[%s2474_s28 + $0x288] sm:$0xf]  ;;  %v345_v18 = vld [vmem:[%s2474_s28 + $0x290] sm:$0xf] }
  0x3c   : > { %260 = vst [vmem:[%s2479_s29 + $0x9c] sm:$0xf] %v259_v39  ;;  %v347_v19 = vld [vmem:[%s2474_s28 + $0x298] sm:$0xf]  ;;  %v349_v20 = vld [vmem:[%s2474_s28 + $0x2a0] sm:$0xf] }
  0x3d   : > { %262 = vst [vmem:[%s2479_s29 + $0xa0] sm:$0xf] %v261_v40  ;;  %v351_v21 = vld [vmem:[%s2474_s28 + $0x2a8] sm:$0xf]  ;;  %v353_v22 = vld [vmem:[%s2474_s28 + $0x2b0] sm:$0xf] }
  0x3e   : > { %264 = vst [vmem:[%s2479_s29 + $0xa4] sm:$0xf] %v263_v41  ;;  %v355_v23 = vld [vmem:[%s2474_s28 + $0x2b8] sm:$0xf]  ;;  %v357_v24 = vld [vmem:[%s2474_s28 + $0x2c0] sm:$0xf] }
  0x3f   : > { %266 = vst [vmem:[%s2479_s29 + $0xa8] sm:$0xf] %v265_v42  ;;  %v359_v25 = vld [vmem:[%s2474_s28 + $0x2c8] sm:$0xf]  ;;  %v361_v26 = vld [vmem:[%s2474_s28 + $0x2d0] sm:$0xf] }
  0x40   : > { %268 = vst [vmem:[%s2479_s29 + $0xac] sm:$0xf] %v267_v43  ;;  %v363_v27 = vld [vmem:[%s2474_s28 + $0x2d8] sm:$0xf]  ;;  %v365_v28 = vld [vmem:[%s2474_s28 + $0x2e0] sm:$0xf] }
  0x41   : > { %270 = vst [vmem:[%s2479_s29 + $0xb0] sm:$0xf] %v269_v44  ;;  %v367_v29 = vld [vmem:[%s2474_s28 + $0x2e8] sm:$0xf]  ;;  %v369_v30 = vld [vmem:[%s2474_s28 + $0x2f0] sm:$0xf] }
  0x42   : > { %272 = vst [vmem:[%s2479_s29 + $0xb4] sm:$0xf] %v271_v45  ;;  %v371_v31 = vld [vmem:[%s2474_s28 + $0x2f8] sm:$0xf]  ;;  %v373_v32 = vld [vmem:[%s2474_s28 + $0x300] sm:$0xf] }
  0x43   : > { %274 = vst [vmem:[%s2479_s29 + $0xb8] sm:$0xf] %v273_v46  ;;  %v375_v33 = vld [vmem:[%s2474_s28 + $0x308] sm:$0xf]  ;;  %v377_v34 = vld [vmem:[%s2474_s28 + $0x310] sm:$0xf] }
  0x44   : > { %276 = vst [vmem:[%s2479_s29 + $0xbc] sm:$0xf] %v275_v47  ;;  %v379_v35 = vld [vmem:[%s2474_s28 + $0x318] sm:$0xf]  ;;  %v381_v36 = vld [vmem:[%s2474_s28 + $0x320] sm:$0xf] }
  0x45   : > { %278 = vst [vmem:[%s2479_s29 + $0xc0] sm:$0xf] %v277_v48  ;;  %v383_v37 = vld [vmem:[%s2474_s28 + $0x328] sm:$0xf]  ;;  %v385_v38 = vld [vmem:[%s2474_s28 + $0x330] sm:$0xf] }
  0x46   : > { %280 = vst [vmem:[%s2479_s29 + $0xc4] sm:$0xf] %v279_v49  ;;  %v387_v39 = vld [vmem:[%s2474_s28 + $0x338] sm:$0xf]  ;;  %v389_v40 = vld [vmem:[%s2474_s28 + $0x340] sm:$0xf] }
  0x47   : > { %282 = vst [vmem:[%s2479_s29 + $0xc8] sm:$0xf] %v281_v50  ;;  %v391_v41 = vld [vmem:[%s2474_s28 + $0x348] sm:$0xf]  ;;  %v393_v42 = vld [vmem:[%s2474_s28 + $0x350] sm:$0xf] }
  0x48   : > { %284 = vst [vmem:[%s2479_s29 + $0xcc] sm:$0xf] %v283_v51  ;;  %v395_v43 = vld [vmem:[%s2474_s28 + $0x358] sm:$0xf]  ;;  %v397_v44 = vld [vmem:[%s2474_s28 + $0x360] sm:$0xf] }
  0x49   : > { %286 = vst [vmem:[%s2479_s29 + $0xd0] sm:$0xf] %v285_v52  ;;  %v399_v45 = vld [vmem:[%s2474_s28 + $0x368] sm:$0xf]  ;;  %v401_v46 = vld [vmem:[%s2474_s28 + $0x370] sm:$0xf] }
  0x4a   : > { %288 = vst [vmem:[%s2479_s29 + $0xd4] sm:$0xf] %v287_v53  ;;  %v403_v47 = vld [vmem:[%s2474_s28 + $0x378] sm:$0xf]  ;;  %v405_v48 = vld [vmem:[%s2474_s28 + $0x380] sm:$0xf] }
  0x4b   : > { %290 = vst [vmem:[%s2479_s29 + $0xd8] sm:$0xf] %v289_v54  ;;  %v407_v49 = vld [vmem:[%s2474_s28 + $0x388] sm:$0xf]  ;;  %v409_v50 = vld [vmem:[%s2474_s28 + $0x390] sm:$0xf] }
  0x4c   : > { %292 = vst [vmem:[%s2479_s29 + $0xdc] sm:$0xf] %v291_v55  ;;  %v411_v51 = vld [vmem:[%s2474_s28 + $0x398] sm:$0xf]  ;;  %v413_v52 = vld [vmem:[%s2474_s28 + $0x3a0] sm:$0xf] }
  0x4d   : > { %294 = vst [vmem:[%s2479_s29 + $0xe0] sm:$0xf] %v293_v56  ;;  %v415_v53 = vld [vmem:[%s2474_s28 + $0x3a8] sm:$0xf]  ;;  %v417_v54 = vld [vmem:[%s2474_s28 + $0x3b0] sm:$0xf] }
  0x4e   : > { %296 = vst [vmem:[%s2479_s29 + $0xe4] sm:$0xf] %v295_v57  ;;  %v419_v55 = vld [vmem:[%s2474_s28 + $0x3b8] sm:$0xf]  ;;  %v421_v56 = vld [vmem:[%s2474_s28 + $0x3c0] sm:$0xf] }
  0x4f   : > { %298 = vst [vmem:[%s2479_s29 + $0xe8] sm:$0xf] %v297_v58  ;;  %v423_v57 = vld [vmem:[%s2474_s28 + $0x3c8] sm:$0xf]  ;;  %v425_v58 = vld [vmem:[%s2474_s28 + $0x3d0] sm:$0xf] }
  0x50   : > { %300 = vst [vmem:[%s2479_s29 + $0xec] sm:$0xf] %v299_v59  ;;  %v427_v59 = vld [vmem:[%s2474_s28 + $0x3d8] sm:$0xf] }
  0x51   : > { %302 = vst [vmem:[%s2479_s29 + $0xf0] sm:$0xf] %v301_v60  ;;  %v429_v60 = vld [vmem:[%s2474_s28 + $0x3e0] sm:$0xf] }
  0x52   : > { %304 = vst [vmem:[%s2479_s29 + $0xf4] sm:$0xf] %v303_v61  ;;  %v431_v61 = vld [vmem:[%s2474_s28 + $0x3e8] sm:$0xf] }
  0x53   : > { %306 = vst [vmem:[%s2479_s29 + $0xf8] sm:$0xf] %v305_v62  ;;  %v433_v62 = vld [vmem:[%s2474_s28 + $0x3f0] sm:$0xf] }
  0x54   : > { %308 = vst [vmem:[%s2479_s29 + $0xfc] sm:$0xf] %v307_v63  ;;  %v435_v63 = vld [vmem:[%s2474_s28 + $0x3f8] sm:$0xf] }
  0x55   : > { %310 = vst [vmem:[%s2479_s29 + $0x100] sm:$0xf] %v309_v0  ;;  %v437_v0 = vld [vmem:[%s2474_s28 + $0x400] sm:$0xf] }
  0x56   : > { %312 = vst [vmem:[%s2479_s29 + $0x104] sm:$0xf] %v311_v1  ;;  %v439_v1 = vld [vmem:[%s2474_s28 + $0x408] sm:$0xf] }
  0x57   : > { %314 = vst [vmem:[%s2479_s29 + $0x108] sm:$0xf] %v313_v2  ;;  %v441_v2 = vld [vmem:[%s2474_s28 + $0x410] sm:$0xf] }
  0x58   : > { %316 = vst [vmem:[%s2479_s29 + $0x10c] sm:$0xf] %v315_v3  ;;  %v443_v3 = vld [vmem:[%s2474_s28 + $0x418] sm:$0xf] }
  0x59   : > { %318 = vst [vmem:[%s2479_s29 + $0x110] sm:$0xf] %v317_v4  ;;  %v445_v4 = vld [vmem:[%s2474_s28 + $0x420] sm:$0xf] }
  0x5a   : > { %320 = vst [vmem:[%s2479_s29 + $0x114] sm:$0xf] %v319_v5  ;;  %v447_v5 = vld [vmem:[%s2474_s28 + $0x428] sm:$0xf] }
  0x5b   : > { %322 = vst [vmem:[%s2479_s29 + $0x118] sm:$0xf] %v321_v6  ;;  %v449_v6 = vld [vmem:[%s2474_s28 + $0x430] sm:$0xf] }
  0x5c   : > { %324 = vst [vmem:[%s2479_s29 + $0x11c] sm:$0xf] %v323_v7  ;;  %v451_v7 = vld [vmem:[%s2474_s28 + $0x438] sm:$0xf] }
  0x5d   : > { %326 = vst [vmem:[%s2479_s29 + $0x120] sm:$0xf] %v325_v8  ;;  %v453_v8 = vld [vmem:[%s2474_s28 + $0x440] sm:$0xf] }
  0x5e   : > { %328 = vst [vmem:[%s2479_s29 + $0x124] sm:$0xf] %v327_v9  ;;  %v455_v9 = vld [vmem:[%s2474_s28 + $0x448] sm:$0xf] }
  0x5f   : > { %330 = vst [vmem:[%s2479_s29 + $0x128] sm:$0xf] %v329_v10  ;;  %v457_v10 = vld [vmem:[%s2474_s28 + $0x450] sm:$0xf] }
  0x60   : > { %332 = vst [vmem:[%s2479_s29 + $0x12c] sm:$0xf] %v331_v11  ;;  %v459_v11 = vld [vmem:[%s2474_s28 + $0x458] sm:$0xf] }
  0x61   : > { %334 = vst [vmem:[%s2479_s29 + $0x130] sm:$0xf] %v333_v12  ;;  %v461_v12 = vld [vmem:[%s2474_s28 + $0x460] sm:$0xf] }
  0x62   : > { %336 = vst [vmem:[%s2479_s29 + $0x134] sm:$0xf] %v335_v13  ;;  %v463_v13 = vld [vmem:[%s2474_s28 + $0x468] sm:$0xf] }
  0x63   : > { %338 = vst [vmem:[%s2479_s29 + $0x138] sm:$0xf] %v337_v14  ;;  %v465_v14 = vld [vmem:[%s2474_s28 + $0x470] sm:$0xf] }
  0x64   : > { %340 = vst [vmem:[%s2479_s29 + $0x13c] sm:$0xf] %v339_v15  ;;  %v467_v15 = vld [vmem:[%s2474_s28 + $0x478] sm:$0xf] }
  0x65   : > { %342 = vst [vmem:[%s2479_s29 + $0x140] sm:$0xf] %v341_v16 }
  0x66   : > { %344 = vst [vmem:[%s2479_s29 + $0x144] sm:$0xf] %v343_v17 }
  0x67   : > { %346 = vst [vmem:[%s2479_s29 + $0x148] sm:$0xf] %v345_v18 }
  0x68   : > { %348 = vst [vmem:[%s2479_s29 + $0x14c] sm:$0xf] %v347_v19 }
  0x69   : > { %350 = vst [vmem:[%s2479_s29 + $0x150] sm:$0xf] %v349_v20 }
  0x6a   : > { %352 = vst [vmem:[%s2479_s29 + $0x154] sm:$0xf] %v351_v21 }
  0x6b   : > { %354 = vst [vmem:[%s2479_s29 + $0x158] sm:$0xf] %v353_v22 }
  0x6c   : > { %356 = vst [vmem:[%s2479_s29 + $0x15c] sm:$0xf] %v355_v23 }
  0x6d   : > { %358 = vst [vmem:[%s2479_s29 + $0x160] sm:$0xf] %v357_v24 }
  0x6e   : > { %360 = vst [vmem:[%s2479_s29 + $0x164] sm:$0xf] %v359_v25 }
  0x6f   : > { %362 = vst [vmem:[%s2479_s29 + $0x168] sm:$0xf] %v361_v26 }
  0x70   : > { %364 = vst [vmem:[%s2479_s29 + $0x16c] sm:$0xf] %v363_v27 }
  0x71   : > { %366 = vst [vmem:[%s2479_s29 + $0x170] sm:$0xf] %v365_v28 }
  0x72   : > { %368 = vst [vmem:[%s2479_s29 + $0x174] sm:$0xf] %v367_v29 }
  0x73   : > { %370 = vst [vmem:[%s2479_s29 + $0x178] sm:$0xf] %v369_v30 }
  0x74   : > { %372 = vst [vmem:[%s2479_s29 + $0x17c] sm:$0xf] %v371_v31 }
  0x75   : > { %374 = vst [vmem:[%s2479_s29 + $0x180] sm:$0xf] %v373_v32 }
  0x76   : > { %376 = vst [vmem:[%s2479_s29 + $0x184] sm:$0xf] %v375_v33 }
  0x77   : > { %378 = vst [vmem:[%s2479_s29 + $0x188] sm:$0xf] %v377_v34 }
  0x78   : > { %380 = vst [vmem:[%s2479_s29 + $0x18c] sm:$0xf] %v379_v35 }
  0x79   : > { %382 = vst [vmem:[%s2479_s29 + $0x190] sm:$0xf] %v381_v36 }
  0x7a   : > { %384 = vst [vmem:[%s2479_s29 + $0x194] sm:$0xf] %v383_v37 }
  0x7b   : > { %386 = vst [vmem:[%s2479_s29 + $0x198] sm:$0xf] %v385_v38 }
  0x7c   : > { %388 = vst [vmem:[%s2479_s29 + $0x19c] sm:$0xf] %v387_v39 }
  0x7d   : > { %390 = vst [vmem:[%s2479_s29 + $0x1a0] sm:$0xf] %v389_v40 }
  0x7e   : > { %392 = vst [vmem:[%s2479_s29 + $0x1a4] sm:$0xf] %v391_v41 }
  0x7f   : > { %394 = vst [vmem:[%s2479_s29 + $0x1a8] sm:$0xf] %v393_v42 }
  0x80   : > { %396 = vst [vmem:[%s2479_s29 + $0x1ac] sm:$0xf] %v395_v43 }
  0x81   : > { %398 = vst [vmem:[%s2479_s29 + $0x1b0] sm:$0xf] %v397_v44 }
  0x82   : > { %400 = vst [vmem:[%s2479_s29 + $0x1b4] sm:$0xf] %v399_v45 }
  0x83   : > { %402 = vst [vmem:[%s2479_s29 + $0x1b8] sm:$0xf] %v401_v46 }
  0x84   : > { %404 = vst [vmem:[%s2479_s29 + $0x1bc] sm:$0xf] %v403_v47 }
  0x85   : > { %406 = vst [vmem:[%s2479_s29 + $0x1c0] sm:$0xf] %v405_v48 }
  0x86   : > { %408 = vst [vmem:[%s2479_s29 + $0x1c4] sm:$0xf] %v407_v49 }
  0x87   : > { %410 = vst [vmem:[%s2479_s29 + $0x1c8] sm:$0xf] %v409_v50 }
  0x88   : > { %412 = vst [vmem:[%s2479_s29 + $0x1cc] sm:$0xf] %v411_v51 }
  0x89   : > { %414 = vst [vmem:[%s2479_s29 + $0x1d0] sm:$0xf] %v413_v52 }
  0x8a   : > { %416 = vst [vmem:[%s2479_s29 + $0x1d4] sm:$0xf] %v415_v53 }
  0x8b   : > { %418 = vst [vmem:[%s2479_s29 + $0x1d8] sm:$0xf] %v417_v54 }
  0x8c   : > { %420 = vst [vmem:[%s2479_s29 + $0x1dc] sm:$0xf] %v419_v55 }
  0x8d   : > { %422 = vst [vmem:[%s2479_s29 + $0x1e0] sm:$0xf] %v421_v56 }
  0x8e   : > { %424 = vst [vmem:[%s2479_s29 + $0x1e4] sm:$0xf] %v423_v57 }
  0x8f   : > { %426 = vst [vmem:[%s2479_s29 + $0x1e8] sm:$0xf] %v425_v58 }
  0x90   : > { %428 = vst [vmem:[%s2479_s29 + $0x1ec] sm:$0xf] %v427_v59 }
  0x91   : > { %430 = vst [vmem:[%s2479_s29 + $0x1f0] sm:$0xf] %v429_v60 }
  0x92   : > { %432 = vst [vmem:[%s2479_s29 + $0x1f4] sm:$0xf] %v431_v61 }
  0x93   : > { %434 = vst [vmem:[%s2479_s29 + $0x1f8] sm:$0xf] %v433_v62 }
  0x94   : > { %436 = vst [vmem:[%s2479_s29 + $0x1fc] sm:$0xf] %v435_v63 }
  0x95   : > { %438 = vst [vmem:[%s2479_s29 + $0x200] sm:$0xf] %v437_v0 }
  0x96   : > { %440 = vst [vmem:[%s2479_s29 + $0x204] sm:$0xf] %v439_v1 }
  0x97   : > { %442 = vst [vmem:[%s2479_s29 + $0x208] sm:$0xf] %v441_v2 }
  0x98   : > { %444 = vst [vmem:[%s2479_s29 + $0x20c] sm:$0xf] %v443_v3 }
  0x99   : > { %446 = vst [vmem:[%s2479_s29 + $0x210] sm:$0xf] %v445_v4 }
  0x9a   : > { %448 = vst [vmem:[%s2479_s29 + $0x214] sm:$0xf] %v447_v5 }
  0x9b   : > { %450 = vst [vmem:[%s2479_s29 + $0x218] sm:$0xf] %v449_v6 }
  0x9c   : > { %452 = vst [vmem:[%s2479_s29 + $0x21c] sm:$0xf] %v451_v7 }
  0x9d   : > { %454 = vst [vmem:[%s2479_s29 + $0x220] sm:$0xf] %v453_v8 }
  0x9e   : > { %456 = vst [vmem:[%s2479_s29 + $0x224] sm:$0xf] %v455_v9 }
  0x9f   : > { %458 = vst [vmem:[%s2479_s29 + $0x228] sm:$0xf] %v457_v10 }
  0xa0   : > { %460 = vst [vmem:[%s2479_s29 + $0x22c] sm:$0xf] %v459_v11 }
  0xa1   : > { %462 = vst [vmem:[%s2479_s29 + $0x230] sm:$0xf] %v461_v12 }
  0xa2   : > { %464 = vst [vmem:[%s2479_s29 + $0x234] sm:$0xf] %v463_v13 }
  0xa3   : > { %466 = vst [vmem:[%s2479_s29 + $0x238] sm:$0xf] %v465_v14 }
  0xa4   : > { %468 = vst [vmem:[%s2479_s29 + $0x23c] sm:$0xf] %v467_v15 }
  0xa5 PF: > { %p1859_p8 = scmp.ge.s32.totalorder %s2404_s16, 1  ;;  %p785_p9 = scmp.lt.s32.totalorder %s2404_s16, 3 }
  0xa7   : > { %p786_p10 = pnand %p1859_p8, %p785_p9 }
  0xa8   : > { %s792_s30 = sand.u32 (!%p786_p10), 1, %s2388_s12   ;;  %p830_p11 = scmp.lt.s32.totalorder (!%p786_p10), %s2396_s14, 1 }
  0xa9   : > { %789 = sbr.rel (%p786_p10) target bundleno = 418 (0x1a2), region = 69 }
  0xaa   : > { %s2324_s4 = smul.u32 (!%p786_p10), 576, %s792_s30 }
  0xac   : > { %s2771_s5 = scalar_lea.vmem (!%p786_p10), [#allocation2], %s2324_s4 }
  0xae   : > { %v2250_v16 = vld [vmem:[%s2771_s5 + $0x38] sm:$0xff]  ;;  %v2249_v20 = vld [vmem:[%s2771_s5 + $0x30] sm:$0xff]  ;;  %v2248_v24 = vld [vmem:[%s2771_s5 + $0x28] sm:$0xff]  ;;  %s2797_s6 = scalar_select %p830_p11, %s2396_s14, 1 }
  0xaf   : > { %v2258_v17 = vld [vmem:[%s2771_s5 + $0x78] sm:$0xff]  ;;  %1526 = vmatpush.bf16.msra.mxu0 %v2250_v16  ;;  %v2257_v21 = vld [vmem:[%s2771_s5 + $0x70] sm:$0xff]  ;;  %v2256_v25 = vld [vmem:[%s2771_s5 + $0x68] sm:$0xff]  ;;  %s2222_s12 = sshll.u32 (%p2461_p6), %s2396_s14, 3 }
  0xb0   : > { %v2266_v18 = vld [vmem:[%s2771_s5 + $0xb8] sm:$0xff]  ;;  %1545 = vmatpush.bf16.msra.mxu1 %v2258_v17  ;;  %v2265_v22 = vld [vmem:[%s2771_s5 + $0xb0] sm:$0xff]  ;;  %v2264_v26 = vld [vmem:[%s2771_s5 + $0xa8] sm:$0xff]  ;;  %s832_s9 = scalar_lea.vmem %s2991_s2, %s2797_s6  ;;  %s1860_s6 = sshll.u32 %s792_s30, 5 }
  0xb1   : > { %v2274_v19 = vld [vmem:[%s2771_s5 + $0xf8] sm:$0xff]  ;;  %1564 = vmatpush.bf16.msra.mxu2 %v2266_v18  ;;  %v2273_v23 = vld [vmem:[%s2771_s5 + $0xf0] sm:$0xff]  ;;  %v2272_v27 = vld [vmem:[%s2771_s5 + $0xe8] sm:$0xff]  ;;  %s1716_s8 = scalar_lea.vmem (%p2461_p6), %s2992_s3, %s2222_s12 }
  0xb2   : > { %1583 = vmatpush.bf16.msra.mxu3 %v2274_v19  ;;  %v2247_v28 = vld [vmem:[%s2771_s5 + $0x20] sm:$0xff]  ;;  %v2246_v32 = vld [vmem:[%s2771_s5 + $0x18] sm:$0xff]  ;;  %v2245_v36 = vld [vmem:[%s2771_s5 + $0x10] sm:$0xff] }
  0xb3   : > { %1527 = vmatpush.bf16.msra.mxu0 %v2249_v20  ;;  %v2255_v29 = vld [vmem:[%s2771_s5 + $0x60] sm:$0xff]  ;;  %v2254_v33 = vld [vmem:[%s2771_s5 + $0x58] sm:$0xff]  ;;  %v2253_v37 = vld [vmem:[%s2771_s5 + $0x50] sm:$0xff] }
  0xb4   : > { %1546 = vmatpush.bf16.msra.mxu1 %v2257_v21  ;;  %v2263_v30 = vld [vmem:[%s2771_s5 + $0xa0] sm:$0xff]  ;;  %v2262_v34 = vld [vmem:[%s2771_s5 + $0x98] sm:$0xff]  ;;  %v2261_v38 = vld [vmem:[%s2771_s5 + $0x90] sm:$0xff] }
  0xb5   : > { %1565 = vmatpush.bf16.msra.mxu2 %v2265_v22  ;;  %v2271_v31 = vld [vmem:[%s2771_s5 + $0xe0] sm:$0xff]  ;;  %v2270_v35 = vld [vmem:[%s2771_s5 + $0xd8] sm:$0xff]  ;;  %v2269_v39 = vld [vmem:[%s2771_s5 + $0xd0] sm:$0xff] }
  0xb6   : > { %1584 = vmatpush.bf16.msra.mxu3 %v2273_v23  ;;  %v2244_v40 = vld [vmem:[%s2771_s5 + $0x8] sm:$0xff]  ;;  %v2243_v44 = vld [vmem:[%s2771_s5] sm:$0xff]  ;;  %v1873_v55 = vld [vmem:[%s2989_s0 + $0x2c] sm:$0xf0] }
  0xb7   : > { %1528 = vmatpush.bf16.msra.mxu0 %v2248_v24  ;;  %v2252_v41 = vld [vmem:[%s2771_s5 + $0x48] sm:$0xff]  ;;  %v1863_v45 = vld [vmem:[%s2989_s0] sm:$0xf]  ;;  %v2229_v46 = vld [vmem:[%s2989_s0 + $0x20] sm:$0xf0] }
  0xb8   : > { %1547 = vmatpush.bf16.msra.mxu1 %v2256_v25  ;;  %v2260_v42 = vld [vmem:[%s2771_s5 + $0x88] sm:$0xff]  ;;  %v2251_v47 = vld [vmem:[%s2771_s5 + $0x40] sm:$0xff]  ;;  %v2282_v56 = vld [vmem:[%s2771_s5 + $0x138] sm:$0xff]  ;;  %v1864_v58 = vor.u32 %v2229_v46, %v1863_v45 }
  0xb9   : > { %1566 = vmatpush.bf16.msra.mxu2 %v2264_v26  ;;  %v2268_v43 = vld [vmem:[%s2771_s5 + $0xc8] sm:$0xff]  ;;  %v2259_v48 = vld [vmem:[%s2771_s5 + $0x80] sm:$0xff]  ;;  %v2290_v57 = vld [vmem:[%s2771_s5 + $0x178] sm:$0xff] }
  0xba   : > { %1585 = vmatpush.bf16.msra.mxu3 %v2272_v27  ;;  %v2267_v49 = vld [vmem:[%s2771_s5 + $0xc0] sm:$0xff]  ;;  %v1865_v51 = vld [vmem:[%s2989_s0 + $0x24] sm:$0xf0]  ;;  %v2230_v53 = vld [vmem:[%s2989_s0 + $0x28] sm:$0xf0] }
  0xbb   : > { %1529 = vmatpush.bf16.msra.mxu0 %v2247_v28  ;;  %v2225_v50 = vld [vmem:[%s2989_s0 + $0x4] sm:$0xf]  ;;  %v1871_v52 = vld [vmem:[%s2989_s0 + $0x8] sm:$0xf]  ;;  %v2226_v54 = vld [vmem:[%s2989_s0 + $0xc] sm:$0xf] }
  0xbc   : > { %1548 = vmatpush.bf16.msra.mxu1 %v2255_v29  ;;  %v1868_v59 = vor.u32 %v2225_v50, %v1865_v51  ;;  %v1872_v60 = vor.u32 %v2230_v53, %v1871_v52  ;;  %v1876_v61 = vor.u32 %v2226_v54, %v1873_v55  ;;  %v2298_v62 = vld [vmem:[%s2771_s5 + $0x1b8] sm:$0xff]  ;;  %v2281_v0 = vld [vmem:[%s2771_s5 + $0x130] sm:$0xff]  ;;  %v2280_v4 = vld [vmem:[%s2771_s5 + $0x128] sm:$0xff] }
  0xbd   : > { %1567 = vmatpush.bf16.msra.mxu2 %v2263_v30  ;;  %v2306_v63 = vld [vmem:[%s2771_s5 + $0x1f8] sm:$0xff]  ;;  %v2289_v1 = vld [vmem:[%s2771_s5 + $0x170] sm:$0xff]  ;;  %v2288_v5 = vld [vmem:[%s2771_s5 + $0x168] sm:$0xff] }
  0xbe   : > { %1586 = vmatpush.bf16.msra.mxu3 %v2271_v31  ;;  %v2297_v2 = vld [vmem:[%s2771_s5 + $0x1b0] sm:$0xff]  ;;  %v2296_v6 = vld [vmem:[%s2771_s5 + $0x1a8] sm:$0xff]  ;;  %v2279_v8 = vld [vmem:[%s2771_s5 + $0x120] sm:$0xff] }
  0xbf   : > { %1530 = vmatpush.bf16.msra.mxu0 %v2246_v32  ;;  %v2305_v3 = vld [vmem:[%s2771_s5 + $0x1f0] sm:$0xff]  ;;  %v2304_v7 = vld [vmem:[%s2771_s5 + $0x1e8] sm:$0xff]  ;;  %v2287_v9 = vld [vmem:[%s2771_s5 + $0x160] sm:$0xff] }
  0xc0   : > { %1549 = vmatpush.bf16.msra.mxu1 %v2254_v33  ;;  %v2295_v10 = vld [vmem:[%s2771_s5 + $0x1a0] sm:$0xff]  ;;  %v1899_v12 = vld [vmem:[%s2989_s0 + $0x48] sm:$0xf]  ;;  %v2238_v13 = vld [vmem:[%s2989_s0 + $0x68] sm:$0xf0] }
  0xc1   : > { %1568 = vmatpush.bf16.msra.mxu2 %v2262_v34  ;;  %v2303_v11 = vld [vmem:[%s2771_s5 + $0x1e0] sm:$0xff]  ;;  %v2234_v14 = vld [vmem:[%s2989_s0 + $0x4c] sm:$0xf]  ;;  %v1901_v15 = vld [vmem:[%s2989_s0 + $0x6c] sm:$0xf0]  ;;  %v1900_v22 = vor.u32 %v2238_v13, %v1899_v12 }
  0xc2   : > { %1587 = vmatpush.bf16.msra.mxu3 %v2270_v35  ;;  %v1907_v16 = vld [vmem:[%s2989_s0 + $0x50] sm:$0xf]  ;;  %v2239_v17 = vld [vmem:[%s2989_s0 + $0x70] sm:$0xf0]  ;;  %v1909_v19 = vld [vmem:[%s2989_s0 + $0x74] sm:$0xf0]  ;;  %v1904_v23 = vor.u32 %v2234_v14, %v1901_v15 }
  0xc3   : > { %1531 = vmatpush.bf16.msra.mxu0 %v2245_v36  ;;  %v2235_v18 = vld [vmem:[%s2989_s0 + $0x54] sm:$0xf]  ;;  %v2278_v20 = vld [vmem:[%s2771_s5 + $0x118] sm:$0xff]  ;;  %v1908_v24 = vor.u32 %v2239_v17, %v1907_v16  ;;  %v2276_v32 = vld [vmem:[%s2771_s5 + $0x108] sm:$0xff] }
  0xc4   : > { %1550 = vmatpush.bf16.msra.mxu1 %v2253_v37  ;;  %v2286_v21 = vld [vmem:[%s2771_s5 + $0x158] sm:$0xff]  ;;  %v1912_v25 = vor.u32 %v2235_v18, %v1909_v19  ;;  %v2277_v28 = vld [vmem:[%s2771_s5 + $0x110] sm:$0xff]  ;;  %v2284_v33 = vld [vmem:[%s2771_s5 + $0x148] sm:$0xff] }
  0xc5   : > { %1569 = vmatpush.bf16.msra.mxu2 %v2261_v38  ;;  %v2294_v26 = vld [vmem:[%s2771_s5 + $0x198] sm:$0xff]  ;;  %v2285_v29 = vld [vmem:[%s2771_s5 + $0x150] sm:$0xff]  ;;  %v2292_v34 = vld [vmem:[%s2771_s5 + $0x188] sm:$0xff] }
  0xc6   : > { %1588 = vmatpush.bf16.msra.mxu3 %v2269_v39  ;;  %v2302_v27 = vld [vmem:[%s2771_s5 + $0x1d8] sm:$0xff]  ;;  %v2293_v30 = vld [vmem:[%s2771_s5 + $0x190] sm:$0xff]  ;;  %v2300_v35 = vld [vmem:[%s2771_s5 + $0x1c8] sm:$0xff] }
  0xc7   : > { %1532 = vmatpush.bf16.msra.mxu0 %v2244_v40  ;;  %v2301_v31 = vld [vmem:[%s2771_s5 + $0x1d0] sm:$0xff]  ;;  %v2275_v36 = vld [vmem:[%s2771_s5 + $0x100] sm:$0xff]  ;;  %v1887_v45 = vld [vmem:[%s2989_s0 + $0x18] sm:$0xf] }
  0xc8   : > { %1551 = vmatpush.bf16.msra.mxu1 %v2252_v41  ;;  %v2283_v37 = vld [vmem:[%s2771_s5 + $0x140] sm:$0xff]  ;;  %v1879_v40 = vld [vmem:[%s2989_s0 + $0x10] sm:$0xf]  ;;  %v2231_v41 = vld [vmem:[%s2989_s0 + $0x30] sm:$0xf0] }
  0xc9   : > { %1570 = vmatpush.bf16.msra.mxu2 %v2260_v42  ;;  %v2291_v38 = vld [vmem:[%s2771_s5 + $0x180] sm:$0xff]  ;;  %v2314_v42 = vld [vmem:[%s2771_s5 + $0x238] sm:$0xff]  ;;  %v2313_v53 = vld [vmem:[%s2771_s5 + $0x230] sm:$0xff] }
  0xca   : > { %1589 = vmatpush.bf16.msra.mxu3 %v2268_v43  ;;  %v2299_v39 = vld [vmem:[%s2771_s5 + $0x1c0] sm:$0xff]  ;;  %v2227_v43 = vld [vmem:[%s2989_s0 + $0x14] sm:$0xf]  ;;  %v2232_v46 = vld [vmem:[%s2989_s0 + $0x38] sm:$0xf0] }
  0xcb   : > { %1533 = vmatpush.bf16.msra.mxu0 %v2243_v44  ;;  %v1881_v44 = vld [vmem:[%s2989_s0 + $0x34] sm:$0xf0]  ;;  %v1888_v51 = vor.u32 %v2232_v46, %v1887_v45  ;;  %v2312_v54 = vld [vmem:[%s2771_s5 + $0x228] sm:$0xff]  ;;  %v2311_v55 = vld [vmem:[%s2771_s5 + $0x220] sm:$0xff] }
  0xcc   : > { %1552 = vmatpush.bf16.msra.mxu1 %v2251_v47  ;;  %v2228_v47 = vld [vmem:[%s2989_s0 + $0x1c] sm:$0xf]  ;;  %v1884_v50 = vor.u32 %v2227_v43, %v1881_v44 }
  0xcd   : > { %1571 = vmatpush.bf16.msra.mxu2 %v2259_v48  ;;  %v1889_v48 = vld [vmem:[%s2989_s0 + $0x3c] sm:$0xf0] }
  0xce   : > { %1590 = vmatpush.bf16.msra.mxu3 %v2267_v49  ;;  %1534 = vmatmul.bf16.vlgmr.msra.gmra.mxu0 %v1864_v58  ;;  %v1880_v49 = vor.u32 %v2231_v41, %v1879_v40  ;;  %v1892_v52 = vor.u32 %v2228_v47, %v1889_v48  ;;  %v2236_v58 = vld [vmem:[%s2989_s0 + $0x5c] sm:$0xf] }
  0xcf   : > { %1602 = vmatpush.bf16.msrb.mxu0 %v2282_v56  ;;  %1553 = vmatmul.bf16.vlgmr.msra.gmra.mxu1 %v1868_v59  ;;  %v1915_v56 = vld [vmem:[%s2989_s0 + $0x58] sm:$0xf]  ;;  %v1917_v59 = vld [vmem:[%s2989_s0 + $0x7c] sm:$0xf0] }
  0xd0   : > { %1621 = vmatpush.bf16.msrb.mxu1 %v2290_v57  ;;  %1572 = vmatmul.bf16.vlgmr.msra.gmra.mxu2 %v1872_v60  ;;  %v2240_v57 = vld [vmem:[%s2989_s0 + $0x78] sm:$0xf0]  ;;  %v1923_v60 = vld [vmem:[%s2989_s0 + $0x60] sm:$0xf] }
  0xd1   : > { %1591 = vmatmul.bf16.vlgmr.msra.gmra.mxu3 %v1876_v61  ;;  %1640 = vmatpush.bf16.msrb.mxu2 %v2298_v62  ;;  %v2241_v61 = vld [vmem:[%s2989_s0 + $0x80] sm:$0xf0] }
  0xd2   : > { %1659 = vmatpush.bf16.msrb.mxu3 %v2306_v63  ;;  %v2237_v62 = vld [vmem:[%s2989_s0 + $0x64] sm:$0xf]  ;;  %v1925_v63 = vld [vmem:[%s2989_s0 + $0x84] sm:$0xf0] }
  0xd3   : > { %1603 = vmatpush.bf16.msrb.mxu0 %v2281_v0  ;;  %v2310_v0 = vld [vmem:[%s2771_s5 + $0x218] sm:$0xff] }
  0xd4   : > { %1622 = vmatpush.bf16.msrb.mxu1 %v2289_v1  ;;  %v1916_v1 = vor.u32 %v2240_v57, %v1915_v56 }
  0xd5   : > { %1641 = vmatpush.bf16.msrb.mxu2 %v2297_v2  ;;  %v1920_v2 = vor.u32 %v2236_v58, %v1917_v59 }
  0xd6   : > { %1660 = vmatpush.bf16.msrb.mxu3 %v2305_v3  ;;  %v1924_v3 = vor.u32 %v2241_v61, %v1923_v60 }
  0xd7   : > { %1604 = vmatpush.bf16.msrb.mxu0 %v2280_v4  ;;  %v1928_v4 = vor.u32 %v2237_v62, %v1925_v63 }
  0xd8   : > { %1623 = vmatpush.bf16.msrb.mxu1 %v2288_v5  ;;  %v2309_v5 = vld [vmem:[%s2771_s5 + $0x210] sm:$0xff] }
  0xd9   : > { %1642 = vmatpush.bf16.msrb.mxu2 %v2296_v6  ;;  %v2308_v6 = vld [vmem:[%s2771_s5 + $0x208] sm:$0xff] }
  0xda   : > { %1661 = vmatpush.bf16.msrb.mxu3 %v2304_v7  ;;  %v2307_v7 = vld [vmem:[%s2771_s5 + $0x200] sm:$0xff] }
  0xdb   : > { %1605 = vmatpush.bf16.msrb.mxu0 %v2279_v8  ;;  %v1895_v8 = vld [vmem:[%s2989_s0 + $0x20] sm:$0xf] }
  0xdc   : > { %1624 = vmatpush.bf16.msrb.mxu1 %v2287_v9  ;;  %v2233_v9 = vld [vmem:[%s2989_s0 + $0x40] sm:$0xf0] }
  0xdd   : > { %1643 = vmatpush.bf16.msrb.mxu2 %v2295_v10  ;;  %v1931_v10 = vld [vmem:[%s2989_s0 + $0x68] sm:$0xf]  ;;  %v1896_v12 = vor.u32 %v2233_v9, %v1895_v8 }
  0xde   : > { %1662 = vmatpush.bf16.msrb.mxu3 %v2303_v11  ;;  %1539 = vmatmul.bf16.gmra.mxu0 %v1900_v22  ;;  %v2242_v11 = vld [vmem:[%s2989_s0 + $0x88] sm:$0xf0] }
  0xdf   : > { %1606 = vmatpush.bf16.msrb.mxu0 %v2278_v20  ;;  %1558 = vmatmul.bf16.gmra.mxu1 %v1904_v23  ;;  %v1932_v13 = vor.u32 %v2242_v11, %v1931_v10 }
  0xe0   : > { %1625 = vmatpush.bf16.msrb.mxu1 %v2286_v21  ;;  %1577 = vmatmul.bf16.gmra.mxu2 %v1908_v24 }
  0xe1   : > { %1596 = vmatmul.bf16.gmra.mxu3 %v1912_v25  ;;  %1644 = vmatpush.bf16.msrb.mxu2 %v2294_v26 }
  0xe2   : > { %1663 = vmatpush.bf16.msrb.mxu3 %v2302_v27 }
  0xe3   : > { %1607 = vmatpush.bf16.msrb.mxu0 %v2277_v28 }
  0xe4   : > { %1626 = vmatpush.bf16.msrb.mxu1 %v2285_v29 }
  0xe5   : > { %1645 = vmatpush.bf16.msrb.mxu2 %v2293_v30 }
  0xe6   : > { %1664 = vmatpush.bf16.msrb.mxu3 %v2301_v31 }
  0xe7   : > { %1608 = vmatpush.bf16.msrb.mxu0 %v2276_v32  ;;  %v2365_v32 = vld [vmem:[%s832_s9] ss:$0 sm:$0xff]  ;;  %s822_s9 = scalar_lea.vmem [#allocation3], %s1860_s6 }
  0xe8   : > { %1627 = vmatpush.bf16.msrb.mxu1 %v2284_v33 }
  0xe9   : > { %1646 = vmatpush.bf16.msrb.mxu2 %v2292_v34 }
  0xea   : > { %1665 = vmatpush.bf16.msrb.mxu3 %v2300_v35 }
  0xeb   : > { %1609 = vmatpush.bf16.msrb.mxu0 %v2275_v36 }
  0xec   : > { %1628 = vmatpush.bf16.msrb.mxu1 %v2283_v37 }
  0xed   : > { %1647 = vmatpush.bf16.msrb.mxu2 %v2291_v38 }
  0xee   : > { %1666 = vmatpush.bf16.msrb.mxu3 %v2299_v39  ;;  %1610 = vmatmul.bf16.vlgmr.msrb.gmra.mxu0 %v1880_v49 }
  0xef   : > { %1678 = vmatpush.bf16.msra.mxu0 %v2314_v42  ;;  %1629 = vmatmul.bf16.vlgmr.msrb.gmra.mxu1 %v1884_v50 }
  0xf0   : > { %2315 = vmatpush.bf16.msra.mxu1 %v2314_v42  ;;  %1648 = vmatmul.bf16.vlgmr.msrb.gmra.mxu2 %v1888_v51 }
  0xf1   : > { %1667 = vmatmul.bf16.vlgmr.msrb.gmra.mxu3 %v1892_v52 }
  0xf3   : > { %1679 = vmatpush.bf16.msra.mxu0 %v2313_v53 }
  0xf4   : > { %2316 = vmatpush.bf16.msra.mxu1 %v2313_v53 }
  0xf7   : > { %1680 = vmatpush.bf16.msra.mxu0 %v2312_v54 }
  0xf8   : > { %2317 = vmatpush.bf16.msra.mxu1 %v2312_v54 }
  0xfb   : > { %1681 = vmatpush.bf16.msra.mxu0 %v2311_v55 }
  0xfc   : > { %2318 = vmatpush.bf16.msra.mxu1 %v2311_v55 }
  0xfe   : > { %1615 = vmatmul.bf16.gmra.mxu0 %v1916_v1 }
  0xff   : > { %1682 = vmatpush.bf16.msra.mxu0 %v2310_v0  ;;  %1634 = vmatmul.bf16.gmra.mxu1 %v1920_v2 }
 0x100   : > { %2319 = vmatpush.bf16.msra.mxu1 %v2310_v0  ;;  %1653 = vmatmul.bf16.gmra.mxu2 %v1924_v3 }
 0x101   : > { %1672 = vmatmul.bf16.gmra.mxu3 %v1928_v4 }
 0x103   : > { %1683 = vmatpush.bf16.msra.mxu0 %v2309_v5 }
 0x104   : > { %2320 = vmatpush.bf16.msra.mxu1 %v2309_v5 }
 0x107   : > { %1684 = vmatpush.bf16.msra.mxu0 %v2308_v6 }
 0x108   : > { %2321 = vmatpush.bf16.msra.mxu1 %v2308_v6 }
 0x10b   : > { %1685 = vmatpush.bf16.msra.mxu0 %v2307_v7 }
 0x10c   : > { %2322 = vmatpush.bf16.msra.mxu1 %v2307_v7 }
 0x10e   : > { %1686 = vmatmul.bf16.vlgmr.msra.gmra.mxu0 %v1896_v12 }
 0x10f   : > { %1691 = vmatmul.bf16.vlgmr.msra.gmra.mxu1 %v1932_v13 }
 0x14b   : > { %v1535_v14 = vpop.f32.mrf.mxu0 }
 0x14c   : > { %v1554_v15 = vpop.f32.mrf.mxu1  ;;  %v1536_v37 = vadd.f32 %v2365_v32, %v1535_v14 }
 0x14e   : > { %v1555_v39 = vadd.f32 %v1554_v15, %v1536_v37 }
 0x153   : > { %v1573_v16 = vpop.f32.mrf.mxu2  ;;  %v1537_v18 = vpop.f32.mrf.mxu0 }
 0x154   : > { %v1592_v17 = vpop.f32.mrf.mxu3  ;;  %v1556_v19 = vpop.f32.mrf.mxu1  ;;  %v1574_v41 = vadd.f32 %v1573_v16, %v1555_v39  ;;  %v1538_v46 = vadd.f32 %v2365_v32, %v1537_v18 }
 0x156   : > { %v1593_v49 = vadd.f32 %v1592_v17, %v1574_v41  ;;  %v1557_v51 = vadd.f32 %v1556_v19, %v1538_v46 }
 0x15b   : > { %v1575_v20 = vpop.f32.mrf.mxu2  ;;  %v1540_v22 = vpop.f32.mrf.mxu0 }
 0x15c   : > { %v1594_v21 = vpop.f32.mrf.mxu3  ;;  %v1559_v23 = vpop.f32.mrf.mxu1  ;;  %v1541_v38 = vadd.f32 %v2365_v32, %v1540_v22  ;;  %v1576_v55 = vadd.f32 %v1575_v20, %v1557_v51 }
 0x15e   : > { %v1560_v40 = vadd.f32 %v1559_v23, %v1541_v38  ;;  %v1595_v62 = vadd.f32 %v1594_v21, %v1576_v55 }
 0x163   : > { %v1578_v24 = vpop.f32.mrf.mxu2  ;;  %v1542_v26 = vpop.f32.mrf.mxu0 }
 0x164   : > { %v1597_v25 = vpop.f32.mrf.mxu3  ;;  %v1561_v27 = vpop.f32.mrf.mxu1  ;;  %v1579_v42 = vadd.f32 %v1578_v24, %v1560_v40  ;;  %v1543_v47 = vadd.f32 %v2365_v32, %v1542_v26 }
 0x166   : > { %v1598_v50 = vadd.f32 %v1597_v25, %v1579_v42  ;;  %v1562_v52 = vadd.f32 %v1561_v27, %v1543_v47 }
 0x16b   : > { %v1580_v28 = vpop.f32.mrf.mxu2  ;;  %v1611_v30 = vpop.f32.mrf.mxu0 }
 0x16c   : > { %v1599_v29 = vpop.f32.mrf.mxu3  ;;  %v1630_v31 = vpop.f32.mrf.mxu1  ;;  %v1612_v53 = vadd.f32 %v1611_v30, %v1593_v49  ;;  %v1581_v56 = vadd.f32 %v1580_v28, %v1562_v52 }
 0x16e   : > { %v1631_v60 = vadd.f32 %v1630_v31, %v1612_v53  ;;  %v1600_v63 = vadd.f32 %v1599_v29, %v1581_v56 }
 0x173   : > { %v1649_v33 = vpop.f32.mrf.mxu2  ;;  %v1613_v35 = vpop.f32.mrf.mxu0 }
 0x174   : > { %v1668_v34 = vpop.f32.mrf.mxu3  ;;  %v1632_v36 = vpop.f32.mrf.mxu1  ;;  %v1650_v0 = vadd.f32 %v1649_v33, %v1631_v60  ;;  %v1614_v3 = vadd.f32 %v1613_v35, %v1595_v62 }
 0x176   : > { %v1669_v5 = vadd.f32 %v1668_v34, %v1650_v0  ;;  %v1633_v10 = vadd.f32 %v1632_v36, %v1614_v3 }
 0x17b   : > { %v1651_v43 = vpop.f32.mrf.mxu2  ;;  %v1616_v44 = vpop.f32.mrf.mxu0 }
 0x17c   : > { %v1635_v45 = vpop.f32.mrf.mxu1  ;;  %v1670_v48 = vpop.f32.mrf.mxu3  ;;  %v1617_v54 = vadd.f32 %v1616_v44, %v1598_v50  ;;  %v1652_v14 = vadd.f32 %v1651_v43, %v1633_v10 }
 0x17e   : > { %v1636_v61 = vadd.f32 %v1635_v45, %v1617_v54  ;;  %v1671_v19 = vadd.f32 %v1670_v48, %v1652_v14 }
 0x183   : > { %v1654_v57 = vpop.f32.mrf.mxu2  ;;  %v1618_v58 = vpop.f32.mrf.mxu0 }
 0x184   : > { %v1637_v59 = vpop.f32.mrf.mxu1  ;;  %v1655_v1 = vadd.f32 %v1654_v57, %v1636_v61  ;;  %v1673_v2 = vpop.f32.mrf.mxu3  ;;  %v1619_v4 = vadd.f32 %v1618_v58, %v1600_v63 }
 0x186   : > { %v1674_v6 = vadd.f32 %v1673_v2, %v1655_v1  ;;  %v1638_v11 = vadd.f32 %v1637_v59, %v1619_v4 }
 0x18b   : > { %v1656_v7 = vpop.f32.mrf.mxu2  ;;  %v1687_v8 = vpop.f32.mrf.mxu0 }
 0x18c   : > { %v1692_v9 = vpop.f32.mrf.mxu1  ;;  %v1688_v12 = vadd.f32 %v1687_v8, %v1669_v5  ;;  %v1657_v15 = vadd.f32 %v1656_v7, %v1638_v11  ;;  %v1675_v18 = vpop.f32.mrf.mxu3 }
 0x18d   : > { %v1693_v13 = vadd.f32 %v1692_v9, %v1674_v6 }
 0x18e   : > { %v1697_v16 = vmax.f32 %v1688_v12, 0.0  ;;  %v1676_v20 = vadd.f32 %v1675_v18, %v1657_v15 }
 0x18f   : > { %v1699_v17 = vmax.f32 %v1693_v13, 0.0 }
 0x190   : > { %1701 = vst [vmem:[%s822_s9] sm:$0xff] %v1697_v16 }
 0x191   : > { %1703 = vst [vmem:[%s822_s9 + $0x10] sm:$0xff] %v1699_v17 }
 0x193   : > { %v1689_v21 = vpop.f32.mrf.mxu0 }
 0x194   : > { %v1694_v22 = vpop.f32.mrf.mxu1  ;;  %v1690_v23 = vadd.f32 %v1689_v21, %v1671_v19 }
 0x195   : > { %v1695_v24 = vadd.f32 %v1694_v22, %v1676_v20  ;;  %1711 = sbr.rel (!%p2461_p6) target bundleno = 418 (0x1a2), region = 77 }
 0x196   : > { %v1698_v25 = vmax.f32 %v1690_v23, 0.0 }
 0x197   : > { %v1700_v26 = vmax.f32 %v1695_v24, 0.0  ;;  %v1751_v27 = vld [vmem:[%s822_s9] sm:$0xff] (%p2461_p6) }
 0x198   : > { %1702 = vst [vmem:[%s822_s9 + $0x8] sm:$0xff] %v1698_v25  ;;  %v1755_v29 = vld [vmem:[%s822_s9 + $0x10] sm:$0xff] (%p2461_p6) }
 0x199   : > { %1704 = vst [vmem:[%s822_s9 + $0x18] sm:$0xff] %v1700_v26 }
 0x19a   : > { %1752 = vst [vmem:[%s1716_s8] sm:$0xff] %v1751_v27 }
 0x19b   : > { %1756 = vst [vmem:[%s1716_s8 + $0x20] sm:$0xff] %v1755_v29 }
 0x19f   : > { %v1753_v28 = vld [vmem:[%s822_s9 + $0x8] sm:$0xff] }
 0x1a0   : > { %v1757_v30 = vld [vmem:[%s822_s9 + $0x18] sm:$0xff]  ;;  %1754 = vst [vmem:[%s1716_s8 + $0x10] sm:$0xff] %v1753_v28 }
 0x1a1   : > { %1758 = vst [vmem:[%s1716_s8 + $0x30] sm:$0xff] %v1757_v30 }
 0x1a2 PF: > { %s13_s16 = sadd.s32 1, %s2404_s16   ;;  %s2994_s12 = smov %s2392_s13 }
 0x1a3   : > { %p10_p12 = scmp.ge.s32.totalorder %s13_s16, 4   ;;  %s2995_s13 = smov %s2466_s22 }
 0x1a4   : > { %s2996_s14 = smov %s2400_s15  ;;  %s2997_s15 = smov %s2999_s17 }
 0x1a5   :  { %12 = sbr.rel (!%p10_p12) target bundleno = 3 (0x3), region = 152 }

// kernel: generator_forward.11
= control target key start
LH: loop header
LB: loop body
LE: loop exit
PB: predicated region body
PF: predicated region fallthrough
CT: control target
= control target key end

     0   :  { %s2205_s12 = smov 0   ;;  %s2207_s13 = smov 0   ;;  %s2726_s0 = inlined_call_operand.vmem [shape: bf16[32,1024], index: 0, kind: input, shape index: {}]   ;;  %s2727_s1 = inlined_call_operand.vmem [shape: bf16[1024,512], index: 1, kind: input, shape index: {}]   ;;  %s2728_s2 = inlined_call_operand.vmem [shape: f32[1,512], index: 2, kind: input, shape index: {}]   ;;  %s2729_s3 = inlined_call_operand.vmem [shape: f32[32,512], index: 3, kind: output, shape index: {}]  }
   0x1   :  { %s2209_s14 = smov 0   ;;  %s2211_s15 = smov 0  }
   0x2   :  { %s2213_s16 = smov 0  }
   0x3 LB: > { %s22_s17 = sadd.s32 1, %s2179_s15  ;;  %s1690_s18 = sadd.s32 4294967295, %s2183_s16   ;;  %s2183_s16 = sphi %s2213_s16, %s13_s16   ;;  %s2179_s15 = sphi %s2211_s15, %s2734_s15   ;;  %s2175_s14 = sphi %s2209_s14, %s2733_s14   ;;  %s2171_s13 = sphi %s2207_s13, %s2732_s13   ;;  %s2167_s12 = sphi %s2205_s12, %s2731_s12  }
   0x4   : > { %p23_p0 = scmp.ge.s32.totalorder %s22_s17, 4  ;;  %p65_p1 = scmp.ne.s32.totalorder %s2171_s13, %s2167_s12 }
   0x5   : > { %p66_p2 = scmp.eq.s32.totalorder %s2183_s16, 0  ;;  %p123_p4 = scmp.eq.s32.totalorder %s1690_s18, 3 }
   0x6   : > { %s2736_s17 = smov (%p23_p0, %s22_s17), 0  ;;  %s58_s20 = sadd.s32 1, %s2171_s13 }
   0x7   : > { %p67_p3 = por %p66_p2, %p65_p1  ;;  %s55_s19 = ssub.s32 %s2179_s15, %s2736_s17 }
   0x8   : > { %p56_p5 = scmp.eq.s32.totalorder %s55_s19, 0  ;;  %p2240_p6 = por %p123_p4, %p65_p1 }
   0x9   : > { %p1694_p7 = scmp.ge.s32.totalorder %s2183_s16, 4 }
   0xa   : > { %s2245_s22 = scalar_select %p56_p5, %s2171_s13, %s58_s20  }
   0xb   : > { %155 = sbr.rel (%p1694_p7) target bundleno = 148 (0x94), region = 20 }
  0x10   : > { %158 = sbr.rel (!%p67_p3) target bundleno = 148 (0x94), region = 24  ;;  %s160_s23 = sand.u32 (%p67_p3), 1, %s2171_s13  }
  0x11   : > { %s1696_s24 = sshll.u32 (%p67_p3), %s2179_s15, 2  ;;  %s1695_s25 = sshll.u32 (%p67_p3), %s160_s23, 9 }
  0x12   : > { %s2253_s28 = scalar_lea.vmem (%p67_p3), %s2727_s1, %s1696_s24  ;;  %s2257_s29 = scalar_lea.vmem (%p67_p3), [#allocation2], %s1695_s25 }
  0x13   : > { %v181_v0 = vld [vmem:[%s2253_s28] sm:$0xf] (%p67_p3)  ;;  %v183_v1 = vld [vmem:[%s2253_s28 + $0x10] sm:$0xf] (%p67_p3) }
  0x14   : > { %182 = vst [vmem:[%s2257_s29] sm:$0xf] (%p67_p3), %v181_v0  ;;  %v185_v2 = vld [vmem:[%s2253_s28 + $0x20] sm:$0xf] (%p67_p3)  ;;  %v187_v3 = vld [vmem:[%s2253_s28 + $0x30] sm:$0xf] (%p67_p3) }
  0x15   : > { %184 = vst [vmem:[%s2257_s29 + $0x4] sm:$0xf] %v183_v1  ;;  %v189_v4 = vld [vmem:[%s2253_s28 + $0x40] sm:$0xf]  ;;  %v191_v5 = vld [vmem:[%s2253_s28 + $0x50] sm:$0xf] }
  0x16   : > { %186 = vst [vmem:[%s2257_s29 + $0x8] sm:$0xf] %v185_v2  ;;  %v193_v6 = vld [vmem:[%s2253_s28 + $0x60] sm:$0xf]  ;;  %v195_v7 = vld [vmem:[%s2253_s28 + $0x70] sm:$0xf] }
  0x17   : > { %188 = vst [vmem:[%s2257_s29 + $0xc] sm:$0xf] %v187_v3  ;;  %v197_v8 = vld [vmem:[%s2253_s28 + $0x80] sm:$0xf]  ;;  %v199_v9 = vld [vmem:[%s2253_s28 + $0x90] sm:$0xf] }
  0x18   : > { %190 = vst [vmem:[%s2257_s29 + $0x10] sm:$0xf] %v189_v4  ;;  %v201_v10 = vld [vmem:[%s2253_s28 + $0xa0] sm:$0xf]  ;;  %v203_v11 = vld [vmem:[%s2253_s28 + $0xb0] sm:$0xf] }
  0x19   : > { %192 = vst [vmem:[%s2257_s29 + $0x14] sm:$0xf] %v191_v5  ;;  %v205_v12 = vld [vmem:[%s2253_s28 + $0xc0] sm:$0xf]  ;;  %v207_v13 = vld [vmem:[%s2253_s28 + $0xd0] sm:$0xf] }
  0x1a   : > { %194 = vst [vmem:[%s2257_s29 + $0x18] sm:$0xf] %v193_v6  ;;  %v209_v14 = vld [vmem:[%s2253_s28 + $0xe0] sm:$0xf]  ;;  %v211_v15 = vld [vmem:[%s2253_s28 + $0xf0] sm:$0xf] }
  0x1b   : > { %196 = vst [vmem:[%s2257_s29 + $0x1c] sm:$0xf] %v195_v7  ;;  %v213_v16 = vld [vmem:[%s2253_s28 + $0x100] sm:$0xf]  ;;  %v215_v17 = vld [vmem:[%s2253_s28 + $0x110] sm:$0xf] }
  0x1c   : > { %198 = vst [vmem:[%s2257_s29 + $0x20] sm:$0xf] %v197_v8  ;;  %v217_v18 = vld [vmem:[%s2253_s28 + $0x120] sm:$0xf]  ;;  %v219_v19 = vld [vmem:[%s2253_s28 + $0x130] sm:$0xf] }
  0x1d   : > { %200 = vst [vmem:[%s2257_s29 + $0x24] sm:$0xf] %v199_v9  ;;  %v221_v20 = vld [vmem:[%s2253_s28 + $0x140] sm:$0xf]  ;;  %v223_v21 = vld [vmem:[%s2253_s28 + $0x150] sm:$0xf] }
  0x1e   : > { %202 = vst [vmem:[%s2257_s29 + $0x28] sm:$0xf] %v201_v10  ;;  %v225_v22 = vld [vmem:[%s2253_s28 + $0x160] sm:$0xf]  ;;  %v227_v23 = vld [vmem:[%s2253_s28 + $0x170] sm:$0xf] }
  0x1f   : > { %204 = vst [vmem:[%s2257_s29 + $0x2c] sm:$0xf] %v203_v11  ;;  %v229_v24 = vld [vmem:[%s2253_s28 + $0x180] sm:$0xf]  ;;  %v231_v25 = vld [vmem:[%s2253_s28 + $0x190] sm:$0xf] }
  0x20   : > { %206 = vst [vmem:[%s2257_s29 + $0x30] sm:$0xf] %v205_v12  ;;  %v233_v26 = vld [vmem:[%s2253_s28 + $0x1a0] sm:$0xf]  ;;  %v235_v27 = vld [vmem:[%s2253_s28 + $0x1b0] sm:$0xf] }
  0x21   : > { %208 = vst [vmem:[%s2257_s29 + $0x34] sm:$0xf] %v207_v13  ;;  %v237_v28 = vld [vmem:[%s2253_s28 + $0x1c0] sm:$0xf]  ;;  %v239_v29 = vld [vmem:[%s2253_s28 + $0x1d0] sm:$0xf] }
  0x22   : > { %210 = vst [vmem:[%s2257_s29 + $0x38] sm:$0xf] %v209_v14  ;;  %v241_v30 = vld [vmem:[%s2253_s28 + $0x1e0] sm:$0xf]  ;;  %v243_v31 = vld [vmem:[%s2253_s28 + $0x1f0] sm:$0xf] }
  0x23   : > { %212 = vst [vmem:[%s2257_s29 + $0x3c] sm:$0xf] %v211_v15  ;;  %v245_v32 = vld [vmem:[%s2253_s28 + $0x200] sm:$0xf]  ;;  %v247_v33 = vld [vmem:[%s2253_s28 + $0x210] sm:$0xf] }
  0x24   : > { %214 = vst [vmem:[%s2257_s29 + $0x40] sm:$0xf] %v213_v16  ;;  %v249_v34 = vld [vmem:[%s2253_s28 + $0x220] sm:$0xf]  ;;  %v251_v35 = vld [vmem:[%s2253_s28 + $0x230] sm:$0xf] }
  0x25   : > { %216 = vst [vmem:[%s2257_s29 + $0x44] sm:$0xf] %v215_v17  ;;  %v253_v36 = vld [vmem:[%s2253_s28 + $0x240] sm:$0xf]  ;;  %v255_v37 = vld [vmem:[%s2253_s28 + $0x250] sm:$0xf] }
  0x26   : > { %218 = vst [vmem:[%s2257_s29 + $0x48] sm:$0xf] %v217_v18  ;;  %v257_v38 = vld [vmem:[%s2253_s28 + $0x260] sm:$0xf]  ;;  %v259_v39 = vld [vmem:[%s2253_s28 + $0x270] sm:$0xf] }
  0x27   : > { %220 = vst [vmem:[%s2257_s29 + $0x4c] sm:$0xf] %v219_v19  ;;  %v261_v40 = vld [vmem:[%s2253_s28 + $0x280] sm:$0xf]  ;;  %v263_v41 = vld [vmem:[%s2253_s28 + $0x290] sm:$0xf] }
  0x28   : > { %222 = vst [vmem:[%s2257_s29 + $0x50] sm:$0xf] %v221_v20  ;;  %v265_v42 = vld [vmem:[%s2253_s28 + $0x2a0] sm:$0xf]  ;;  %v267_v43 = vld [vmem:[%s2253_s28 + $0x2b0] sm:$0xf] }
  0x29   : > { %224 = vst [vmem:[%s2257_s29 + $0x54] sm:$0xf] %v223_v21  ;;  %v269_v44 = vld [vmem:[%s2253_s28 + $0x2c0] sm:$0xf]  ;;  %v271_v45 = vld [vmem:[%s2253_s28 + $0x2d0] sm:$0xf] }
  0x2a   : > { %226 = vst [vmem:[%s2257_s29 + $0x58] sm:$0xf] %v225_v22  ;;  %v273_v46 = vld [vmem:[%s2253_s28 + $0x2e0] sm:$0xf]  ;;  %v275_v47 = vld [vmem:[%s2253_s28 + $0x2f0] sm:$0xf] }
  0x2b   : > { %228 = vst [vmem:[%s2257_s29 + $0x5c] sm:$0xf] %v227_v23  ;;  %v277_v48 = vld [vmem:[%s2253_s28 + $0x300] sm:$0xf]  ;;  %v279_v49 = vld [vmem:[%s2253_s28 + $0x310] sm:$0xf] }
  0x2c   : > { %230 = vst [vmem:[%s2257_s29 + $0x60] sm:$0xf] %v229_v24  ;;  %v281_v50 = vld [vmem:[%s2253_s28 + $0x320] sm:$0xf]  ;;  %v283_v51 = vld [vmem:[%s2253_s28 + $0x330] sm:$0xf] }
  0x2d   : > { %232 = vst [vmem:[%s2257_s29 + $0x64] sm:$0xf] %v231_v25  ;;  %v285_v52 = vld [vmem:[%s2253_s28 + $0x340] sm:$0xf]  ;;  %v287_v53 = vld [vmem:[%s2253_s28 + $0x350] sm:$0xf] }
  0x2e   : > { %234 = vst [vmem:[%s2257_s29 + $0x68] sm:$0xf] %v233_v26  ;;  %v289_v54 = vld [vmem:[%s2253_s28 + $0x360] sm:$0xf]  ;;  %v291_v55 = vld [vmem:[%s2253_s28 + $0x370] sm:$0xf] }
  0x2f   : > { %236 = vst [vmem:[%s2257_s29 + $0x6c] sm:$0xf] %v235_v27  ;;  %v293_v56 = vld [vmem:[%s2253_s28 + $0x380] sm:$0xf]  ;;  %v295_v57 = vld [vmem:[%s2253_s28 + $0x390] sm:$0xf] }
  0x30   : > { %238 = vst [vmem:[%s2257_s29 + $0x70] sm:$0xf] %v237_v28  ;;  %v297_v58 = vld [vmem:[%s2253_s28 + $0x3a0] sm:$0xf]  ;;  %v299_v59 = vld [vmem:[%s2253_s28 + $0x3b0] sm:$0xf] }
  0x31   : > { %240 = vst [vmem:[%s2257_s29 + $0x74] sm:$0xf] %v239_v29  ;;  %v301_v60 = vld [vmem:[%s2253_s28 + $0x3c0] sm:$0xf]  ;;  %v303_v61 = vld [vmem:[%s2253_s28 + $0x3d0] sm:$0xf] }
  0x32   : > { %242 = vst [vmem:[%s2257_s29 + $0x78] sm:$0xf] %v241_v30  ;;  %v305_v62 = vld [vmem:[%s2253_s28 + $0x3e0] sm:$0xf]  ;;  %v307_v63 = vld [vmem:[%s2253_s28 + $0x3f0] sm:$0xf] }
  0x33   : > { %244 = vst [vmem:[%s2257_s29 + $0x7c] sm:$0xf] %v243_v31  ;;  %v309_v0 = vld [vmem:[%s2253_s28 + $0x400] sm:$0xf]  ;;  %v311_v1 = vld [vmem:[%s2253_s28 + $0x410] sm:$0xf] }
  0x34   : > { %246 = vst [vmem:[%s2257_s29 + $0x80] sm:$0xf] %v245_v32  ;;  %v313_v2 = vld [vmem:[%s2253_s28 + $0x420] sm:$0xf]  ;;  %v315_v3 = vld [vmem:[%s2253_s28 + $0x430] sm:$0xf] }
  0x35   : > { %248 = vst [vmem:[%s2257_s29 + $0x84] sm:$0xf] %v247_v33  ;;  %v317_v4 = vld [vmem:[%s2253_s28 + $0x440] sm:$0xf]  ;;  %v319_v5 = vld [vmem:[%s2253_s28 + $0x450] sm:$0xf] }
  0x36   : > { %250 = vst [vmem:[%s2257_s29 + $0x88] sm:$0xf] %v249_v34  ;;  %v321_v6 = vld [vmem:[%s2253_s28 + $0x460] sm:$0xf]  ;;  %v323_v7 = vld [vmem:[%s2253_s28 + $0x470] sm:$0xf] }
  0x37   : > { %252 = vst [vmem:[%s2257_s29 + $0x8c] sm:$0xf] %v251_v35  ;;  %v325_v8 = vld [vmem:[%s2253_s28 + $0x480] sm:$0xf]  ;;  %v327_v9 = vld [vmem:[%s2253_s28 + $0x490] sm:$0xf] }
  0x38   : > { %254 = vst [vmem:[%s2257_s29 + $0x90] sm:$0xf] %v253_v36  ;;  %v329_v10 = vld [vmem:[%s2253_s28 + $0x4a0] sm:$0xf]  ;;  %v331_v11 = vld [vmem:[%s2253_s28 + $0x4b0] sm:$0xf] }
  0x39   : > { %256 = vst [vmem:[%s2257_s29 + $0x94] sm:$0xf] %v255_v37  ;;  %v333_v12 = vld [vmem:[%s2253_s28 + $0x4c0] sm:$0xf]  ;;  %v335_v13 = vld [vmem:[%s2253_s28 + $0x4d0] sm:$0xf] }
  0x3a   : > { %258 = vst [vmem:[%s2257_s29 + $0x98] sm:$0xf] %v257_v38  ;;  %v337_v14 = vld [vmem:[%s2253_s28 + $0x4e0] sm:$0xf]  ;;  %v339_v15 = vld [vmem:[%s2253_s28 + $0x4f0] sm:$0xf] }
  0x3b   : > { %260 = vst [vmem:[%s2257_s29 + $0x9c] sm:$0xf] %v259_v39  ;;  %v341_v16 = vld [vmem:[%s2253_s28 + $0x500] sm:$0xf]  ;;  %v343_v17 = vld [vmem:[%s2253_s28 + $0x510] sm:$0xf] }
  0x3c   : > { %262 = vst [vmem:[%s2257_s29 + $0xa0] sm:$0xf] %v261_v40  ;;  %v345_v18 = vld [vmem:[%s2253_s28 + $0x520] sm:$0xf]  ;;  %v347_v19 = vld [vmem:[%s2253_s28 + $0x530] sm:$0xf] }
  0x3d   : > { %264 = vst [vmem:[%s2257_s29 + $0xa4] sm:$0xf] %v263_v41  ;;  %v349_v20 = vld [vmem:[%s2253_s28 + $0x540] sm:$0xf]  ;;  %v351_v21 = vld [vmem:[%s2253_s28 + $0x550] sm:$0xf] }
  0x3e   : > { %266 = vst [vmem:[%s2257_s29 + $0xa8] sm:$0xf] %v265_v42  ;;  %v353_v22 = vld [vmem:[%s2253_s28 + $0x560] sm:$0xf]  ;;  %v355_v23 = vld [vmem:[%s2253_s28 + $0x570] sm:$0xf] }
  0x3f   : > { %268 = vst [vmem:[%s2257_s29 + $0xac] sm:$0xf] %v267_v43  ;;  %v357_v24 = vld [vmem:[%s2253_s28 + $0x580] sm:$0xf]  ;;  %v359_v25 = vld [vmem:[%s2253_s28 + $0x590] sm:$0xf] }
  0x40   : > { %270 = vst [vmem:[%s2257_s29 + $0xb0] sm:$0xf] %v269_v44  ;;  %v361_v26 = vld [vmem:[%s2253_s28 + $0x5a0] sm:$0xf]  ;;  %v363_v27 = vld [vmem:[%s2253_s28 + $0x5b0] sm:$0xf] }
  0x41   : > { %272 = vst [vmem:[%s2257_s29 + $0xb4] sm:$0xf] %v271_v45  ;;  %v365_v28 = vld [vmem:[%s2253_s28 + $0x5c0] sm:$0xf]  ;;  %v367_v29 = vld [vmem:[%s2253_s28 + $0x5d0] sm:$0xf] }
  0x42   : > { %274 = vst [vmem:[%s2257_s29 + $0xb8] sm:$0xf] %v273_v46  ;;  %v369_v30 = vld [vmem:[%s2253_s28 + $0x5e0] sm:$0xf]  ;;  %v371_v31 = vld [vmem:[%s2253_s28 + $0x5f0] sm:$0xf] }
  0x43   : > { %276 = vst [vmem:[%s2257_s29 + $0xbc] sm:$0xf] %v275_v47  ;;  %v373_v32 = vld [vmem:[%s2253_s28 + $0x600] sm:$0xf]  ;;  %v375_v33 = vld [vmem:[%s2253_s28 + $0x610] sm:$0xf] }
  0x44   : > { %278 = vst [vmem:[%s2257_s29 + $0xc0] sm:$0xf] %v277_v48  ;;  %v377_v34 = vld [vmem:[%s2253_s28 + $0x620] sm:$0xf]  ;;  %v379_v35 = vld [vmem:[%s2253_s28 + $0x630] sm:$0xf] }
  0x45   : > { %280 = vst [vmem:[%s2257_s29 + $0xc4] sm:$0xf] %v279_v49  ;;  %v381_v36 = vld [vmem:[%s2253_s28 + $0x640] sm:$0xf]  ;;  %v383_v37 = vld [vmem:[%s2253_s28 + $0x650] sm:$0xf] }
  0x46   : > { %282 = vst [vmem:[%s2257_s29 + $0xc8] sm:$0xf] %v281_v50  ;;  %v385_v38 = vld [vmem:[%s2253_s28 + $0x660] sm:$0xf]  ;;  %v387_v39 = vld [vmem:[%s2253_s28 + $0x670] sm:$0xf] }
  0x47   : > { %284 = vst [vmem:[%s2257_s29 + $0xcc] sm:$0xf] %v283_v51  ;;  %v389_v40 = vld [vmem:[%s2253_s28 + $0x680] sm:$0xf]  ;;  %v391_v41 = vld [vmem:[%s2253_s28 + $0x690] sm:$0xf] }
  0x48   : > { %286 = vst [vmem:[%s2257_s29 + $0xd0] sm:$0xf] %v285_v52  ;;  %v393_v42 = vld [vmem:[%s2253_s28 + $0x6a0] sm:$0xf]  ;;  %v395_v43 = vld [vmem:[%s2253_s28 + $0x6b0] sm:$0xf] }
  0x49   : > { %288 = vst [vmem:[%s2257_s29 + $0xd4] sm:$0xf] %v287_v53  ;;  %v397_v44 = vld [vmem:[%s2253_s28 + $0x6c0] sm:$0xf]  ;;  %v399_v45 = vld [vmem:[%s2253_s28 + $0x6d0] sm:$0xf] }
  0x4a   : > { %290 = vst [vmem:[%s2257_s29 + $0xd8] sm:$0xf] %v289_v54  ;;  %v401_v46 = vld [vmem:[%s2253_s28 + $0x6e0] sm:$0xf]  ;;  %v403_v47 = vld [vmem:[%s2253_s28 + $0x6f0] sm:$0xf] }
  0x4b   : > { %292 = vst [vmem:[%s2257_s29 + $0xdc] sm:$0xf] %v291_v55  ;;  %v405_v48 = vld [vmem:[%s2253_s28 + $0x700] sm:$0xf]  ;;  %v407_v49 = vld [vmem:[%s2253_s28 + $0x710] sm:$0xf] }
  0x4c   : > { %294 = vst [vmem:[%s2257_s29 + $0xe0] sm:$0xf] %v293_v56  ;;  %v409_v50 = vld [vmem:[%s2253_s28 + $0x720] sm:$0xf]  ;;  %v411_v51 = vld [vmem:[%s2253_s28 + $0x730] sm:$0xf] }
  0x4d   : > { %296 = vst [vmem:[%s2257_s29 + $0xe4] sm:$0xf] %v295_v57  ;;  %v413_v52 = vld [vmem:[%s2253_s28 + $0x740] sm:$0xf]  ;;  %v415_v53 = vld [vmem:[%s2253_s28 + $0x750] sm:$0xf] }
  0x4e   : > { %298 = vst [vmem:[%s2257_s29 + $0xe8] sm:$0xf] %v297_v58  ;;  %v417_v54 = vld [vmem:[%s2253_s28 + $0x760] sm:$0xf]  ;;  %v419_v55 = vld [vmem:[%s2253_s28 + $0x770] sm:$0xf] }
  0x4f   : > { %300 = vst [vmem:[%s2257_s29 + $0xec] sm:$0xf] %v299_v59  ;;  %v421_v56 = vld [vmem:[%s2253_s28 + $0x780] sm:$0xf]  ;;  %v423_v57 = vld [vmem:[%s2253_s28 + $0x790] sm:$0xf] }
  0x50   : > { %302 = vst [vmem:[%s2257_s29 + $0xf0] sm:$0xf] %v301_v60  ;;  %v425_v58 = vld [vmem:[%s2253_s28 + $0x7a0] sm:$0xf]  ;;  %v427_v59 = vld [vmem:[%s2253_s28 + $0x7b0] sm:$0xf] }
  0x51   : > { %304 = vst [vmem:[%s2257_s29 + $0xf4] sm:$0xf] %v303_v61  ;;  %v429_v60 = vld [vmem:[%s2253_s28 + $0x7c0] sm:$0xf]  ;;  %v431_v61 = vld [vmem:[%s2253_s28 + $0x7d0] sm:$0xf] }
  0x52   : > { %306 = vst [vmem:[%s2257_s29 + $0xf8] sm:$0xf] %v305_v62  ;;  %v433_v62 = vld [vmem:[%s2253_s28 + $0x7e0] sm:$0xf] }
  0x53   : > { %308 = vst [vmem:[%s2257_s29 + $0xfc] sm:$0xf] %v307_v63  ;;  %v435_v63 = vld [vmem:[%s2253_s28 + $0x7f0] sm:$0xf] }
  0x54   : > { %310 = vst [vmem:[%s2257_s29 + $0x100] sm:$0xf] %v309_v0 }
  0x55   : > { %312 = vst [vmem:[%s2257_s29 + $0x104] sm:$0xf] %v311_v1 }
  0x56   : > { %314 = vst [vmem:[%s2257_s29 + $0x108] sm:$0xf] %v313_v2 }
  0x57   : > { %316 = vst [vmem:[%s2257_s29 + $0x10c] sm:$0xf] %v315_v3 }
  0x58   : > { %318 = vst [vmem:[%s2257_s29 + $0x110] sm:$0xf] %v317_v4 }
  0x59   : > { %320 = vst [vmem:[%s2257_s29 + $0x114] sm:$0xf] %v319_v5 }
  0x5a   : > { %322 = vst [vmem:[%s2257_s29 + $0x118] sm:$0xf] %v321_v6 }
  0x5b   : > { %324 = vst [vmem:[%s2257_s29 + $0x11c] sm:$0xf] %v323_v7 }
  0x5c   : > { %326 = vst [vmem:[%s2257_s29 + $0x120] sm:$0xf] %v325_v8 }
  0x5d   : > { %328 = vst [vmem:[%s2257_s29 + $0x124] sm:$0xf] %v327_v9 }
  0x5e   : > { %330 = vst [vmem:[%s2257_s29 + $0x128] sm:$0xf] %v329_v10 }
  0x5f   : > { %332 = vst [vmem:[%s2257_s29 + $0x12c] sm:$0xf] %v331_v11 }
  0x60   : > { %334 = vst [vmem:[%s2257_s29 + $0x130] sm:$0xf] %v333_v12 }
  0x61   : > { %336 = vst [vmem:[%s2257_s29 + $0x134] sm:$0xf] %v335_v13 }
  0x62   : > { %338 = vst [vmem:[%s2257_s29 + $0x138] sm:$0xf] %v337_v14 }
  0x63   : > { %340 = vst [vmem:[%s2257_s29 + $0x13c] sm:$0xf] %v339_v15 }
  0x64   : > { %342 = vst [vmem:[%s2257_s29 + $0x140] sm:$0xf] %v341_v16 }
  0x65   : > { %344 = vst [vmem:[%s2257_s29 + $0x144] sm:$0xf] %v343_v17 }
  0x66   : > { %346 = vst [vmem:[%s2257_s29 + $0x148] sm:$0xf] %v345_v18 }
  0x67   : > { %348 = vst [vmem:[%s2257_s29 + $0x14c] sm:$0xf] %v347_v19 }
  0x68   : > { %350 = vst [vmem:[%s2257_s29 + $0x150] sm:$0xf] %v349_v20 }
  0x69   : > { %352 = vst [vmem:[%s2257_s29 + $0x154] sm:$0xf] %v351_v21 }
  0x6a   : > { %354 = vst [vmem:[%s2257_s29 + $0x158] sm:$0xf] %v353_v22 }
  0x6b   : > { %356 = vst [vmem:[%s2257_s29 + $0x15c] sm:$0xf] %v355_v23 }
  0x6c   : > { %358 = vst [vmem:[%s2257_s29 + $0x160] sm:$0xf] %v357_v24 }
  0x6d   : > { %360 = vst [vmem:[%s2257_s29 + $0x164] sm:$0xf] %v359_v25 }
  0x6e   : > { %362 = vst [vmem:[%s2257_s29 + $0x168] sm:$0xf] %v361_v26 }
  0x6f   : > { %364 = vst [vmem:[%s2257_s29 + $0x16c] sm:$0xf] %v363_v27 }
  0x70   : > { %366 = vst [vmem:[%s2257_s29 + $0x170] sm:$0xf] %v365_v28 }
  0x71   : > { %368 = vst [vmem:[%s2257_s29 + $0x174] sm:$0xf] %v367_v29 }
  0x72   : > { %370 = vst [vmem:[%s2257_s29 + $0x178] sm:$0xf] %v369_v30 }
  0x73   : > { %372 = vst [vmem:[%s2257_s29 + $0x17c] sm:$0xf] %v371_v31 }
  0x74   : > { %374 = vst [vmem:[%s2257_s29 + $0x180] sm:$0xf] %v373_v32 }
  0x75   : > { %376 = vst [vmem:[%s2257_s29 + $0x184] sm:$0xf] %v375_v33 }
  0x76   : > { %378 = vst [vmem:[%s2257_s29 + $0x188] sm:$0xf] %v377_v34 }
  0x77   : > { %380 = vst [vmem:[%s2257_s29 + $0x18c] sm:$0xf] %v379_v35 }
  0x78   : > { %382 = vst [vmem:[%s2257_s29 + $0x190] sm:$0xf] %v381_v36 }
  0x79   : > { %384 = vst [vmem:[%s2257_s29 + $0x194] sm:$0xf] %v383_v37 }
  0x7a   : > { %386 = vst [vmem:[%s2257_s29 + $0x198] sm:$0xf] %v385_v38 }
  0x7b   : > { %388 = vst [vmem:[%s2257_s29 + $0x19c] sm:$0xf] %v387_v39 }
  0x7c   : > { %390 = vst [vmem:[%s2257_s29 + $0x1a0] sm:$0xf] %v389_v40 }
  0x7d   : > { %392 = vst [vmem:[%s2257_s29 + $0x1a4] sm:$0xf] %v391_v41 }
  0x7e   : > { %394 = vst [vmem:[%s2257_s29 + $0x1a8] sm:$0xf] %v393_v42 }
  0x7f   : > { %396 = vst [vmem:[%s2257_s29 + $0x1ac] sm:$0xf] %v395_v43 }
  0x80   : > { %398 = vst [vmem:[%s2257_s29 + $0x1b0] sm:$0xf] %v397_v44 }
  0x81   : > { %400 = vst [vmem:[%s2257_s29 + $0x1b4] sm:$0xf] %v399_v45 }
  0x82   : > { %402 = vst [vmem:[%s2257_s29 + $0x1b8] sm:$0xf] %v401_v46 }
  0x83   : > { %404 = vst [vmem:[%s2257_s29 + $0x1bc] sm:$0xf] %v403_v47 }
  0x84   : > { %406 = vst [vmem:[%s2257_s29 + $0x1c0] sm:$0xf] %v405_v48 }
  0x85   : > { %408 = vst [vmem:[%s2257_s29 + $0x1c4] sm:$0xf] %v407_v49 }
  0x86   : > { %410 = vst [vmem:[%s2257_s29 + $0x1c8] sm:$0xf] %v409_v50 }
  0x87   : > { %412 = vst [vmem:[%s2257_s29 + $0x1cc] sm:$0xf] %v411_v51 }
  0x88   : > { %414 = vst [vmem:[%s2257_s29 + $0x1d0] sm:$0xf] %v413_v52 }
  0x89   : > { %416 = vst [vmem:[%s2257_s29 + $0x1d4] sm:$0xf] %v415_v53 }
  0x8a   : > { %418 = vst [vmem:[%s2257_s29 + $0x1d8] sm:$0xf] %v417_v54 }
  0x8b   : > { %420 = vst [vmem:[%s2257_s29 + $0x1dc] sm:$0xf] %v419_v55 }
  0x8c   : > { %422 = vst [vmem:[%s2257_s29 + $0x1e0] sm:$0xf] %v421_v56 }
  0x8d   : > { %424 = vst [vmem:[%s2257_s29 + $0x1e4] sm:$0xf] %v423_v57 }
  0x8e   : > { %426 = vst [vmem:[%s2257_s29 + $0x1e8] sm:$0xf] %v425_v58 }
  0x8f   : > { %428 = vst [vmem:[%s2257_s29 + $0x1ec] sm:$0xf] %v427_v59 }
  0x90   : > { %430 = vst [vmem:[%s2257_s29 + $0x1f0] sm:$0xf] %v429_v60 }
  0x91   : > { %432 = vst [vmem:[%s2257_s29 + $0x1f4] sm:$0xf] %v431_v61 }
  0x92   : > { %434 = vst [vmem:[%s2257_s29 + $0x1f8] sm:$0xf] %v433_v62 }
  0x93   : > { %436 = vst [vmem:[%s2257_s29 + $0x1fc] sm:$0xf] %v435_v63 }
  0x94 PF: > { %p1697_p8 = scmp.ge.s32.totalorder %s2183_s16, 1  ;;  %p721_p9 = scmp.lt.s32.totalorder %s2183_s16, 5 }
  0x96   : > { %p722_p10 = pnand %p1697_p8, %p721_p9 }
  0x97   : > { %s728_s30 = sand.u32 (!%p722_p10), 1, %s2167_s12   ;;  %p766_p11 = scmp.lt.s32.totalorder (!%p722_p10), %s2175_s14, 3 }
  0x98   : > { %725 = sbr.rel (%p722_p10) target bundleno = 394 (0x18a), region = 69  ;;  %s1698_s4 = sshll.u32 (!%p722_p10), %s728_s30, 9 }
  0x99   : > { %s2518_s5 = scalar_lea.vmem (!%p722_p10), [#allocation2], %s1698_s4 }
  0x9d   : > { %v2047_v0 = vld [vmem:[%s2518_s5 + $0x38] sm:$0xff]  ;;  %v2046_v4 = vld [vmem:[%s2518_s5 + $0x30] sm:$0xff]  ;;  %v2045_v8 = vld [vmem:[%s2518_s5 + $0x28] sm:$0xff]  ;;  %s2544_s6 = scalar_select %p766_p11, %s2175_s14, 3 }
  0x9e   : > { %v2055_v1 = vld [vmem:[%s2518_s5 + $0x78] sm:$0xff]  ;;  %1382 = vmatpush.bf16.msra.mxu0 %v2047_v0  ;;  %v2054_v5 = vld [vmem:[%s2518_s5 + $0x70] sm:$0xff]  ;;  %v2053_v9 = vld [vmem:[%s2518_s5 + $0x68] sm:$0xff]  ;;  %s2021_s12 = sshll.u32 (%p2240_p6), %s2175_s14, 3 }
  0x9f   : > { %v2063_v2 = vld [vmem:[%s2518_s5 + $0xb8] sm:$0xff]  ;;  %1401 = vmatpush.bf16.msra.mxu1 %v2055_v1  ;;  %v2062_v6 = vld [vmem:[%s2518_s5 + $0xb0] sm:$0xff]  ;;  %v2061_v10 = vld [vmem:[%s2518_s5 + $0xa8] sm:$0xff]  ;;  %s768_s9 = scalar_lea.vmem %s2728_s2, %s2544_s6  ;;  %s1699_s6 = sshll.u32 %s728_s30, 5 }
  0xa0   : > { %v2071_v3 = vld [vmem:[%s2518_s5 + $0xf8] sm:$0xff]  ;;  %1420 = vmatpush.bf16.msra.mxu2 %v2063_v2  ;;  %v2070_v7 = vld [vmem:[%s2518_s5 + $0xf0] sm:$0xff]  ;;  %v2069_v11 = vld [vmem:[%s2518_s5 + $0xe8] sm:$0xff]  ;;  %s1553_s23 = scalar_lea.vmem (%p2240_p6), %s2729_s3, %s2021_s12 }
  0xa1   : > { %1439 = vmatpush.bf16.msra.mxu3 %v2071_v3  ;;  %v2044_v12 = vld [vmem:[%s2518_s5 + $0x20] sm:$0xff]  ;;  %v2043_v16 = vld [vmem:[%s2518_s5 + $0x18] sm:$0xff]  ;;  %v2042_v20 = vld [vmem:[%s2518_s5 + $0x10] sm:$0xff] }
  0xa2   : > { %1383 = vmatpush.bf16.msra.mxu0 %v2046_v4  ;;  %v2052_v13 = vld [vmem:[%s2518_s5 + $0x60] sm:$0xff]  ;;  %v2051_v17 = vld [vmem:[%s2518_s5 + $0x58] sm:$0xff]  ;;  %v2050_v21 = vld [vmem:[%s2518_s5 + $0x50] sm:$0xff] }
  0xa3   : > { %1402 = vmatpush.bf16.msra.mxu1 %v2054_v5  ;;  %v2060_v14 = vld [vmem:[%s2518_s5 + $0xa0] sm:$0xff]  ;;  %v2059_v18 = vld [vmem:[%s2518_s5 + $0x98] sm:$0xff]  ;;  %v2058_v22 = vld [vmem:[%s2518_s5 + $0x90] sm:$0xff] }
  0xa4   : > { %1421 = vmatpush.bf16.msra.mxu2 %v2062_v6  ;;  %v2068_v15 = vld [vmem:[%s2518_s5 + $0xe0] sm:$0xff]  ;;  %v2067_v19 = vld [vmem:[%s2518_s5 + $0xd8] sm:$0xff]  ;;  %v2066_v23 = vld [vmem:[%s2518_s5 + $0xd0] sm:$0xff] }
  0xa5   : > { %1440 = vmatpush.bf16.msra.mxu3 %v2070_v7  ;;  %v2041_v24 = vld [vmem:[%s2518_s5 + $0x8] sm:$0xff]  ;;  %v2040_v28 = vld [vmem:[%s2518_s5] sm:$0xff]  ;;  %v2095_v40 = vld [vmem:[%s2518_s5 + $0x1b8] sm:$0xff] }
  0xa6   : > { %1384 = vmatpush.bf16.msra.mxu0 %v2045_v8  ;;  %v2049_v25 = vld [vmem:[%s2518_s5 + $0x48] sm:$0xff]  ;;  %v1702_v29 = vld [vmem:[%s2726_s0] sm:$0xf]  ;;  %v2024_v34 = vld [vmem:[%s2726_s0 + $0x4] sm:$0xf] }
  0xa7   : > { %1403 = vmatpush.bf16.msra.mxu1 %v2053_v9  ;;  %v2057_v26 = vld [vmem:[%s2518_s5 + $0x88] sm:$0xff]  ;;  %v2028_v30 = vld [vmem:[%s2726_s0 + $0x1c] sm:$0xf0]  ;;  %v1704_v35 = vld [vmem:[%s2726_s0 + $0x20] sm:$0xf0] }
  0xa8   : > { %1422 = vmatpush.bf16.msra.mxu2 %v2061_v10  ;;  %v2065_v27 = vld [vmem:[%s2518_s5 + $0xc8] sm:$0xff]  ;;  %v2048_v31 = vld [vmem:[%s2518_s5 + $0x40] sm:$0xff]  ;;  %v2079_v41 = vld [vmem:[%s2518_s5 + $0x138] sm:$0xff]  ;;  %v1703_v42 = vor.u32 %v2028_v30, %v1702_v29  ;;  %v1707_v43 = vor.u32 %v2024_v34, %v1704_v35 }
  0xa9   : > { %1441 = vmatpush.bf16.msra.mxu3 %v2069_v11  ;;  %v2056_v32 = vld [vmem:[%s2518_s5 + $0x80] sm:$0xff]  ;;  %v1710_v36 = vld [vmem:[%s2726_s0 + $0x8] sm:$0xf]  ;;  %v2025_v38 = vld [vmem:[%s2726_s0 + $0xc] sm:$0xf] }
  0xaa   : > { %1385 = vmatpush.bf16.msra.mxu0 %v2044_v12  ;;  %v2064_v33 = vld [vmem:[%s2518_s5 + $0xc0] sm:$0xff]  ;;  %v2029_v37 = vld [vmem:[%s2726_s0 + $0x24] sm:$0xf0]  ;;  %v1712_v39 = vld [vmem:[%s2726_s0 + $0x28] sm:$0xf0] }
  0xab   : > { %1404 = vmatpush.bf16.msra.mxu1 %v2052_v13  ;;  %v1711_v44 = vor.u32 %v2029_v37, %v1710_v36  ;;  %v1715_v45 = vor.u32 %v2025_v38, %v1712_v39  ;;  %v2087_v46 = vld [vmem:[%s2518_s5 + $0x178] sm:$0xff]  ;;  %v2094_v48 = vld [vmem:[%s2518_s5 + $0x1b0] sm:$0xff]  ;;  %v2093_v52 = vld [vmem:[%s2518_s5 + $0x1a8] sm:$0xff] }
  0xac   : > { %1423 = vmatpush.bf16.msra.mxu2 %v2060_v14  ;;  %v2103_v47 = vld [vmem:[%s2518_s5 + $0x1f8] sm:$0xff]  ;;  %v2078_v49 = vld [vmem:[%s2518_s5 + $0x130] sm:$0xff]  ;;  %v2077_v53 = vld [vmem:[%s2518_s5 + $0x128] sm:$0xff] }
  0xad   : > { %1442 = vmatpush.bf16.msra.mxu3 %v2068_v15  ;;  %v2086_v50 = vld [vmem:[%s2518_s5 + $0x170] sm:$0xff]  ;;  %v2085_v54 = vld [vmem:[%s2518_s5 + $0x168] sm:$0xff]  ;;  %v2092_v56 = vld [vmem:[%s2518_s5 + $0x1a0] sm:$0xff] }
  0xae   : > { %1386 = vmatpush.bf16.msra.mxu0 %v2043_v16  ;;  %v2102_v51 = vld [vmem:[%s2518_s5 + $0x1f0] sm:$0xff]  ;;  %v2101_v55 = vld [vmem:[%s2518_s5 + $0x1e8] sm:$0xff]  ;;  %v2076_v57 = vld [vmem:[%s2518_s5 + $0x120] sm:$0xff] }
  0xaf   : > { %1405 = vmatpush.bf16.msra.mxu1 %v2051_v17  ;;  %v2084_v58 = vld [vmem:[%s2518_s5 + $0x160] sm:$0xff]  ;;  %v1742_v0 = vld [vmem:[%s2726_s0 + $0x48] sm:$0xf]  ;;  %v2033_v2 = vld [vmem:[%s2726_s0 + $0x4c] sm:$0xf] }
  0xb0   : > { %1424 = vmatpush.bf16.msra.mxu2 %v2059_v18  ;;  %v2100_v59 = vld [vmem:[%s2518_s5 + $0x1e0] sm:$0xff]  ;;  %v2037_v1 = vld [vmem:[%s2726_s0 + $0x64] sm:$0xf0]  ;;  %v1744_v3 = vld [vmem:[%s2726_s0 + $0x68] sm:$0xf0] }
  0xb1   : > { %1443 = vmatpush.bf16.msra.mxu3 %v2067_v19  ;;  %v1734_v60 = vld [vmem:[%s2726_s0 + $0x40] sm:$0xf]  ;;  %v2032_v62 = vld [vmem:[%s2726_s0 + $0x44] sm:$0xf]  ;;  %v2091_v4 = vld [vmem:[%s2518_s5 + $0x198] sm:$0xff]  ;;  %v1743_v8 = vor.u32 %v2037_v1, %v1742_v0  ;;  %v1747_v9 = vor.u32 %v2033_v2, %v1744_v3 }
  0xb2   : > { %1387 = vmatpush.bf16.msra.mxu0 %v2042_v20  ;;  %v2036_v61 = vld [vmem:[%s2726_s0 + $0x5c] sm:$0xf0]  ;;  %v1736_v63 = vld [vmem:[%s2726_s0 + $0x60] sm:$0xf0]  ;;  %v2075_v5 = vld [vmem:[%s2518_s5 + $0x118] sm:$0xff] }
  0xb3   : > { %1406 = vmatpush.bf16.msra.mxu1 %v2050_v21  ;;  %v1735_v6 = vor.u32 %v2036_v61, %v1734_v60  ;;  %v1739_v7 = vor.u32 %v2032_v62, %v1736_v63  ;;  %v2083_v10 = vld [vmem:[%s2518_s5 + $0x158] sm:$0xff]  ;;  %v2090_v12 = vld [vmem:[%s2518_s5 + $0x190] sm:$0xff]  ;;  %v2089_v16 = vld [vmem:[%s2518_s5 + $0x188] sm:$0xff] }
  0xb4   : > { %1425 = vmatpush.bf16.msra.mxu2 %v2058_v22  ;;  %v2099_v11 = vld [vmem:[%s2518_s5 + $0x1d8] sm:$0xff]  ;;  %v2074_v13 = vld [vmem:[%s2518_s5 + $0x110] sm:$0xff]  ;;  %v2073_v17 = vld [vmem:[%s2518_s5 + $0x108] sm:$0xff] }
  0xb5   : > { %1444 = vmatpush.bf16.msra.mxu3 %v2066_v23  ;;  %v2082_v14 = vld [vmem:[%s2518_s5 + $0x150] sm:$0xff]  ;;  %v2081_v18 = vld [vmem:[%s2518_s5 + $0x148] sm:$0xff]  ;;  %v2088_v20 = vld [vmem:[%s2518_s5 + $0x180] sm:$0xff] }
  0xb6   : > { %1388 = vmatpush.bf16.msra.mxu0 %v2041_v24  ;;  %v2098_v15 = vld [vmem:[%s2518_s5 + $0x1d0] sm:$0xff]  ;;  %v2097_v19 = vld [vmem:[%s2518_s5 + $0x1c8] sm:$0xff]  ;;  %v2072_v21 = vld [vmem:[%s2518_s5 + $0x100] sm:$0xff] }
  0xb7   : > { %1407 = vmatpush.bf16.msra.mxu1 %v2049_v25  ;;  %v2080_v22 = vld [vmem:[%s2518_s5 + $0x140] sm:$0xff]  ;;  %v1718_v24 = vld [vmem:[%s2726_s0 + $0x10] sm:$0xf]  ;;  %v2031_v29 = vld [vmem:[%s2726_s0 + $0x34] sm:$0xf0] }
  0xb8   : > { %1426 = vmatpush.bf16.msra.mxu2 %v2057_v26  ;;  %v2096_v23 = vld [vmem:[%s2518_s5 + $0x1c0] sm:$0xff]  ;;  %v2030_v25 = vld [vmem:[%s2726_s0 + $0x2c] sm:$0xf0]  ;;  %v2026_v26 = vld [vmem:[%s2726_s0 + $0x14] sm:$0xf] }
  0xb9   : > { %1445 = vmatpush.bf16.msra.mxu3 %v2065_v27  ;;  %v1720_v27 = vld [vmem:[%s2726_s0 + $0x30] sm:$0xf0]  ;;  %v2027_v30 = vld [vmem:[%s2726_s0 + $0x1c] sm:$0xf]  ;;  %v1750_v36 = vld [vmem:[%s2726_s0 + $0x50] sm:$0xf] }
  0xba   : > { %1389 = vmatpush.bf16.msra.mxu0 %v2040_v28  ;;  %v1726_v28 = vld [vmem:[%s2726_s0 + $0x18] sm:$0xf]  ;;  %v2038_v37 = vld [vmem:[%s2726_s0 + $0x6c] sm:$0xf0]  ;;  %v2034_v38 = vld [vmem:[%s2726_s0 + $0x54] sm:$0xf] }
  0xbb   : > { %1408 = vmatpush.bf16.msra.mxu1 %v2048_v31  ;;  %v1728_v31 = vld [vmem:[%s2726_s0 + $0x38] sm:$0xf0]  ;;  %v1727_v34 = vor.u32 %v2031_v29, %v1726_v28  ;;  %v1752_v39 = vld [vmem:[%s2726_s0 + $0x70] sm:$0xf0] }
  0xbc   : > { %1427 = vmatpush.bf16.msra.mxu2 %v2056_v32  ;;  %v1719_v32 = vor.u32 %v2030_v25, %v1718_v24  ;;  %v1731_v35 = vor.u32 %v2027_v30, %v1728_v31 }
  0xbd   : > { %1446 = vmatpush.bf16.msra.mxu3 %v2064_v33  ;;  %1390 = vmatmul.bf16.vlgmr.msra.gmra.mxu0 %v1703_v42  ;;  %v1723_v33 = vor.u32 %v2026_v26, %v1720_v27  ;;  %v2035_v42 = vld [vmem:[%s2726_s0 + $0x5c] sm:$0xf] }
  0xbe   : > { %1458 = vmatpush.bf16.msrb.mxu0 %v2079_v41  ;;  %1409 = vmatmul.bf16.vlgmr.msra.gmra.mxu1 %v1707_v43  ;;  %v2039_v41 = vld [vmem:[%s2726_s0 + $0x74] sm:$0xf0]  ;;  %v1760_v43 = vld [vmem:[%s2726_s0 + $0x78] sm:$0xf0] }
  0xbf   : > { %1428 = vmatmul.bf16.vlgmr.msra.gmra.mxu2 %v1711_v44  ;;  %1477 = vmatpush.bf16.msrb.mxu1 %v2087_v46  ;;  %v1751_v44 = vor.u32 %v2038_v37, %v1750_v36 }
  0xc0   : > { %1496 = vmatpush.bf16.msrb.mxu2 %v2095_v40  ;;  %1447 = vmatmul.bf16.vlgmr.msra.gmra.mxu3 %v1715_v45  ;;  %v1758_v40 = vld [vmem:[%s2726_s0 + $0x58] sm:$0xf]  ;;  %v1755_v45 = vor.u32 %v2034_v38, %v1752_v39 }
  0xc1   : > { %1515 = vmatpush.bf16.msrb.mxu3 %v2103_v47  ;;  %v1759_v46 = vor.u32 %v2039_v41, %v1758_v40  ;;  %v1763_v47 = vor.u32 %v2035_v42, %v1760_v43 }
  0xc2   : > { %1459 = vmatpush.bf16.msrb.mxu0 %v2078_v49 }
  0xc3   : > { %1478 = vmatpush.bf16.msrb.mxu1 %v2086_v50 }
  0xc4   : > { %1497 = vmatpush.bf16.msrb.mxu2 %v2094_v48 }
  0xc5   : > { %1516 = vmatpush.bf16.msrb.mxu3 %v2102_v51 }
  0xc6   : > { %1460 = vmatpush.bf16.msrb.mxu0 %v2077_v53 }
  0xc7   : > { %1479 = vmatpush.bf16.msrb.mxu1 %v2085_v54 }
  0xc8   : > { %1498 = vmatpush.bf16.msrb.mxu2 %v2093_v52 }
  0xc9   : > { %1517 = vmatpush.bf16.msrb.mxu3 %v2101_v55 }
  0xca   : > { %1461 = vmatpush.bf16.msrb.mxu0 %v2076_v57 }
  0xcb   : > { %1480 = vmatpush.bf16.msrb.mxu1 %v2084_v58 }
  0xcc   : > { %1499 = vmatpush.bf16.msrb.mxu2 %v2092_v56  ;;  %v2144_v56 = vld [vmem:[%s768_s9] ss:$0 sm:$0xff]  ;;  %s2695_s9 = scalar_lea.vmem [#allocation3], %s1699_s6 }
  0xcd   : > { %1518 = vmatpush.bf16.msrb.mxu3 %v2100_v59  ;;  %1395 = vmatmul.bf16.gmra.mxu0 %v1735_v6 }
  0xce   : > { %1462 = vmatpush.bf16.msrb.mxu0 %v2075_v5  ;;  %1414 = vmatmul.bf16.gmra.mxu1 %v1739_v7 }
  0xcf   : > { %1433 = vmatmul.bf16.gmra.mxu2 %v1743_v8  ;;  %1481 = vmatpush.bf16.msrb.mxu1 %v2083_v10 }
  0xd0   : > { %1500 = vmatpush.bf16.msrb.mxu2 %v2091_v4  ;;  %1452 = vmatmul.bf16.gmra.mxu3 %v1747_v9 }
  0xd1   : > { %1519 = vmatpush.bf16.msrb.mxu3 %v2099_v11 }
  0xd2   : > { %1463 = vmatpush.bf16.msrb.mxu0 %v2074_v13 }
  0xd3   : > { %1482 = vmatpush.bf16.msrb.mxu1 %v2082_v14 }
  0xd4   : > { %1501 = vmatpush.bf16.msrb.mxu2 %v2090_v12 }
  0xd5   : > { %1520 = vmatpush.bf16.msrb.mxu3 %v2098_v15 }
  0xd6   : > { %1464 = vmatpush.bf16.msrb.mxu0 %v2073_v17 }
  0xd7   : > { %1483 = vmatpush.bf16.msrb.mxu1 %v2081_v18 }
  0xd8   : > { %1502 = vmatpush.bf16.msrb.mxu2 %v2089_v16 }
  0xd9   : > { %1521 = vmatpush.bf16.msrb.mxu3 %v2097_v19 }
  0xda   : > { %1465 = vmatpush.bf16.msrb.mxu0 %v2072_v21 }
  0xdb   : > { %1484 = vmatpush.bf16.msrb.mxu1 %v2080_v22 }
  0xdc   : > { %1503 = vmatpush.bf16.msrb.mxu2 %v2088_v20 }
  0xdd   : > { %1522 = vmatpush.bf16.msrb.mxu3 %v2096_v23  ;;  %1466 = vmatmul.bf16.vlgmr.msrb.gmra.mxu0 %v1719_v32 }
  0xde   : > { %1485 = vmatmul.bf16.vlgmr.msrb.gmra.mxu1 %v1723_v33 }
  0xdf   : > { %1504 = vmatmul.bf16.vlgmr.msrb.gmra.mxu2 %v1727_v34 }
  0xe0   : > { %1523 = vmatmul.bf16.vlgmr.msrb.gmra.mxu3 %v1731_v35 }
  0xed   : > { %1471 = vmatmul.bf16.gmra.mxu0 %v1751_v44 }
  0xee   : > { %1490 = vmatmul.bf16.gmra.mxu1 %v1755_v45 }
  0xef   : > { %1509 = vmatmul.bf16.gmra.mxu2 %v1759_v46 }
  0xf0   : > { %1528 = vmatmul.bf16.gmra.mxu3 %v1763_v47 }
 0x13a   : > { %v1391_v48 = vpop.f32.mrf.mxu0 }
 0x13b   : > { %v1410_v49 = vpop.f32.mrf.mxu1  ;;  %v1392_v59 = vadd.f32 %v2144_v56, %v1391_v48 }
 0x13d   : > { %v1411_v62 = vadd.f32 %v1410_v49, %v1392_v59 }
 0x142   : > { %v1429_v50 = vpop.f32.mrf.mxu2  ;;  %v1393_v52 = vpop.f32.mrf.mxu0 }
 0x143   : > { %v1448_v51 = vpop.f32.mrf.mxu3  ;;  %v1412_v53 = vpop.f32.mrf.mxu1  ;;  %v1430_v1 = vadd.f32 %v1429_v50, %v1411_v62  ;;  %v1394_v2 = vadd.f32 %v2144_v56, %v1393_v52 }
 0x145   : > { %v1449_v5 = vadd.f32 %v1448_v51, %v1430_v1  ;;  %v1413_v8 = vadd.f32 %v1412_v53, %v1394_v2 }
 0x14a   : > { %v1431_v54 = vpop.f32.mrf.mxu2  ;;  %v1396_v57 = vpop.f32.mrf.mxu0 }
 0x14b   : > { %v1450_v55 = vpop.f32.mrf.mxu3  ;;  %v1415_v58 = vpop.f32.mrf.mxu1  ;;  %v1432_v10 = vadd.f32 %v1431_v54, %v1413_v8  ;;  %v1397_v11 = vadd.f32 %v2144_v56, %v1396_v57 }
 0x14d   : > { %v1451_v14 = vadd.f32 %v1450_v55, %v1432_v10  ;;  %v1416_v15 = vadd.f32 %v1415_v58, %v1397_v11 }
 0x152   : > { %v1434_v60 = vpop.f32.mrf.mxu2  ;;  %v1398_v63 = vpop.f32.mrf.mxu0 }
 0x153   : > { %v1453_v61 = vpop.f32.mrf.mxu3  ;;  %v1417_v0 = vpop.f32.mrf.mxu1  ;;  %v1435_v22 = vadd.f32 %v1434_v60, %v1416_v15  ;;  %v1399_v24 = vadd.f32 %v2144_v56, %v1398_v63 }
 0x155   : > { %v1454_v27 = vadd.f32 %v1453_v61, %v1435_v22  ;;  %v1418_v31 = vadd.f32 %v1417_v0, %v1399_v24 }
 0x15a   : > { %v1436_v3 = vpop.f32.mrf.mxu2  ;;  %v1467_v6 = vpop.f32.mrf.mxu0 }
 0x15b   : > { %v1455_v4 = vpop.f32.mrf.mxu3  ;;  %v1486_v7 = vpop.f32.mrf.mxu1  ;;  %v1468_v9 = vadd.f32 %v1467_v6, %v1449_v5  ;;  %v1437_v35 = vadd.f32 %v1436_v3, %v1418_v31 }
 0x15d   : > { %v1487_v12 = vadd.f32 %v1486_v7, %v1468_v9  ;;  %v1456_v39 = vadd.f32 %v1455_v4, %v1437_v35 }
 0x162   : > { %v1505_v13 = vpop.f32.mrf.mxu2  ;;  %v1469_v18 = vpop.f32.mrf.mxu0 }
 0x163   : > { %v1506_v16 = vadd.f32 %v1505_v13, %v1487_v12  ;;  %v1524_v17 = vpop.f32.mrf.mxu3  ;;  %v1488_v19 = vpop.f32.mrf.mxu1  ;;  %v1470_v21 = vadd.f32 %v1469_v18, %v1451_v14 }
 0x165   : > { %v1525_v20 = vadd.f32 %v1524_v17, %v1506_v16  ;;  %v1489_v25 = vadd.f32 %v1488_v19, %v1470_v21 }
 0x167   : > { %v1534_v23 = vmax.f32 %v1525_v20, 0.0 }
 0x169   : > { %1538 = vst [vmem:[%s2695_s9] sm:$0xff] %v1534_v23 }
 0x16a   : > { %v1507_v26 = vpop.f32.mrf.mxu2  ;;  %v1472_v30 = vpop.f32.mrf.mxu0 }
 0x16b   : > { %v1508_v28 = vadd.f32 %v1507_v26, %v1489_v25  ;;  %v1526_v29 = vpop.f32.mrf.mxu3  ;;  %v1473_v33 = vadd.f32 %v1472_v30, %v1454_v27  ;;  %v1491_v34 = vpop.f32.mrf.mxu1 }
 0x16d   : > { %v1527_v32 = vadd.f32 %v1526_v29, %v1508_v28  ;;  %v1492_v37 = vadd.f32 %v1491_v34, %v1473_v33 }
 0x16f   : > { %v1535_v36 = vmax.f32 %v1527_v32, 0.0 }
 0x170   : > { %v1588_v53 = vld [vmem:[%s2695_s9] sm:$0xff] (%p2240_p6) }
 0x171   : > { %1539 = vst [vmem:[%s2695_s9 + $0x8] sm:$0xff] %v1535_v36 }
 0x172   : > { %v1510_v38 = vpop.f32.mrf.mxu2  ;;  %v1474_v42 = vpop.f32.mrf.mxu0  ;;  %1589 = vst [vmem:[%s1553_s23] sm:$0xff] (%p2240_p6), %v1588_v53 }
 0x173   : > { %v1511_v40 = vadd.f32 %v1510_v38, %v1492_v37  ;;  %v1529_v41 = vpop.f32.mrf.mxu3  ;;  %v1475_v44 = vadd.f32 %v1474_v42, %v1456_v39  ;;  %v1493_v46 = vpop.f32.mrf.mxu1 }
 0x175   : > { %v1530_v43 = vadd.f32 %v1529_v41, %v1511_v40  ;;  %v1494_v47 = vadd.f32 %v1493_v46, %v1475_v44 }
 0x177   : > { %v1536_v45 = vmax.f32 %v1530_v43, 0.0 }
 0x178   : > { %v1590_v54 = vld [vmem:[%s2695_s9 + $0x8] sm:$0xff] (%p2240_p6) }
 0x179   : > { %1540 = vst [vmem:[%s2695_s9 + $0x10] sm:$0xff] %v1536_v45 }
 0x17a   : > { %v1512_v48 = vpop.f32.mrf.mxu2  ;;  %1591 = vst [vmem:[%s1553_s23 + $0x20] sm:$0xff] (%p2240_p6), %v1590_v54 }
 0x17b   : > { %v1513_v49 = vadd.f32 %v1512_v48, %v1494_v47  ;;  %v1531_v50 = vpop.f32.mrf.mxu3 }
 0x17d   : > { %v1532_v51 = vadd.f32 %v1531_v50, %v1513_v49  ;;  %1548 = sbr.rel (!%p2240_p6) target bundleno = 394 (0x18a), region = 77 }
 0x17f   : > { %v1537_v52 = vmax.f32 %v1532_v51, 0.0 }
 0x180   : > { %v1592_v55 = vld [vmem:[%s2695_s9 + $0x10] sm:$0xff] (%p2240_p6) }
 0x181   : > { %1541 = vst [vmem:[%s2695_s9 + $0x18] sm:$0xff] %v1537_v52 }
 0x182   : > { %1593 = vst [vmem:[%s1553_s23 + $0x40] sm:$0xff] %v1592_v55 }
 0x188   : > { %v1594_v56 = vld [vmem:[%s2695_s9 + $0x18] sm:$0xff] }
 0x189   : > { %1595 = vst [vmem:[%s1553_s23 + $0x60] sm:$0xff] %v1594_v56 }
 0x18a PF: > { %s13_s16 = sadd.s32 1, %s2183_s16   ;;  %s2731_s12 = smov %s2171_s13 }
 0x18b   : > { %p10_p12 = scmp.ge.s32.totalorder %s13_s16, 6   ;;  %s2732_s13 = smov %s2245_s22 }
 0x18c   : > { %s2733_s14 = smov %s2179_s15  ;;  %s2734_s15 = smov %s2736_s17 }
 0x18d   :  { %12 = sbr.rel (!%p10_p12) target bundleno = 3 (0x3), region = 152 }

// kernel: generator_forward.12
= control target key start
LH: loop header
LB: loop body
LE: loop exit
PB: predicated region body
PF: predicated region fallthrough
CT: control target
= control target key end

     0   :  { %s1825_s12 = smov 0   ;;  %s1827_s13 = smov 0   ;;  %s2324_s0 = inlined_call_operand.vmem [shape: bf16[128,512], index: 0, kind: input, shape index: {}]   ;;  %s2325_s1 = inlined_call_operand.vmem [shape: bf16[512,256], index: 1, kind: input, shape index: {}]   ;;  %s2326_s2 = inlined_call_operand.vmem [shape: f32[1,256], index: 2, kind: input, shape index: {}]   ;;  %s2327_s3 = inlined_call_operand.vmem [shape: f32[128,256], index: 3, kind: output, shape index: {}]  }
   0x1   :  { %s1829_s14 = smov 0   ;;  %s1831_s15 = smov 0  }
   0x2   :  { %s1833_s16 = smov 0  }
   0x3 LB: > { %s22_s17 = sadd.s32 1, %s1799_s15  ;;  %s1390_s18 = sadd.s32 4294967295, %s1803_s16   ;;  %s1803_s16 = sphi %s1833_s16, %s13_s16   ;;  %s1799_s15 = sphi %s1831_s15, %s2332_s15   ;;  %s1795_s14 = sphi %s1829_s14, %s2331_s14   ;;  %s1791_s13 = sphi %s1827_s13, %s2330_s13   ;;  %s1787_s12 = sphi %s1825_s12, %s2329_s12  }
   0x4   : > { %p23_p0 = scmp.ge.s32.totalorder %s22_s17, 2  ;;  %p65_p1 = scmp.ne.s32.totalorder %s1791_s13, %s1787_s12 }
   0x5   : > { %p66_p2 = scmp.eq.s32.totalorder %s1803_s16, 0  ;;  %p123_p4 = scmp.eq.s32.totalorder %s1390_s18, 1 }
   0x6   : > { %s2334_s17 = smov (%p23_p0, %s22_s17), 0  ;;  %s58_s20 = sadd.s32 1, %s1791_s13 }
   0x7   : > { %p67_p3 = por %p66_p2, %p65_p1  ;;  %s55_s19 = ssub.s32 %s1799_s15, %s2334_s17 }
   0x8   : > { %p56_p5 = scmp.eq.s32.totalorder %s55_s19, 0  ;;  %p1860_p6 = por %p123_p4, %p65_p1 }
   0x9   : > { %p1394_p7 = scmp.ge.s32.totalorder %s1803_s16, 2 }
   0xa   : > { %s1865_s22 = scalar_select %p56_p5, %s1791_s13, %s58_s20  }
   0xb   : > { %155 = sbr.rel (%p1394_p7) target bundleno = 84 (0x54), region = 20 }
  0x10   : > { %158 = sbr.rel (!%p67_p3) target bundleno = 84 (0x54), region = 24  ;;  %s160_s23 = sand.u32 (%p67_p3), 1, %s1791_s13  }
  0x11   : > { %s1396_s24 = sshll.u32 (%p67_p3), %s1799_s15, 2  ;;  %s1395_s25 = sshll.u32 (%p67_p3), %s160_s23, 8 }
  0x12   : > { %s1873_s28 = scalar_lea.vmem (%p67_p3), %s2325_s1, %s1396_s24  ;;  %s1877_s29 = scalar_lea.vmem (%p67_p3), [#allocation2], %s1395_s25 }
  0x13   : > { %v181_v0 = vld [vmem:[%s1873_s28] sm:$0xf] (%p67_p3)  ;;  %v183_v1 = vld [vmem:[%s1873_s28 + $0x8] sm:$0xf] (%p67_p3)  ;;  %v185_v2 = vld [vmem:[%s1873_s28 + $0x10] sm:$0xf] (%p67_p3) }
  0x14   : > { %182 = vst [vmem:[%s1877_s29] sm:$0xf] (%p67_p3), %v181_v0  ;;  %v187_v3 = vld [vmem:[%s1873_s28 + $0x18] sm:$0xf] (%p67_p3)  ;;  %v189_v4 = vld [vmem:[%s1873_s28 + $0x20] sm:$0xf] (%p67_p3) }
  0x15   : > { %184 = vst [vmem:[%s1877_s29 + $0x4] sm:$0xf] %v183_v1  ;;  %v191_v5 = vld [vmem:[%s1873_s28 + $0x28] sm:$0xf]  ;;  %v193_v6 = vld [vmem:[%s1873_s28 + $0x30] sm:$0xf] }
  0x16   : > { %186 = vst [vmem:[%s1877_s29 + $0x8] sm:$0xf] %v185_v2  ;;  %v195_v7 = vld [vmem:[%s1873_s28 + $0x38] sm:$0xf]  ;;  %v197_v8 = vld [vmem:[%s1873_s28 + $0x40] sm:$0xf] }
  0x17   : > { %188 = vst [vmem:[%s1877_s29 + $0xc] sm:$0xf] %v187_v3  ;;  %v199_v9 = vld [vmem:[%s1873_s28 + $0x48] sm:$0xf]  ;;  %v201_v10 = vld [vmem:[%s1873_s28 + $0x50] sm:$0xf] }
  0x18   : > { %190 = vst [vmem:[%s1877_s29 + $0x10] sm:$0xf] %v189_v4  ;;  %v203_v11 = vld [vmem:[%s1873_s28 + $0x58] sm:$0xf]  ;;  %v205_v12 = vld [vmem:[%s1873_s28 + $0x60] sm:$0xf] }
  0x19   : > { %192 = vst [vmem:[%s1877_s29 + $0x14] sm:$0xf] %v191_v5  ;;  %v207_v13 = vld [vmem:[%s1873_s28 + $0x68] sm:$0xf]  ;;  %v209_v14 = vld [vmem:[%s1873_s28 + $0x70] sm:$0xf] }
  0x1a   : > { %194 = vst [vmem:[%s1877_s29 + $0x18] sm:$0xf] %v193_v6  ;;  %v211_v15 = vld [vmem:[%s1873_s28 + $0x78] sm:$0xf]  ;;  %v213_v16 = vld [vmem:[%s1873_s28 + $0x80] sm:$0xf] }
  0x1b   : > { %196 = vst [vmem:[%s1877_s29 + $0x1c] sm:$0xf] %v195_v7  ;;  %v215_v17 = vld [vmem:[%s1873_s28 + $0x88] sm:$0xf]  ;;  %v217_v18 = vld [vmem:[%s1873_s28 + $0x90] sm:$0xf] }
  0x1c   : > { %198 = vst [vmem:[%s1877_s29 + $0x20] sm:$0xf] %v197_v8  ;;  %v219_v19 = vld [vmem:[%s1873_s28 + $0x98] sm:$0xf]  ;;  %v221_v20 = vld [vmem:[%s1873_s28 + $0xa0] sm:$0xf] }
  0x1d   : > { %200 = vst [vmem:[%s1877_s29 + $0x24] sm:$0xf] %v199_v9  ;;  %v223_v21 = vld [vmem:[%s1873_s28 + $0xa8] sm:$0xf]  ;;  %v225_v22 = vld [vmem:[%s1873_s28 + $0xb0] sm:$0xf] }
  0x1e   : > { %202 = vst [vmem:[%s1877_s29 + $0x28] sm:$0xf] %v201_v10  ;;  %v227_v23 = vld [vmem:[%s1873_s28 + $0xb8] sm:$0xf]  ;;  %v229_v24 = vld [vmem:[%s1873_s28 + $0xc0] sm:$0xf] }
  0x1f   : > { %204 = vst [vmem:[%s1877_s29 + $0x2c] sm:$0xf] %v203_v11  ;;  %v231_v25 = vld [vmem:[%s1873_s28 + $0xc8] sm:$0xf]  ;;  %v233_v26 = vld [vmem:[%s1873_s28 + $0xd0] sm:$0xf] }
  0x20   : > { %206 = vst [vmem:[%s1877_s29 + $0x30] sm:$0xf] %v205_v12  ;;  %v235_v27 = vld [vmem:[%s1873_s28 + $0xd8] sm:$0xf]  ;;  %v237_v28 = vld [vmem:[%s1873_s28 + $0xe0] sm:$0xf] }
  0x21   : > { %208 = vst [vmem:[%s1877_s29 + $0x34] sm:$0xf] %v207_v13  ;;  %v239_v29 = vld [vmem:[%s1873_s28 + $0xe8] sm:$0xf]  ;;  %v241_v30 = vld [vmem:[%s1873_s28 + $0xf0] sm:$0xf] }
  0x22   : > { %210 = vst [vmem:[%s1877_s29 + $0x38] sm:$0xf] %v209_v14  ;;  %v243_v31 = vld [vmem:[%s1873_s28 + $0xf8] sm:$0xf]  ;;  %v245_v32 = vld [vmem:[%s1873_s28 + $0x100] sm:$0xf] }
  0x23   : > { %212 = vst [vmem:[%s1877_s29 + $0x3c] sm:$0xf] %v211_v15  ;;  %v247_v33 = vld [vmem:[%s1873_s28 + $0x108] sm:$0xf]  ;;  %v249_v34 = vld [vmem:[%s1873_s28 + $0x110] sm:$0xf] }
  0x24   : > { %214 = vst [vmem:[%s1877_s29 + $0x40] sm:$0xf] %v213_v16  ;;  %v251_v35 = vld [vmem:[%s1873_s28 + $0x118] sm:$0xf]  ;;  %v253_v36 = vld [vmem:[%s1873_s28 + $0x120] sm:$0xf] }
  0x25   : > { %216 = vst [vmem:[%s1877_s29 + $0x44] sm:$0xf] %v215_v17  ;;  %v255_v37 = vld [vmem:[%s1873_s28 + $0x128] sm:$0xf]  ;;  %v257_v38 = vld [vmem:[%s1873_s28 + $0x130] sm:$0xf] }
  0x26   : > { %218 = vst [vmem:[%s1877_s29 + $0x48] sm:$0xf] %v217_v18  ;;  %v259_v39 = vld [vmem:[%s1873_s28 + $0x138] sm:$0xf]  ;;  %v261_v40 = vld [vmem:[%s1873_s28 + $0x140] sm:$0xf] }
  0x27   : > { %220 = vst [vmem:[%s1877_s29 + $0x4c] sm:$0xf] %v219_v19  ;;  %v263_v41 = vld [vmem:[%s1873_s28 + $0x148] sm:$0xf]  ;;  %v265_v42 = vld [vmem:[%s1873_s28 + $0x150] sm:$0xf] }
  0x28   : > { %222 = vst [vmem:[%s1877_s29 + $0x50] sm:$0xf] %v221_v20  ;;  %v267_v43 = vld [vmem:[%s1873_s28 + $0x158] sm:$0xf]  ;;  %v269_v44 = vld [vmem:[%s1873_s28 + $0x160] sm:$0xf] }
  0x29   : > { %224 = vst [vmem:[%s1877_s29 + $0x54] sm:$0xf] %v223_v21  ;;  %v271_v45 = vld [vmem:[%s1873_s28 + $0x168] sm:$0xf]  ;;  %v273_v46 = vld [vmem:[%s1873_s28 + $0x170] sm:$0xf] }
  0x2a   : > { %226 = vst [vmem:[%s1877_s29 + $0x58] sm:$0xf] %v225_v22  ;;  %v275_v47 = vld [vmem:[%s1873_s28 + $0x178] sm:$0xf]  ;;  %v277_v48 = vld [vmem:[%s1873_s28 + $0x180] sm:$0xf] }
  0x2b   : > { %228 = vst [vmem:[%s1877_s29 + $0x5c] sm:$0xf] %v227_v23  ;;  %v279_v49 = vld [vmem:[%s1873_s28 + $0x188] sm:$0xf]  ;;  %v281_v50 = vld [vmem:[%s1873_s28 + $0x190] sm:$0xf] }
  0x2c   : > { %230 = vst [vmem:[%s1877_s29 + $0x60] sm:$0xf] %v229_v24  ;;  %v283_v51 = vld [vmem:[%s1873_s28 + $0x198] sm:$0xf]  ;;  %v285_v52 = vld [vmem:[%s1873_s28 + $0x1a0] sm:$0xf] }
  0x2d   : > { %232 = vst [vmem:[%s1877_s29 + $0x64] sm:$0xf] %v231_v25  ;;  %v287_v53 = vld [vmem:[%s1873_s28 + $0x1a8] sm:$0xf]  ;;  %v289_v54 = vld [vmem:[%s1873_s28 + $0x1b0] sm:$0xf] }
  0x2e   : > { %234 = vst [vmem:[%s1877_s29 + $0x68] sm:$0xf] %v233_v26  ;;  %v291_v55 = vld [vmem:[%s1873_s28 + $0x1b8] sm:$0xf]  ;;  %v293_v56 = vld [vmem:[%s1873_s28 + $0x1c0] sm:$0xf] }
  0x2f   : > { %236 = vst [vmem:[%s1877_s29 + $0x6c] sm:$0xf] %v235_v27  ;;  %v295_v57 = vld [vmem:[%s1873_s28 + $0x1c8] sm:$0xf]  ;;  %v297_v58 = vld [vmem:[%s1873_s28 + $0x1d0] sm:$0xf] }
  0x30   : > { %238 = vst [vmem:[%s1877_s29 + $0x70] sm:$0xf] %v237_v28  ;;  %v299_v59 = vld [vmem:[%s1873_s28 + $0x1d8] sm:$0xf]  ;;  %v301_v60 = vld [vmem:[%s1873_s28 + $0x1e0] sm:$0xf] }
  0x31   : > { %240 = vst [vmem:[%s1877_s29 + $0x74] sm:$0xf] %v239_v29  ;;  %v303_v61 = vld [vmem:[%s1873_s28 + $0x1e8] sm:$0xf]  ;;  %v305_v62 = vld [vmem:[%s1873_s28 + $0x1f0] sm:$0xf] }
  0x32   : > { %242 = vst [vmem:[%s1877_s29 + $0x78] sm:$0xf] %v241_v30  ;;  %v307_v63 = vld [vmem:[%s1873_s28 + $0x1f8] sm:$0xf] }
  0x33   : > { %244 = vst [vmem:[%s1877_s29 + $0x7c] sm:$0xf] %v243_v31 }
  0x34   : > { %246 = vst [vmem:[%s1877_s29 + $0x80] sm:$0xf] %v245_v32 }
  0x35   : > { %248 = vst [vmem:[%s1877_s29 + $0x84] sm:$0xf] %v247_v33 }
  0x36   : > { %250 = vst [vmem:[%s1877_s29 + $0x88] sm:$0xf] %v249_v34 }
  0x37   : > { %252 = vst [vmem:[%s1877_s29 + $0x8c] sm:$0xf] %v251_v35 }
  0x38   : > { %254 = vst [vmem:[%s1877_s29 + $0x90] sm:$0xf] %v253_v36 }
  0x39   : > { %256 = vst [vmem:[%s1877_s29 + $0x94] sm:$0xf] %v255_v37 }
  0x3a   : > { %258 = vst [vmem:[%s1877_s29 + $0x98] sm:$0xf] %v257_v38 }
  0x3b   : > { %260 = vst [vmem:[%s1877_s29 + $0x9c] sm:$0xf] %v259_v39 }
  0x3c   : > { %262 = vst [vmem:[%s1877_s29 + $0xa0] sm:$0xf] %v261_v40 }
  0x3d   : > { %264 = vst [vmem:[%s1877_s29 + $0xa4] sm:$0xf] %v263_v41 }
  0x3e   : > { %266 = vst [vmem:[%s1877_s29 + $0xa8] sm:$0xf] %v265_v42 }
  0x3f   : > { %268 = vst [vmem:[%s1877_s29 + $0xac] sm:$0xf] %v267_v43 }
  0x40   : > { %270 = vst [vmem:[%s1877_s29 + $0xb0] sm:$0xf] %v269_v44 }
  0x41   : > { %272 = vst [vmem:[%s1877_s29 + $0xb4] sm:$0xf] %v271_v45 }
  0x42   : > { %274 = vst [vmem:[%s1877_s29 + $0xb8] sm:$0xf] %v273_v46 }
  0x43   : > { %276 = vst [vmem:[%s1877_s29 + $0xbc] sm:$0xf] %v275_v47 }
  0x44   : > { %278 = vst [vmem:[%s1877_s29 + $0xc0] sm:$0xf] %v277_v48 }
  0x45   : > { %280 = vst [vmem:[%s1877_s29 + $0xc4] sm:$0xf] %v279_v49 }
  0x46   : > { %282 = vst [vmem:[%s1877_s29 + $0xc8] sm:$0xf] %v281_v50 }
  0x47   : > { %284 = vst [vmem:[%s1877_s29 + $0xcc] sm:$0xf] %v283_v51 }
  0x48   : > { %286 = vst [vmem:[%s1877_s29 + $0xd0] sm:$0xf] %v285_v52 }
  0x49   : > { %288 = vst [vmem:[%s1877_s29 + $0xd4] sm:$0xf] %v287_v53 }
  0x4a   : > { %290 = vst [vmem:[%s1877_s29 + $0xd8] sm:$0xf] %v289_v54 }
  0x4b   : > { %292 = vst [vmem:[%s1877_s29 + $0xdc] sm:$0xf] %v291_v55 }
  0x4c   : > { %294 = vst [vmem:[%s1877_s29 + $0xe0] sm:$0xf] %v293_v56 }
  0x4d   : > { %296 = vst [vmem:[%s1877_s29 + $0xe4] sm:$0xf] %v295_v57 }
  0x4e   : > { %298 = vst [vmem:[%s1877_s29 + $0xe8] sm:$0xf] %v297_v58 }
  0x4f   : > { %300 = vst [vmem:[%s1877_s29 + $0xec] sm:$0xf] %v299_v59 }
  0x50   : > { %302 = vst [vmem:[%s1877_s29 + $0xf0] sm:$0xf] %v301_v60 }
  0x51   : > { %304 = vst [vmem:[%s1877_s29 + $0xf4] sm:$0xf] %v303_v61 }
  0x52   : > { %306 = vst [vmem:[%s1877_s29 + $0xf8] sm:$0xf] %v305_v62 }
  0x53   : > { %308 = vst [vmem:[%s1877_s29 + $0xfc] sm:$0xf] %v307_v63 }
  0x54 PF: > { %p1397_p8 = scmp.ge.s32.totalorder %s1803_s16, 1  ;;  %p465_p9 = scmp.lt.s32.totalorder %s1803_s16, 3 }
  0x56   : > { %p466_p10 = pnand %p1397_p8, %p465_p9 }
  0x57   : > { %s472_s30 = sand.u32 (!%p466_p10), 1, %s1787_s12   ;;  %p510_p11 = scmp.lt.s32.totalorder (!%p466_p10), %s1795_s14, 1 }
  0x58   : > { %469 = sbr.rel (%p466_p10) target bundleno = 394 (0x18a), region = 69  ;;  %s1398_s4 = sshll.u32 (!%p466_p10), %s472_s30, 8 }
  0x59   : > { %s2010_s5 = scalar_lea.vmem (!%p466_p10), [#allocation2], %s1398_s4  ;;  %s1399_s18 = sshll.u32 (!%p466_p10), %s472_s30, 7 }
  0x5a   : > { %s2255_s19 = scalar_lea.vmem (!%p466_p10), [#allocation3], %s1399_s18 }
  0x5d   : > { %v1699_v0 = vld [vmem:[%s2010_s5 + $0x38] sm:$0xff]  ;;  %v1698_v4 = vld [vmem:[%s2010_s5 + $0x30] sm:$0xff]  ;;  %v1697_v8 = vld [vmem:[%s2010_s5 + $0x28] sm:$0xff]  ;;  %s2038_s6 = scalar_select %p510_p11, %s1795_s14, 1 }
  0x5e   : > { %v1707_v1 = vld [vmem:[%s2010_s5 + $0x78] sm:$0xff]  ;;  %966 = vmatpush.bf16.msra.mxu0 %v1699_v0  ;;  %v1706_v5 = vld [vmem:[%s2010_s5 + $0x70] sm:$0xff]  ;;  %v1705_v9 = vld [vmem:[%s2010_s5 + $0x68] sm:$0xff]  ;;  %s1657_s12 = sshll.u32 (%p1860_p6), %s1795_s14, 3 }
  0x5f   : > { %v1715_v2 = vld [vmem:[%s2010_s5 + $0xb8] sm:$0xff]  ;;  %1015 = vmatpush.bf16.msra.mxu1 %v1707_v1  ;;  %v1714_v6 = vld [vmem:[%s2010_s5 + $0xb0] sm:$0xff]  ;;  %v1713_v10 = vld [vmem:[%s2010_s5 + $0xa8] sm:$0xff]  ;;  %s512_s9 = scalar_lea.vmem %s2326_s2, %s2038_s6 }
  0x60   : > { %v1723_v3 = vld [vmem:[%s2010_s5 + $0xf8] sm:$0xff]  ;;  %1064 = vmatpush.bf16.msra.mxu2 %v1715_v2  ;;  %v1722_v7 = vld [vmem:[%s2010_s5 + $0xf0] sm:$0xff]  ;;  %v1721_v11 = vld [vmem:[%s2010_s5 + $0xe8] sm:$0xff] }
  0x61   : > { %1113 = vmatpush.bf16.msra.mxu3 %v1723_v3  ;;  %v1696_v12 = vld [vmem:[%s2010_s5 + $0x20] sm:$0xff]  ;;  %v1695_v16 = vld [vmem:[%s2010_s5 + $0x18] sm:$0xff]  ;;  %v1694_v20 = vld [vmem:[%s2010_s5 + $0x10] sm:$0xff] }
  0x62   : > { %967 = vmatpush.bf16.msra.mxu0 %v1698_v4  ;;  %v1704_v13 = vld [vmem:[%s2010_s5 + $0x60] sm:$0xff]  ;;  %v1703_v17 = vld [vmem:[%s2010_s5 + $0x58] sm:$0xff]  ;;  %v1702_v21 = vld [vmem:[%s2010_s5 + $0x50] sm:$0xff] }
  0x63   : > { %1016 = vmatpush.bf16.msra.mxu1 %v1706_v5  ;;  %v1712_v14 = vld [vmem:[%s2010_s5 + $0xa0] sm:$0xff]  ;;  %v1711_v18 = vld [vmem:[%s2010_s5 + $0x98] sm:$0xff]  ;;  %v1710_v22 = vld [vmem:[%s2010_s5 + $0x90] sm:$0xff] }
  0x64   : > { %1065 = vmatpush.bf16.msra.mxu2 %v1714_v6  ;;  %v1720_v15 = vld [vmem:[%s2010_s5 + $0xe0] sm:$0xff]  ;;  %v1719_v19 = vld [vmem:[%s2010_s5 + $0xd8] sm:$0xff]  ;;  %v1718_v23 = vld [vmem:[%s2010_s5 + $0xd0] sm:$0xff] }
  0x65   : > { %1114 = vmatpush.bf16.msra.mxu3 %v1722_v7  ;;  %v1693_v24 = vld [vmem:[%s2010_s5 + $0x8] sm:$0xff]  ;;  %v1692_v28 = vld [vmem:[%s2010_s5] sm:$0xff]  ;;  %v1662_v30 = vld [vmem:[%s2324_s0 + $0xc] sm:$0xf0] }
  0x66   : > { %968 = vmatpush.bf16.msra.mxu0 %v1697_v8  ;;  %v1701_v25 = vld [vmem:[%s2010_s5 + $0x48] sm:$0xff]  ;;  %v1402_v29 = vld [vmem:[%s2324_s0] sm:$0xf]  ;;  %v1660_v34 = vld [vmem:[%s2324_s0 + $0x4] sm:$0xf] }
  0x67   : > { %1017 = vmatpush.bf16.msra.mxu1 %v1705_v9  ;;  %v1709_v26 = vld [vmem:[%s2010_s5 + $0x88] sm:$0xff]  ;;  %v1700_v31 = vld [vmem:[%s2010_s5 + $0x40] sm:$0xff]  ;;  %v1404_v35 = vld [vmem:[%s2324_s0 + $0x10] sm:$0xf0]  ;;  %v1403_v40 = vor.u32 %v1662_v30, %v1402_v29 }
  0x68   : > { %1066 = vmatpush.bf16.msra.mxu2 %v1713_v10  ;;  %v1717_v27 = vld [vmem:[%s2010_s5 + $0xc8] sm:$0xff]  ;;  %v1708_v32 = vld [vmem:[%s2010_s5 + $0x80] sm:$0xff]  ;;  %v1663_v37 = vld [vmem:[%s2324_s0 + $0x14] sm:$0xf0]  ;;  %v1407_v41 = vor.u32 %v1660_v34, %v1404_v35 }
  0x69   : > { %1115 = vmatpush.bf16.msra.mxu3 %v1721_v11  ;;  %v1716_v33 = vld [vmem:[%s2010_s5 + $0xc0] sm:$0xff]  ;;  %v1410_v36 = vld [vmem:[%s2324_s0 + $0x8] sm:$0xf]  ;;  %v1661_v38 = vld [vmem:[%s2324_s0 + $0xc] sm:$0xf] }
  0x6a   : > { %969 = vmatpush.bf16.msra.mxu0 %v1696_v12  ;;  %v1412_v39 = vld [vmem:[%s2324_s0 + $0x18] sm:$0xf0]  ;;  %v1411_v42 = vor.u32 %v1663_v37, %v1410_v36  ;;  %v1418_v44 = vld [vmem:[%s2324_s0 + $0x20] sm:$0xf]  ;;  %v1666_v45 = vld [vmem:[%s2324_s0 + $0x2c] sm:$0xf0] }
  0x6b   : > { %1018 = vmatpush.bf16.msra.mxu1 %v1704_v13  ;;  %v1415_v43 = vor.u32 %v1661_v38, %v1412_v39  ;;  %v1664_v46 = vld [vmem:[%s2324_s0 + $0x24] sm:$0xf]  ;;  %v1420_v47 = vld [vmem:[%s2324_s0 + $0x30] sm:$0xf0]  ;;  %v1426_v48 = vld [vmem:[%s2324_s0 + $0x28] sm:$0xf]  ;;  %v1419_v52 = vor.u32 %v1666_v45, %v1418_v44 }
  0x6c   : > { %1067 = vmatpush.bf16.msra.mxu2 %v1712_v14  ;;  %v1667_v49 = vld [vmem:[%s2324_s0 + $0x34] sm:$0xf0]  ;;  %v1665_v50 = vld [vmem:[%s2324_s0 + $0x2c] sm:$0xf]  ;;  %v1428_v51 = vld [vmem:[%s2324_s0 + $0x38] sm:$0xf0]  ;;  %v1423_v53 = vor.u32 %v1664_v46, %v1420_v47 }
  0x6d   : > { %1116 = vmatpush.bf16.msra.mxu3 %v1720_v15  ;;  %v1427_v54 = vor.u32 %v1667_v49, %v1426_v48  ;;  %v1431_v55 = vor.u32 %v1665_v50, %v1428_v51  ;;  %v1434_v56 = vld [vmem:[%s2324_s0 + $0x40] sm:$0xf]  ;;  %v1670_v57 = vld [vmem:[%s2324_s0 + $0x4c] sm:$0xf0]  ;;  %v1668_v58 = vld [vmem:[%s2324_s0 + $0x44] sm:$0xf] }
  0x6e   : > { %970 = vmatpush.bf16.msra.mxu0 %v1695_v16  ;;  %v1436_v59 = vld [vmem:[%s2324_s0 + $0x50] sm:$0xf0]  ;;  %v1442_v60 = vld [vmem:[%s2324_s0 + $0x48] sm:$0xf]  ;;  %v1671_v61 = vld [vmem:[%s2324_s0 + $0x54] sm:$0xf0]  ;;  %v1435_v0 = vor.u32 %v1670_v57, %v1434_v56 }
  0x6f   : > { %1019 = vmatpush.bf16.msra.mxu1 %v1703_v17  ;;  %v1669_v62 = vld [vmem:[%s2324_s0 + $0x4c] sm:$0xf]  ;;  %v1444_v63 = vld [vmem:[%s2324_s0 + $0x58] sm:$0xf0]  ;;  %v1439_v1 = vor.u32 %v1668_v58, %v1436_v59  ;;  %v1443_v2 = vor.u32 %v1671_v61, %v1442_v60  ;;  %v1450_v4 = vld [vmem:[%s2324_s0 + $0x60] sm:$0xf] }
  0x70   : > { %1068 = vmatpush.bf16.msra.mxu2 %v1711_v18  ;;  %v1447_v3 = vor.u32 %v1669_v62, %v1444_v63  ;;  %v1674_v5 = vld [vmem:[%s2324_s0 + $0x6c] sm:$0xf0]  ;;  %v1672_v6 = vld [vmem:[%s2324_s0 + $0x64] sm:$0xf]  ;;  %v1452_v7 = vld [vmem:[%s2324_s0 + $0x70] sm:$0xf0] }
  0x71   : > { %1117 = vmatpush.bf16.msra.mxu3 %v1719_v19  ;;  %v1458_v8 = vld [vmem:[%s2324_s0 + $0x68] sm:$0xf]  ;;  %v1675_v9 = vld [vmem:[%s2324_s0 + $0x74] sm:$0xf0]  ;;  %v1673_v10 = vld [vmem:[%s2324_s0 + $0x6c] sm:$0xf]  ;;  %v1451_v12 = vor.u32 %v1674_v5, %v1450_v4  ;;  %v1455_v13 = vor.u32 %v1672_v6, %v1452_v7 }
  0x72   : > { %971 = vmatpush.bf16.msra.mxu0 %v1694_v20  ;;  %v1460_v11 = vld [vmem:[%s2324_s0 + $0x78] sm:$0xf0]  ;;  %v1459_v14 = vor.u32 %v1675_v9, %v1458_v8  ;;  %v1466_v16 = vld [vmem:[%s2324_s0 + $0x80] sm:$0xf]  ;;  %v1678_v17 = vld [vmem:[%s2324_s0 + $0x8c] sm:$0xf0] }
  0x73   : > { %1020 = vmatpush.bf16.msra.mxu1 %v1702_v21  ;;  %v1463_v15 = vor.u32 %v1673_v10, %v1460_v11  ;;  %v1676_v18 = vld [vmem:[%s2324_s0 + $0x84] sm:$0xf]  ;;  %v1468_v19 = vld [vmem:[%s2324_s0 + $0x90] sm:$0xf0]  ;;  %v1474_v20 = vld [vmem:[%s2324_s0 + $0x88] sm:$0xf] }
  0x74   : > { %1069 = vmatpush.bf16.msra.mxu2 %v1710_v22  ;;  %v1679_v21 = vld [vmem:[%s2324_s0 + $0x94] sm:$0xf0]  ;;  %v1677_v22 = vld [vmem:[%s2324_s0 + $0x8c] sm:$0xf]  ;;  %v1682_v29 = vld [vmem:[%s2324_s0 + $0xac] sm:$0xf0] }
  0x75   : > { %1118 = vmatpush.bf16.msra.mxu3 %v1718_v23  ;;  %v1476_v23 = vld [vmem:[%s2324_s0 + $0x98] sm:$0xf0]  ;;  %v1680_v30 = vld [vmem:[%s2324_s0 + $0xa4] sm:$0xf]  ;;  %v1681_v34 = vld [vmem:[%s2324_s0 + $0xac] sm:$0xf] }
  0x76   : > { %972 = vmatpush.bf16.msra.mxu0 %v1693_v24  ;;  %v1467_v24 = vor.u32 %v1678_v17, %v1466_v16  ;;  %v1492_v35 = vld [vmem:[%s2324_s0 + $0xb8] sm:$0xf0]  ;;  %v1506_v44 = vld [vmem:[%s2324_s0 + $0xc8] sm:$0xf]  ;;  %v1687_v45 = vld [vmem:[%s2324_s0 + $0xd4] sm:$0xf0] }
  0x77   : > { %1021 = vmatpush.bf16.msra.mxu1 %v1701_v25  ;;  %v1471_v25 = vor.u32 %v1676_v18, %v1468_v19  ;;  %v1495_v39 = vor.u32 %v1681_v34, %v1492_v35  ;;  %v1685_v46 = vld [vmem:[%s2324_s0 + $0xcc] sm:$0xf]  ;;  %v1508_v47 = vld [vmem:[%s2324_s0 + $0xd8] sm:$0xf0]  ;;  %v1507_v50 = vor.u32 %v1687_v45, %v1506_v44  ;;  %v1522_v56 = vld [vmem:[%s2324_s0 + $0xe8] sm:$0xf] }
  0x78   : > { %1070 = vmatpush.bf16.msra.mxu2 %v1709_v26  ;;  %v1475_v26 = vor.u32 %v1679_v21, %v1474_v20  ;;  %v1511_v51 = vor.u32 %v1685_v46, %v1508_v47  ;;  %v1691_v57 = vld [vmem:[%s2324_s0 + $0xf4] sm:$0xf0]  ;;  %v1689_v58 = vld [vmem:[%s2324_s0 + $0xec] sm:$0xf]  ;;  %v1524_v59 = vld [vmem:[%s2324_s0 + $0xf8] sm:$0xf0] }
  0x79   : > { %1119 = vmatpush.bf16.msra.mxu3 %v1717_v27  ;;  %v1479_v27 = vor.u32 %v1677_v22, %v1476_v23  ;;  %v1523_v62 = vor.u32 %v1691_v57, %v1522_v56  ;;  %v1527_v63 = vor.u32 %v1689_v58, %v1524_v59 }
  0x7a   : > { %973 = vmatpush.bf16.msra.mxu0 %v1692_v28  ;;  %v1482_v28 = vld [vmem:[%s2324_s0 + $0xa0] sm:$0xf] }
  0x7b   : > { %1022 = vmatpush.bf16.msra.mxu1 %v1700_v31  ;;  %v1484_v31 = vld [vmem:[%s2324_s0 + $0xb0] sm:$0xf0]  ;;  %v1483_v36 = vor.u32 %v1682_v29, %v1482_v28 }
  0x7c   : > { %1071 = vmatpush.bf16.msra.mxu2 %v1708_v32  ;;  %v1490_v32 = vld [vmem:[%s2324_s0 + $0xa8] sm:$0xf]  ;;  %v1487_v37 = vor.u32 %v1680_v30, %v1484_v31 }
  0x7d   : > { %1120 = vmatpush.bf16.msra.mxu3 %v1716_v33  ;;  %974 = vmatmul.bf16.vlgmr.msra.gmra.mxu0 %v1403_v40  ;;  %v1683_v33 = vld [vmem:[%s2324_s0 + $0xb4] sm:$0xf0]  ;;  %v1498_v40 = vld [vmem:[%s2324_s0 + $0xc0] sm:$0xf] }
  0x7e   : > { %1023 = vmatmul.bf16.vlgmr.msra.gmra.mxu1 %v1407_v41  ;;  %v1491_v38 = vor.u32 %v1683_v33, %v1490_v32  ;;  %v1686_v41 = vld [vmem:[%s2324_s0 + $0xcc] sm:$0xf0] }
  0x7f   : > { %1072 = vmatmul.bf16.vlgmr.msra.gmra.mxu2 %v1411_v42  ;;  %v1684_v42 = vld [vmem:[%s2324_s0 + $0xc4] sm:$0xf]  ;;  %v1499_v48 = vor.u32 %v1686_v41, %v1498_v40 }
  0x80   : > { %1121 = vmatmul.bf16.vlgmr.msra.gmra.mxu3 %v1415_v43  ;;  %v1500_v43 = vld [vmem:[%s2324_s0 + $0xd0] sm:$0xf0] }
  0x81   : > { %v1503_v49 = vor.u32 %v1684_v42, %v1500_v43 }
  0x8d   : > { %979 = vmatmul.bf16.gmra.mxu0 %v1419_v52  ;;  %v1514_v52 = vld [vmem:[%s2324_s0 + $0xe0] sm:$0xf] }
  0x8e   : > { %1028 = vmatmul.bf16.gmra.mxu1 %v1423_v53  ;;  %v1690_v53 = vld [vmem:[%s2324_s0 + $0xec] sm:$0xf0] }
  0x8f   : > { %1077 = vmatmul.bf16.gmra.mxu2 %v1427_v54  ;;  %v1688_v54 = vld [vmem:[%s2324_s0 + $0xe4] sm:$0xf]  ;;  %v1515_v60 = vor.u32 %v1690_v53, %v1514_v52 }
  0x90   : > { %1126 = vmatmul.bf16.gmra.mxu3 %v1431_v55  ;;  %v1516_v55 = vld [vmem:[%s2324_s0 + $0xf0] sm:$0xf0] }
  0x91   : > { %v1519_v61 = vor.u32 %v1688_v54, %v1516_v55 }
  0x9d   : > { %984 = vmatmul.bf16.gmra.mxu0 %v1435_v0  ;;  %v2249_v0 = vld [vmem:[%s512_s9] ss:$0 sm:$0xff]  ;;  %s1205_s9 = scalar_lea.vmem (%p1860_p6), %s2327_s3, %s1657_s12 }
  0x9e   : > { %1033 = vmatmul.bf16.gmra.mxu1 %v1439_v1 }
  0x9f   : > { %1082 = vmatmul.bf16.gmra.mxu2 %v1443_v2 }
  0xa0   : > { %1131 = vmatmul.bf16.gmra.mxu3 %v1447_v3 }
  0xad   : > { %989 = vmatmul.bf16.gmra.mxu0 %v1451_v12 }
  0xae   : > { %1038 = vmatmul.bf16.gmra.mxu1 %v1455_v13 }
  0xaf   : > { %1087 = vmatmul.bf16.gmra.mxu2 %v1459_v14 }
  0xb0   : > { %1136 = vmatmul.bf16.gmra.mxu3 %v1463_v15 }
  0xbd   : > { %994 = vmatmul.bf16.gmra.mxu0 %v1467_v24 }
  0xbe   : > { %1043 = vmatmul.bf16.gmra.mxu1 %v1471_v25 }
  0xbf   : > { %1092 = vmatmul.bf16.gmra.mxu2 %v1475_v26 }
  0xc0   : > { %1141 = vmatmul.bf16.gmra.mxu3 %v1479_v27 }
  0xcd   : > { %999 = vmatmul.bf16.gmra.mxu0 %v1483_v36 }
  0xce   : > { %1048 = vmatmul.bf16.gmra.mxu1 %v1487_v37 }
  0xcf   : > { %1097 = vmatmul.bf16.gmra.mxu2 %v1491_v38 }
  0xd0   : > { %1146 = vmatmul.bf16.gmra.mxu3 %v1495_v39 }
  0xdd   : > { %1004 = vmatmul.bf16.gmra.mxu0 %v1499_v48 }
  0xde   : > { %1053 = vmatmul.bf16.gmra.mxu1 %v1503_v49 }
  0xdf   : > { %1102 = vmatmul.bf16.gmra.mxu2 %v1507_v50 }
  0xe0   : > { %1151 = vmatmul.bf16.gmra.mxu3 %v1511_v51 }
  0xed   : > { %1009 = vmatmul.bf16.gmra.mxu0 %v1515_v60 }
  0xee   : > { %1058 = vmatmul.bf16.gmra.mxu1 %v1519_v61 }
  0xef   : > { %1107 = vmatmul.bf16.gmra.mxu2 %v1523_v62 }
  0xf0   : > { %1156 = vmatmul.bf16.gmra.mxu3 %v1527_v63 }
  0xfa   : > { %v975_v1 = vpop.f32.mrf.mxu0 }
  0xfb   : > { %v1024_v2 = vpop.f32.mrf.mxu1  ;;  %v976_v3 = vadd.f32 %v2249_v0, %v975_v1 }
  0xfd   : > { %v1025_v4 = vadd.f32 %v1024_v2, %v976_v3 }
 0x102   : > { %v1073_v5 = vpop.f32.mrf.mxu2  ;;  %v977_v8 = vpop.f32.mrf.mxu0 }
 0x103   : > { %v1122_v6 = vpop.f32.mrf.mxu3  ;;  %v1074_v7 = vadd.f32 %v1073_v5, %v1025_v4  ;;  %v1026_v9 = vpop.f32.mrf.mxu1  ;;  %v978_v11 = vadd.f32 %v2249_v0, %v977_v8 }
 0x105   : > { %v1123_v10 = vadd.f32 %v1122_v6, %v1074_v7  ;;  %v1027_v13 = vadd.f32 %v1026_v9, %v978_v11 }
 0x107   : > { %v1162_v12 = vmax.f32 %v1123_v10, 0.0 }
 0x109   : > { %1178 = vst [vmem:[%s2255_s19] sm:$0xff] %v1162_v12 }
 0x10a   : > { %v1075_v14 = vpop.f32.mrf.mxu2  ;;  %v980_v17 = vpop.f32.mrf.mxu0 }
 0x10b   : > { %v1124_v15 = vpop.f32.mrf.mxu3  ;;  %v1076_v16 = vadd.f32 %v1075_v14, %v1027_v13  ;;  %v1029_v18 = vpop.f32.mrf.mxu1  ;;  %v981_v19 = vadd.f32 %v2249_v0, %v980_v17 }
 0x10d   : > { %v1125_v20 = vadd.f32 %v1124_v15, %v1076_v16  ;;  %v1030_v22 = vadd.f32 %v1029_v18, %v981_v19 }
 0x10f   : > { %v1163_v21 = vmax.f32 %v1125_v20, 0.0 }
 0x111   : > { %1179 = vst [vmem:[%s2255_s19 + $0x8] sm:$0xff] %v1163_v21 }
 0x112   : > { %v1078_v23 = vpop.f32.mrf.mxu2  ;;  %v982_v26 = vpop.f32.mrf.mxu0 }
 0x113   : > { %v1127_v24 = vpop.f32.mrf.mxu3  ;;  %v1079_v25 = vadd.f32 %v1078_v23, %v1030_v22  ;;  %v1031_v27 = vpop.f32.mrf.mxu1  ;;  %v983_v29 = vadd.f32 %v2249_v0, %v982_v26 }
 0x115   : > { %v1128_v28 = vadd.f32 %v1127_v24, %v1079_v25  ;;  %v1032_v31 = vadd.f32 %v1031_v27, %v983_v29 }
 0x117   : > { %v1164_v30 = vmax.f32 %v1128_v28, 0.0 }
 0x119   : > { %1180 = vst [vmem:[%s2255_s19 + $0x10] sm:$0xff] %v1164_v30 }
 0x11a   : > { %v1080_v32 = vpop.f32.mrf.mxu2  ;;  %v985_v35 = vpop.f32.mrf.mxu0 }
 0x11b   : > { %v1129_v33 = vpop.f32.mrf.mxu3  ;;  %v1081_v34 = vadd.f32 %v1080_v32, %v1032_v31  ;;  %v1034_v36 = vpop.f32.mrf.mxu1  ;;  %v986_v37 = vadd.f32 %v2249_v0, %v985_v35 }
 0x11d   : > { %v1130_v38 = vadd.f32 %v1129_v33, %v1081_v34  ;;  %v1035_v40 = vadd.f32 %v1034_v36, %v986_v37 }
 0x11f   : > { %v1165_v39 = vmax.f32 %v1130_v38, 0.0 }
 0x121   : > { %1181 = vst [vmem:[%s2255_s19 + $0x18] sm:$0xff] %v1165_v39 }
 0x122   : > { %v1083_v41 = vpop.f32.mrf.mxu2  ;;  %v987_v44 = vpop.f32.mrf.mxu0 }
 0x123   : > { %v1132_v42 = vpop.f32.mrf.mxu3  ;;  %v1084_v43 = vadd.f32 %v1083_v41, %v1035_v40  ;;  %v1036_v45 = vpop.f32.mrf.mxu1  ;;  %v988_v47 = vadd.f32 %v2249_v0, %v987_v44 }
 0x125   : > { %v1133_v46 = vadd.f32 %v1132_v42, %v1084_v43  ;;  %v1037_v49 = vadd.f32 %v1036_v45, %v988_v47 }
 0x127   : > { %v1166_v48 = vmax.f32 %v1133_v46, 0.0 }
 0x129   : > { %1182 = vst [vmem:[%s2255_s19 + $0x20] sm:$0xff] %v1166_v48 }
 0x12a   : > { %v1085_v50 = vpop.f32.mrf.mxu2  ;;  %v990_v53 = vpop.f32.mrf.mxu0 }
 0x12b   : > { %v1134_v51 = vpop.f32.mrf.mxu3  ;;  %v1086_v52 = vadd.f32 %v1085_v50, %v1037_v49  ;;  %v1039_v54 = vpop.f32.mrf.mxu1  ;;  %v991_v55 = vadd.f32 %v2249_v0, %v990_v53 }
 0x12d   : > { %v1135_v56 = vadd.f32 %v1134_v51, %v1086_v52  ;;  %v1040_v58 = vadd.f32 %v1039_v54, %v991_v55 }
 0x12f   : > { %v1167_v57 = vmax.f32 %v1135_v56, 0.0 }
 0x131   : > { %1183 = vst [vmem:[%s2255_s19 + $0x28] sm:$0xff] %v1167_v57 }
 0x132   : > { %v1088_v59 = vpop.f32.mrf.mxu2  ;;  %v992_v62 = vpop.f32.mrf.mxu0 }
 0x133   : > { %v1137_v60 = vpop.f32.mrf.mxu3  ;;  %v1089_v61 = vadd.f32 %v1088_v59, %v1040_v58  ;;  %v1041_v63 = vpop.f32.mrf.mxu1  ;;  %v993_v2 = vadd.f32 %v2249_v0, %v992_v62 }
 0x135   : > { %v1138_v1 = vadd.f32 %v1137_v60, %v1089_v61  ;;  %v1042_v4 = vadd.f32 %v1041_v63, %v993_v2 }
 0x137   : > { %v1168_v3 = vmax.f32 %v1138_v1, 0.0 }
 0x139   : > { %1184 = vst [vmem:[%s2255_s19 + $0x30] sm:$0xff] %v1168_v3 }
 0x13a   : > { %v1090_v5 = vpop.f32.mrf.mxu2  ;;  %v995_v8 = vpop.f32.mrf.mxu0 }
 0x13b   : > { %v1139_v6 = vpop.f32.mrf.mxu3  ;;  %v1091_v7 = vadd.f32 %v1090_v5, %v1042_v4  ;;  %v1044_v9 = vpop.f32.mrf.mxu1  ;;  %v996_v10 = vadd.f32 %v2249_v0, %v995_v8 }
 0x13d   : > { %v1140_v11 = vadd.f32 %v1139_v6, %v1091_v7  ;;  %v1045_v13 = vadd.f32 %v1044_v9, %v996_v10 }
 0x13f   : > { %v1169_v12 = vmax.f32 %v1140_v11, 0.0 }
 0x141   : > { %1185 = vst [vmem:[%s2255_s19 + $0x38] sm:$0xff] %v1169_v12 }
 0x142   : > { %v1093_v14 = vpop.f32.mrf.mxu2  ;;  %v997_v17 = vpop.f32.mrf.mxu0 }
 0x143   : > { %v1142_v15 = vpop.f32.mrf.mxu3  ;;  %v1094_v16 = vadd.f32 %v1093_v14, %v1045_v13  ;;  %v1046_v18 = vpop.f32.mrf.mxu1  ;;  %v998_v20 = vadd.f32 %v2249_v0, %v997_v17 }
 0x145   : > { %v1143_v19 = vadd.f32 %v1142_v15, %v1094_v16  ;;  %v1047_v22 = vadd.f32 %v1046_v18, %v998_v20  ;;  %v1268_v20 = vld [vmem:[%s2255_s19 + $0x10] sm:$0xff] (%p1860_p6) }
 0x146   : > { %1269 = vst [vmem:[%s1205_s9 + $0x20] sm:$0xff] (%p1860_p6), %v1268_v20 }
 0x147   : > { %v1170_v21 = vmax.f32 %v1143_v19, 0.0  ;;  %v1266_v19 = vld [vmem:[%s2255_s19 + $0x8] sm:$0xff] (%p1860_p6) }
 0x148   : > { %1267 = vst [vmem:[%s1205_s9 + $0x10] sm:$0xff] (%p1860_p6), %v1266_v19 }
 0x149   : > { %1186 = vst [vmem:[%s2255_s19 + $0x40] sm:$0xff] %v1170_v21  ;;  %v1270_v21 = vld [vmem:[%s2255_s19 + $0x18] sm:$0xff] (%p1860_p6) }
 0x14a   : > { %v1095_v23 = vpop.f32.mrf.mxu2  ;;  %v1000_v26 = vpop.f32.mrf.mxu0  ;;  %1271 = vst [vmem:[%s1205_s9 + $0x30] sm:$0xff] (%p1860_p6), %v1270_v21 }
 0x14b   : > { %v1144_v24 = vpop.f32.mrf.mxu3  ;;  %v1096_v25 = vadd.f32 %v1095_v23, %v1047_v22  ;;  %v1049_v27 = vpop.f32.mrf.mxu1  ;;  %v1001_v28 = vadd.f32 %v2249_v0, %v1000_v26  ;;  %v1272_v22 = vld [vmem:[%s2255_s19 + $0x20] sm:$0xff] (%p1860_p6)  ;;  %v1274_v23 = vld [vmem:[%s2255_s19 + $0x28] sm:$0xff] (%p1860_p6) }
 0x14c   : > { %1273 = vst [vmem:[%s1205_s9 + $0x40] sm:$0xff] (%p1860_p6), %v1272_v22 }
 0x14d   : > { %v1145_v29 = vadd.f32 %v1144_v24, %v1096_v25  ;;  %v1050_v31 = vadd.f32 %v1049_v27, %v1001_v28  ;;  %v1276_v24 = vld [vmem:[%s2255_s19 + $0x30] sm:$0xff] (%p1860_p6)  ;;  %v1278_v25 = vld [vmem:[%s2255_s19 + $0x38] sm:$0xff] (%p1860_p6)  ;;  %1275 = vst [vmem:[%s1205_s9 + $0x50] sm:$0xff] (%p1860_p6), %v1274_v23 }
 0x14e   : > { %1277 = vst [vmem:[%s1205_s9 + $0x60] sm:$0xff] (%p1860_p6), %v1276_v24 }
 0x14f   : > { %v1171_v30 = vmax.f32 %v1145_v29, 0.0  ;;  %1279 = vst [vmem:[%s1205_s9 + $0x70] sm:$0xff] (%p1860_p6), %v1278_v25 }
 0x150   : > { %v1280_v26 = vld [vmem:[%s2255_s19 + $0x40] sm:$0xff] (%p1860_p6) }
 0x151   : > { %1187 = vst [vmem:[%s2255_s19 + $0x48] sm:$0xff] %v1171_v30 }
 0x152   : > { %v1098_v32 = vpop.f32.mrf.mxu2  ;;  %v1002_v35 = vpop.f32.mrf.mxu0  ;;  %1281 = vst [vmem:[%s1205_s9 + $0x80] sm:$0xff] (%p1860_p6), %v1280_v26 }
 0x153   : > { %v1147_v33 = vpop.f32.mrf.mxu3  ;;  %v1099_v34 = vadd.f32 %v1098_v32, %v1050_v31  ;;  %v1051_v36 = vpop.f32.mrf.mxu1  ;;  %v1003_v38 = vadd.f32 %v2249_v0, %v1002_v35 }
 0x155   : > { %v1148_v37 = vadd.f32 %v1147_v33, %v1099_v34  ;;  %v1052_v40 = vadd.f32 %v1051_v36, %v1003_v38 }
 0x157   : > { %v1172_v39 = vmax.f32 %v1148_v37, 0.0 }
 0x158   : > { %v1282_v27 = vld [vmem:[%s2255_s19 + $0x48] sm:$0xff] (%p1860_p6) }
 0x159   : > { %1188 = vst [vmem:[%s2255_s19 + $0x50] sm:$0xff] %v1172_v39 }
 0x15a   : > { %v1100_v41 = vpop.f32.mrf.mxu2  ;;  %v1005_v44 = vpop.f32.mrf.mxu0  ;;  %1283 = vst [vmem:[%s1205_s9 + $0x90] sm:$0xff] (%p1860_p6), %v1282_v27 }
 0x15b   : > { %v1149_v42 = vpop.f32.mrf.mxu3  ;;  %v1101_v43 = vadd.f32 %v1100_v41, %v1052_v40  ;;  %v1054_v45 = vpop.f32.mrf.mxu1  ;;  %v1006_v46 = vadd.f32 %v2249_v0, %v1005_v44 }
 0x15d   : > { %v1150_v47 = vadd.f32 %v1149_v42, %v1101_v43  ;;  %v1055_v49 = vadd.f32 %v1054_v45, %v1006_v46 }
 0x15f   : > { %v1173_v48 = vmax.f32 %v1150_v47, 0.0 }
 0x160   : > { %v1284_v28 = vld [vmem:[%s2255_s19 + $0x50] sm:$0xff] (%p1860_p6) }
 0x161   : > { %1189 = vst [vmem:[%s2255_s19 + $0x58] sm:$0xff] %v1173_v48 }
 0x162   : > { %v1103_v50 = vpop.f32.mrf.mxu2  ;;  %v1007_v53 = vpop.f32.mrf.mxu0  ;;  %1285 = vst [vmem:[%s1205_s9 + $0xa0] sm:$0xff] (%p1860_p6), %v1284_v28 }
 0x163   : > { %v1152_v51 = vpop.f32.mrf.mxu3  ;;  %v1104_v52 = vadd.f32 %v1103_v50, %v1055_v49  ;;  %v1056_v54 = vpop.f32.mrf.mxu1  ;;  %v1008_v56 = vadd.f32 %v2249_v0, %v1007_v53 }
 0x165   : > { %v1153_v55 = vadd.f32 %v1152_v51, %v1104_v52  ;;  %v1057_v58 = vadd.f32 %v1056_v54, %v1008_v56 }
 0x167   : > { %v1174_v57 = vmax.f32 %v1153_v55, 0.0 }
 0x168   : > { %v1286_v29 = vld [vmem:[%s2255_s19 + $0x58] sm:$0xff] (%p1860_p6) }
 0x169   : > { %1190 = vst [vmem:[%s2255_s19 + $0x60] sm:$0xff] %v1174_v57 }
 0x16a   : > { %v1105_v59 = vpop.f32.mrf.mxu2  ;;  %v1010_v62 = vpop.f32.mrf.mxu0  ;;  %1287 = vst [vmem:[%s1205_s9 + $0xb0] sm:$0xff] (%p1860_p6), %v1286_v29 }
 0x16b   : > { %v1154_v60 = vpop.f32.mrf.mxu3  ;;  %v1106_v61 = vadd.f32 %v1105_v59, %v1057_v58  ;;  %v1011_v63 = vadd.f32 %v2249_v0, %v1010_v62  ;;  %v1059_v2 = vpop.f32.mrf.mxu1 }
 0x16d   : > { %v1155_v1 = vadd.f32 %v1154_v60, %v1106_v61  ;;  %v1060_v4 = vadd.f32 %v1059_v2, %v1011_v63 }
 0x16f   : > { %v1175_v3 = vmax.f32 %v1155_v1, 0.0 }
 0x170   : > { %v1288_v30 = vld [vmem:[%s2255_s19 + $0x60] sm:$0xff] (%p1860_p6) }
 0x171   : > { %1191 = vst [vmem:[%s2255_s19 + $0x68] sm:$0xff] %v1175_v3 }
 0x172   : > { %v1108_v5 = vpop.f32.mrf.mxu2  ;;  %v1012_v8 = vpop.f32.mrf.mxu0  ;;  %1289 = vst [vmem:[%s1205_s9 + $0xc0] sm:$0xff] (%p1860_p6), %v1288_v30 }
 0x173   : > { %v1157_v6 = vpop.f32.mrf.mxu3  ;;  %v1109_v7 = vadd.f32 %v1108_v5, %v1060_v4  ;;  %v1013_v10 = vadd.f32 %v2249_v0, %v1012_v8  ;;  %v1061_v12 = vpop.f32.mrf.mxu1  ;;  %v1264_v0 = vld [vmem:[%s2255_s19] sm:$0xff] (%p1860_p6) }
 0x174   : > { %1265 = vst [vmem:[%s1205_s9] sm:$0xff] (%p1860_p6), %v1264_v0 }
 0x175   : > { %v1158_v9 = vadd.f32 %v1157_v6, %v1109_v7  ;;  %v1062_v13 = vadd.f32 %v1061_v12, %v1013_v10 }
 0x177   : > { %v1176_v11 = vmax.f32 %v1158_v9, 0.0 }
 0x178   : > { %v1290_v31 = vld [vmem:[%s2255_s19 + $0x68] sm:$0xff] (%p1860_p6) }
 0x179   : > { %1192 = vst [vmem:[%s2255_s19 + $0x70] sm:$0xff] %v1176_v11 }
 0x17a   : > { %v1110_v14 = vpop.f32.mrf.mxu2  ;;  %1291 = vst [vmem:[%s1205_s9 + $0xd0] sm:$0xff] (%p1860_p6), %v1290_v31 }
 0x17b   : > { %v1111_v15 = vadd.f32 %v1110_v14, %v1062_v13  ;;  %v1159_v16 = vpop.f32.mrf.mxu3 }
 0x17d   : > { %v1160_v17 = vadd.f32 %v1159_v16, %v1111_v15  ;;  %1200 = sbr.rel (!%p1860_p6) target bundleno = 394 (0x18a), region = 77 }
 0x17f   : > { %v1177_v18 = vmax.f32 %v1160_v17, 0.0 }
 0x180   : > { %v1292_v32 = vld [vmem:[%s2255_s19 + $0x70] sm:$0xff] (%p1860_p6) }
 0x181   : > { %1193 = vst [vmem:[%s2255_s19 + $0x78] sm:$0xff] %v1177_v18 }
 0x182   : > { %1293 = vst [vmem:[%s1205_s9 + $0xe0] sm:$0xff] %v1292_v32 }
 0x188   : > { %v1294_v33 = vld [vmem:[%s2255_s19 + $0x78] sm:$0xff] }
 0x189   : > { %1295 = vst [vmem:[%s1205_s9 + $0xf0] sm:$0xff] %v1294_v33 }
 0x18a PF: > { %s13_s16 = sadd.s32 1, %s1803_s16   ;;  %s2329_s12 = smov %s1791_s13 }
 0x18b   : > { %p10_p12 = scmp.ge.s32.totalorder %s13_s16, 4   ;;  %s2330_s13 = smov %s1865_s22 }
 0x18c   : > { %s2331_s14 = smov %s1799_s15  ;;  %s2332_s15 = smov %s2334_s17 }
 0x18d   :  { %12 = sbr.rel (!%p10_p12) target bundleno = 3 (0x3), region = 152 }

// kernel: generator_forward.13
= control target key start
LH: loop header
LB: loop body
LE: loop exit
PB: predicated region body
PF: predicated region fallthrough
CT: control target
= control target key end

     0   :  { %s9824_s12 = smov 0   ;;  %s9826_s13 = smov 0   ;;  %s11917_s0 = inlined_call_operand.vmem [shape: bf16[512,3136], index: 0, kind: input, shape index: {}]   ;;  %s11918_s1 = inlined_call_operand.vmem [shape: bf16[3136,128], index: 1, kind: input, shape index: {}]   ;;  %s11919_s2 = inlined_call_operand.vmem [shape: f32[1,128], index: 2, kind: input, shape index: {}]   ;;  %s11920_s3 = inlined_call_operand.vmem [shape: f32[512,128], index: 3, kind: output, shape index: {}]  }
   0x1   :  { %s9828_s14 = smov 0  }
   0x2 LB: > { %s25_s15 = sadd.s32 1, %s9798_s13  ;;  %p6663_p0 = scmp.ge.s32.totalorder %s9802_s14, 1  ;;  %s9802_s14 = sphi %s9828_s14, %s13_s14   ;;  %s9798_s13 = sphi %s9826_s13, %s11922_s13   ;;  %s9794_s12 = sphi %s9824_s12, %s11921_s12  }
   0x3   : > { %p27_p1 = scmp.ge.s32.totalorder %s25_s15, 2  ;;  %p170_p2 = scmp.lt.s32.totalorder %s9802_s14, 3 }
   0x5   : > { %s11924_s15 = smov (%p27_p1, %s25_s15), 0  ;;  %p171_p3 = pnand %p6663_p0, %p170_p2 }
   0x6   : > { %s6664_s22 = sshll.u32 (!%p171_p3), %s9794_s12, 5 }
   0x7   : > { %174 = sbr.rel (%p171_p3) target bundleno = 1782 (0x6f6), region = 32  ;;  %p206_p4 = scmp.lt.s32.totalorder (!%p171_p3), %s6664_s22, 63 }
   0xc   : > { %v9477_v0 = vld [vmem:[%s11918_s1 + $0x38] sm:$0xff]  ;;  %v9476_v1 = vld [vmem:[%s11918_s1 + $0x30] sm:$0xff]  ;;  %v9475_v2 = vld [vmem:[%s11918_s1 + $0x28] sm:$0xff]  ;;  %s11926_s22 = smov (!%p206_p4, %s6664_s22), 63  ;;  %vm4217_vm0 = vcmask 523264  }
   0xd   : > { %9666 = vmatpush.bf16.msra.mxu1 %v9477_v0  ;;  %9667 = vmatpush.bf16.msra.mxu2 %v9477_v0  ;;  %v9474_v3 = vld [vmem:[%s11918_s1 + $0x20] sm:$0xff]  ;;  %v9473_v4 = vld [vmem:[%s11918_s1 + $0x18] sm:$0xff]  ;;  %v9472_v5 = vld [vmem:[%s11918_s1 + $0x10] sm:$0xff]  ;;  %s9690_s29 = smul.u32 100, %s11926_s22  ;;  %s6667_s17 = sshll.u32 %s11926_s22, 3 }
   0xe   : > { %9668 = vmatpush.bf16.msra.mxu3 %v9477_v0  ;;  %4266 = vmatpush.bf16.msra.mxu0 %v9477_v0  ;;  %v9471_v6 = vld [vmem:[%s11918_s1 + $0x8] sm:$0xff]  ;;  %v9470_v7 = vld [vmem:[%s11918_s1] sm:$0xff]  ;;  %v9493_v16 = vld [vmem:[%s11918_s1 + $0xb8] sm:$0xff]  ;;  %s11789_s20 = scalar_lea.vmem %s11920_s3, %s6667_s17 }
   0xf   : > { %s9872_s7 = scalar_lea.vmem %s11917_s0, %s9690_s29  ;;  %v9501_v17 = vld [vmem:[%s11918_s1 + $0xf8] sm:$0xff]  ;;  %v9492_v24 = vld [vmem:[%s11918_s1 + $0xb0] sm:$0xff]  ;;  %v9491_v28 = vld [vmem:[%s11918_s1 + $0xa8] sm:$0xff] }
  0x10   : > { %v7070_v8 = vld [vmem:[%s9872_s7 + $0x320] sm:$0xf]  ;;  %v9182_v9 = vld [vmem:[%s9872_s7 + $0x380] sm:$0xf0]  ;;  %v9485_v22 = vld [vmem:[%s11918_s1 + $0x78] sm:$0xff] }
  0x11   : > { %9669 = vmatpush.bf16.msra.mxu1 %v9476_v1  ;;  %9670 = vmatpush.bf16.msra.mxu2 %v9476_v1  ;;  %v7470_v10 = vld [vmem:[%s9872_s7 + $0x640] sm:$0xf]  ;;  %v9282_v11 = vld [vmem:[%s9872_s7 + $0x6a0] sm:$0xf0]  ;;  %v7071_v18 = vor.u32 %v9182_v9, %v7070_v8  ;;  %v9509_v23 = vld [vmem:[%s11918_s1 + $0x138] sm:$0xff] }
  0x12   : > { %9671 = vmatpush.bf16.msra.mxu3 %v9476_v1  ;;  %4267 = vmatpush.bf16.msra.mxu0 %v9476_v1  ;;  %v7870_v12 = vld [vmem:[%s9872_s7 + $0x960] sm:$0xf]  ;;  %v9382_v13 = vld [vmem:[%s9872_s7 + $0x9c0] sm:$0xf0]  ;;  %v7471_v19 = vor.u32 %v9282_v11, %v7470_v10  ;;  %v9500_v25 = vld [vmem:[%s11918_s1 + $0xf0] sm:$0xff] }
  0x13   : > { %v6670_v14 = vld [vmem:[%s9872_s7] sm:$0xf]  ;;  %v9082_v15 = vld [vmem:[%s9872_s7 + $0x60] sm:$0xf0]  ;;  %v7871_v20 = vor.u32 %v9382_v13, %v7870_v12  ;;  %v9484_v26 = vld [vmem:[%s11918_s1 + $0x70] sm:$0xff] }
  0x14   : > { %v6671_v21 = vor.u32 %v9082_v15, %v6670_v14  ;;  %v9508_v27 = vld [vmem:[%s11918_s1 + $0x130] sm:$0xff]  ;;  %v9499_v29 = vld [vmem:[%s11918_s1 + $0xe8] sm:$0xff]  ;;  %v9490_v33 = vld [vmem:[%s11918_s1 + $0xa0] sm:$0xff] }
  0x15   : > { %9672 = vmatpush.bf16.msra.mxu1 %v9475_v2  ;;  %9673 = vmatpush.bf16.msra.mxu2 %v9475_v2  ;;  %v9483_v30 = vld [vmem:[%s11918_s1 + $0x68] sm:$0xff]  ;;  %v9498_v34 = vld [vmem:[%s11918_s1 + $0xe0] sm:$0xff]  ;;  %v9489_v44 = vld [vmem:[%s11918_s1 + $0x98] sm:$0xff] }
  0x16   : > { %9674 = vmatpush.bf16.msra.mxu3 %v9475_v2  ;;  %4268 = vmatpush.bf16.msra.mxu0 %v9475_v2  ;;  %v9507_v31 = vld [vmem:[%s11918_s1 + $0x128] sm:$0xff]  ;;  %v9482_v42 = vld [vmem:[%s11918_s1 + $0x60] sm:$0xff]  ;;  %v9497_v45 = vld [vmem:[%s11918_s1 + $0xd8] sm:$0xff] }
  0x17   : > { %v7170_v32 = vld [vmem:[%s9872_s7 + $0x3e8] sm:$0xf]  ;;  %v9207_v35 = vld [vmem:[%s9872_s7 + $0x448] sm:$0xf0]  ;;  %v9506_v43 = vld [vmem:[%s11918_s1 + $0x120] sm:$0xff] }
  0x18   : > { %v7570_v36 = vld [vmem:[%s9872_s7 + $0x708] sm:$0xf]  ;;  %v9307_v37 = vld [vmem:[%s9872_s7 + $0x768] sm:$0xf0]  ;;  %v7171_v46 = vor.u32 %v9207_v35, %v7170_v32  ;;  %v9481_v50 = vld [vmem:[%s11918_s1 + $0x58] sm:$0xff] }
  0x19   : > { %9675 = vmatpush.bf16.msra.mxu1 %v9474_v3  ;;  %9676 = vmatpush.bf16.msra.mxu2 %v9474_v3  ;;  %v7970_v38 = vld [vmem:[%s9872_s7 + $0xa28] sm:$0xf]  ;;  %v9407_v39 = vld [vmem:[%s9872_s7 + $0xa88] sm:$0xf0]  ;;  %v7571_v47 = vor.u32 %v9307_v37, %v7570_v36  ;;  %v9505_v51 = vld [vmem:[%s11918_s1 + $0x118] sm:$0xff] }
  0x1a   : > { %9677 = vmatpush.bf16.msra.mxu3 %v9474_v3  ;;  %4269 = vmatpush.bf16.msra.mxu0 %v9474_v3  ;;  %v6770_v40 = vld [vmem:[%s9872_s7 + $0xc8] sm:$0xf]  ;;  %v9107_v41 = vld [vmem:[%s9872_s7 + $0x128] sm:$0xf0]  ;;  %v7971_v48 = vor.u32 %v9407_v39, %v7970_v38  ;;  %v9488_v52 = vld [vmem:[%s11918_s1 + $0x90] sm:$0xff] }
  0x1b   : > { %v6771_v49 = vor.u32 %v9107_v41, %v6770_v40  ;;  %v9496_v53 = vld [vmem:[%s11918_s1 + $0xd0] sm:$0xff]  ;;  %v9487_v56 = vld [vmem:[%s11918_s1 + $0x88] sm:$0xff]  ;;  %v9486_v61 = vld [vmem:[%s11918_s1 + $0x80] sm:$0xff] }
  0x1c   : > { %v9480_v54 = vld [vmem:[%s11918_s1 + $0x50] sm:$0xff]  ;;  %v9495_v57 = vld [vmem:[%s11918_s1 + $0xc8] sm:$0xff]  ;;  %v9494_v62 = vld [vmem:[%s11918_s1 + $0xc0] sm:$0xff] }
  0x1d   : > { %9678 = vmatpush.bf16.msra.mxu1 %v9473_v4  ;;  %9679 = vmatpush.bf16.msra.mxu2 %v9473_v4  ;;  %v9504_v55 = vld [vmem:[%s11918_s1 + $0x110] sm:$0xff]  ;;  %v9479_v58 = vld [vmem:[%s11918_s1 + $0x48] sm:$0xff]  ;;  %v9525_v12 = vld [vmem:[%s11918_s1 + $0x1b8] sm:$0xff] }
  0x1e   : > { %9680 = vmatpush.bf16.msra.mxu3 %v9473_v4  ;;  %4270 = vmatpush.bf16.msra.mxu0 %v9473_v4  ;;  %v9503_v59 = vld [vmem:[%s11918_s1 + $0x108] sm:$0xff]  ;;  %v7270_v60 = vld [vmem:[%s9872_s7 + $0x4b0] sm:$0xf]  ;;  %v9232_v63 = vld [vmem:[%s9872_s7 + $0x510] sm:$0xf0] }
  0x1f   : > { %v7670_v0 = vld [vmem:[%s9872_s7 + $0x7d0] sm:$0xf]  ;;  %v9332_v1 = vld [vmem:[%s9872_s7 + $0x830] sm:$0xf0]  ;;  %v7271_v8 = vor.u32 %v9232_v63, %v7270_v60  ;;  %v9533_v13 = vld [vmem:[%s11918_s1 + $0x1f8] sm:$0xff] }
  0x20   : > { %v8070_v2 = vld [vmem:[%s9872_s7 + $0xaf0] sm:$0xf]  ;;  %v9432_v3 = vld [vmem:[%s9872_s7 + $0xb50] sm:$0xf0]  ;;  %v7671_v9 = vor.u32 %v9332_v1, %v7670_v0  ;;  %v9517_v14 = vld [vmem:[%s11918_s1 + $0x178] sm:$0xff] }
  0x21   : > { %9681 = vmatpush.bf16.msra.mxu1 %v9472_v5  ;;  %9682 = vmatpush.bf16.msra.mxu2 %v9472_v5  ;;  %v6870_v4 = vld [vmem:[%s9872_s7 + $0x190] sm:$0xf]  ;;  %v8071_v10 = vor.u32 %v9432_v3, %v8070_v2  ;;  %v9541_v15 = vld [vmem:[%s11918_s1 + $0x238] sm:$0xff]  ;;  %v9071_v32 = vld [vmem:[%s9872_s7 + $0xc] sm:$0xf] }
  0x22   : > { %9683 = vmatpush.bf16.msra.mxu3 %v9472_v5  ;;  %4271 = vmatpush.bf16.msra.mxu0 %v9472_v5  ;;  %v9132_v5 = vld [vmem:[%s9872_s7 + $0x1f0] sm:$0xf0]  ;;  %v9121_v60 = vld [vmem:[%s9872_s7 + $0x19c] sm:$0xf]  ;;  %v9134_v63 = vld [vmem:[%s9872_s7 + $0x200] sm:$0xf0] }
  0x23   : > { %v6871_v11 = vor.u32 %v9132_v5, %v6870_v4  ;;  %v9084_v35 = vld [vmem:[%s9872_s7 + $0x70] sm:$0xf0]  ;;  %v9523_v4 = vld [vmem:[%s11918_s1 + $0x1a8] sm:$0xff] }
  0x24   : > { %v9524_v40 = vld [vmem:[%s11918_s1 + $0x1b0] sm:$0xff]  ;;  %v9531_v5 = vld [vmem:[%s11918_s1 + $0x1e8] sm:$0xff] }
  0x25   : > { %9684 = vmatpush.bf16.msra.mxu1 %v9471_v6  ;;  %9685 = vmatpush.bf16.msra.mxu2 %v9471_v6  ;;  %v9532_v41 = vld [vmem:[%s11918_s1 + $0x1f0] sm:$0xff] }
  0x26   : > { %9686 = vmatpush.bf16.msra.mxu3 %v9471_v6  ;;  %4272 = vmatpush.bf16.msra.mxu0 %v9471_v6  ;;  %v9478_v6 = vld [vmem:[%s11918_s1 + $0x40] sm:$0xff] }
  0x29   : > { %9687 = vmatpush.bf16.msra.mxu1 %v9470_v7  ;;  %9688 = vmatpush.bf16.msra.mxu2 %v9470_v7 }
  0x2a   : > { %9689 = vmatpush.bf16.msra.mxu3 %v9470_v7  ;;  %4273 = vmatpush.bf16.msra.mxu0 %v9470_v7  ;;  %v9502_v7 = vld [vmem:[%s11918_s1 + $0x100] sm:$0xff] }
  0x2c   : > { %4294 = vmatmul.bf16.vlgmr.msra.gmra.mxu1 %v7071_v18  ;;  %4314 = vmatmul.bf16.vlgmr.msra.gmra.mxu2 %v7471_v19  ;;  %v7770_v18 = vld [vmem:[%s9872_s7 + $0x898] sm:$0xf]  ;;  %v9357_v19 = vld [vmem:[%s9872_s7 + $0x8f8] sm:$0xf0] }
  0x2d   : > { %4444 = vmatpush.bf16.msrb.mxu2 %v9493_v16  ;;  %4334 = vmatmul.bf16.vlgmr.msra.gmra.mxu3 %v7871_v20  ;;  %v7370_v16 = vld [vmem:[%s9872_s7 + $0x578] sm:$0xf] }
  0x2e   : > { %4533 = vmatpush.bf16.msrb.mxu3 %v9501_v17  ;;  %4274 = vmatmul.bf16.vlgmr.msra.gmra.mxu0 %v6671_v21  ;;  %v9257_v17 = vld [vmem:[%s9872_s7 + $0x5d8] sm:$0xf0]  ;;  %v8170_v20 = vld [vmem:[%s9872_s7 + $0xbb8] sm:$0xf] }
  0x2f   : > { %4355 = vmatpush.bf16.msrb.mxu1 %v9485_v22  ;;  %4622 = vmatpush.bf16.msrb.mxu0 %v9509_v23  ;;  %v9457_v21 = vld [vmem:[%s9872_s7 + $0xc18] sm:$0xf0]  ;;  %v6970_v22 = vld [vmem:[%s9872_s7 + $0x258] sm:$0xf] }
  0x30   : > { %v9157_v23 = vld [vmem:[%s9872_s7 + $0x2b8] sm:$0xf0] }
  0x31   : > { %4445 = vmatpush.bf16.msrb.mxu2 %v9492_v24  ;;  %v7371_v24 = vor.u32 %v9257_v17, %v7370_v16 }
  0x32   : > { %4534 = vmatpush.bf16.msrb.mxu3 %v9500_v25  ;;  %v7771_v25 = vor.u32 %v9357_v19, %v7770_v18 }
  0x33   : > { %4356 = vmatpush.bf16.msrb.mxu1 %v9484_v26  ;;  %4623 = vmatpush.bf16.msrb.mxu0 %v9508_v27  ;;  %v8171_v26 = vor.u32 %v9457_v21, %v8170_v20  ;;  %v6971_v27 = vor.u32 %v9157_v23, %v6970_v22  ;;  %v10076_v20 = vld [vmem:[%s11919_s2] ss:$0 sm:$0xff]  ;;  %v9170_v21 = vld [vmem:[%s9872_s7 + $0x324] sm:$0xf]  ;;  %v7072_v22 = vld [vmem:[%s9872_s7 + $0x384] sm:$0xf0] }
  0x34   : > { %v7078_v23 = vld [vmem:[%s9872_s7 + $0x328] sm:$0xf] }
  0x35   : > { %4446 = vmatpush.bf16.msrb.mxu2 %v9491_v28  ;;  %v9070_v28 = vld [vmem:[%s9872_s7 + $0x4] sm:$0xf] }
  0x36   : > { %4535 = vmatpush.bf16.msrb.mxu3 %v9499_v29  ;;  %v6672_v29 = vld [vmem:[%s9872_s7 + $0x64] sm:$0xf0] }
  0x37   : > { %4357 = vmatpush.bf16.msrb.mxu1 %v9483_v30  ;;  %4624 = vmatpush.bf16.msrb.mxu0 %v9507_v31  ;;  %v6678_v30 = vld [vmem:[%s9872_s7 + $0x8] sm:$0xf]  ;;  %v9083_v31 = vld [vmem:[%s9872_s7 + $0x68] sm:$0xf0]  ;;  %v6675_v36 = vor.u32 %v9070_v28, %v6672_v29  ;;  %v9184_v28 = vld [vmem:[%s9872_s7 + $0x390] sm:$0xf0]  ;;  %v7075_v29 = vor.u32 %v9170_v21, %v7072_v22 }
  0x38   : > { %v6679_v37 = vor.u32 %v9083_v31, %v6678_v30 }
  0x39   : > { %4447 = vmatpush.bf16.msrb.mxu2 %v9490_v33  ;;  %v6680_v33 = vld [vmem:[%s9872_s7 + $0x6c] sm:$0xf0] }
  0x3a   : > { %4536 = vmatpush.bf16.msrb.mxu3 %v9498_v34  ;;  %v6686_v34 = vld [vmem:[%s9872_s7 + $0x10] sm:$0xf]  ;;  %v6683_v38 = vor.u32 %v9071_v32, %v6680_v33 }
  0x3b   : > { %4358 = vmatpush.bf16.msrb.mxu1 %v9482_v42  ;;  %4625 = vmatpush.bf16.msrb.mxu0 %v9506_v43  ;;  %v6687_v39 = vor.u32 %v9084_v35, %v6686_v34  ;;  %v9516_v42 = vld [vmem:[%s11918_s1 + $0x170] sm:$0xff] }
  0x3c   : > { %4299 = vmatmul.bf16.gmra.mxu1 %v7171_v46  ;;  %4319 = vmatmul.bf16.gmra.mxu2 %v7571_v47  ;;  %v9540_v43 = vld [vmem:[%s11918_s1 + $0x230] sm:$0xff] }
  0x3d   : > { %4448 = vmatpush.bf16.msrb.mxu2 %v9489_v44  ;;  %4339 = vmatmul.bf16.gmra.mxu3 %v7971_v48  ;;  %v9095_v44 = vld [vmem:[%s9872_s7 + $0xcc] sm:$0xf]  ;;  %v6778_v46 = vld [vmem:[%s9872_s7 + $0xd0] sm:$0xf]  ;;  %v9108_v47 = vld [vmem:[%s9872_s7 + $0x130] sm:$0xf0] }
  0x3e   : > { %4537 = vmatpush.bf16.msrb.mxu3 %v9497_v45  ;;  %4279 = vmatmul.bf16.gmra.mxu0 %v6771_v49  ;;  %v6772_v45 = vld [vmem:[%s9872_s7 + $0x12c] sm:$0xf0]  ;;  %v9096_v48 = vld [vmem:[%s9872_s7 + $0xd4] sm:$0xf]  ;;  %v6780_v49 = vld [vmem:[%s9872_s7 + $0x134] sm:$0xf0] }
  0x3f   : > { %4359 = vmatpush.bf16.msrb.mxu1 %v9481_v50  ;;  %4626 = vmatpush.bf16.msrb.mxu0 %v9505_v51  ;;  %v6786_v50 = vld [vmem:[%s9872_s7 + $0xd8] sm:$0xf]  ;;  %v9109_v51 = vld [vmem:[%s9872_s7 + $0x138] sm:$0xf0] }
  0x41   : > { %4449 = vmatpush.bf16.msrb.mxu2 %v9488_v52  ;;  %v6775_v52 = vor.u32 %v9095_v44, %v6772_v45 }
  0x42   : > { %4538 = vmatpush.bf16.msrb.mxu3 %v9496_v53  ;;  %v6779_v53 = vor.u32 %v9108_v47, %v6778_v46  ;;  %v9538_v46 = vld [vmem:[%s11918_s1 + $0x220] sm:$0xff]  ;;  %v9195_v47 = vld [vmem:[%s9872_s7 + $0x3ec] sm:$0xf] }
  0x43   : > { %4360 = vmatpush.bf16.msrb.mxu1 %v9480_v54  ;;  %4627 = vmatpush.bf16.msrb.mxu0 %v9504_v55  ;;  %v6783_v54 = vor.u32 %v9096_v48, %v6780_v49  ;;  %v6787_v55 = vor.u32 %v9109_v51, %v6786_v50  ;;  %v7172_v48 = vld [vmem:[%s9872_s7 + $0x44c] sm:$0xf0]  ;;  %v9208_v50 = vld [vmem:[%s9872_s7 + $0x450] sm:$0xf0] }
  0x44   : > { %v7178_v49 = vld [vmem:[%s9872_s7 + $0x3f0] sm:$0xf]  ;;  %v9196_v51 = vld [vmem:[%s9872_s7 + $0x3f4] sm:$0xf] }
  0x45   : > { %4450 = vmatpush.bf16.msrb.mxu2 %v9487_v56  ;;  %v9120_v56 = vld [vmem:[%s9872_s7 + $0x194] sm:$0xf] }
  0x46   : > { %4539 = vmatpush.bf16.msrb.mxu3 %v9495_v57  ;;  %v6872_v57 = vld [vmem:[%s9872_s7 + $0x1f4] sm:$0xf0] }
  0x47   : > { %4361 = vmatpush.bf16.msrb.mxu1 %v9479_v58  ;;  %4628 = vmatpush.bf16.msrb.mxu0 %v9503_v59  ;;  %v6878_v58 = vld [vmem:[%s9872_s7 + $0x198] sm:$0xf]  ;;  %v9133_v59 = vld [vmem:[%s9872_s7 + $0x1f8] sm:$0xf0]  ;;  %v6875_v0 = vor.u32 %v9120_v56, %v6872_v57 }
  0x48   : > { %v6879_v1 = vor.u32 %v9133_v59, %v6878_v58  ;;  %v7175_v58 = vor.u32 %v9195_v47, %v7172_v48  ;;  %v7179_v59 = vor.u32 %v9208_v50, %v7178_v49  ;;  %v7372_v47 = vld [vmem:[%s9872_s7 + $0x5dc] sm:$0xf0]  ;;  %v9258_v49 = vld [vmem:[%s9872_s7 + $0x5e0] sm:$0xf0] }
  0x49   : > { %4451 = vmatpush.bf16.msrb.mxu2 %v9486_v61  ;;  %v6880_v61 = vld [vmem:[%s9872_s7 + $0x1fc] sm:$0xf0]  ;;  %v9246_v50 = vld [vmem:[%s9872_s7 + $0x584] sm:$0xf] }
  0x4a   : > { %4540 = vmatpush.bf16.msrb.mxu3 %v9494_v62  ;;  %v6886_v62 = vld [vmem:[%s9872_s7 + $0x1a0] sm:$0xf]  ;;  %v6883_v2 = vor.u32 %v9121_v60, %v6880_v61 }
  0x4b   : > { %4362 = vmatpush.bf16.msrb.mxu1 %v9478_v6  ;;  %4629 = vmatpush.bf16.msrb.mxu0 %v9502_v7  ;;  %v6887_v3 = vor.u32 %v9134_v63, %v6886_v62  ;;  %v9515_v6 = vld [vmem:[%s11918_s1 + $0x168] sm:$0xff]  ;;  %v7378_v48 = vld [vmem:[%s9872_s7 + $0x580] sm:$0xf] }
  0x4c   : > { %4304 = vmatmul.bf16.gmra.mxu1 %v7271_v8  ;;  %4324 = vmatmul.bf16.gmra.mxu2 %v7671_v9  ;;  %v9539_v7 = vld [vmem:[%s11918_s1 + $0x228] sm:$0xff]  ;;  %v9145_v8 = vld [vmem:[%s9872_s7 + $0x25c] sm:$0xf]  ;;  %v6972_v9 = vld [vmem:[%s9872_s7 + $0x2bc] sm:$0xf0] }
  0x4d   : > { %4344 = vmatmul.bf16.gmra.mxu3 %v8071_v10  ;;  %4800 = vmatpush.bf16.msra.mxu2 %v9525_v12  ;;  %v6978_v10 = vld [vmem:[%s9872_s7 + $0x260] sm:$0xf]  ;;  %v9146_v12 = vld [vmem:[%s9872_s7 + $0x264] sm:$0xf]  ;;  %v6975_v16 = vor.u32 %v9145_v8, %v6972_v9  ;;  %v9220_v9 = vld [vmem:[%s9872_s7 + $0x4b4] sm:$0xf] }
  0x4e   : > { %4284 = vmatmul.bf16.gmra.mxu0 %v6871_v11  ;;  %4889 = vmatpush.bf16.msra.mxu3 %v9533_v13  ;;  %v9158_v11 = vld [vmem:[%s9872_s7 + $0x2c0] sm:$0xf0]  ;;  %v6980_v13 = vld [vmem:[%s9872_s7 + $0x2c4] sm:$0xf0] }
  0x4f   : > { %4711 = vmatpush.bf16.msra.mxu1 %v9517_v14  ;;  %4978 = vmatpush.bf16.msra.mxu0 %v9541_v15  ;;  %v6986_v14 = vld [vmem:[%s9872_s7 + $0x268] sm:$0xf]  ;;  %v9159_v15 = vld [vmem:[%s9872_s7 + $0x2c8] sm:$0xf0]  ;;  %v6979_v17 = vor.u32 %v9158_v11, %v6978_v10  ;;  %v6983_v18 = vor.u32 %v9146_v12, %v6980_v13  ;;  %v7272_v10 = vld [vmem:[%s9872_s7 + $0x514] sm:$0xf0] }
  0x50   : > { %v6987_v19 = vor.u32 %v9159_v15, %v6986_v14  ;;  %v7278_v11 = vld [vmem:[%s9872_s7 + $0x4b8] sm:$0xf]  ;;  %v9233_v12 = vld [vmem:[%s9872_s7 + $0x518] sm:$0xf0]  ;;  %v7280_v14 = vld [vmem:[%s9872_s7 + $0x51c] sm:$0xf0]  ;;  %v7275_v21 = vor.u32 %v9220_v9, %v7272_v10 }
  0x51   : > { %4801 = vmatpush.bf16.msra.mxu2 %v9524_v40  ;;  %v9221_v13 = vld [vmem:[%s9872_s7 + $0x4bc] sm:$0xf]  ;;  %v7286_v15 = vld [vmem:[%s9872_s7 + $0x4c0] sm:$0xf]  ;;  %v7279_v22 = vor.u32 %v9233_v12, %v7278_v11 }
  0x52   : > { %4890 = vmatpush.bf16.msra.mxu3 %v9532_v41 }
  0x53   : > { %4712 = vmatpush.bf16.msra.mxu1 %v9516_v42  ;;  %4979 = vmatpush.bf16.msra.mxu0 %v9540_v43  ;;  %v9514_v43 = vld [vmem:[%s11918_s1 + $0x160] sm:$0xff] }
  0x55   : > { %4802 = vmatpush.bf16.msra.mxu2 %v9523_v4 }
  0x56   : > { %4891 = vmatpush.bf16.msra.mxu3 %v9531_v5 }
  0x57   : > { %4713 = vmatpush.bf16.msra.mxu1 %v9515_v6  ;;  %4980 = vmatpush.bf16.msra.mxu0 %v9539_v7 }
  0x5b   : > { %4714 = vmatpush.bf16.msra.mxu1 %v9514_v43  ;;  %4981 = vmatpush.bf16.msra.mxu0 %v9538_v46  ;;  %v9537_v43 = vld [vmem:[%s11918_s1 + $0x218] sm:$0xff] }
  0x5c   : > { %4309 = vmatmul.bf16.gmra.mxu1 %v7371_v24  ;;  %4329 = vmatmul.bf16.gmra.mxu2 %v7771_v25  ;;  %v9183_v24 = vld [vmem:[%s9872_s7 + $0x388] sm:$0xf0]  ;;  %v9245_v46 = vld [vmem:[%s9872_s7 + $0x57c] sm:$0xf] }
  0x5d   : > { %4349 = vmatmul.bf16.gmra.mxu3 %v8171_v26  ;;  %v9171_v25 = vld [vmem:[%s9872_s7 + $0x32c] sm:$0xf]  ;;  %v7080_v26 = vld [vmem:[%s9872_s7 + $0x38c] sm:$0xf0]  ;;  %v7079_v30 = vor.u32 %v9183_v24, %v7078_v23 }
  0x5e   : > { %4289 = vmatmul.bf16.gmra.mxu0 %v6971_v27  ;;  %v7086_v27 = vld [vmem:[%s9872_s7 + $0x330] sm:$0xf]  ;;  %v7083_v32 = vor.u32 %v9171_v25, %v7080_v26  ;;  %v7283_v25 = vor.u32 %v9221_v13, %v7280_v14 }
  0x5f   : > { %v7087_v33 = vor.u32 %v9184_v28, %v7086_v27  ;;  %4982 = vmatpush.bf16.msra.mxu0 %v9537_v43 }
  0x6c   : > { %4363 = vmatmul.bf16.vlgmr.msrb.gmra.mxu1 %v6675_v36  ;;  %4452 = vmatmul.bf16.vlgmr.msrb.gmra.mxu2 %v6679_v37  ;;  %v9522_v36 = vld [vmem:[%s11918_s1 + $0x1a0] sm:$0xff] }
  0x6d   : > { %4541 = vmatmul.bf16.vlgmr.msrb.gmra.mxu3 %v6683_v38  ;;  %v9530_v37 = vld [vmem:[%s11918_s1 + $0x1e0] sm:$0xff]  ;;  %4803 = vmatpush.bf16.msra.mxu2 %v9522_v36 }
  0x6e   : > { %4630 = vmatmul.bf16.vlgmr.msrb.gmra.mxu0 %v6687_v39  ;;  %4892 = vmatpush.bf16.msra.mxu3 %v9530_v37 }
  0x7c   : > { %4368 = vmatmul.bf16.gmra.mxu1 %v6775_v52  ;;  %4457 = vmatmul.bf16.gmra.mxu2 %v6779_v53  ;;  %v7180_v52 = vld [vmem:[%s9872_s7 + $0x454] sm:$0xf0] }
  0x7d   : > { %4546 = vmatmul.bf16.gmra.mxu3 %v6783_v54  ;;  %v7186_v53 = vld [vmem:[%s9872_s7 + $0x3f8] sm:$0xf]  ;;  %v9209_v54 = vld [vmem:[%s9872_s7 + $0x458] sm:$0xf0]  ;;  %v7183_v62 = vor.u32 %v9196_v51, %v7180_v52  ;;  %v7380_v51 = vld [vmem:[%s9872_s7 + $0x5e4] sm:$0xf0] }
  0x7e   : > { %4635 = vmatmul.bf16.gmra.mxu0 %v6787_v55  ;;  %v7187_v63 = vor.u32 %v9209_v54, %v7186_v53  ;;  %v7386_v52 = vld [vmem:[%s9872_s7 + $0x588] sm:$0xf]  ;;  %v9259_v53 = vld [vmem:[%s9872_s7 + $0x5e8] sm:$0xf0] }
  0x8c   : > { %4373 = vmatmul.bf16.gmra.mxu1 %v6875_v0  ;;  %4462 = vmatmul.bf16.gmra.mxu2 %v6879_v1 }
  0x8d   : > { %4551 = vmatmul.bf16.gmra.mxu3 %v6883_v2 }
  0x8e   : > { %4640 = vmatmul.bf16.gmra.mxu0 %v6887_v3 }
  0x9c   : > { %4378 = vmatmul.bf16.gmra.mxu1 %v6975_v16  ;;  %4467 = vmatmul.bf16.gmra.mxu2 %v6979_v17  ;;  %v9234_v16 = vld [vmem:[%s9872_s7 + $0x520] sm:$0xf0] }
  0x9d   : > { %4556 = vmatmul.bf16.gmra.mxu3 %v6983_v18  ;;  %v7287_v26 = vor.u32 %v9234_v16, %v7286_v15  ;;  %v9270_v16 = vld [vmem:[%s9872_s7 + $0x644] sm:$0xf] }
  0x9e   : > { %4645 = vmatmul.bf16.gmra.mxu0 %v6987_v19 }
  0xa9   : > { %v4295_v31 = vpop.f32.mrf.mxu1 }
  0xaa   : > { %v10087_v34 = vadd.f32 %v10076_v20, %v4295_v31 }
  0xab   : > { %v10089_v35 = vpop.f32.mrf.mxu0 }
  0xac   : > { %4383 = vmatmul.bf16.gmra.mxu1 %v7075_v29  ;;  %4472 = vmatmul.bf16.gmra.mxu2 %v7079_v30  ;;  %v9521_v29 = vld [vmem:[%s11918_s1 + $0x198] sm:$0xff] }
  0xad   : > { %4561 = vmatmul.bf16.gmra.mxu3 %v7083_v32  ;;  %v9529_v30 = vld [vmem:[%s11918_s1 + $0x1d8] sm:$0xff]  ;;  %4804 = vmatpush.bf16.msra.mxu2 %v9521_v29 }
  0xae   : > { %4650 = vmatmul.bf16.gmra.mxu0 %v7087_v33  ;;  %4893 = vmatpush.bf16.msra.mxu3 %v9529_v30  ;;  %v4276_v30 = vadd.f32 %v10076_v20, %v10089_v35  ;;  %v9520_v35 = vld [vmem:[%s11918_s1 + $0x190] sm:$0xff] }
  0xaf   : > { %v4315_v38 = vpop.f32.mrf.mxu2 }
  0xb0   : > { %v10098_v39 = vadd.f32 %v10076_v20, %v4315_v38  ;;  %v4335_v40 = vpop.f32.mrf.mxu3 }
  0xb1   : > { %v10101_v41 = vadd.f32 %v10076_v20, %v4335_v40  ;;  %v4297_v42 = vpop.f32.mrf.mxu1  ;;  %4805 = vmatpush.bf16.msra.mxu2 %v9520_v35 }
  0xb2   : > { %v10107_v44 = vadd.f32 %v10076_v20, %v4297_v42  ;;  %v9513_v42 = vld [vmem:[%s11918_s1 + $0x158] sm:$0xff] }
  0xb3   : > { %v10109_v45 = vpop.f32.mrf.mxu0  ;;  %4715 = vmatpush.bf16.msra.mxu1 %v9513_v42 }
  0xb7   : > { %v4317_v55 = vpop.f32.mrf.mxu2 }
  0xb8   : > { %v10123_v56 = vadd.f32 %v10076_v20, %v4317_v55  ;;  %v4337_v57 = vpop.f32.mrf.mxu3 }
  0xb9   : > { %v10126_v60 = vadd.f32 %v10076_v20, %v4337_v57  ;;  %v4300_v61 = vpop.f32.mrf.mxu1 }
  0xba   : > { %v10129_v0 = vadd.f32 %v10076_v20, %v4300_v61 }
  0xbb   : > { %v10131_v1 = vpop.f32.mrf.mxu0 }
  0xbc   : > { %4388 = vmatmul.bf16.gmra.mxu1 %v7175_v58  ;;  %4477 = vmatmul.bf16.gmra.mxu2 %v7179_v59  ;;  %v7375_v58 = vor.u32 %v9245_v46, %v7372_v47  ;;  %v7379_v59 = vor.u32 %v9258_v49, %v7378_v48 }
  0xbd   : > { %4566 = vmatmul.bf16.gmra.mxu3 %v7183_v62 }
  0xbe   : > { %4655 = vmatmul.bf16.gmra.mxu0 %v7187_v63  ;;  %v7383_v63 = vor.u32 %v9246_v50, %v7380_v51  ;;  %v9528_v51 = vld [vmem:[%s11918_s1 + $0x1d0] sm:$0xff] }
  0xbf   : > { %v4320_v2 = vpop.f32.mrf.mxu2  ;;  %4894 = vmatpush.bf16.msra.mxu3 %v9528_v51 }
  0xc0   : > { %v10134_v3 = vadd.f32 %v10076_v20, %v4320_v2  ;;  %v4340_v4 = vpop.f32.mrf.mxu3  ;;  %v7387_v2 = vor.u32 %v9259_v53, %v7386_v52  ;;  %v4278_v53 = vadd.f32 %v10076_v20, %v10109_v45  ;;  %v7572_v45 = vld [vmem:[%s9872_s7 + $0x76c] sm:$0xf0] }
  0xc1   : > { %v10137_v5 = vadd.f32 %v10076_v20, %v4340_v4  ;;  %v4302_v6 = vpop.f32.mrf.mxu1 }
  0xc2   : > { %v10140_v7 = vadd.f32 %v10076_v20, %v4302_v6 }
  0xc3   : > { %v10142_v8 = vpop.f32.mrf.mxu0 }
  0xc4   : > { %v4283_v51 = vadd.f32 %v10076_v20, %v10142_v8 }
  0xc7   : > { %v4322_v17 = vpop.f32.mrf.mxu2 }
  0xc8   : > { %v10153_v18 = vadd.f32 %v10076_v20, %v4322_v17  ;;  %v4342_v19 = vpop.f32.mrf.mxu3  ;;  %v7472_v17 = vld [vmem:[%s9872_s7 + $0x6a4] sm:$0xf0] }
  0xc9   : > { %v10156_v23 = vadd.f32 %v10076_v20, %v4342_v19  ;;  %v4305_v24 = vpop.f32.mrf.mxu1  ;;  %v7478_v19 = vld [vmem:[%s9872_s7 + $0x648] sm:$0xf] }
  0xca   : > { %v10159_v27 = vadd.f32 %v10076_v20, %v4305_v24  ;;  %v7480_v24 = vld [vmem:[%s9872_s7 + $0x6ac] sm:$0xf0] }
  0xcb   : > { %v10161_v28 = vpop.f32.mrf.mxu0 }
  0xcc   : > { %4393 = vmatmul.bf16.gmra.mxu1 %v7275_v21  ;;  %4482 = vmatmul.bf16.gmra.mxu2 %v7279_v22  ;;  %v9283_v21 = vld [vmem:[%s9872_s7 + $0x6a8] sm:$0xf0]  ;;  %v4286_v8 = vadd.f32 %v10076_v20, %v10161_v28 }
  0xcd   : > { %4571 = vmatmul.bf16.gmra.mxu3 %v7283_v25  ;;  %v9271_v22 = vld [vmem:[%s9872_s7 + $0x64c] sm:$0xf]  ;;  %v7486_v25 = vld [vmem:[%s9872_s7 + $0x650] sm:$0xf]  ;;  %v7479_v42 = vor.u32 %v9283_v21, %v7478_v19  ;;  %v9296_v19 = vld [vmem:[%s9872_s7 + $0x714] sm:$0xf] }
  0xce   : > { %4660 = vmatmul.bf16.gmra.mxu0 %v7287_v26  ;;  %v9284_v26 = vld [vmem:[%s9872_s7 + $0x6b0] sm:$0xf0]  ;;  %v7483_v47 = vor.u32 %v9271_v22, %v7480_v24  ;;  %v7580_v21 = vld [vmem:[%s9872_s7 + $0x774] sm:$0xf0]  ;;  %v9309_v24 = vld [vmem:[%s9872_s7 + $0x778] sm:$0xf0] }
  0xcf   : > { %v4325_v31 = vpop.f32.mrf.mxu2  ;;  %v7487_v48 = vor.u32 %v9284_v26, %v7486_v25  ;;  %v7586_v22 = vld [vmem:[%s9872_s7 + $0x718] sm:$0xf]  ;;  %v4281_v26 = vadd.f32 %v10076_v20, %v10131_v1  ;;  %v9519_v28 = vld [vmem:[%s11918_s1 + $0x188] sm:$0xff] }
  0xd0   : > { %v10170_v32 = vadd.f32 %v10076_v20, %v4325_v31  ;;  %v4345_v33 = vpop.f32.mrf.mxu3  ;;  %4806 = vmatpush.bf16.msra.mxu2 %v9519_v28 }
  0xd1   : > { %v10173_v36 = vadd.f32 %v10076_v20, %v4345_v33  ;;  %v4307_v37 = vpop.f32.mrf.mxu1 }
  0xd2   : > { %v10176_v38 = vadd.f32 %v10076_v20, %v4307_v37  ;;  %v7475_v37 = vor.u32 %v9270_v16, %v7472_v17  ;;  %v7578_v16 = vld [vmem:[%s9872_s7 + $0x710] sm:$0xf]  ;;  %v9308_v17 = vld [vmem:[%s9872_s7 + $0x770] sm:$0xf0] }
  0xd3   : > { %v10178_v40 = vpop.f32.mrf.mxu0 }
  0xd7   : > { %v4327_v54 = vpop.f32.mrf.mxu2 }
  0xd8   : > { %v10195_v55 = vadd.f32 %v10076_v20, %v4327_v54  ;;  %v4347_v57 = vpop.f32.mrf.mxu3 }
  0xd9   : > { %v10198_v61 = vadd.f32 %v10076_v20, %v4347_v57  ;;  %v4310_v62 = vpop.f32.mrf.mxu1 }
  0xda   : > { %v10201_v4 = vadd.f32 %v10076_v20, %v4310_v62 }
  0xdb   : > { %v10203_v6 = vpop.f32.mrf.mxu0 }
  0xdc   : > { %4398 = vmatmul.bf16.gmra.mxu1 %v7375_v58  ;;  %4487 = vmatmul.bf16.gmra.mxu2 %v7379_v59 }
  0xdd   : > { %4576 = vmatmul.bf16.gmra.mxu3 %v7383_v63 }
  0xde   : > { %4665 = vmatmul.bf16.gmra.mxu0 %v7387_v2  ;;  %v9512_v2 = vld [vmem:[%s11918_s1 + $0x150] sm:$0xff] }
  0xdf   : > { %v4330_v9 = vpop.f32.mrf.mxu2  ;;  %4716 = vmatpush.bf16.msra.mxu1 %v9512_v2  ;;  %v7672_v2 = vld [vmem:[%s9872_s7 + $0x834] sm:$0xf0] }
  0xe0   : > { %v10206_v10 = vadd.f32 %v10076_v20, %v4330_v9  ;;  %v4350_v11 = vpop.f32.mrf.mxu3  ;;  %v9536_v9 = vld [vmem:[%s11918_s1 + $0x210] sm:$0xff] }
  0xe1   : > { %v10209_v12 = vadd.f32 %v10076_v20, %v4350_v11  ;;  %v4312_v13 = vpop.f32.mrf.mxu1  ;;  %v9295_v11 = vld [vmem:[%s9872_s7 + $0x70c] sm:$0xf]  ;;  %4983 = vmatpush.bf16.msra.mxu0 %v9536_v9  ;;  %v7678_v9 = vld [vmem:[%s9872_s7 + $0x7d8] sm:$0xf] }
  0xe2   : > { %v10212_v14 = vadd.f32 %v10076_v20, %v4312_v13 }
  0xe3   : > { %v10214_v15 = vpop.f32.mrf.mxu0 }
  0xe7   : > { %v4332_v29 = vpop.f32.mrf.mxu2 }
  0xe8   : > { %v10227_v31 = vadd.f32 %v10076_v20, %v4332_v29  ;;  %v4352_v33 = vpop.f32.mrf.mxu3 }
  0xe9   : > { %v10230_v43 = vadd.f32 %v10076_v20, %v4352_v33  ;;  %v4364_v46 = vpop.f32.mrf.mxu1  ;;  %v7575_v33 = vor.u32 %v9295_v11, %v7572_v45  ;;  %v9333_v11 = vld [vmem:[%s9872_s7 + $0x838] sm:$0xf0] }
  0xea   : > { %v4365_v49 = vadd.f32 %v4364_v46, %v4276_v30  ;;  %v7583_v46 = vor.u32 %v9296_v19, %v7580_v21  ;;  %v9321_v45 = vld [vmem:[%s9872_s7 + $0x7dc] sm:$0xf]  ;;  %v9334_v19 = vld [vmem:[%s9872_s7 + $0x840] sm:$0xf0] }
  0xeb   : > { %v4631_v50 = vpop.f32.mrf.mxu0 }
  0xec   : > { %4403 = vmatmul.bf16.gmra.mxu1 %v7475_v37  ;;  %4492 = vmatmul.bf16.gmra.mxu2 %v7479_v42  ;;  %v7579_v37 = vor.u32 %v9308_v17, %v7578_v16  ;;  %v7680_v16 = vld [vmem:[%s9872_s7 + $0x83c] sm:$0xf0] }
  0xed   : > { %4581 = vmatmul.bf16.gmra.mxu3 %v7483_v47  ;;  %v7587_v47 = vor.u32 %v9309_v24, %v7586_v22  ;;  %v7686_v17 = vld [vmem:[%s9872_s7 + $0x7e0] sm:$0xf] }
  0xee   : > { %4670 = vmatmul.bf16.gmra.mxu0 %v7487_v48 }
  0xef   : > { %v4453_v52 = vpop.f32.mrf.mxu2 }
  0xf0   : > { %v4454_v54 = vadd.f32 %v4453_v52, %v4365_v49  ;;  %v4542_v57 = vpop.f32.mrf.mxu3 }
  0xf1   : > { %v4366_v58 = vpop.f32.mrf.mxu1 }
  0xf2   : > { %v4543_v59 = vadd.f32 %v4542_v57, %v4454_v54  ;;  %v4367_v62 = vadd.f32 %v4366_v58, %v4278_v53 }
  0xf3   : > { %v4633_v63 = vpop.f32.mrf.mxu0 }
  0xf4   : > { %v10248_v13 = vadd.f32 %v4631_v50, %v4543_v59 }
  0xf7   : > { %v4455_v25 = vpop.f32.mrf.mxu2 }
  0xf8   : > { %v4456_v29 = vadd.f32 %v4455_v25, %v4367_v62  ;;  %v4544_v30 = vpop.f32.mrf.mxu3  ;;  %v9320_v62 = vld [vmem:[%s9872_s7 + $0x7d4] sm:$0xf] }
  0xf9   : > { %v4369_v42 = vpop.f32.mrf.mxu1  ;;  %v7675_v25 = vor.u32 %v9320_v62, %v7672_v2  ;;  %v9345_v62 = vld [vmem:[%s9872_s7 + $0x89c] sm:$0xf] }
  0xfa   : > { %v4545_v48 = vadd.f32 %v4544_v30, %v4456_v29  ;;  %v4370_v49 = vadd.f32 %v4369_v42, %v4281_v26  ;;  %v7679_v26 = vor.u32 %v9333_v11, %v7678_v9  ;;  %v7683_v30 = vor.u32 %v9321_v45, %v7680_v16  ;;  %v7778_v9 = vld [vmem:[%s9872_s7 + $0x8a0] sm:$0xf]  ;;  %v9358_v11 = vld [vmem:[%s9872_s7 + $0x900] sm:$0xf0]  ;;  %v7780_v16 = vld [vmem:[%s9872_s7 + $0x904] sm:$0xf0] }
  0xfb   : > { %v4636_v50 = vpop.f32.mrf.mxu0  ;;  %v9346_v45 = vld [vmem:[%s9872_s7 + $0x8a4] sm:$0xf] }
  0xfc   : > { %4408 = vmatmul.bf16.gmra.mxu1 %v7575_v33  ;;  %4497 = vmatmul.bf16.gmra.mxu2 %v7579_v37  ;;  %v10258_v35 = vadd.f32 %v4633_v63, %v4545_v48  ;;  %v7687_v33 = vor.u32 %v9334_v19, %v7686_v17  ;;  %v9527_v48 = vld [vmem:[%s11918_s1 + $0x1c8] sm:$0xff] }
  0xfd   : > { %4586 = vmatmul.bf16.gmra.mxu3 %v7583_v46  ;;  %v7786_v17 = vld [vmem:[%s9872_s7 + $0x8a8] sm:$0xf]  ;;  %v9359_v19 = vld [vmem:[%s9872_s7 + $0x908] sm:$0xf0] }
  0xfe   : > { %4675 = vmatmul.bf16.gmra.mxu0 %v7587_v47  ;;  %4895 = vmatpush.bf16.msra.mxu3 %v9527_v48  ;;  %v4293_v48 = vadd.f32 %v10076_v20, %v10214_v15 }
  0xff   : > { %v4458_v1 = vpop.f32.mrf.mxu2 }
 0x100   : > { %v4459_v52 = vadd.f32 %v4458_v1, %v4370_v49  ;;  %v4547_v53 = vpop.f32.mrf.mxu3 }
 0x101   : > { %v4371_v54 = vpop.f32.mrf.mxu1 }
 0x102   : > { %v4548_v57 = vadd.f32 %v4547_v53, %v4459_v52  ;;  %v4372_v58 = vadd.f32 %v4371_v54, %v4283_v51 }
 0x103   : > { %v4638_v59 = vpop.f32.mrf.mxu0 }
 0x104   : > { %v10264_v63 = vadd.f32 %v4636_v50, %v4548_v57  ;;  %v4288_v50 = vadd.f32 %v10076_v20, %v10178_v40  ;;  %v7772_v40 = vld [vmem:[%s9872_s7 + $0x8fc] sm:$0xf0] }
 0x107   : > { %v4460_v21 = vpop.f32.mrf.mxu2 }
 0x108   : > { %v4461_v22 = vadd.f32 %v4460_v21, %v4372_v58  ;;  %v4549_v24 = vpop.f32.mrf.mxu3  ;;  %v9511_v58 = vld [vmem:[%s11918_s1 + $0x148] sm:$0xff] }
 0x109   : > { %v4374_v29 = vpop.f32.mrf.mxu1  ;;  %4717 = vmatpush.bf16.msra.mxu1 %v9511_v58  ;;  %v7872_v58 = vld [vmem:[%s9872_s7 + $0x9c4] sm:$0xf0] }
 0x10a   : > { %v4550_v37 = vadd.f32 %v4549_v24, %v4461_v22  ;;  %v4375_v42 = vadd.f32 %v4374_v29, %v4286_v8  ;;  %v4291_v8 = vadd.f32 %v10076_v20, %v10203_v6 }
 0x10b   : > { %v4641_v46 = vpop.f32.mrf.mxu0 }
 0x10c   : > { %4413 = vmatmul.bf16.gmra.mxu1 %v7675_v25  ;;  %4502 = vmatmul.bf16.gmra.mxu2 %v7679_v26  ;;  %v10274_v47 = vadd.f32 %v4638_v59, %v4550_v37  ;;  %v9535_v59 = vld [vmem:[%s11918_s1 + $0x208] sm:$0xff]  ;;  %v7775_v25 = vor.u32 %v9345_v62, %v7772_v40  ;;  %v7779_v26 = vor.u32 %v9358_v11, %v7778_v9  ;;  %v7880_v9 = vld [vmem:[%s9872_s7 + $0x9cc] sm:$0xf0] }
 0x10d   : > { %4591 = vmatmul.bf16.gmra.mxu3 %v7683_v30  ;;  %4984 = vmatpush.bf16.msra.mxu0 %v9535_v59  ;;  %v7783_v30 = vor.u32 %v9346_v45, %v7780_v16  ;;  %v7878_v59 = vld [vmem:[%s9872_s7 + $0x968] sm:$0xf]  ;;  %v9383_v62 = vld [vmem:[%s9872_s7 + $0x9c8] sm:$0xf0]  ;;  %v7886_v11 = vld [vmem:[%s9872_s7 + $0x970] sm:$0xf] }
 0x10e   : > { %4680 = vmatmul.bf16.gmra.mxu0 %v7687_v33  ;;  %v7787_v33 = vor.u32 %v9359_v19, %v7786_v17  ;;  %v9371_v40 = vld [vmem:[%s9872_s7 + $0x96c] sm:$0xf]  ;;  %v9384_v45 = vld [vmem:[%s9872_s7 + $0x9d0] sm:$0xf0]  ;;  %v7879_v15 = vor.u32 %v9383_v62, %v7878_v59  ;;  %v7980_v62 = vld [vmem:[%s9872_s7 + $0xa94] sm:$0xf0] }
 0x10f   : > { %v4463_v49 = vpop.f32.mrf.mxu2  ;;  %v9396_v59 = vld [vmem:[%s9872_s7 + $0xa34] sm:$0xf] }
 0x110   : > { %v4464_v1 = vadd.f32 %v4463_v49, %v4375_v42  ;;  %v4552_v51 = vpop.f32.mrf.mxu3 }
 0x111   : > { %v4376_v52 = vpop.f32.mrf.mxu1 }
 0x112   : > { %v4553_v53 = vadd.f32 %v4552_v51, %v4464_v1  ;;  %v4377_v54 = vadd.f32 %v4376_v52, %v4288_v50 }
 0x113   : > { %v4643_v57 = vpop.f32.mrf.mxu0 }
 0x114   : > { %v10292_v2 = vadd.f32 %v4641_v46, %v4553_v53 }
 0x117   : > { %v4465_v21 = vpop.f32.mrf.mxu2 }
 0x118   : > { %v4466_v22 = vadd.f32 %v4465_v21, %v4377_v54  ;;  %v4554_v24 = vpop.f32.mrf.mxu3  ;;  %v9370_v54 = vld [vmem:[%s9872_s7 + $0x964] sm:$0xf] }
 0x119   : > { %v4379_v29 = vpop.f32.mrf.mxu1  ;;  %v7875_v20 = vor.u32 %v9370_v54, %v7872_v58  ;;  %v7978_v54 = vld [vmem:[%s9872_s7 + $0xa30] sm:$0xf]  ;;  %v9408_v58 = vld [vmem:[%s9872_s7 + $0xa90] sm:$0xf0] }
 0x11a   : > { %v4555_v37 = vadd.f32 %v4554_v24, %v4466_v22  ;;  %v4380_v42 = vadd.f32 %v4379_v29, %v4291_v8  ;;  %v7883_v8 = vor.u32 %v9371_v40, %v7880_v9  ;;  %v7887_v22 = vor.u32 %v9384_v45, %v7886_v11  ;;  %v9409_v40 = vld [vmem:[%s9872_s7 + $0xa98] sm:$0xf0] }
 0x11b   : > { %v4646_v46 = vpop.f32.mrf.mxu0 }
 0x11c   : > { %4418 = vmatmul.bf16.gmra.mxu1 %v7775_v25  ;;  %4507 = vmatmul.bf16.gmra.mxu2 %v7779_v26  ;;  %v10302_v28 = vadd.f32 %v4643_v57, %v4555_v37 }
 0x11d   : > { %4596 = vmatmul.bf16.gmra.mxu3 %v7783_v30  ;;  %v9518_v30 = vld [vmem:[%s11918_s1 + $0x180] sm:$0xff] }
 0x11e   : > { %4685 = vmatmul.bf16.gmra.mxu0 %v7787_v33  ;;  %v9526_v33 = vld [vmem:[%s11918_s1 + $0x1c0] sm:$0xff]  ;;  %4807 = vmatpush.bf16.msra.mxu2 %v9518_v30 }
 0x11f   : > { %v4468_v6 = vpop.f32.mrf.mxu2  ;;  %4896 = vmatpush.bf16.msra.mxu3 %v9526_v33 }
 0x120   : > { %v4469_v49 = vadd.f32 %v4468_v6, %v4380_v42  ;;  %v4557_v50 = vpop.f32.mrf.mxu3 }
 0x121   : > { %v4381_v1 = vpop.f32.mrf.mxu1 }
 0x122   : > { %v4558_v51 = vadd.f32 %v4557_v50, %v4469_v49  ;;  %v4382_v52 = vadd.f32 %v4381_v1, %v4293_v48  ;;  %v9510_v50 = vld [vmem:[%s11918_s1 + $0x140] sm:$0xff] }
 0x123   : > { %v4648_v53 = vpop.f32.mrf.mxu0  ;;  %v9534_v1 = vld [vmem:[%s11918_s1 + $0x200] sm:$0xff]  ;;  %4718 = vmatpush.bf16.msra.mxu1 %v9510_v50  ;;  %v9421_v50 = vld [vmem:[%s9872_s7 + $0xafc] sm:$0xf] }
 0x124   : > { %v10308_v57 = vadd.f32 %v4646_v46, %v4558_v51  ;;  %v9395_v51 = vld [vmem:[%s9872_s7 + $0xa2c] sm:$0xf]  ;;  %4985 = vmatpush.bf16.msra.mxu0 %v9534_v1  ;;  %v8080_v1 = vld [vmem:[%s9872_s7 + $0xb5c] sm:$0xf0] }
 0x127   : > { %v4470_v16 = vpop.f32.mrf.mxu2 }
 0x128   : > { %v4471_v17 = vadd.f32 %v4470_v16, %v4382_v52  ;;  %v4559_v19 = vpop.f32.mrf.mxu3  ;;  %v7972_v52 = vld [vmem:[%s9872_s7 + $0xa8c] sm:$0xf0] }
 0x129   : > { %v4384_v21 = vpop.f32.mrf.mxu1  ;;  %v7975_v16 = vor.u32 %v9395_v51, %v7972_v52  ;;  %v8086_v51 = vld [vmem:[%s9872_s7 + $0xb00] sm:$0xf]  ;;  %v9434_v52 = vld [vmem:[%s9872_s7 + $0xb60] sm:$0xf0] }
 0x12a   : > { %v4560_v24 = vadd.f32 %v4559_v19, %v4471_v17  ;;  %v4385_v25 = vadd.f32 %v4384_v21, %v10087_v34  ;;  %v7979_v17 = vor.u32 %v9408_v58, %v7978_v54 }
 0x12b   : > { %v4651_v26 = vpop.f32.mrf.mxu0 }
 0x12c   : > { %4423 = vmatmul.bf16.gmra.mxu1 %v7875_v20  ;;  %4512 = vmatmul.bf16.gmra.mxu2 %v7879_v15  ;;  %v10317_v29 = vadd.f32 %v4648_v53, %v4560_v24  ;;  %v7983_v20 = vor.u32 %v9396_v59, %v7980_v62 }
 0x12d   : > { %4601 = vmatmul.bf16.gmra.mxu3 %v7883_v8 }
 0x12e   : > { %4690 = vmatmul.bf16.gmra.mxu0 %v7887_v22 }
 0x12f   : > { %v4473_v37 = vpop.f32.mrf.mxu2 }
 0x130   : > { %v4474_v34 = vadd.f32 %v4473_v37, %v4385_v25  ;;  %v4562_v42 = vpop.f32.mrf.mxu3 }
 0x131   : > { %v4386_v46 = vpop.f32.mrf.mxu1 }
 0x132   : > { %v4563_v6 = vadd.f32 %v4562_v42, %v4474_v34  ;;  %v4387_v48 = vadd.f32 %v4386_v46, %v10107_v44  ;;  %v7986_v44 = vld [vmem:[%s9872_s7 + $0xa38] sm:$0xf]  ;;  %v9420_v42 = vld [vmem:[%s9872_s7 + $0xaf4] sm:$0xf] }
 0x133   : > { %v4653_v49 = vpop.f32.mrf.mxu0  ;;  %v7987_v15 = vor.u32 %v9409_v40, %v7986_v44  ;;  %v8072_v46 = vld [vmem:[%s9872_s7 + $0xb54] sm:$0xf0] }
 0x134   : > { %v10334_v53 = vadd.f32 %v4651_v26, %v4563_v6  ;;  %v8075_v62 = vor.u32 %v9420_v42, %v8072_v46  ;;  %v8178_v42 = vld [vmem:[%s9872_s7 + $0xbc0] sm:$0xf]  ;;  %v9458_v46 = vld [vmem:[%s9872_s7 + $0xc20] sm:$0xf0] }
 0x137   : > { %v4475_v9 = vpop.f32.mrf.mxu2 }
 0x138   : > { %v4476_v11 = vadd.f32 %v4475_v9, %v4387_v48  ;;  %v4564_v45 = vpop.f32.mrf.mxu3  ;;  %v8078_v48 = vld [vmem:[%s9872_s7 + $0xaf8] sm:$0xf]  ;;  %v8083_v9 = vor.u32 %v9421_v50, %v8080_v1  ;;  %v9459_v50 = vld [vmem:[%s9872_s7 + $0xc28] sm:$0xf0] }
 0x139   : > { %v4389_v19 = vpop.f32.mrf.mxu1 }
 0x13a   : > { %v4565_v21 = vadd.f32 %v4564_v45, %v4476_v11  ;;  %v4390_v8 = vadd.f32 %v4389_v19, %v10129_v0  ;;  %v8087_v11 = vor.u32 %v9434_v52, %v8086_v51  ;;  %v9557_v19 = vld [vmem:[%s11918_s1 + $0x2b8] sm:$0xff] }
 0x13b   : > { %v4656_v22 = vpop.f32.mrf.mxu0  ;;  %5156 = vmatpush.bf16.msrb.mxu2 %v9557_v19 }
 0x13c   : > { %4428 = vmatmul.bf16.gmra.mxu1 %v7975_v16  ;;  %4517 = vmatmul.bf16.gmra.mxu2 %v7979_v17  ;;  %v10343_v24 = vadd.f32 %v4653_v49, %v4565_v21  ;;  %v9433_v49 = vld [vmem:[%s9872_s7 + $0xb58] sm:$0xf0] }
 0x13d   : > { %4606 = vmatmul.bf16.gmra.mxu3 %v7983_v20  ;;  %v8079_v44 = vor.u32 %v9433_v49, %v8078_v48  ;;  %v9565_v20 = vld [vmem:[%s11918_s1 + $0x2f8] sm:$0xff]  ;;  %v9446_v48 = vld [vmem:[%s9872_s7 + $0xbc4] sm:$0xf]  ;;  %v8180_v49 = vld [vmem:[%s9872_s7 + $0xc24] sm:$0xf0] }
 0x13e   : > { %4695 = vmatmul.bf16.gmra.mxu0 %v7987_v15  ;;  %5245 = vmatpush.bf16.msrb.mxu3 %v9565_v20 }
 0x13f   : > { %v4478_v25 = vpop.f32.mrf.mxu2 }
 0x140   : > { %v4479_v26 = vadd.f32 %v4478_v25, %v4390_v8  ;;  %v4567_v30 = vpop.f32.mrf.mxu3 }
 0x141   : > { %v4391_v33 = vpop.f32.mrf.mxu1 }
 0x142   : > { %v4568_v37 = vadd.f32 %v4567_v30, %v4479_v26  ;;  %v4392_v0 = vadd.f32 %v4391_v33, %v10140_v7  ;;  %v9549_v30 = vld [vmem:[%s11918_s1 + $0x278] sm:$0xff] }
 0x143   : > { %v4658_v34 = vpop.f32.mrf.mxu0  ;;  %v9573_v33 = vld [vmem:[%s11918_s1 + $0x338] sm:$0xff]  ;;  %5067 = vmatpush.bf16.msrb.mxu1 %v9549_v30 }
 0x144   : > { %v10348_v6 = vadd.f32 %v4656_v22, %v4568_v37  ;;  %v9445_v37 = vld [vmem:[%s9872_s7 + $0xbbc] sm:$0xf]  ;;  %5334 = vmatpush.bf16.msrb.mxu0 %v9573_v33  ;;  %v6696_v33 = vld [vmem:[%s9872_s7 + $0x7c] sm:$0xf0] }
 0x145   : > { %v9073_v30 = vld [vmem:[%s9872_s7 + $0x1c] sm:$0xf] }
 0x147   : > { %v4480_v54 = vpop.f32.mrf.mxu2 }
 0x148   : > { %v4481_v58 = vadd.f32 %v4480_v54, %v4392_v0  ;;  %v4569_v59 = vpop.f32.mrf.mxu3  ;;  %v8172_v0 = vld [vmem:[%s9872_s7 + $0xc1c] sm:$0xf0] }
 0x149   : > { %v4394_v40 = vpop.f32.mrf.mxu1  ;;  %v8175_v54 = vor.u32 %v9445_v37, %v8172_v0  ;;  %v6702_v37 = vld [vmem:[%s9872_s7 + $0x20] sm:$0xf]  ;;  %v9086_v0 = vld [vmem:[%s9872_s7 + $0x80] sm:$0xf0] }
 0x14a   : > { %v4570_v7 = vadd.f32 %v4569_v59, %v4481_v58  ;;  %v4395_v45 = vadd.f32 %v4394_v40, %v10159_v27  ;;  %v8179_v58 = vor.u32 %v9458_v46, %v8178_v42 }
 0x14b   : > { %v4661_v16 = vpop.f32.mrf.mxu0 }
 0x14c   : > { %4433 = vmatmul.bf16.gmra.mxu1 %v8075_v62  ;;  %4522 = vmatmul.bf16.gmra.mxu2 %v8079_v44  ;;  %v10357_v17 = vadd.f32 %v4658_v34, %v4570_v7  ;;  %v8183_v62 = vor.u32 %v9446_v48, %v8180_v49 }
 0x14d   : > { %4611 = vmatmul.bf16.gmra.mxu3 %v8083_v9 }
 0x14e   : > { %4700 = vmatmul.bf16.gmra.mxu0 %v8087_v11 }
 0x14f   : > { %v4483_v15 = vpop.f32.mrf.mxu2 }
 0x150   : > { %v4484_v27 = vadd.f32 %v4483_v15, %v4395_v45  ;;  %v4572_v21 = vpop.f32.mrf.mxu3 }
 0x151   : > { %v4396_v8 = vpop.f32.mrf.mxu1 }
 0x152   : > { %v4573_v22 = vadd.f32 %v4572_v21, %v4484_v27  ;;  %v4397_v25 = vadd.f32 %v4396_v8, %v10176_v38  ;;  %v8186_v38 = vld [vmem:[%s9872_s7 + $0xbc8] sm:$0xf]  ;;  %v9072_v21 = vld [vmem:[%s9872_s7 + $0x14] sm:$0xf]  ;;  %v6688_v8 = vld [vmem:[%s9872_s7 + $0x74] sm:$0xf0] }
 0x153   : > { %v4663_v26 = vpop.f32.mrf.mxu0  ;;  %v8187_v44 = vor.u32 %v9459_v50, %v8186_v38  ;;  %v6691_v49 = vor.u32 %v9072_v21, %v6688_v8  ;;  %v6794_v21 = vld [vmem:[%s9872_s7 + $0xe0] sm:$0xf]  ;;  %v9110_v8 = vld [vmem:[%s9872_s7 + $0x140] sm:$0xf0] }
 0x154   : > { %v10374_v34 = vadd.f32 %v4661_v16, %v4573_v22 }
 0x157   : > { %v4485_v1 = vpop.f32.mrf.mxu2 }
 0x158   : > { %v4486_v51 = vadd.f32 %v4485_v1, %v4397_v25  ;;  %v4574_v52 = vpop.f32.mrf.mxu3  ;;  %v6694_v25 = vld [vmem:[%s9872_s7 + $0x18] sm:$0xf]  ;;  %v6699_v1 = vor.u32 %v9073_v30, %v6696_v33  ;;  %v9111_v30 = vld [vmem:[%s9872_s7 + $0x148] sm:$0xf0] }
 0x159   : > { %v4399_v59 = vpop.f32.mrf.mxu1 }
 0x15a   : > { %v4575_v40 = vadd.f32 %v4574_v52, %v4486_v51  ;;  %v4400_v9 = vadd.f32 %v4399_v59, %v10201_v4  ;;  %v6703_v51 = vor.u32 %v9086_v0, %v6702_v37  ;;  %v9556_v59 = vld [vmem:[%s11918_s1 + $0x2b0] sm:$0xff] }
 0x15b   : > { %v4666_v11 = vpop.f32.mrf.mxu0  ;;  %5157 = vmatpush.bf16.msrb.mxu2 %v9556_v59 }
 0x15c   : > { %4438 = vmatmul.bf16.gmra.mxu1 %v8175_v54  ;;  %4527 = vmatmul.bf16.gmra.mxu2 %v8179_v58  ;;  %v10383_v7 = vadd.f32 %v4663_v26, %v4575_v40  ;;  %v9085_v26 = vld [vmem:[%s9872_s7 + $0x78] sm:$0xf0] }
 0x15d   : > { %4616 = vmatmul.bf16.gmra.mxu3 %v8183_v62  ;;  %v6695_v38 = vor.u32 %v9085_v26, %v6694_v25  ;;  %v9564_v62 = vld [vmem:[%s11918_s1 + $0x2f0] sm:$0xff]  ;;  %v9098_v25 = vld [vmem:[%s9872_s7 + $0xe4] sm:$0xf]  ;;  %v6796_v26 = vld [vmem:[%s9872_s7 + $0x144] sm:$0xf0] }
 0x15e   : > { %4705 = vmatmul.bf16.gmra.mxu0 %v8187_v44  ;;  %5246 = vmatpush.bf16.msrb.mxu3 %v9564_v62 }
 0x15f   : > { %v4488_v45 = vpop.f32.mrf.mxu2 }
 0x160   : > { %v4489_v16 = vadd.f32 %v4488_v45, %v4400_v9  ;;  %v4577_v19 = vpop.f32.mrf.mxu3 }
 0x161   : > { %v4401_v20 = vpop.f32.mrf.mxu1 }
 0x162   : > { %v4578_v15 = vadd.f32 %v4577_v19, %v4489_v16  ;;  %v4402_v4 = vadd.f32 %v4401_v20, %v10212_v14  ;;  %v9548_v19 = vld [vmem:[%s11918_s1 + $0x270] sm:$0xff] }
 0x163   : > { %v4668_v27 = vpop.f32.mrf.mxu0  ;;  %v9572_v20 = vld [vmem:[%s11918_s1 + $0x330] sm:$0xff]  ;;  %5068 = vmatpush.bf16.msrb.mxu1 %v9548_v19  ;;  %v9123_v19 = vld [vmem:[%s9872_s7 + $0x1ac] sm:$0xf] }
 0x164   : > { %v10388_v22 = vadd.f32 %v4666_v11, %v4578_v15  ;;  %v9097_v15 = vld [vmem:[%s9872_s7 + $0xdc] sm:$0xf]  ;;  %5335 = vmatpush.bf16.msrb.mxu0 %v9572_v20  ;;  %v6896_v20 = vld [vmem:[%s9872_s7 + $0x20c] sm:$0xf0] }
 0x167   : > { %v4490_v42 = vpop.f32.mrf.mxu2 }
 0x168   : > { %v4491_v46 = vadd.f32 %v4490_v42, %v4402_v4  ;;  %v4579_v48 = vpop.f32.mrf.mxu3  ;;  %v6788_v4 = vld [vmem:[%s9872_s7 + $0x13c] sm:$0xf0] }
 0x169   : > { %v4404_v50 = vpop.f32.mrf.mxu1  ;;  %v6791_v42 = vor.u32 %v9097_v15, %v6788_v4  ;;  %v6902_v15 = vld [vmem:[%s9872_s7 + $0x1b0] sm:$0xf]  ;;  %v9136_v4 = vld [vmem:[%s9872_s7 + $0x210] sm:$0xf0] }
 0x16a   : > { %v4580_v14 = vadd.f32 %v4579_v48, %v4491_v46  ;;  %v4405_v52 = vadd.f32 %v4404_v50, %v10098_v39  ;;  %v6795_v46 = vor.u32 %v9110_v8, %v6794_v21 }
 0x16b   : > { %v4671_v54 = vpop.f32.mrf.mxu0 }
 0x16c   : > { %4719 = vmatmul.bf16.vlgmr.msra.gmra.mxu1 %v6691_v49  ;;  %4808 = vmatmul.bf16.vlgmr.msra.gmra.mxu2 %v6695_v38  ;;  %v10397_v58 = vadd.f32 %v4668_v27, %v4580_v14  ;;  %v6799_v49 = vor.u32 %v9098_v25, %v6796_v26 }
 0x16d   : > { %4897 = vmatmul.bf16.vlgmr.msra.gmra.mxu3 %v6699_v1 }
 0x16e   : > { %4986 = vmatmul.bf16.vlgmr.msra.gmra.mxu0 %v6703_v51 }
 0x16f   : > { %v4493_v44 = vpop.f32.mrf.mxu2 }
 0x170   : > { %v4494_v39 = vadd.f32 %v4493_v44, %v4405_v52  ;;  %v4582_v40 = vpop.f32.mrf.mxu3 }
 0x171   : > { %v4406_v9 = vpop.f32.mrf.mxu1 }
 0x172   : > { %v4583_v11 = vadd.f32 %v4582_v40, %v4494_v39  ;;  %v4407_v45 = vadd.f32 %v4406_v9, %v10123_v56  ;;  %v6802_v56 = vld [vmem:[%s9872_s7 + $0xe8] sm:$0xf]  ;;  %v9122_v40 = vld [vmem:[%s9872_s7 + $0x1a4] sm:$0xf] }
 0x173   : > { %v4673_v16 = vpop.f32.mrf.mxu0  ;;  %v6803_v38 = vor.u32 %v9111_v30, %v6802_v56  ;;  %v6888_v9 = vld [vmem:[%s9872_s7 + $0x204] sm:$0xf0] }
 0x174   : > { %v10414_v27 = vadd.f32 %v4671_v54, %v4583_v11  ;;  %v6891_v26 = vor.u32 %v9122_v40, %v6888_v9  ;;  %v6994_v40 = vld [vmem:[%s9872_s7 + $0x270] sm:$0xf]  ;;  %v9160_v9 = vld [vmem:[%s9872_s7 + $0x2d0] sm:$0xf0] }
 0x177   : > { %v4495_v33 = vpop.f32.mrf.mxu2 }
 0x178   : > { %v4496_v37 = vadd.f32 %v4495_v33, %v4407_v45  ;;  %v4584_v0 = vpop.f32.mrf.mxu3  ;;  %v6894_v45 = vld [vmem:[%s9872_s7 + $0x1a8] sm:$0xf]  ;;  %v6899_v33 = vor.u32 %v9123_v19, %v6896_v20  ;;  %v9161_v19 = vld [vmem:[%s9872_s7 + $0x2d8] sm:$0xf0] }
 0x179   : > { %v4409_v48 = vpop.f32.mrf.mxu1 }
 0x17a   : > { %v4585_v50 = vadd.f32 %v4584_v0, %v4496_v37  ;;  %v4410_v1 = vadd.f32 %v4409_v48, %v10134_v3  ;;  %v6903_v37 = vor.u32 %v9136_v4, %v6902_v15  ;;  %v9555_v48 = vld [vmem:[%s11918_s1 + $0x2a8] sm:$0xff] }
 0x17b   : > { %v4676_v51 = vpop.f32.mrf.mxu0  ;;  %5158 = vmatpush.bf16.msrb.mxu2 %v9555_v48 }
 0x17c   : > { %4724 = vmatmul.bf16.gmra.mxu1 %v6791_v42  ;;  %4813 = vmatmul.bf16.gmra.mxu2 %v6795_v46  ;;  %v10423_v14 = vadd.f32 %v4673_v16, %v4585_v50  ;;  %v9135_v16 = vld [vmem:[%s9872_s7 + $0x208] sm:$0xf0] }
 0x17d   : > { %4902 = vmatmul.bf16.gmra.mxu3 %v6799_v49  ;;  %v6895_v56 = vor.u32 %v9135_v16, %v6894_v45  ;;  %v9563_v49 = vld [vmem:[%s11918_s1 + $0x2e8] sm:$0xff]  ;;  %v9148_v45 = vld [vmem:[%s9872_s7 + $0x274] sm:$0xf]  ;;  %v6996_v16 = vld [vmem:[%s9872_s7 + $0x2d4] sm:$0xf0] }
 0x17e   : > { %4991 = vmatmul.bf16.gmra.mxu0 %v6803_v38  ;;  %5247 = vmatpush.bf16.msrb.mxu3 %v9563_v49 }
 0x17f   : > { %v4498_v52 = vpop.f32.mrf.mxu2 }
 0x180   : > { %v4499_v54 = vadd.f32 %v4498_v52, %v4410_v1  ;;  %v4587_v59 = vpop.f32.mrf.mxu3 }
 0x181   : > { %v4411_v62 = vpop.f32.mrf.mxu1 }
 0x182   : > { %v4588_v44 = vadd.f32 %v4587_v59, %v4499_v54  ;;  %v4412_v3 = vadd.f32 %v4411_v62, %v10153_v18  ;;  %v9547_v59 = vld [vmem:[%s11918_s1 + $0x268] sm:$0xff] }
 0x183   : > { %v4678_v39 = vpop.f32.mrf.mxu0  ;;  %v9571_v62 = vld [vmem:[%s11918_s1 + $0x328] sm:$0xff]  ;;  %5069 = vmatpush.bf16.msrb.mxu1 %v9547_v59  ;;  %v9173_v59 = vld [vmem:[%s9872_s7 + $0x33c] sm:$0xf] }
 0x184   : > { %v10428_v11 = vadd.f32 %v4676_v51, %v4588_v44  ;;  %v9147_v44 = vld [vmem:[%s9872_s7 + $0x26c] sm:$0xf]  ;;  %5336 = vmatpush.bf16.msrb.mxu0 %v9571_v62  ;;  %v7096_v62 = vld [vmem:[%s9872_s7 + $0x39c] sm:$0xf0] }
 0x187   : > { %v4500_v21 = vpop.f32.mrf.mxu2 }
 0x188   : > { %v4501_v8 = vadd.f32 %v4500_v21, %v4412_v3  ;;  %v4589_v25 = vpop.f32.mrf.mxu3  ;;  %v6988_v3 = vld [vmem:[%s9872_s7 + $0x2cc] sm:$0xf0] }
 0x189   : > { %v4414_v30 = vpop.f32.mrf.mxu1  ;;  %v6991_v21 = vor.u32 %v9147_v44, %v6988_v3  ;;  %v7102_v44 = vld [vmem:[%s9872_s7 + $0x340] sm:$0xf]  ;;  %v9186_v3 = vld [vmem:[%s9872_s7 + $0x3a0] sm:$0xf0] }
 0x18a   : > { %v4590_v18 = vadd.f32 %v4589_v25, %v4501_v8  ;;  %v4415_v0 = vadd.f32 %v4414_v30, %v10170_v32  ;;  %v6995_v8 = vor.u32 %v9160_v9, %v6994_v40 }
 0x18b   : > { %v4681_v42 = vpop.f32.mrf.mxu0 }
 0x18c   : > { %4729 = vmatmul.bf16.gmra.mxu1 %v6891_v26  ;;  %4818 = vmatmul.bf16.gmra.mxu2 %v6895_v56  ;;  %v10437_v46 = vadd.f32 %v4678_v39, %v4590_v18  ;;  %v6999_v26 = vor.u32 %v9148_v45, %v6996_v16 }
 0x18d   : > { %4907 = vmatmul.bf16.gmra.mxu3 %v6899_v33 }
 0x18e   : > { %4996 = vmatmul.bf16.gmra.mxu0 %v6903_v37 }
 0x18f   : > { %v4503_v38 = vpop.f32.mrf.mxu2 }
 0x190   : > { %v4504_v32 = vadd.f32 %v4503_v38, %v4415_v0  ;;  %v4592_v50 = vpop.f32.mrf.mxu3 }
 0x191   : > { %v4416_v1 = vpop.f32.mrf.mxu1 }
 0x192   : > { %v4593_v51 = vadd.f32 %v4592_v50, %v4504_v32  ;;  %v4417_v52 = vadd.f32 %v4416_v1, %v10195_v55  ;;  %v7002_v55 = vld [vmem:[%s9872_s7 + $0x278] sm:$0xf]  ;;  %v9172_v50 = vld [vmem:[%s9872_s7 + $0x334] sm:$0xf] }
 0x193   : > { %v4683_v54 = vpop.f32.mrf.mxu0  ;;  %v7003_v56 = vor.u32 %v9161_v19, %v7002_v55  ;;  %v7088_v1 = vld [vmem:[%s9872_s7 + $0x394] sm:$0xf0] }
 0x194   : > { %v10454_v39 = vadd.f32 %v4681_v42, %v4593_v51  ;;  %v7091_v16 = vor.u32 %v9172_v50, %v7088_v1  ;;  %v7194_v50 = vld [vmem:[%s9872_s7 + $0x400] sm:$0xf]  ;;  %v9210_v1 = vld [vmem:[%s9872_s7 + $0x460] sm:$0xf0] }
 0x197   : > { %v4505_v20 = vpop.f32.mrf.mxu2 }
 0x198   : > { %v4506_v15 = vadd.f32 %v4505_v20, %v4417_v52  ;;  %v4594_v4 = vpop.f32.mrf.mxu3  ;;  %v7094_v52 = vld [vmem:[%s9872_s7 + $0x338] sm:$0xf]  ;;  %v7099_v20 = vor.u32 %v9173_v59, %v7096_v62  ;;  %v9211_v59 = vld [vmem:[%s9872_s7 + $0x468] sm:$0xf0] }
 0x199   : > { %v4419_v25 = vpop.f32.mrf.mxu1 }
 0x19a   : > { %v4595_v30 = vadd.f32 %v4594_v4, %v4506_v15  ;;  %v4420_v33 = vadd.f32 %v4419_v25, %v10206_v10  ;;  %v7103_v15 = vor.u32 %v9186_v3, %v7102_v44  ;;  %v9554_v25 = vld [vmem:[%s11918_s1 + $0x2a0] sm:$0xff] }
 0x19b   : > { %v4686_v37 = vpop.f32.mrf.mxu0  ;;  %5159 = vmatpush.bf16.msrb.mxu2 %v9554_v25 }
 0x19c   : > { %4734 = vmatmul.bf16.gmra.mxu1 %v6991_v21  ;;  %4823 = vmatmul.bf16.gmra.mxu2 %v6995_v8  ;;  %v10463_v18 = vadd.f32 %v4683_v54, %v4595_v30  ;;  %v9185_v54 = vld [vmem:[%s9872_s7 + $0x398] sm:$0xf0] }
 0x19d   : > { %4912 = vmatmul.bf16.gmra.mxu3 %v6999_v26  ;;  %v7095_v55 = vor.u32 %v9185_v54, %v7094_v52  ;;  %v9562_v26 = vld [vmem:[%s11918_s1 + $0x2e0] sm:$0xff]  ;;  %v7196_v54 = vld [vmem:[%s9872_s7 + $0x464] sm:$0xf0] }
 0x19e   : > { %5001 = vmatmul.bf16.gmra.mxu0 %v7003_v56  ;;  %5248 = vmatpush.bf16.msrb.mxu3 %v9562_v26  ;;  %v9198_v52 = vld [vmem:[%s9872_s7 + $0x404] sm:$0xf] }
 0x19f   : > { %v4508_v0 = vpop.f32.mrf.mxu2 }
 0x1a0   : > { %v4509_v42 = vadd.f32 %v4508_v0, %v4420_v33  ;;  %v4597_v48 = vpop.f32.mrf.mxu3 }
 0x1a1   : > { %v4421_v49 = vpop.f32.mrf.mxu1 }
 0x1a2   : > { %v4598_v38 = vadd.f32 %v4597_v48, %v4509_v42  ;;  %v4422_v10 = vadd.f32 %v4421_v49, %v10227_v31  ;;  %v9546_v48 = vld [vmem:[%s11918_s1 + $0x260] sm:$0xff] }
 0x1a3   : > { %v4688_v32 = vpop.f32.mrf.mxu0  ;;  %v9570_v49 = vld [vmem:[%s11918_s1 + $0x320] sm:$0xff]  ;;  %5070 = vmatpush.bf16.msrb.mxu1 %v9546_v48  ;;  %v9223_v48 = vld [vmem:[%s9872_s7 + $0x4cc] sm:$0xf] }
 0x1a4   : > { %v10468_v51 = vadd.f32 %v4686_v37, %v4598_v38  ;;  %v9197_v38 = vld [vmem:[%s9872_s7 + $0x3fc] sm:$0xf]  ;;  %5337 = vmatpush.bf16.msrb.mxu0 %v9570_v49  ;;  %v7296_v49 = vld [vmem:[%s9872_s7 + $0x52c] sm:$0xf0] }
 0x1a7   : > { %v4510_v40 = vpop.f32.mrf.mxu2 }
 0x1a8   : > { %v4511_v9 = vadd.f32 %v4510_v40, %v4422_v10  ;;  %v4599_v45 = vpop.f32.mrf.mxu3  ;;  %v7188_v10 = vld [vmem:[%s9872_s7 + $0x45c] sm:$0xf0] }
 0x1a9   : > { %v4424_v19 = vpop.f32.mrf.mxu1  ;;  %v7191_v40 = vor.u32 %v9197_v38, %v7188_v10  ;;  %v7302_v38 = vld [vmem:[%s9872_s7 + $0x4d0] sm:$0xf]  ;;  %v9236_v10 = vld [vmem:[%s9872_s7 + $0x530] sm:$0xf0] }
 0x1aa   : > { %v4600_v31 = vadd.f32 %v4599_v45, %v4511_v9  ;;  %v4425_v4 = vadd.f32 %v4424_v19, %v10101_v41  ;;  %v7195_v9 = vor.u32 %v9210_v1, %v7194_v50 }
 0x1ab   : > { %v4691_v21 = vpop.f32.mrf.mxu0 }
 0x1ac   : > { %4739 = vmatmul.bf16.gmra.mxu1 %v7091_v16  ;;  %4828 = vmatmul.bf16.gmra.mxu2 %v7095_v55  ;;  %v10477_v8 = vadd.f32 %v4688_v32, %v4600_v31  ;;  %v7199_v16 = vor.u32 %v9198_v52, %v7196_v54 }
 0x1ad   : > { %4917 = vmatmul.bf16.gmra.mxu3 %v7099_v20 }
 0x1ae   : > { %5006 = vmatmul.bf16.gmra.mxu0 %v7103_v15 }
 0x1af   : > { %v4513_v56 = vpop.f32.mrf.mxu2 }
 0x1b0   : > { %v4514_v41 = vadd.f32 %v4513_v56, %v4425_v4  ;;  %v4602_v30 = vpop.f32.mrf.mxu3 }
 0x1b1   : > { %v4426_v33 = vpop.f32.mrf.mxu1 }
 0x1b2   : > { %v4603_v37 = vadd.f32 %v4602_v30, %v4514_v41  ;;  %v4427_v0 = vadd.f32 %v4426_v33, %v10126_v60  ;;  %v7202_v60 = vld [vmem:[%s9872_s7 + $0x408] sm:$0xf]  ;;  %v9222_v30 = vld [vmem:[%s9872_s7 + $0x4c4] sm:$0xf] }
 0x1b3   : > { %v4693_v42 = vpop.f32.mrf.mxu0  ;;  %v7203_v55 = vor.u32 %v9211_v59, %v7202_v60  ;;  %v7288_v33 = vld [vmem:[%s9872_s7 + $0x524] sm:$0xf0] }
 0x1b4   : > { %v10494_v32 = vadd.f32 %v4691_v21, %v4603_v37  ;;  %v7291_v54 = vor.u32 %v9222_v30, %v7288_v33  ;;  %v7394_v30 = vld [vmem:[%s9872_s7 + $0x590] sm:$0xf]  ;;  %v9260_v33 = vld [vmem:[%s9872_s7 + $0x5f0] sm:$0xf0] }
 0x1b7   : > { %v4515_v62 = vpop.f32.mrf.mxu2 }
 0x1b8   : > { %v4516_v44 = vadd.f32 %v4515_v62, %v4427_v0  ;;  %v4604_v3 = vpop.f32.mrf.mxu3  ;;  %v7294_v0 = vld [vmem:[%s9872_s7 + $0x4c8] sm:$0xf]  ;;  %v7299_v62 = vor.u32 %v9223_v48, %v7296_v49  ;;  %v9261_v48 = vld [vmem:[%s9872_s7 + $0x5f8] sm:$0xf0] }
 0x1b9   : > { %v4429_v45 = vpop.f32.mrf.mxu1 }
 0x1ba   : > { %v4605_v19 = vadd.f32 %v4604_v3, %v4516_v44  ;;  %v4430_v20 = vadd.f32 %v4429_v45, %v10137_v5  ;;  %v7303_v44 = vor.u32 %v9236_v10, %v7302_v38  ;;  %v9553_v45 = vld [vmem:[%s11918_s1 + $0x298] sm:$0xff] }
 0x1bb   : > { %v4696_v15 = vpop.f32.mrf.mxu0  ;;  %5160 = vmatpush.bf16.msrb.mxu2 %v9553_v45 }
 0x1bc   : > { %4744 = vmatmul.bf16.gmra.mxu1 %v7191_v40  ;;  %4833 = vmatmul.bf16.gmra.mxu2 %v7195_v9  ;;  %v10503_v31 = vadd.f32 %v4693_v42, %v4605_v19  ;;  %v9235_v42 = vld [vmem:[%s9872_s7 + $0x528] sm:$0xf0] }
 0x1bd   : > { %4922 = vmatmul.bf16.gmra.mxu3 %v7199_v16  ;;  %v7295_v60 = vor.u32 %v9235_v42, %v7294_v0  ;;  %v9561_v16 = vld [vmem:[%s11918_s1 + $0x2d8] sm:$0xff]  ;;  %v9248_v0 = vld [vmem:[%s9872_s7 + $0x594] sm:$0xf] }
 0x1be   : > { %5011 = vmatmul.bf16.gmra.mxu0 %v7203_v55  ;;  %5249 = vmatpush.bf16.msrb.mxu3 %v9561_v16  ;;  %v7396_v42 = vld [vmem:[%s9872_s7 + $0x5f4] sm:$0xf0] }
 0x1bf   : > { %v4518_v4 = vpop.f32.mrf.mxu2 }
 0x1c0   : > { %v4519_v21 = vadd.f32 %v4518_v4, %v4430_v20  ;;  %v4607_v25 = vpop.f32.mrf.mxu3 }
 0x1c1   : > { %v4431_v26 = vpop.f32.mrf.mxu1 }
 0x1c2   : > { %v4608_v56 = vadd.f32 %v4607_v25, %v4519_v21  ;;  %v4432_v5 = vadd.f32 %v4431_v26, %v10156_v23  ;;  %v9545_v25 = vld [vmem:[%s11918_s1 + $0x258] sm:$0xff] }
 0x1c3   : > { %v4698_v41 = vpop.f32.mrf.mxu0  ;;  %v9569_v26 = vld [vmem:[%s11918_s1 + $0x318] sm:$0xff]  ;;  %5071 = vmatpush.bf16.msrb.mxu1 %v9545_v25 }
 0x1c4   : > { %v10508_v37 = vadd.f32 %v4696_v15, %v4608_v56  ;;  %v9247_v56 = vld [vmem:[%s9872_s7 + $0x58c] sm:$0xf]  ;;  %5338 = vmatpush.bf16.msrb.mxu0 %v9569_v26  ;;  %v9273_v25 = vld [vmem:[%s9872_s7 + $0x65c] sm:$0xf]  ;;  %v7496_v26 = vld [vmem:[%s9872_s7 + $0x6bc] sm:$0xf0] }
 0x1c7   : > { %v4520_v50 = vpop.f32.mrf.mxu2 }
 0x1c8   : > { %v4521_v1 = vadd.f32 %v4520_v50, %v4432_v5  ;;  %v4609_v52 = vpop.f32.mrf.mxu3  ;;  %v7388_v5 = vld [vmem:[%s9872_s7 + $0x5ec] sm:$0xf0] }
 0x1c9   : > { %v4434_v59 = vpop.f32.mrf.mxu1  ;;  %v7391_v50 = vor.u32 %v9247_v56, %v7388_v5  ;;  %v7502_v56 = vld [vmem:[%s9872_s7 + $0x660] sm:$0xf]  ;;  %v9286_v5 = vld [vmem:[%s9872_s7 + $0x6c0] sm:$0xf0] }
 0x1ca   : > { %v4610_v23 = vadd.f32 %v4609_v52, %v4521_v1  ;;  %v4435_v3 = vadd.f32 %v4434_v59, %v10173_v36  ;;  %v7395_v1 = vor.u32 %v9260_v33, %v7394_v30 }
 0x1cb   : > { %v4701_v40 = vpop.f32.mrf.mxu0 }
 0x1cc   : > { %4749 = vmatmul.bf16.gmra.mxu1 %v7291_v54  ;;  %4838 = vmatmul.bf16.gmra.mxu2 %v7295_v60  ;;  %v10517_v9 = vadd.f32 %v4698_v41, %v4610_v23  ;;  %v7399_v54 = vor.u32 %v9248_v0, %v7396_v42 }
 0x1cd   : > { %4927 = vmatmul.bf16.gmra.mxu3 %v7299_v62 }
 0x1ce   : > { %5016 = vmatmul.bf16.gmra.mxu0 %v7303_v44 }
 0x1cf   : > { %v4523_v55 = vpop.f32.mrf.mxu2 }
 0x1d0   : > { %v4524_v36 = vadd.f32 %v4523_v55, %v4435_v3  ;;  %v4612_v19 = vpop.f32.mrf.mxu3 }
 0x1d1   : > { %v4436_v20 = vpop.f32.mrf.mxu1 }
 0x1d2   : > { %v4613_v15 = vadd.f32 %v4612_v19, %v4524_v36  ;;  %v4437_v4 = vadd.f32 %v4436_v20, %v10198_v61  ;;  %v7402_v61 = vld [vmem:[%s9872_s7 + $0x598] sm:$0xf]  ;;  %v9272_v19 = vld [vmem:[%s9872_s7 + $0x654] sm:$0xf] }
 0x1d3   : > { %v4703_v21 = vpop.f32.mrf.mxu0  ;;  %v7403_v60 = vor.u32 %v9261_v48, %v7402_v61  ;;  %v7488_v20 = vld [vmem:[%s9872_s7 + $0x6b4] sm:$0xf0] }
 0x1d4   : > { %v10534_v41 = vadd.f32 %v4701_v40, %v4613_v15  ;;  %v7491_v42 = vor.u32 %v9272_v19, %v7488_v20  ;;  %v7594_v19 = vld [vmem:[%s9872_s7 + $0x720] sm:$0xf]  ;;  %v9310_v20 = vld [vmem:[%s9872_s7 + $0x780] sm:$0xf0] }
 0x1d7   : > { %v4525_v49 = vpop.f32.mrf.mxu2 }
 0x1d8   : > { %v4526_v38 = vadd.f32 %v4525_v49, %v4437_v4  ;;  %v4614_v10 = vpop.f32.mrf.mxu3  ;;  %v7494_v4 = vld [vmem:[%s9872_s7 + $0x658] sm:$0xf]  ;;  %v7499_v49 = vor.u32 %v9273_v25, %v7496_v26  ;;  %v9311_v25 = vld [vmem:[%s9872_s7 + $0x788] sm:$0xf0] }
 0x1d9   : > { %v4439_v52 = vpop.f32.mrf.mxu1 }
 0x1da   : > { %v4615_v59 = vadd.f32 %v4614_v10, %v4526_v38  ;;  %v4440_v62 = vadd.f32 %v4439_v52, %v10209_v12  ;;  %v7503_v38 = vor.u32 %v9286_v5, %v7502_v56  ;;  %v9552_v52 = vld [vmem:[%s11918_s1 + $0x290] sm:$0xff] }
 0x1db   : > { %v4706_v44 = vpop.f32.mrf.mxu0  ;;  %5161 = vmatpush.bf16.msrb.mxu2 %v9552_v52 }
 0x1dc   : > { %4754 = vmatmul.bf16.gmra.mxu1 %v7391_v50  ;;  %4843 = vmatmul.bf16.gmra.mxu2 %v7395_v1  ;;  %v10543_v23 = vadd.f32 %v4703_v21, %v4615_v59  ;;  %v9285_v21 = vld [vmem:[%s9872_s7 + $0x6b8] sm:$0xf0] }
 0x1dd   : > { %4932 = vmatmul.bf16.gmra.mxu3 %v7399_v54  ;;  %v7495_v61 = vor.u32 %v9285_v21, %v7494_v4  ;;  %v9560_v54 = vld [vmem:[%s11918_s1 + $0x2d0] sm:$0xff]  ;;  %v9298_v4 = vld [vmem:[%s9872_s7 + $0x724] sm:$0xf]  ;;  %v7596_v21 = vld [vmem:[%s9872_s7 + $0x784] sm:$0xf0] }
 0x1de   : > { %5021 = vmatmul.bf16.gmra.mxu0 %v7403_v60  ;;  %5250 = vmatpush.bf16.msrb.mxu3 %v9560_v54 }
 0x1df   : > { %v4528_v3 = vpop.f32.mrf.mxu2 }
 0x1e0   : > { %v4529_v40 = vadd.f32 %v4528_v3, %v4440_v62  ;;  %v4617_v45 = vpop.f32.mrf.mxu3 }
 0x1e1   : > { %v4441_v16 = vpop.f32.mrf.mxu1 }
 0x1e2   : > { %v4618_v55 = vadd.f32 %v4617_v45, %v4529_v40  ;;  %v4442_v12 = vadd.f32 %v4441_v16, %v10230_v43  ;;  %v9544_v45 = vld [vmem:[%s11918_s1 + $0x250] sm:$0xff] }
 0x1e3   : > { %v4708_v36 = vpop.f32.mrf.mxu0  ;;  %v9568_v16 = vld [vmem:[%s11918_s1 + $0x310] sm:$0xff]  ;;  %5072 = vmatpush.bf16.msrb.mxu1 %v9544_v45  ;;  %v9323_v45 = vld [vmem:[%s9872_s7 + $0x7ec] sm:$0xf] }
 0x1e4   : > { %v10548_v15 = vadd.f32 %v4706_v44, %v4618_v55  ;;  %v9297_v55 = vld [vmem:[%s9872_s7 + $0x71c] sm:$0xf]  ;;  %5339 = vmatpush.bf16.msrb.mxu0 %v9568_v16  ;;  %v7696_v16 = vld [vmem:[%s9872_s7 + $0x84c] sm:$0xf0] }
 0x1e7   : > { %v4530_v30 = vpop.f32.mrf.mxu2 }
 0x1e8   : > { %v4531_v33 = vadd.f32 %v4530_v30, %v4442_v12  ;;  %v4619_v0 = vpop.f32.mrf.mxu3  ;;  %v7588_v12 = vld [vmem:[%s9872_s7 + $0x77c] sm:$0xf0] }
 0x1e9   : > { %v4720_v48 = vpop.f32.mrf.mxu1  ;;  %v7591_v30 = vor.u32 %v9297_v55, %v7588_v12  ;;  %v7702_v55 = vld [vmem:[%s9872_s7 + $0x7f0] sm:$0xf]  ;;  %v9336_v12 = vld [vmem:[%s9872_s7 + $0x850] sm:$0xf0] }
 0x1ea   : > { %v4620_v43 = vadd.f32 %v4619_v0, %v4531_v33  ;;  %v4721_v10 = vadd.f32 %v4720_v48, %v10248_v13  ;;  %v7595_v33 = vor.u32 %v9310_v20, %v7594_v19 }
 0x1eb   : > { %v4987_v50 = vpop.f32.mrf.mxu0 }
 0x1ec   : > { %4759 = vmatmul.bf16.gmra.mxu1 %v7491_v42  ;;  %4848 = vmatmul.bf16.gmra.mxu2 %v7495_v61  ;;  %v10557_v1 = vadd.f32 %v4708_v36, %v4620_v43  ;;  %v7599_v42 = vor.u32 %v9298_v4, %v7596_v21 }
 0x1ed   : > { %4937 = vmatmul.bf16.gmra.mxu3 %v7499_v49 }
 0x1ee   : > { %5026 = vmatmul.bf16.gmra.mxu0 %v7503_v38 }
 0x1ef   : > { %v4809_v60 = vpop.f32.mrf.mxu2 }
 0x1f0   : > { %v4810_v13 = vadd.f32 %v4809_v60, %v4721_v10  ;;  %v4898_v59 = vpop.f32.mrf.mxu3 }
 0x1f1   : > { %v4722_v62 = vpop.f32.mrf.mxu1 }
 0x1f2   : > { %v4899_v44 = vadd.f32 %v4898_v59, %v4810_v13  ;;  %v4723_v3 = vadd.f32 %v4722_v62, %v10258_v35  ;;  %v7602_v35 = vld [vmem:[%s9872_s7 + $0x728] sm:$0xf]  ;;  %v9322_v59 = vld [vmem:[%s9872_s7 + $0x7e4] sm:$0xf] }
 0x1f3   : > { %v4989_v40 = vpop.f32.mrf.mxu0  ;;  %v7603_v61 = vor.u32 %v9311_v25, %v7602_v35  ;;  %v7688_v62 = vld [vmem:[%s9872_s7 + $0x844] sm:$0xf0] }
 0x1f4   : > { %v10574_v36 = vadd.f32 %v4987_v50, %v4899_v44  ;;  %v7691_v21 = vor.u32 %v9322_v59, %v7688_v62  ;;  %v7794_v59 = vld [vmem:[%s9872_s7 + $0x8b0] sm:$0xf]  ;;  %v9360_v62 = vld [vmem:[%s9872_s7 + $0x910] sm:$0xf0] }
 0x1f7   : > { %v4811_v26 = vpop.f32.mrf.mxu2 }
 0x1f8   : > { %v4812_v56 = vadd.f32 %v4811_v26, %v4723_v3  ;;  %v4900_v5 = vpop.f32.mrf.mxu3  ;;  %v7694_v3 = vld [vmem:[%s9872_s7 + $0x7e8] sm:$0xf]  ;;  %v7699_v26 = vor.u32 %v9323_v45, %v7696_v16  ;;  %v9361_v45 = vld [vmem:[%s9872_s7 + $0x918] sm:$0xf0] }
 0x1f9   : > { %v4725_v0 = vpop.f32.mrf.mxu1 }
 0x1fa   : > { %v4901_v48 = vadd.f32 %v4900_v5, %v4812_v56  ;;  %v4726_v49 = vadd.f32 %v4725_v0, %v10264_v63  ;;  %v7703_v56 = vor.u32 %v9336_v12, %v7702_v55  ;;  %v9551_v0 = vld [vmem:[%s11918_s1 + $0x288] sm:$0xff] }
 0x1fb   : > { %v4992_v38 = vpop.f32.mrf.mxu0  ;;  %5162 = vmatpush.bf16.msrb.mxu2 %v9551_v0 }
 0x1fc   : > { %4764 = vmatmul.bf16.gmra.mxu1 %v7591_v30  ;;  %4853 = vmatmul.bf16.gmra.mxu2 %v7595_v33  ;;  %v10583_v43 = vadd.f32 %v4989_v40, %v4901_v48  ;;  %v9335_v40 = vld [vmem:[%s9872_s7 + $0x848] sm:$0xf0] }
 0x1fd   : > { %4942 = vmatmul.bf16.gmra.mxu3 %v7599_v42  ;;  %v7695_v35 = vor.u32 %v9335_v40, %v7694_v3  ;;  %v9559_v42 = vld [vmem:[%s11918_s1 + $0x2c8] sm:$0xff]  ;;  %v9348_v3 = vld [vmem:[%s9872_s7 + $0x8b4] sm:$0xf]  ;;  %v7796_v40 = vld [vmem:[%s9872_s7 + $0x914] sm:$0xf0] }
 0x1fe   : > { %5031 = vmatmul.bf16.gmra.mxu0 %v7603_v61  ;;  %5251 = vmatpush.bf16.msrb.mxu3 %v9559_v42 }
 0x1ff   : > { %v4814_v10 = vpop.f32.mrf.mxu2 }
 0x200   : > { %v4815_v50 = vadd.f32 %v4814_v10, %v4726_v49  ;;  %v4903_v52 = vpop.f32.mrf.mxu3 }
 0x201   : > { %v4727_v54 = vpop.f32.mrf.mxu1 }
 0x202   : > { %v4904_v60 = vadd.f32 %v4903_v52, %v4815_v50  ;;  %v4728_v63 = vadd.f32 %v4727_v54, %v10274_v47  ;;  %v9543_v52 = vld [vmem:[%s11918_s1 + $0x248] sm:$0xff] }
 0x203   : > { %v4994_v13 = vpop.f32.mrf.mxu0  ;;  %v9567_v54 = vld [vmem:[%s11918_s1 + $0x308] sm:$0xff]  ;;  %5073 = vmatpush.bf16.msrb.mxu1 %v9543_v52  ;;  %v9373_v52 = vld [vmem:[%s9872_s7 + $0x97c] sm:$0xf] }
 0x204   : > { %v10588_v44 = vadd.f32 %v4992_v38, %v4904_v60  ;;  %v9347_v60 = vld [vmem:[%s9872_s7 + $0x8ac] sm:$0xf]  ;;  %5340 = vmatpush.bf16.msrb.mxu0 %v9567_v54  ;;  %v7896_v54 = vld [vmem:[%s9872_s7 + $0x9dc] sm:$0xf0] }
 0x207   : > { %v4816_v19 = vpop.f32.mrf.mxu2 }
 0x208   : > { %v4817_v20 = vadd.f32 %v4816_v19, %v4728_v63  ;;  %v4905_v4 = vpop.f32.mrf.mxu3  ;;  %v7788_v63 = vld [vmem:[%s9872_s7 + $0x90c] sm:$0xf0] }
 0x209   : > { %v4730_v25 = vpop.f32.mrf.mxu1  ;;  %v7791_v19 = vor.u32 %v9347_v60, %v7788_v63  ;;  %v7902_v60 = vld [vmem:[%s9872_s7 + $0x980] sm:$0xf]  ;;  %v9386_v63 = vld [vmem:[%s9872_s7 + $0x9e0] sm:$0xf0] }
 0x20a   : > { %v4906_v47 = vadd.f32 %v4905_v4, %v4817_v20  ;;  %v4731_v5 = vadd.f32 %v4730_v25, %v10292_v2  ;;  %v7795_v20 = vor.u32 %v9360_v62, %v7794_v59 }
 0x20b   : > { %v4997_v30 = vpop.f32.mrf.mxu0 }
 0x20c   : > { %4769 = vmatmul.bf16.gmra.mxu1 %v7691_v21  ;;  %4858 = vmatmul.bf16.gmra.mxu2 %v7695_v35  ;;  %v10597_v33 = vadd.f32 %v4994_v13, %v4906_v47  ;;  %v7799_v21 = vor.u32 %v9348_v3, %v7796_v40 }
 0x20d   : > { %4947 = vmatmul.bf16.gmra.mxu3 %v7699_v26 }
 0x20e   : > { %5036 = vmatmul.bf16.gmra.mxu0 %v7703_v56 }
 0x20f   : > { %v4819_v61 = vpop.f32.mrf.mxu2 }
 0x210   : > { %v4820_v2 = vadd.f32 %v4819_v61, %v4731_v5  ;;  %v4908_v48 = vpop.f32.mrf.mxu3 }
 0x211   : > { %v4732_v49 = vpop.f32.mrf.mxu1 }
 0x212   : > { %v4909_v38 = vadd.f32 %v4908_v48, %v4820_v2  ;;  %v4733_v10 = vadd.f32 %v4732_v49, %v10302_v28  ;;  %v7802_v28 = vld [vmem:[%s9872_s7 + $0x8b8] sm:$0xf]  ;;  %v9372_v48 = vld [vmem:[%s9872_s7 + $0x974] sm:$0xf] }
 0x213   : > { %v4999_v50 = vpop.f32.mrf.mxu0  ;;  %v7803_v35 = vor.u32 %v9361_v45, %v7802_v28  ;;  %v7888_v49 = vld [vmem:[%s9872_s7 + $0x9d4] sm:$0xf0] }
 0x214   : > { %v10614_v13 = vadd.f32 %v4997_v30, %v4909_v38  ;;  %v7891_v40 = vor.u32 %v9372_v48, %v7888_v49  ;;  %v7994_v48 = vld [vmem:[%s9872_s7 + $0xa40] sm:$0xf]  ;;  %v9410_v49 = vld [vmem:[%s9872_s7 + $0xaa0] sm:$0xf0] }
 0x217   : > { %v4821_v16 = vpop.f32.mrf.mxu2 }
 0x218   : > { %v4822_v55 = vadd.f32 %v4821_v16, %v4733_v10  ;;  %v4910_v12 = vpop.f32.mrf.mxu3  ;;  %v7894_v10 = vld [vmem:[%s9872_s7 + $0x978] sm:$0xf]  ;;  %v7899_v16 = vor.u32 %v9373_v52, %v7896_v54  ;;  %v9411_v52 = vld [vmem:[%s9872_s7 + $0xaa8] sm:$0xf0] }
 0x219   : > { %v4735_v4 = vpop.f32.mrf.mxu1 }
 0x21a   : > { %v4911_v25 = vadd.f32 %v4910_v12, %v4822_v55  ;;  %v4736_v26 = vadd.f32 %v4735_v4, %v10308_v57  ;;  %v7903_v55 = vor.u32 %v9386_v63, %v7902_v60  ;;  %v9550_v4 = vld [vmem:[%s11918_s1 + $0x280] sm:$0xff] }
 0x21b   : > { %v5002_v56 = vpop.f32.mrf.mxu0  ;;  %5163 = vmatpush.bf16.msrb.mxu2 %v9550_v4 }
 0x21c   : > { %4774 = vmatmul.bf16.gmra.mxu1 %v7791_v19  ;;  %4863 = vmatmul.bf16.gmra.mxu2 %v7795_v20  ;;  %v10623_v47 = vadd.f32 %v4999_v50, %v4911_v25  ;;  %v9385_v50 = vld [vmem:[%s9872_s7 + $0x9d8] sm:$0xf0] }
 0x21d   : > { %4952 = vmatmul.bf16.gmra.mxu3 %v7799_v21  ;;  %v7895_v28 = vor.u32 %v9385_v50, %v7894_v10  ;;  %v9558_v21 = vld [vmem:[%s11918_s1 + $0x2c0] sm:$0xff]  ;;  %v7996_v50 = vld [vmem:[%s9872_s7 + $0xaa4] sm:$0xf0] }
 0x21e   : > { %5041 = vmatmul.bf16.gmra.mxu0 %v7803_v35  ;;  %5252 = vmatpush.bf16.msrb.mxu3 %v9558_v21  ;;  %v9398_v10 = vld [vmem:[%s9872_s7 + $0xa44] sm:$0xf] }
 0x21f   : > { %v4824_v5 = vpop.f32.mrf.mxu2 }
 0x220   : > { %v4825_v30 = vadd.f32 %v4824_v5, %v4736_v26  ;;  %v4913_v0 = vpop.f32.mrf.mxu3 }
 0x221   : > { %v4737_v42 = vpop.f32.mrf.mxu1 }
 0x222   : > { %v4914_v61 = vadd.f32 %v4913_v0, %v4825_v30  ;;  %v4738_v57 = vadd.f32 %v4737_v42, %v10317_v29  ;;  %v9542_v0 = vld [vmem:[%s11918_s1 + $0x240] sm:$0xff] }
 0x223   : > { %v5004_v2 = vpop.f32.mrf.mxu0  ;;  %v9566_v42 = vld [vmem:[%s11918_s1 + $0x300] sm:$0xff]  ;;  %5074 = vmatpush.bf16.msrb.mxu1 %v9542_v0  ;;  %v9423_v0 = vld [vmem:[%s9872_s7 + $0xb0c] sm:$0xf] }
 0x224   : > { %v10628_v38 = vadd.f32 %v5002_v56, %v4914_v61  ;;  %v9397_v61 = vld [vmem:[%s9872_s7 + $0xa3c] sm:$0xf]  ;;  %5341 = vmatpush.bf16.msrb.mxu0 %v9566_v42  ;;  %v8096_v42 = vld [vmem:[%s9872_s7 + $0xb6c] sm:$0xf0] }
 0x227   : > { %v4826_v59 = vpop.f32.mrf.mxu2 }
 0x228   : > { %v4827_v62 = vadd.f32 %v4826_v59, %v4738_v57  ;;  %v4915_v3 = vpop.f32.mrf.mxu3  ;;  %v7988_v57 = vld [vmem:[%s9872_s7 + $0xa9c] sm:$0xf0] }
 0x229   : > { %v4740_v45 = vpop.f32.mrf.mxu1  ;;  %v7991_v59 = vor.u32 %v9397_v61, %v7988_v57  ;;  %v8102_v61 = vld [vmem:[%s9872_s7 + $0xb10] sm:$0xf]  ;;  %v9436_v57 = vld [vmem:[%s9872_s7 + $0xb70] sm:$0xf0] }
 0x22a   : > { %v4916_v29 = vadd.f32 %v4915_v3, %v4827_v62  ;;  %v4741_v12 = vadd.f32 %v4740_v45, %v10334_v53  ;;  %v7995_v62 = vor.u32 %v9410_v49, %v7994_v48 }
 0x22b   : > { %v5007_v19 = vpop.f32.mrf.mxu0 }
 0x22c   : > { %4779 = vmatmul.bf16.gmra.mxu1 %v7891_v40  ;;  %4868 = vmatmul.bf16.gmra.mxu2 %v7895_v28  ;;  %v10637_v20 = vadd.f32 %v5004_v2, %v4916_v29  ;;  %v7999_v40 = vor.u32 %v9398_v10, %v7996_v50 }
 0x22d   : > { %4957 = vmatmul.bf16.gmra.mxu3 %v7899_v16 }
 0x22e   : > { %5046 = vmatmul.bf16.gmra.mxu0 %v7903_v55 }
 0x22f   : > { %v4829_v35 = vpop.f32.mrf.mxu2 }
 0x230   : > { %v4830_v53 = vadd.f32 %v4829_v35, %v4741_v12  ;;  %v4918_v25 = vpop.f32.mrf.mxu3 }
 0x231   : > { %v4742_v26 = vpop.f32.mrf.mxu1 }
 0x232   : > { %v4919_v56 = vadd.f32 %v4918_v25, %v4830_v53  ;;  %v4743_v5 = vadd.f32 %v4742_v26, %v10343_v24  ;;  %v8002_v24 = vld [vmem:[%s9872_s7 + $0xa48] sm:$0xf]  ;;  %v9422_v25 = vld [vmem:[%s9872_s7 + $0xb04] sm:$0xf] }
 0x233   : > { %v5009_v30 = vpop.f32.mrf.mxu0  ;;  %v8003_v28 = vor.u32 %v9411_v52, %v8002_v24  ;;  %v8088_v26 = vld [vmem:[%s9872_s7 + $0xb64] sm:$0xf0] }
 0x234   : > { %v10654_v2 = vadd.f32 %v5007_v19, %v4919_v56  ;;  %v8091_v50 = vor.u32 %v9422_v25, %v8088_v26  ;;  %v8194_v25 = vld [vmem:[%s9872_s7 + $0xbd0] sm:$0xf]  ;;  %v9460_v26 = vld [vmem:[%s9872_s7 + $0xc30] sm:$0xf0] }
 0x237   : > { %v4831_v54 = vpop.f32.mrf.mxu2 }
 0x238   : > { %v4832_v60 = vadd.f32 %v4831_v54, %v4743_v5  ;;  %v4920_v63 = vpop.f32.mrf.mxu3  ;;  %v8094_v5 = vld [vmem:[%s9872_s7 + $0xb08] sm:$0xf]  ;;  %v8099_v54 = vor.u32 %v9423_v0, %v8096_v42  ;;  %v9461_v0 = vld [vmem:[%s9872_s7 + $0xc38] sm:$0xf0] }
 0x239   : > { %v4745_v3 = vpop.f32.mrf.mxu1 }
 0x23a   : > { %v4921_v45 = vadd.f32 %v4920_v63, %v4832_v60  ;;  %v4746_v16 = vadd.f32 %v4745_v3, %v10348_v6  ;;  %v8103_v60 = vor.u32 %v9436_v57, %v8102_v61  ;;  %v9589_v3 = vld [vmem:[%s11918_s1 + $0x3b8] sm:$0xff] }
 0x23b   : > { %v5012_v55 = vpop.f32.mrf.mxu0  ;;  %5512 = vmatpush.bf16.msra.mxu2 %v9589_v3 }
 0x23c   : > { %4784 = vmatmul.bf16.gmra.mxu1 %v7991_v59  ;;  %4873 = vmatmul.bf16.gmra.mxu2 %v7995_v62  ;;  %v10663_v29 = vadd.f32 %v5009_v30, %v4921_v45  ;;  %v9435_v30 = vld [vmem:[%s9872_s7 + $0xb68] sm:$0xf0] }
 0x23d   : > { %4962 = vmatmul.bf16.gmra.mxu3 %v7999_v40  ;;  %v8095_v24 = vor.u32 %v9435_v30, %v8094_v5  ;;  %v9597_v40 = vld [vmem:[%s11918_s1 + $0x3f8] sm:$0xff]  ;;  %v9448_v5 = vld [vmem:[%s9872_s7 + $0xbd4] sm:$0xf] }
 0x23e   : > { %5051 = vmatmul.bf16.gmra.mxu0 %v8003_v28  ;;  %5601 = vmatpush.bf16.msra.mxu3 %v9597_v40  ;;  %v8196_v30 = vld [vmem:[%s9872_s7 + $0xc34] sm:$0xf0] }
 0x23f   : > { %v4834_v12 = vpop.f32.mrf.mxu2 }
 0x240   : > { %v4835_v19 = vadd.f32 %v4834_v12, %v4746_v16  ;;  %v4923_v4 = vpop.f32.mrf.mxu3 }
 0x241   : > { %v4747_v21 = vpop.f32.mrf.mxu1 }
 0x242   : > { %v4924_v35 = vadd.f32 %v4923_v4, %v4835_v19  ;;  %v4748_v6 = vadd.f32 %v4747_v21, %v10357_v17  ;;  %v9581_v4 = vld [vmem:[%s11918_s1 + $0x378] sm:$0xff] }
 0x243   : > { %v5014_v53 = vpop.f32.mrf.mxu0  ;;  %v9605_v21 = vld [vmem:[%s11918_s1 + $0x438] sm:$0xff]  ;;  %5423 = vmatpush.bf16.msra.mxu1 %v9581_v4  ;;  %v9075_v4 = vld [vmem:[%s9872_s7 + $0x2c] sm:$0xf] }
 0x244   : > { %v10668_v56 = vadd.f32 %v5012_v55, %v4924_v35  ;;  %v9447_v35 = vld [vmem:[%s9872_s7 + $0xbcc] sm:$0xf]  ;;  %5690 = vmatpush.bf16.msra.mxu0 %v9605_v21  ;;  %v6712_v21 = vld [vmem:[%s9872_s7 + $0x8c] sm:$0xf0] }
 0x247   : > { %v4836_v48 = vpop.f32.mrf.mxu2 }
 0x248   : > { %v4837_v49 = vadd.f32 %v4836_v48, %v4748_v6  ;;  %v4925_v10 = vpop.f32.mrf.mxu3  ;;  %v8188_v6 = vld [vmem:[%s9872_s7 + $0xc2c] sm:$0xf0] }
 0x249   : > { %v4750_v52 = vpop.f32.mrf.mxu1  ;;  %v8191_v48 = vor.u32 %v9447_v35, %v8188_v6  ;;  %v6718_v35 = vld [vmem:[%s9872_s7 + $0x30] sm:$0xf]  ;;  %v9088_v6 = vld [vmem:[%s9872_s7 + $0x90] sm:$0xf0] }
 0x24a   : > { %v4926_v17 = vadd.f32 %v4925_v10, %v4837_v49  ;;  %v4751_v63 = vadd.f32 %v4750_v52, %v10374_v34  ;;  %v8195_v49 = vor.u32 %v9460_v26, %v8194_v25 }
 0x24b   : > { %v5017_v59 = vpop.f32.mrf.mxu0 }
 0x24c   : > { %4789 = vmatmul.bf16.gmra.mxu1 %v8091_v50  ;;  %4878 = vmatmul.bf16.gmra.mxu2 %v8095_v24  ;;  %v10677_v62 = vadd.f32 %v5014_v53, %v4926_v17  ;;  %v8199_v50 = vor.u32 %v9448_v5, %v8196_v30 }
 0x24d   : > { %4967 = vmatmul.bf16.gmra.mxu3 %v8099_v54 }
 0x24e   : > { %5056 = vmatmul.bf16.gmra.mxu0 %v8103_v60 }
 0x24f   : > { %v4839_v28 = vpop.f32.mrf.mxu2 }
 0x250   : > { %v4840_v34 = vadd.f32 %v4839_v28, %v4751_v63  ;;  %v4928_v45 = vpop.f32.mrf.mxu3 }
 0x251   : > { %v4752_v16 = vpop.f32.mrf.mxu1 }
 0x252   : > { %v4929_v55 = vadd.f32 %v4928_v45, %v4840_v34  ;;  %v4753_v12 = vadd.f32 %v4752_v16, %v10383_v7  ;;  %v8202_v7 = vld [vmem:[%s9872_s7 + $0xbd8] sm:$0xf]  ;;  %v9074_v45 = vld [vmem:[%s9872_s7 + $0x24] sm:$0xf]  ;;  %v6704_v16 = vld [vmem:[%s9872_s7 + $0x84] sm:$0xf0] }
 0x253   : > { %v5019_v19 = vpop.f32.mrf.mxu0  ;;  %v8203_v24 = vor.u32 %v9461_v0, %v8202_v7  ;;  %v6707_v30 = vor.u32 %v9074_v45, %v6704_v16  ;;  %v6810_v45 = vld [vmem:[%s9872_s7 + $0xf0] sm:$0xf]  ;;  %v9112_v16 = vld [vmem:[%s9872_s7 + $0x150] sm:$0xf0] }
 0x254   : > { %v10694_v53 = vadd.f32 %v5017_v59, %v4929_v55 }
 0x257   : > { %v4841_v42 = vpop.f32.mrf.mxu2 }
 0x258   : > { %v4842_v61 = vadd.f32 %v4841_v42, %v4753_v12  ;;  %v4930_v57 = vpop.f32.mrf.mxu3  ;;  %v6710_v12 = vld [vmem:[%s9872_s7 + $0x28] sm:$0xf]  ;;  %v6715_v42 = vor.u32 %v9075_v4, %v6712_v21  ;;  %v9113_v4 = vld [vmem:[%s9872_s7 + $0x158] sm:$0xf0] }
 0x259   : > { %v4755_v10 = vpop.f32.mrf.mxu1 }
 0x25a   : > { %v4931_v52 = vadd.f32 %v4930_v57, %v4842_v61  ;;  %v4756_v54 = vadd.f32 %v4755_v10, %v10388_v22  ;;  %v6719_v61 = vor.u32 %v9088_v6, %v6718_v35  ;;  %v9588_v10 = vld [vmem:[%s11918_s1 + $0x3b0] sm:$0xff] }
 0x25b   : > { %v5022_v60 = vpop.f32.mrf.mxu0  ;;  %5513 = vmatpush.bf16.msra.mxu2 %v9588_v10 }
 0x25c   : > { %4794 = vmatmul.bf16.gmra.mxu1 %v8191_v48  ;;  %4883 = vmatmul.bf16.gmra.mxu2 %v8195_v49  ;;  %v10703_v17 = vadd.f32 %v5019_v19, %v4931_v52  ;;  %v9087_v19 = vld [vmem:[%s9872_s7 + $0x88] sm:$0xf0] }
 0x25d   : > { %4972 = vmatmul.bf16.gmra.mxu3 %v8199_v50  ;;  %v6711_v7 = vor.u32 %v9087_v19, %v6710_v12  ;;  %v9596_v50 = vld [vmem:[%s11918_s1 + $0x3f0] sm:$0xff]  ;;  %v6812_v19 = vld [vmem:[%s9872_s7 + $0x154] sm:$0xf0] }
 0x25e   : > { %5061 = vmatmul.bf16.gmra.mxu0 %v8203_v24  ;;  %5602 = vmatpush.bf16.msra.mxu3 %v9596_v50  ;;  %v9100_v12 = vld [vmem:[%s9872_s7 + $0xf4] sm:$0xf] }
 0x25f   : > { %v4844_v63 = vpop.f32.mrf.mxu2 }
 0x260   : > { %v4845_v59 = vadd.f32 %v4844_v63, %v4756_v54  ;;  %v4933_v3 = vpop.f32.mrf.mxu3 }
 0x261   : > { %v4757_v40 = vpop.f32.mrf.mxu1 }
 0x262   : > { %v4934_v28 = vadd.f32 %v4933_v3, %v4845_v59  ;;  %v4758_v22 = vadd.f32 %v4757_v40, %v10397_v58  ;;  %v9580_v3 = vld [vmem:[%s11918_s1 + $0x370] sm:$0xff] }
 0x263   : > { %v5024_v34 = vpop.f32.mrf.mxu0  ;;  %v9604_v40 = vld [vmem:[%s11918_s1 + $0x430] sm:$0xff]  ;;  %5424 = vmatpush.bf16.msra.mxu1 %v9580_v3  ;;  %v9125_v3 = vld [vmem:[%s9872_s7 + $0x1bc] sm:$0xf] }
 0x264   : > { %v10708_v55 = vadd.f32 %v5022_v60, %v4934_v28  ;;  %v9099_v28 = vld [vmem:[%s9872_s7 + $0xec] sm:$0xf]  ;;  %5691 = vmatpush.bf16.msra.mxu0 %v9604_v40  ;;  %v6912_v40 = vld [vmem:[%s9872_s7 + $0x21c] sm:$0xf0] }
 0x267   : > { %v4846_v25 = vpop.f32.mrf.mxu2 }
 0x268   : > { %v4847_v26 = vadd.f32 %v4846_v25, %v4758_v22  ;;  %v4935_v5 = vpop.f32.mrf.mxu3  ;;  %v6804_v22 = vld [vmem:[%s9872_s7 + $0x14c] sm:$0xf0] }
 0x269   : > { %v4760_v0 = vpop.f32.mrf.mxu1  ;;  %v6807_v25 = vor.u32 %v9099_v28, %v6804_v22  ;;  %v6918_v28 = vld [vmem:[%s9872_s7 + $0x1c0] sm:$0xf]  ;;  %v9138_v22 = vld [vmem:[%s9872_s7 + $0x220] sm:$0xf0] }
 0x26a   : > { %v4936_v58 = vadd.f32 %v4935_v5, %v4847_v26  ;;  %v4761_v57 = vadd.f32 %v4760_v0, %v10414_v27  ;;  %v6811_v26 = vor.u32 %v9112_v16, %v6810_v45 }
 0x26b   : > { %v5027_v48 = vpop.f32.mrf.mxu0 }
 0x26c   : > { %5075 = vmatmul.bf16.vlgmr.msrb.gmra.mxu1 %v6707_v30  ;;  %5164 = vmatmul.bf16.vlgmr.msrb.gmra.mxu2 %v6711_v7  ;;  %v10717_v49 = vadd.f32 %v5024_v34, %v4936_v58  ;;  %v6815_v30 = vor.u32 %v9100_v12, %v6812_v19 }
 0x26d   : > { %5253 = vmatmul.bf16.vlgmr.msrb.gmra.mxu3 %v6715_v42 }
 0x26e   : > { %5342 = vmatmul.bf16.vlgmr.msrb.gmra.mxu0 %v6719_v61 }
 0x26f   : > { %v4849_v24 = vpop.f32.mrf.mxu2 }
 0x270   : > { %v4850_v27 = vadd.f32 %v4849_v24, %v4761_v57  ;;  %v4938_v52 = vpop.f32.mrf.mxu3 }
 0x271   : > { %v4762_v54 = vpop.f32.mrf.mxu1 }
 0x272   : > { %v4939_v60 = vadd.f32 %v4938_v52, %v4850_v27  ;;  %v4763_v63 = vadd.f32 %v4762_v54, %v10423_v14  ;;  %v6818_v14 = vld [vmem:[%s9872_s7 + $0xf8] sm:$0xf]  ;;  %v9124_v52 = vld [vmem:[%s9872_s7 + $0x1b4] sm:$0xf] }
 0x273   : > { %v5029_v59 = vpop.f32.mrf.mxu0  ;;  %v6819_v7 = vor.u32 %v9113_v4, %v6818_v14  ;;  %v6904_v54 = vld [vmem:[%s9872_s7 + $0x214] sm:$0xf0] }
 0x274   : > { %v10734_v34 = vadd.f32 %v5027_v48, %v4939_v60  ;;  %v6907_v19 = vor.u32 %v9124_v52, %v6904_v54  ;;  %v7010_v52 = vld [vmem:[%s9872_s7 + $0x280] sm:$0xf]  ;;  %v9162_v54 = vld [vmem:[%s9872_s7 + $0x2e0] sm:$0xf0] }
 0x277   : > { %v4851_v21 = vpop.f32.mrf.mxu2 }
 0x278   : > { %v4852_v35 = vadd.f32 %v4851_v21, %v4763_v63  ;;  %v4940_v6 = vpop.f32.mrf.mxu3  ;;  %v6910_v63 = vld [vmem:[%s9872_s7 + $0x1b8] sm:$0xf]  ;;  %v6915_v21 = vor.u32 %v9125_v3, %v6912_v40  ;;  %v9163_v3 = vld [vmem:[%s9872_s7 + $0x2e8] sm:$0xf0] }
 0x279   : > { %v4765_v5 = vpop.f32.mrf.mxu1 }
 0x27a   : > { %v4941_v0 = vadd.f32 %v4940_v6, %v4852_v35  ;;  %v4766_v42 = vadd.f32 %v4765_v5, %v10428_v11  ;;  %v6919_v35 = vor.u32 %v9138_v22, %v6918_v28  ;;  %v9587_v5 = vld [vmem:[%s11918_s1 + $0x3a8] sm:$0xff] }
 0x27b   : > { %v5032_v61 = vpop.f32.mrf.mxu0  ;;  %5514 = vmatpush.bf16.msra.mxu2 %v9587_v5 }
 0x27c   : > { %5080 = vmatmul.bf16.gmra.mxu1 %v6807_v25  ;;  %5169 = vmatmul.bf16.gmra.mxu2 %v6811_v26  ;;  %v10743_v58 = vadd.f32 %v5029_v59, %v4941_v0  ;;  %v9137_v59 = vld [vmem:[%s9872_s7 + $0x218] sm:$0xf0] }
 0x27d   : > { %5258 = vmatmul.bf16.gmra.mxu3 %v6815_v30  ;;  %v6911_v14 = vor.u32 %v9137_v59, %v6910_v63  ;;  %v9595_v30 = vld [vmem:[%s11918_s1 + $0x3e8] sm:$0xff]  ;;  %v9150_v63 = vld [vmem:[%s9872_s7 + $0x284] sm:$0xf] }
 0x27e   : > { %5347 = vmatmul.bf16.gmra.mxu0 %v6819_v7  ;;  %5603 = vmatpush.bf16.msra.mxu3 %v9595_v30  ;;  %v7012_v59 = vld [vmem:[%s9872_s7 + $0x2e4] sm:$0xf0] }
 0x27f   : > { %v4854_v57 = vpop.f32.mrf.mxu2 }
 0x280   : > { %v4855_v48 = vadd.f32 %v4854_v57, %v4766_v42  ;;  %v4943_v10 = vpop.f32.mrf.mxu3 }
 0x281   : > { %v4767_v50 = vpop.f32.mrf.mxu1 }
 0x282   : > { %v4944_v24 = vadd.f32 %v4943_v10, %v4855_v48  ;;  %v4768_v11 = vadd.f32 %v4767_v50, %v10437_v46  ;;  %v9579_v10 = vld [vmem:[%s11918_s1 + $0x368] sm:$0xff] }
 0x283   : > { %v5034_v27 = vpop.f32.mrf.mxu0  ;;  %v9603_v50 = vld [vmem:[%s11918_s1 + $0x428] sm:$0xff]  ;;  %5425 = vmatpush.bf16.msra.mxu1 %v9579_v10 }
 0x284   : > { %v10748_v60 = vadd.f32 %v5032_v61, %v4944_v24  ;;  %v9149_v24 = vld [vmem:[%s9872_s7 + $0x27c] sm:$0xf]  ;;  %5692 = vmatpush.bf16.msra.mxu0 %v9603_v50  ;;  %v9175_v10 = vld [vmem:[%s9872_s7 + $0x34c] sm:$0xf]  ;;  %v7112_v50 = vld [vmem:[%s9872_s7 + $0x3ac] sm:$0xf0] }
 0x287   : > { %v4856_v45 = vpop.f32.mrf.mxu2 }
 0x288   : > { %v4857_v16 = vadd.f32 %v4856_v45, %v4768_v11  ;;  %v4945_v12 = vpop.f32.mrf.mxu3  ;;  %v7004_v11 = vld [vmem:[%s9872_s7 + $0x2dc] sm:$0xf0] }
 0x289   : > { %v4770_v4 = vpop.f32.mrf.mxu1  ;;  %v7007_v45 = vor.u32 %v9149_v24, %v7004_v11  ;;  %v7118_v24 = vld [vmem:[%s9872_s7 + $0x350] sm:$0xf]  ;;  %v9188_v11 = vld [vmem:[%s9872_s7 + $0x3b0] sm:$0xf0] }
 0x28a   : > { %v4946_v46 = vadd.f32 %v4945_v12, %v4857_v16  ;;  %v4771_v6 = vadd.f32 %v4770_v4, %v10454_v39  ;;  %v7011_v16 = vor.u32 %v9162_v54, %v7010_v52 }
 0x28b   : > { %v5037_v25 = vpop.f32.mrf.mxu0 }
 0x28c   : > { %5085 = vmatmul.bf16.gmra.mxu1 %v6907_v19  ;;  %5174 = vmatmul.bf16.gmra.mxu2 %v6911_v14  ;;  %v10757_v26 = vadd.f32 %v5034_v27, %v4946_v46  ;;  %v7015_v19 = vor.u32 %v9150_v63, %v7012_v59 }
 0x28d   : > { %5263 = vmatmul.bf16.gmra.mxu3 %v6915_v21 }
 0x28e   : > { %5352 = vmatmul.bf16.gmra.mxu0 %v6919_v35 }
 0x28f   : > { %v4859_v7 = vpop.f32.mrf.mxu2 }
 0x290   : > { %v4860_v39 = vadd.f32 %v4859_v7, %v4771_v6  ;;  %v4948_v0 = vpop.f32.mrf.mxu3 }
 0x291   : > { %v4772_v42 = vpop.f32.mrf.mxu1 }
 0x292   : > { %v4949_v61 = vadd.f32 %v4948_v0, %v4860_v39  ;;  %v4773_v57 = vadd.f32 %v4772_v42, %v10463_v18  ;;  %v7018_v18 = vld [vmem:[%s9872_s7 + $0x288] sm:$0xf]  ;;  %v9174_v0 = vld [vmem:[%s9872_s7 + $0x344] sm:$0xf] }
 0x293   : > { %v5039_v48 = vpop.f32.mrf.mxu0  ;;  %v7019_v14 = vor.u32 %v9163_v3, %v7018_v18  ;;  %v7104_v42 = vld [vmem:[%s9872_s7 + $0x3a4] sm:$0xf0] }
 0x294   : > { %v10774_v27 = vadd.f32 %v5037_v25, %v4949_v61  ;;  %v7107_v59 = vor.u32 %v9174_v0, %v7104_v42  ;;  %v7210_v0 = vld [vmem:[%s9872_s7 + $0x410] sm:$0xf]  ;;  %v9212_v42 = vld [vmem:[%s9872_s7 + $0x470] sm:$0xf0] }
 0x297   : > { %v4861_v40 = vpop.f32.mrf.mxu2 }
 0x298   : > { %v4862_v28 = vadd.f32 %v4861_v40, %v4773_v57  ;;  %v4950_v22 = vpop.f32.mrf.mxu3  ;;  %v7110_v57 = vld [vmem:[%s9872_s7 + $0x348] sm:$0xf]  ;;  %v7115_v40 = vor.u32 %v9175_v10, %v7112_v50  ;;  %v9213_v10 = vld [vmem:[%s9872_s7 + $0x478] sm:$0xf0] }
 0x299   : > { %v4775_v12 = vpop.f32.mrf.mxu1 }
 0x29a   : > { %v4951_v4 = vadd.f32 %v4950_v22, %v4862_v28  ;;  %v4776_v21 = vadd.f32 %v4775_v12, %v10468_v51  ;;  %v7119_v28 = vor.u32 %v9188_v11, %v7118_v24  ;;  %v9586_v12 = vld [vmem:[%s11918_s1 + $0x3a0] sm:$0xff] }
 0x29b   : > { %v5042_v35 = vpop.f32.mrf.mxu0  ;;  %5515 = vmatpush.bf16.msra.mxu2 %v9586_v12 }
 0x29c   : > { %5090 = vmatmul.bf16.gmra.mxu1 %v7007_v45  ;;  %5179 = vmatmul.bf16.gmra.mxu2 %v7011_v16  ;;  %v10783_v46 = vadd.f32 %v5039_v48, %v4951_v4  ;;  %v9187_v48 = vld [vmem:[%s9872_s7 + $0x3a8] sm:$0xf0] }
 0x29d   : > { %5268 = vmatmul.bf16.gmra.mxu3 %v7015_v19  ;;  %v7111_v18 = vor.u32 %v9187_v48, %v7110_v57  ;;  %v9594_v19 = vld [vmem:[%s11918_s1 + $0x3e0] sm:$0xff]  ;;  %v9200_v57 = vld [vmem:[%s9872_s7 + $0x414] sm:$0xf]  ;;  %v7212_v48 = vld [vmem:[%s9872_s7 + $0x474] sm:$0xf0] }
 0x29e   : > { %5357 = vmatmul.bf16.gmra.mxu0 %v7019_v14  ;;  %5604 = vmatpush.bf16.msra.mxu3 %v9594_v19 }
 0x29f   : > { %v4864_v6 = vpop.f32.mrf.mxu2 }
 0x2a0   : > { %v4865_v25 = vadd.f32 %v4864_v6, %v4776_v21  ;;  %v4953_v5 = vpop.f32.mrf.mxu3 }
 0x2a1   : > { %v4777_v30 = vpop.f32.mrf.mxu1 }
 0x2a2   : > { %v4954_v7 = vadd.f32 %v4953_v5, %v4865_v25  ;;  %v4778_v51 = vadd.f32 %v4777_v30, %v10477_v8  ;;  %v9578_v5 = vld [vmem:[%s11918_s1 + $0x360] sm:$0xff] }
 0x2a3   : > { %v5044_v39 = vpop.f32.mrf.mxu0  ;;  %v9602_v30 = vld [vmem:[%s11918_s1 + $0x420] sm:$0xff]  ;;  %5426 = vmatpush.bf16.msra.mxu1 %v9578_v5  ;;  %v9225_v5 = vld [vmem:[%s9872_s7 + $0x4dc] sm:$0xf] }
 0x2a4   : > { %v10788_v61 = vadd.f32 %v5042_v35, %v4954_v7  ;;  %v9199_v7 = vld [vmem:[%s9872_s7 + $0x40c] sm:$0xf]  ;;  %5693 = vmatpush.bf16.msra.mxu0 %v9602_v30  ;;  %v7312_v30 = vld [vmem:[%s9872_s7 + $0x53c] sm:$0xf0] }
 0x2a7   : > { %v4866_v52 = vpop.f32.mrf.mxu2 }
 0x2a8   : > { %v4867_v54 = vadd.f32 %v4866_v52, %v4778_v51  ;;  %v4955_v63 = vpop.f32.mrf.mxu3  ;;  %v7204_v51 = vld [vmem:[%s9872_s7 + $0x46c] sm:$0xf0] }
 0x2a9   : > { %v4780_v3 = vpop.f32.mrf.mxu1  ;;  %v7207_v52 = vor.u32 %v9199_v7, %v7204_v51  ;;  %v7318_v7 = vld [vmem:[%s9872_s7 + $0x4e0] sm:$0xf]  ;;  %v9238_v51 = vld [vmem:[%s9872_s7 + $0x540] sm:$0xf0] }
 0x2aa   : > { %v4956_v8 = vadd.f32 %v4955_v63, %v4867_v54  ;;  %v4781_v22 = vadd.f32 %v4780_v3, %v10494_v32  ;;  %v7211_v54 = vor.u32 %v9212_v42, %v7210_v0 }
 0x2ab   : > { %v5047_v45 = vpop.f32.mrf.mxu0 }
 0x2ac   : > { %5095 = vmatmul.bf16.gmra.mxu1 %v7107_v59  ;;  %5184 = vmatmul.bf16.gmra.mxu2 %v7111_v18  ;;  %v10797_v16 = vadd.f32 %v5044_v39, %v4956_v8  ;;  %v7215_v59 = vor.u32 %v9200_v57, %v7212_v48 }
 0x2ad   : > { %5273 = vmatmul.bf16.gmra.mxu3 %v7115_v40 }
 0x2ae   : > { %5362 = vmatmul.bf16.gmra.mxu0 %v7119_v28 }
 0x2af   : > { %v4869_v14 = vpop.f32.mrf.mxu2 }
 0x2b0   : > { %v4870_v32 = vadd.f32 %v4869_v14, %v4781_v22  ;;  %v4958_v4 = vpop.f32.mrf.mxu3 }
 0x2b1   : > { %v4782_v21 = vpop.f32.mrf.mxu1 }
 0x2b2   : > { %v4959_v35 = vadd.f32 %v4958_v4, %v4870_v32  ;;  %v4783_v6 = vadd.f32 %v4782_v21, %v10503_v31  ;;  %v7218_v31 = vld [vmem:[%s9872_s7 + $0x418] sm:$0xf]  ;;  %v9224_v4 = vld [vmem:[%s9872_s7 + $0x4d4] sm:$0xf] }
 0x2b3   : > { %v5049_v25 = vpop.f32.mrf.mxu0  ;;  %v7219_v18 = vor.u32 %v9213_v10, %v7218_v31  ;;  %v7304_v21 = vld [vmem:[%s9872_s7 + $0x534] sm:$0xf0] }
 0x2b4   : > { %v10814_v39 = vadd.f32 %v5047_v45, %v4959_v35  ;;  %v7307_v48 = vor.u32 %v9224_v4, %v7304_v21  ;;  %v7410_v4 = vld [vmem:[%s9872_s7 + $0x5a0] sm:$0xf]  ;;  %v9262_v21 = vld [vmem:[%s9872_s7 + $0x600] sm:$0xf0] }
 0x2b7   : > { %v4871_v50 = vpop.f32.mrf.mxu2 }
 0x2b8   : > { %v4872_v24 = vadd.f32 %v4871_v50, %v4783_v6  ;;  %v4960_v11 = vpop.f32.mrf.mxu3  ;;  %v7310_v6 = vld [vmem:[%s9872_s7 + $0x4d8] sm:$0xf]  ;;  %v7315_v50 = vor.u32 %v9225_v5, %v7312_v30  ;;  %v9263_v5 = vld [vmem:[%s9872_s7 + $0x608] sm:$0xf0] }
 0x2b9   : > { %v4785_v63 = vpop.f32.mrf.mxu1 }
 0x2ba   : > { %v4961_v3 = vadd.f32 %v4960_v11, %v4872_v24  ;;  %v4786_v40 = vadd.f32 %v4785_v63, %v10508_v37  ;;  %v7319_v24 = vor.u32 %v9238_v51, %v7318_v7  ;;  %v9585_v63 = vld [vmem:[%s11918_s1 + $0x398] sm:$0xff] }
 0x2bb   : > { %v5052_v28 = vpop.f32.mrf.mxu0  ;;  %5516 = vmatpush.bf16.msra.mxu2 %v9585_v63 }
 0x2bc   : > { %5100 = vmatmul.bf16.gmra.mxu1 %v7207_v52  ;;  %5189 = vmatmul.bf16.gmra.mxu2 %v7211_v54  ;;  %v10823_v8 = vadd.f32 %v5049_v25, %v4961_v3  ;;  %v9237_v25 = vld [vmem:[%s9872_s7 + $0x538] sm:$0xf0] }
 0x2bd   : > { %5278 = vmatmul.bf16.gmra.mxu3 %v7215_v59  ;;  %v7311_v31 = vor.u32 %v9237_v25, %v7310_v6  ;;  %v9593_v59 = vld [vmem:[%s11918_s1 + $0x3d8] sm:$0xff]  ;;  %v9250_v6 = vld [vmem:[%s9872_s7 + $0x5a4] sm:$0xf]  ;;  %v7412_v25 = vld [vmem:[%s9872_s7 + $0x604] sm:$0xf0] }
 0x2be   : > { %5367 = vmatmul.bf16.gmra.mxu0 %v7219_v18  ;;  %5605 = vmatpush.bf16.msra.mxu3 %v9593_v59 }
 0x2bf   : > { %v4874_v22 = vpop.f32.mrf.mxu2 }
 0x2c0   : > { %v4875_v45 = vadd.f32 %v4874_v22, %v4786_v40  ;;  %v4963_v12 = vpop.f32.mrf.mxu3 }
 0x2c1   : > { %v4787_v19 = vpop.f32.mrf.mxu1 }
 0x2c2   : > { %v4964_v14 = vadd.f32 %v4963_v12, %v4875_v45  ;;  %v4788_v37 = vadd.f32 %v4787_v19, %v10517_v9  ;;  %v9577_v12 = vld [vmem:[%s11918_s1 + $0x358] sm:$0xff] }
 0x2c3   : > { %v5054_v32 = vpop.f32.mrf.mxu0  ;;  %v9601_v19 = vld [vmem:[%s11918_s1 + $0x418] sm:$0xff]  ;;  %5427 = vmatpush.bf16.msra.mxu1 %v9577_v12  ;;  %v9275_v12 = vld [vmem:[%s9872_s7 + $0x66c] sm:$0xf] }
 0x2c4   : > { %v10828_v35 = vadd.f32 %v5052_v28, %v4964_v14  ;;  %v9249_v14 = vld [vmem:[%s9872_s7 + $0x59c] sm:$0xf]  ;;  %5694 = vmatpush.bf16.msra.mxu0 %v9601_v19  ;;  %v7512_v19 = vld [vmem:[%s9872_s7 + $0x6cc] sm:$0xf0] }
 0x2c7   : > { %v4876_v0 = vpop.f32.mrf.mxu2 }
 0x2c8   : > { %v4877_v42 = vadd.f32 %v4876_v0, %v4788_v37  ;;  %v4965_v57 = vpop.f32.mrf.mxu3  ;;  %v7404_v37 = vld [vmem:[%s9872_s7 + $0x5fc] sm:$0xf0] }
 0x2c9   : > { %v4790_v10 = vpop.f32.mrf.mxu1  ;;  %v7407_v0 = vor.u32 %v9249_v14, %v7404_v37  ;;  %v7518_v14 = vld [vmem:[%s9872_s7 + $0x670] sm:$0xf]  ;;  %v9288_v37 = vld [vmem:[%s9872_s7 + $0x6d0] sm:$0xf0] }
 0x2ca   : > { %v4966_v9 = vadd.f32 %v4965_v57, %v4877_v42  ;;  %v4791_v11 = vadd.f32 %v4790_v10, %v10534_v41  ;;  %v7411_v42 = vor.u32 %v9262_v21, %v7410_v4 }
 0x2cb   : > { %v5057_v52 = vpop.f32.mrf.mxu0 }
 0x2cc   : > { %5105 = vmatmul.bf16.gmra.mxu1 %v7307_v48  ;;  %5194 = vmatmul.bf16.gmra.mxu2 %v7311_v31  ;;  %v10837_v54 = vadd.f32 %v5054_v32, %v4966_v9  ;;  %v7415_v48 = vor.u32 %v9250_v6, %v7412_v25 }
 0x2cd   : > { %5283 = vmatmul.bf16.gmra.mxu3 %v7315_v50 }
 0x2ce   : > { %5372 = vmatmul.bf16.gmra.mxu0 %v7319_v24 }
 0x2cf   : > { %v4879_v18 = vpop.f32.mrf.mxu2 }
 0x2d0   : > { %v4880_v41 = vadd.f32 %v4879_v18, %v4791_v11  ;;  %v4968_v3 = vpop.f32.mrf.mxu3 }
 0x2d1   : > { %v4792_v40 = vpop.f32.mrf.mxu1 }
 0x2d2   : > { %v4969_v28 = vadd.f32 %v4968_v3, %v4880_v41  ;;  %v4793_v22 = vadd.f32 %v4792_v40, %v10543_v23  ;;  %v7418_v23 = vld [vmem:[%s9872_s7 + $0x5a8] sm:$0xf]  ;;  %v9274_v3 = vld [vmem:[%s9872_s7 + $0x664] sm:$0xf] }
 0x2d3   : > { %v5059_v45 = vpop.f32.mrf.mxu0  ;;  %v7419_v31 = vor.u32 %v9263_v5, %v7418_v23  ;;  %v7504_v40 = vld [vmem:[%s9872_s7 + $0x6c4] sm:$0xf0] }
 0x2d4   : > { %v10854_v32 = vadd.f32 %v5057_v52, %v4969_v28  ;;  %v7507_v25 = vor.u32 %v9274_v3, %v7504_v40  ;;  %v7610_v3 = vld [vmem:[%s9872_s7 + $0x730] sm:$0xf]  ;;  %v9312_v40 = vld [vmem:[%s9872_s7 + $0x790] sm:$0xf0] }
 0x2d7   : > { %v4881_v30 = vpop.f32.mrf.mxu2 }
 0x2d8   : > { %v4882_v7 = vadd.f32 %v4881_v30, %v4793_v22  ;;  %v4970_v51 = vpop.f32.mrf.mxu3  ;;  %v7510_v22 = vld [vmem:[%s9872_s7 + $0x668] sm:$0xf]  ;;  %v7515_v30 = vor.u32 %v9275_v12, %v7512_v19  ;;  %v9313_v12 = vld [vmem:[%s9872_s7 + $0x798] sm:$0xf0] }
 0x2d9   : > { %v4795_v57 = vpop.f32.mrf.mxu1 }
 0x2da   : > { %v4971_v10 = vadd.f32 %v4970_v51, %v4882_v7  ;;  %v4796_v50 = vadd.f32 %v4795_v57, %v10548_v15  ;;  %v7519_v7 = vor.u32 %v9288_v37, %v7518_v14  ;;  %v9584_v57 = vld [vmem:[%s11918_s1 + $0x390] sm:$0xff] }
 0x2db   : > { %v5062_v24 = vpop.f32.mrf.mxu0  ;;  %5517 = vmatpush.bf16.msra.mxu2 %v9584_v57 }
 0x2dc   : > { %5110 = vmatmul.bf16.gmra.mxu1 %v7407_v0  ;;  %5199 = vmatmul.bf16.gmra.mxu2 %v7411_v42  ;;  %v10863_v9 = vadd.f32 %v5059_v45, %v4971_v10  ;;  %v9287_v45 = vld [vmem:[%s9872_s7 + $0x6c8] sm:$0xf0] }
 0x2dd   : > { %5288 = vmatmul.bf16.gmra.mxu3 %v7415_v48  ;;  %v7511_v23 = vor.u32 %v9287_v45, %v7510_v22  ;;  %v9592_v48 = vld [vmem:[%s11918_s1 + $0x3d0] sm:$0xff]  ;;  %v7612_v45 = vld [vmem:[%s9872_s7 + $0x794] sm:$0xf0] }
 0x2de   : > { %5377 = vmatmul.bf16.gmra.mxu0 %v7419_v31  ;;  %5606 = vmatpush.bf16.msra.mxu3 %v9592_v48  ;;  %v9300_v22 = vld [vmem:[%s9872_s7 + $0x734] sm:$0xf] }
 0x2df   : > { %v4884_v11 = vpop.f32.mrf.mxu2 }
 0x2e0   : > { %v4885_v52 = vadd.f32 %v4884_v11, %v4796_v50  ;;  %v4973_v63 = vpop.f32.mrf.mxu3 }
 0x2e1   : > { %v4797_v59 = vpop.f32.mrf.mxu1 }
 0x2e2   : > { %v4974_v18 = vadd.f32 %v4973_v63, %v4885_v52  ;;  %v4798_v15 = vadd.f32 %v4797_v59, %v10557_v1  ;;  %v9576_v63 = vld [vmem:[%s11918_s1 + $0x350] sm:$0xff] }
 0x2e3   : > { %v5064_v41 = vpop.f32.mrf.mxu0  ;;  %v9600_v59 = vld [vmem:[%s11918_s1 + $0x410] sm:$0xff]  ;;  %5428 = vmatpush.bf16.msra.mxu1 %v9576_v63  ;;  %v9325_v63 = vld [vmem:[%s9872_s7 + $0x7fc] sm:$0xf] }
 0x2e4   : > { %v10868_v28 = vadd.f32 %v5062_v24, %v4974_v18  ;;  %v9299_v18 = vld [vmem:[%s9872_s7 + $0x72c] sm:$0xf]  ;;  %5695 = vmatpush.bf16.msra.mxu0 %v9600_v59  ;;  %v7712_v59 = vld [vmem:[%s9872_s7 + $0x85c] sm:$0xf0] }
 0x2e7   : > { %v4886_v4 = vpop.f32.mrf.mxu2 }
 0x2e8   : > { %v4887_v21 = vadd.f32 %v4886_v4, %v4798_v15  ;;  %v4975_v6 = vpop.f32.mrf.mxu3  ;;  %v7604_v15 = vld [vmem:[%s9872_s7 + $0x78c] sm:$0xf0] }
 0x2e9   : > { %v5076_v5 = vpop.f32.mrf.mxu1  ;;  %v7607_v4 = vor.u32 %v9299_v18, %v7604_v15  ;;  %v7718_v18 = vld [vmem:[%s9872_s7 + $0x800] sm:$0xf]  ;;  %v9338_v15 = vld [vmem:[%s9872_s7 + $0x860] sm:$0xf0] }
 0x2ea   : > { %v4976_v1 = vadd.f32 %v4975_v6, %v4887_v21  ;;  %v5077_v51 = vadd.f32 %v5076_v5, %v10574_v36  ;;  %v7611_v21 = vor.u32 %v9312_v40, %v7610_v3 }
 0x2eb   : > { %v5343_v0 = vpop.f32.mrf.mxu0 }
 0x2ec   : > { %5115 = vmatmul.bf16.gmra.mxu1 %v7507_v25  ;;  %5204 = vmatmul.bf16.gmra.mxu2 %v7511_v23  ;;  %v10877_v42 = vadd.f32 %v5064_v41, %v4976_v1  ;;  %v7615_v25 = vor.u32 %v9300_v22, %v7612_v45 }
 0x2ed   : > { %5293 = vmatmul.bf16.gmra.mxu3 %v7515_v30 }
 0x2ee   : > { %5382 = vmatmul.bf16.gmra.mxu0 %v7519_v7 }
 0x2ef   : > { %v5165_v31 = vpop.f32.mrf.mxu2 }
 0x2f0   : > { %v5166_v36 = vadd.f32 %v5165_v31, %v5077_v51  ;;  %v5254_v10 = vpop.f32.mrf.mxu3 }
 0x2f1   : > { %v5078_v50 = vpop.f32.mrf.mxu1 }
 0x2f2   : > { %v5255_v24 = vadd.f32 %v5254_v10, %v5166_v36  ;;  %v5079_v11 = vadd.f32 %v5078_v50, %v10583_v43  ;;  %v7618_v43 = vld [vmem:[%s9872_s7 + $0x738] sm:$0xf]  ;;  %v9324_v10 = vld [vmem:[%s9872_s7 + $0x7f4] sm:$0xf] }
 0x2f3   : > { %v5345_v52 = vpop.f32.mrf.mxu0  ;;  %v7619_v23 = vor.u32 %v9313_v12, %v7618_v43  ;;  %v7704_v50 = vld [vmem:[%s9872_s7 + $0x854] sm:$0xf0] }
 0x2f4   : > { %v10894_v41 = vadd.f32 %v5343_v0, %v5255_v24  ;;  %v7707_v45 = vor.u32 %v9324_v10, %v7704_v50  ;;  %v7810_v10 = vld [vmem:[%s9872_s7 + $0x8c0] sm:$0xf]  ;;  %v9362_v50 = vld [vmem:[%s9872_s7 + $0x920] sm:$0xf0] }
 0x2f7   : > { %v5167_v19 = vpop.f32.mrf.mxu2 }
 0x2f8   : > { %v5168_v14 = vadd.f32 %v5167_v19, %v5079_v11  ;;  %v5256_v37 = vpop.f32.mrf.mxu3  ;;  %v7710_v11 = vld [vmem:[%s9872_s7 + $0x7f8] sm:$0xf]  ;;  %v7715_v19 = vor.u32 %v9325_v63, %v7712_v59  ;;  %v9363_v63 = vld [vmem:[%s9872_s7 + $0x928] sm:$0xf0] }
 0x2f9   : > { %v5081_v6 = vpop.f32.mrf.mxu1 }
 0x2fa   : > { %v5257_v5 = vadd.f32 %v5256_v37, %v5168_v14  ;;  %v5082_v30 = vadd.f32 %v5081_v6, %v10588_v44  ;;  %v7719_v14 = vor.u32 %v9338_v15, %v7718_v18  ;;  %v9583_v6 = vld [vmem:[%s11918_s1 + $0x388] sm:$0xff] }
 0x2fb   : > { %v5348_v7 = vpop.f32.mrf.mxu0  ;;  %5518 = vmatpush.bf16.msra.mxu2 %v9583_v6 }
 0x2fc   : > { %5120 = vmatmul.bf16.gmra.mxu1 %v7607_v4  ;;  %5209 = vmatmul.bf16.gmra.mxu2 %v7611_v21  ;;  %v10903_v1 = vadd.f32 %v5345_v52, %v5257_v5  ;;  %v9337_v52 = vld [vmem:[%s9872_s7 + $0x858] sm:$0xf0] }
 0x2fd   : > { %5298 = vmatmul.bf16.gmra.mxu3 %v7615_v25  ;;  %v7711_v43 = vor.u32 %v9337_v52, %v7710_v11  ;;  %v9591_v25 = vld [vmem:[%s11918_s1 + $0x3c8] sm:$0xff]  ;;  %v9350_v11 = vld [vmem:[%s9872_s7 + $0x8c4] sm:$0xf] }
 0x2fe   : > { %5387 = vmatmul.bf16.gmra.mxu0 %v7619_v23  ;;  %5607 = vmatpush.bf16.msra.mxu3 %v9591_v25  ;;  %v7812_v52 = vld [vmem:[%s9872_s7 + $0x924] sm:$0xf0] }
 0x2ff   : > { %v5170_v51 = vpop.f32.mrf.mxu2 }
 0x300   : > { %v5171_v0 = vadd.f32 %v5170_v51, %v5082_v30  ;;  %v5259_v57 = vpop.f32.mrf.mxu3 }
 0x301   : > { %v5083_v48 = vpop.f32.mrf.mxu1 }
 0x302   : > { %v5260_v31 = vadd.f32 %v5259_v57, %v5171_v0  ;;  %v5084_v44 = vadd.f32 %v5083_v48, %v10597_v33  ;;  %v9575_v57 = vld [vmem:[%s11918_s1 + $0x348] sm:$0xff] }
 0x303   : > { %v5350_v36 = vpop.f32.mrf.mxu0  ;;  %v9599_v48 = vld [vmem:[%s11918_s1 + $0x408] sm:$0xff]  ;;  %5429 = vmatpush.bf16.msra.mxu1 %v9575_v57 }
 0x304   : > { %v10908_v24 = vadd.f32 %v5348_v7, %v5260_v31  ;;  %v9349_v31 = vld [vmem:[%s9872_s7 + $0x8bc] sm:$0xf]  ;;  %5696 = vmatpush.bf16.msra.mxu0 %v9599_v48  ;;  %v9375_v57 = vld [vmem:[%s9872_s7 + $0x98c] sm:$0xf]  ;;  %v7912_v48 = vld [vmem:[%s9872_s7 + $0x9ec] sm:$0xf0] }
 0x307   : > { %v5172_v3 = vpop.f32.mrf.mxu2 }
 0x308   : > { %v5173_v40 = vadd.f32 %v5172_v3, %v5084_v44  ;;  %v5261_v22 = vpop.f32.mrf.mxu3  ;;  %v7804_v44 = vld [vmem:[%s9872_s7 + $0x91c] sm:$0xf0] }
 0x309   : > { %v5086_v12 = vpop.f32.mrf.mxu1  ;;  %v7807_v3 = vor.u32 %v9349_v31, %v7804_v44  ;;  %v7918_v31 = vld [vmem:[%s9872_s7 + $0x990] sm:$0xf]  ;;  %v9388_v44 = vld [vmem:[%s9872_s7 + $0x9f0] sm:$0xf0] }
 0x30a   : > { %v5262_v33 = vadd.f32 %v5261_v22, %v5173_v40  ;;  %v5087_v37 = vadd.f32 %v5086_v12, %v10614_v13  ;;  %v7811_v40 = vor.u32 %v9362_v50, %v7810_v10 }
 0x30b   : > { %v5353_v4 = vpop.f32.mrf.mxu0 }
 0x30c   : > { %5125 = vmatmul.bf16.gmra.mxu1 %v7707_v45  ;;  %5214 = vmatmul.bf16.gmra.mxu2 %v7711_v43  ;;  %v10917_v21 = vadd.f32 %v5350_v36, %v5262_v33  ;;  %v7815_v45 = vor.u32 %v9350_v11, %v7812_v52 }
 0x30d   : > { %5303 = vmatmul.bf16.gmra.mxu3 %v7715_v19 }
 0x30e   : > { %5392 = vmatmul.bf16.gmra.mxu0 %v7719_v14 }
 0x30f   : > { %v5175_v23 = vpop.f32.mrf.mxu2 }
 0x310   : > { %v5176_v13 = vadd.f32 %v5175_v23, %v5087_v37  ;;  %v5264_v5 = vpop.f32.mrf.mxu3 }
 0x311   : > { %v5088_v30 = vpop.f32.mrf.mxu1 }
 0x312   : > { %v5265_v7 = vadd.f32 %v5264_v5, %v5176_v13  ;;  %v5089_v51 = vadd.f32 %v5088_v30, %v10623_v47  ;;  %v7818_v47 = vld [vmem:[%s9872_s7 + $0x8c8] sm:$0xf]  ;;  %v9374_v5 = vld [vmem:[%s9872_s7 + $0x984] sm:$0xf] }
 0x313   : > { %v5355_v0 = vpop.f32.mrf.mxu0  ;;  %v7819_v43 = vor.u32 %v9363_v63, %v7818_v47  ;;  %v7904_v30 = vld [vmem:[%s9872_s7 + $0x9e4] sm:$0xf0] }
 0x314   : > { %v10934_v36 = vadd.f32 %v5353_v4, %v5265_v7  ;;  %v7907_v52 = vor.u32 %v9374_v5, %v7904_v30  ;;  %v8010_v5 = vld [vmem:[%s9872_s7 + $0xa50] sm:$0xf]  ;;  %v9412_v30 = vld [vmem:[%s9872_s7 + $0xab0] sm:$0xf0] }
 0x317   : > { %v5177_v59 = vpop.f32.mrf.mxu2 }
 0x318   : > { %v5178_v18 = vadd.f32 %v5177_v59, %v5089_v51  ;;  %v5266_v15 = vpop.f32.mrf.mxu3  ;;  %v7910_v51 = vld [vmem:[%s9872_s7 + $0x988] sm:$0xf]  ;;  %v7915_v59 = vor.u32 %v9375_v57, %v7912_v48  ;;  %v9413_v57 = vld [vmem:[%s9872_s7 + $0xab8] sm:$0xf0] }
 0x319   : > { %v5091_v22 = vpop.f32.mrf.mxu1 }
 0x31a   : > { %v5267_v12 = vadd.f32 %v5266_v15, %v5178_v18  ;;  %v5092_v19 = vadd.f32 %v5091_v22, %v10628_v38  ;;  %v7919_v18 = vor.u32 %v9388_v44, %v7918_v31  ;;  %v9582_v22 = vld [vmem:[%s11918_s1 + $0x380] sm:$0xff] }
 0x31b   : > { %v5358_v14 = vpop.f32.mrf.mxu0  ;;  %5519 = vmatpush.bf16.msra.mxu2 %v9582_v22 }
 0x31c   : > { %5130 = vmatmul.bf16.gmra.mxu1 %v7807_v3  ;;  %5219 = vmatmul.bf16.gmra.mxu2 %v7811_v40  ;;  %v10943_v33 = vadd.f32 %v5355_v0, %v5267_v12  ;;  %v9387_v0 = vld [vmem:[%s9872_s7 + $0x9e8] sm:$0xf0] }
 0x31d   : > { %5308 = vmatmul.bf16.gmra.mxu3 %v7815_v45  ;;  %v7911_v47 = vor.u32 %v9387_v0, %v7910_v51  ;;  %v9590_v45 = vld [vmem:[%s11918_s1 + $0x3c0] sm:$0xff]  ;;  %v9400_v51 = vld [vmem:[%s9872_s7 + $0xa54] sm:$0xf]  ;;  %v8012_v0 = vld [vmem:[%s9872_s7 + $0xab4] sm:$0xf0] }
 0x31e   : > { %5397 = vmatmul.bf16.gmra.mxu0 %v7819_v43  ;;  %5608 = vmatpush.bf16.msra.mxu3 %v9590_v45 }
 0x31f   : > { %v5180_v37 = vpop.f32.mrf.mxu2 }
 0x320   : > { %v5181_v4 = vadd.f32 %v5180_v37, %v5092_v19  ;;  %v5269_v6 = vpop.f32.mrf.mxu3 }
 0x321   : > { %v5093_v25 = vpop.f32.mrf.mxu1 }
 0x322   : > { %v5270_v23 = vadd.f32 %v5269_v6, %v5181_v4  ;;  %v5094_v38 = vadd.f32 %v5093_v25, %v10637_v20  ;;  %v9574_v6 = vld [vmem:[%s11918_s1 + $0x340] sm:$0xff] }
 0x323   : > { %v5360_v13 = vpop.f32.mrf.mxu0  ;;  %v9598_v25 = vld [vmem:[%s11918_s1 + $0x400] sm:$0xff]  ;;  %5430 = vmatpush.bf16.msra.mxu1 %v9574_v6  ;;  %v9425_v6 = vld [vmem:[%s9872_s7 + $0xb1c] sm:$0xf] }
 0x324   : > { %v10948_v7 = vadd.f32 %v5358_v14, %v5270_v23  ;;  %v9399_v23 = vld [vmem:[%s9872_s7 + $0xa4c] sm:$0xf]  ;;  %5697 = vmatpush.bf16.msra.mxu0 %v9598_v25  ;;  %v8112_v25 = vld [vmem:[%s9872_s7 + $0xb7c] sm:$0xf0] }
 0x327   : > { %v5182_v10 = vpop.f32.mrf.mxu2 }
 0x328   : > { %v5183_v50 = vadd.f32 %v5182_v10, %v5094_v38  ;;  %v5271_v11 = vpop.f32.mrf.mxu3  ;;  %v8004_v38 = vld [vmem:[%s9872_s7 + $0xaac] sm:$0xf0] }
 0x329   : > { %v5096_v63 = vpop.f32.mrf.mxu1  ;;  %v8007_v10 = vor.u32 %v9399_v23, %v8004_v38  ;;  %v8118_v23 = vld [vmem:[%s9872_s7 + $0xb20] sm:$0xf]  ;;  %v9438_v38 = vld [vmem:[%s9872_s7 + $0xb80] sm:$0xf0] }
 0x32a   : > { %v5272_v20 = vadd.f32 %v5271_v11, %v5183_v50  ;;  %v5097_v15 = vadd.f32 %v5096_v63, %v10654_v2  ;;  %v8011_v50 = vor.u32 %v9412_v30, %v8010_v5 }
 0x32b   : > { %v5363_v3 = vpop.f32.mrf.mxu0 }
 0x32c   : > { %5135 = vmatmul.bf16.gmra.mxu1 %v7907_v52  ;;  %5224 = vmatmul.bf16.gmra.mxu2 %v7911_v47  ;;  %v10957_v40 = vadd.f32 %v5360_v13, %v5272_v20  ;;  %v8015_v52 = vor.u32 %v9400_v51, %v8012_v0 }
 0x32d   : > { %5313 = vmatmul.bf16.gmra.mxu3 %v7915_v59 }
 0x32e   : > { %5402 = vmatmul.bf16.gmra.mxu0 %v7919_v18 }
 0x32f   : > { %v5185_v43 = vpop.f32.mrf.mxu2 }
 0x330   : > { %v5186_v2 = vadd.f32 %v5185_v43, %v5097_v15  ;;  %v5274_v12 = vpop.f32.mrf.mxu3 }
 0x331   : > { %v5098_v19 = vpop.f32.mrf.mxu1 }
 0x332   : > { %v5275_v14 = vadd.f32 %v5274_v12, %v5186_v2  ;;  %v5099_v37 = vadd.f32 %v5098_v19, %v10663_v29  ;;  %v8018_v29 = vld [vmem:[%s9872_s7 + $0xa58] sm:$0xf]  ;;  %v9424_v12 = vld [vmem:[%s9872_s7 + $0xb14] sm:$0xf] }
 0x333   : > { %v5365_v4 = vpop.f32.mrf.mxu0  ;;  %v8019_v47 = vor.u32 %v9413_v57, %v8018_v29  ;;  %v8104_v19 = vld [vmem:[%s9872_s7 + $0xb74] sm:$0xf0] }
 0x334   : > { %v10974_v13 = vadd.f32 %v5363_v3, %v5275_v14  ;;  %v8107_v0 = vor.u32 %v9424_v12, %v8104_v19  ;;  %v8210_v12 = vld [vmem:[%s9872_s7 + $0xbe0] sm:$0xf]  ;;  %v9462_v19 = vld [vmem:[%s9872_s7 + $0xc40] sm:$0xf0] }
 0x337   : > { %v5187_v48 = vpop.f32.mrf.mxu2 }
 0x338   : > { %v5188_v31 = vadd.f32 %v5187_v48, %v5099_v37  ;;  %v5276_v44 = vpop.f32.mrf.mxu3  ;;  %v8110_v37 = vld [vmem:[%s9872_s7 + $0xb18] sm:$0xf]  ;;  %v8115_v48 = vor.u32 %v9425_v6, %v8112_v25  ;;  %v9463_v6 = vld [vmem:[%s9872_s7 + $0xc48] sm:$0xf0] }
 0x339   : > { %v5101_v11 = vpop.f32.mrf.mxu1 }
 0x33a   : > { %v5277_v63 = vadd.f32 %v5276_v44, %v5188_v31  ;;  %v5102_v59 = vadd.f32 %v5101_v11, %v10668_v56  ;;  %v8119_v31 = vor.u32 %v9438_v38, %v8118_v23  ;;  %v9621_v11 = vld [vmem:[%s11918_s1 + $0x4b8] sm:$0xff] }
 0x33b   : > { %v5368_v18 = vpop.f32.mrf.mxu0  ;;  %5868 = vmatpush.bf16.msrb.mxu2 %v9621_v11 }
 0x33c   : > { %5140 = vmatmul.bf16.gmra.mxu1 %v8007_v10  ;;  %5229 = vmatmul.bf16.gmra.mxu2 %v8011_v50  ;;  %v10983_v20 = vadd.f32 %v5365_v4, %v5277_v63  ;;  %v9437_v4 = vld [vmem:[%s9872_s7 + $0xb78] sm:$0xf0] }
 0x33d   : > { %5318 = vmatmul.bf16.gmra.mxu3 %v8015_v52  ;;  %v8111_v29 = vor.u32 %v9437_v4, %v8110_v37  ;;  %v9629_v52 = vld [vmem:[%s11918_s1 + $0x4f8] sm:$0xff]  ;;  %v9450_v37 = vld [vmem:[%s9872_s7 + $0xbe4] sm:$0xf]  ;;  %v8212_v4 = vld [vmem:[%s9872_s7 + $0xc44] sm:$0xf0] }
 0x33e   : > { %5407 = vmatmul.bf16.gmra.mxu0 %v8019_v47  ;;  %5957 = vmatpush.bf16.msrb.mxu3 %v9629_v52 }
 0x33f   : > { %v5190_v15 = vpop.f32.mrf.mxu2 }
 0x340   : > { %v5191_v3 = vadd.f32 %v5190_v15, %v5102_v59  ;;  %v5279_v22 = vpop.f32.mrf.mxu3 }
 0x341   : > { %v5103_v45 = vpop.f32.mrf.mxu1 }
 0x342   : > { %v5280_v43 = vadd.f32 %v5279_v22, %v5191_v3  ;;  %v5104_v56 = vadd.f32 %v5103_v45, %v10677_v62  ;;  %v9613_v22 = vld [vmem:[%s11918_s1 + $0x478] sm:$0xff] }
 0x343   : > { %v5370_v2 = vpop.f32.mrf.mxu0  ;;  %v9637_v45 = vld [vmem:[%s11918_s1 + $0x538] sm:$0xff]  ;;  %5779 = vmatpush.bf16.msrb.mxu1 %v9613_v22 }
 0x344   : > { %v10988_v14 = vadd.f32 %v5368_v18, %v5280_v43  ;;  %v9449_v43 = vld [vmem:[%s9872_s7 + $0xbdc] sm:$0xf]  ;;  %6046 = vmatpush.bf16.msrb.mxu0 %v9637_v45  ;;  %v6728_v45 = vld [vmem:[%s9872_s7 + $0x9c] sm:$0xf0] }
 0x345   : > { %v9077_v22 = vld [vmem:[%s9872_s7 + $0x3c] sm:$0xf] }
 0x347   : > { %v5192_v5 = vpop.f32.mrf.mxu2 }
 0x348   : > { %v5193_v30 = vadd.f32 %v5192_v5, %v5104_v56  ;;  %v5281_v51 = vpop.f32.mrf.mxu3  ;;  %v8204_v56 = vld [vmem:[%s9872_s7 + $0xc3c] sm:$0xf0] }
 0x349   : > { %v5106_v57 = vpop.f32.mrf.mxu1  ;;  %v8207_v5 = vor.u32 %v9449_v43, %v8204_v56  ;;  %v6734_v43 = vld [vmem:[%s9872_s7 + $0x40] sm:$0xf]  ;;  %v9090_v56 = vld [vmem:[%s9872_s7 + $0xa0] sm:$0xf0] }
 0x34a   : > { %v5282_v62 = vadd.f32 %v5281_v51, %v5193_v30  ;;  %v5107_v44 = vadd.f32 %v5106_v57, %v10694_v53  ;;  %v8211_v30 = vor.u32 %v9462_v19, %v8210_v12 }
 0x34b   : > { %v5373_v10 = vpop.f32.mrf.mxu0 }
 0x34c   : > { %5145 = vmatmul.bf16.gmra.mxu1 %v8107_v0  ;;  %5234 = vmatmul.bf16.gmra.mxu2 %v8111_v29  ;;  %v10997_v50 = vadd.f32 %v5370_v2, %v5282_v62  ;;  %v8215_v0 = vor.u32 %v9450_v37, %v8212_v4 }
 0x34d   : > { %5323 = vmatmul.bf16.gmra.mxu3 %v8115_v48 }
 0x34e   : > { %5412 = vmatmul.bf16.gmra.mxu0 %v8119_v31 }
 0x34f   : > { %v5195_v47 = vpop.f32.mrf.mxu2 }
 0x350   : > { %v5196_v53 = vadd.f32 %v5195_v47, %v5107_v44  ;;  %v5284_v63 = vpop.f32.mrf.mxu3 }
 0x351   : > { %v5108_v59 = vpop.f32.mrf.mxu1 }
 0x352   : > { %v5285_v18 = vadd.f32 %v5284_v63, %v5196_v53  ;;  %v5109_v15 = vadd.f32 %v5108_v59, %v10703_v17  ;;  %v8218_v17 = vld [vmem:[%s9872_s7 + $0xbe8] sm:$0xf]  ;;  %v9076_v63 = vld [vmem:[%s9872_s7 + $0x34] sm:$0xf]  ;;  %v6720_v59 = vld [vmem:[%s9872_s7 + $0x94] sm:$0xf0] }
 0x353   : > { %v5375_v3 = vpop.f32.mrf.mxu0  ;;  %v8219_v29 = vor.u32 %v9463_v6, %v8218_v17  ;;  %v6723_v4 = vor.u32 %v9076_v63, %v6720_v59  ;;  %v6826_v63 = vld [vmem:[%s9872_s7 + $0x100] sm:$0xf]  ;;  %v9114_v59 = vld [vmem:[%s9872_s7 + $0x160] sm:$0xf0] }
 0x354   : > { %v11014_v2 = vadd.f32 %v5373_v10, %v5285_v18 }
 0x357   : > { %v5197_v25 = vpop.f32.mrf.mxu2 }
 0x358   : > { %v5198_v23 = vadd.f32 %v5197_v25, %v5109_v15  ;;  %v5286_v38 = vpop.f32.mrf.mxu3  ;;  %v6726_v15 = vld [vmem:[%s9872_s7 + $0x38] sm:$0xf]  ;;  %v6731_v25 = vor.u32 %v9077_v22, %v6728_v45  ;;  %v9115_v22 = vld [vmem:[%s9872_s7 + $0x168] sm:$0xf0] }
 0x359   : > { %v5111_v51 = vpop.f32.mrf.mxu1 }
 0x35a   : > { %v5287_v57 = vadd.f32 %v5286_v38, %v5198_v23  ;;  %v5112_v48 = vadd.f32 %v5111_v51, %v10708_v55  ;;  %v6735_v23 = vor.u32 %v9090_v56, %v6734_v43  ;;  %v9620_v51 = vld [vmem:[%s11918_s1 + $0x4b0] sm:$0xff] }
 0x35b   : > { %v5378_v31 = vpop.f32.mrf.mxu0  ;;  %5869 = vmatpush.bf16.msrb.mxu2 %v9620_v51 }
 0x35c   : > { %5150 = vmatmul.bf16.gmra.mxu1 %v8207_v5  ;;  %5239 = vmatmul.bf16.gmra.mxu2 %v8211_v30  ;;  %v11023_v62 = vadd.f32 %v5375_v3, %v5287_v57  ;;  %v9089_v3 = vld [vmem:[%s9872_s7 + $0x98] sm:$0xf0] }
 0x35d   : > { %5328 = vmatmul.bf16.gmra.mxu3 %v8215_v0  ;;  %v6727_v17 = vor.u32 %v9089_v3, %v6726_v15  ;;  %v9628_v0 = vld [vmem:[%s11918_s1 + $0x4f0] sm:$0xff]  ;;  %v9102_v15 = vld [vmem:[%s9872_s7 + $0x104] sm:$0xf]  ;;  %v6828_v3 = vld [vmem:[%s9872_s7 + $0x164] sm:$0xf0] }
 0x35e   : > { %5417 = vmatmul.bf16.gmra.mxu0 %v8219_v29  ;;  %5958 = vmatpush.bf16.msrb.mxu3 %v9628_v0 }
 0x35f   : > { %v5200_v44 = vpop.f32.mrf.mxu2 }
 0x360   : > { %v5201_v10 = vadd.f32 %v5200_v44, %v5112_v48  ;;  %v5289_v11 = vpop.f32.mrf.mxu3 }
 0x361   : > { %v5113_v52 = vpop.f32.mrf.mxu1 }
 0x362   : > { %v5290_v47 = vadd.f32 %v5289_v11, %v5201_v10  ;;  %v5114_v55 = vadd.f32 %v5113_v52, %v10717_v49  ;;  %v9612_v11 = vld [vmem:[%s11918_s1 + $0x470] sm:$0xff] }
 0x363   : > { %v5380_v53 = vpop.f32.mrf.mxu0  ;;  %v9636_v52 = vld [vmem:[%s11918_s1 + $0x530] sm:$0xff]  ;;  %5780 = vmatpush.bf16.msrb.mxu1 %v9612_v11  ;;  %v9127_v11 = vld [vmem:[%s9872_s7 + $0x1cc] sm:$0xf] }
 0x364   : > { %v11028_v18 = vadd.f32 %v5378_v31, %v5290_v47  ;;  %v9101_v47 = vld [vmem:[%s9872_s7 + $0xfc] sm:$0xf]  ;;  %6047 = vmatpush.bf16.msrb.mxu0 %v9636_v52  ;;  %v6928_v52 = vld [vmem:[%s9872_s7 + $0x22c] sm:$0xf0] }
 0x367   : > { %v5202_v12 = vpop.f32.mrf.mxu2 }
 0x368   : > { %v5203_v19 = vadd.f32 %v5202_v12, %v5114_v55  ;;  %v5291_v37 = vpop.f32.mrf.mxu3  ;;  %v6820_v55 = vld [vmem:[%s9872_s7 + $0x15c] sm:$0xf0] }
 0x369   : > { %v5116_v6 = vpop.f32.mrf.mxu1  ;;  %v6823_v12 = vor.u32 %v9101_v47, %v6820_v55  ;;  %v6934_v47 = vld [vmem:[%s9872_s7 + $0x1d0] sm:$0xf]  ;;  %v9140_v55 = vld [vmem:[%s9872_s7 + $0x230] sm:$0xf0] }
 0x36a   : > { %v5292_v49 = vadd.f32 %v5291_v37, %v5203_v19  ;;  %v5117_v38 = vadd.f32 %v5116_v6, %v10734_v34  ;;  %v6827_v19 = vor.u32 %v9114_v59, %v6826_v63 }
 0x36b   : > { %v5383_v5 = vpop.f32.mrf.mxu0 }
 0x36c   : > { %5431 = vmatmul.bf16.vlgmr.msra.gmra.mxu1 %v6723_v4  ;;  %5520 = vmatmul.bf16.vlgmr.msra.gmra.mxu2 %v6727_v17  ;;  %v11037_v30 = vadd.f32 %v5380_v53, %v5292_v49  ;;  %v6831_v4 = vor.u32 %v9102_v15, %v6828_v3 }
 0x36d   : > { %5609 = vmatmul.bf16.vlgmr.msra.gmra.mxu3 %v6731_v25 }
 0x36e   : > { %5698 = vmatmul.bf16.vlgmr.msra.gmra.mxu0 %v6735_v23 }
 0x36f   : > { %v5205_v29 = vpop.f32.mrf.mxu2 }
 0x370   : > { %v5206_v34 = vadd.f32 %v5205_v29, %v5117_v38  ;;  %v5294_v57 = vpop.f32.mrf.mxu3 }
 0x371   : > { %v5118_v48 = vpop.f32.mrf.mxu1 }
 0x372   : > { %v5295_v31 = vadd.f32 %v5294_v57, %v5206_v34  ;;  %v5119_v44 = vadd.f32 %v5118_v48, %v10743_v58  ;;  %v6834_v58 = vld [vmem:[%s9872_s7 + $0x108] sm:$0xf]  ;;  %v9126_v57 = vld [vmem:[%s9872_s7 + $0x1c4] sm:$0xf] }
 0x373   : > { %v5385_v10 = vpop.f32.mrf.mxu0  ;;  %v6835_v17 = vor.u32 %v9115_v22, %v6834_v58  ;;  %v6920_v48 = vld [vmem:[%s9872_s7 + $0x224] sm:$0xf0] }
 0x374   : > { %v11054_v53 = vadd.f32 %v5383_v5, %v5295_v31  ;;  %v6923_v3 = vor.u32 %v9126_v57, %v6920_v48  ;;  %v7026_v57 = vld [vmem:[%s9872_s7 + $0x290] sm:$0xf]  ;;  %v9164_v48 = vld [vmem:[%s9872_s7 + $0x2f0] sm:$0xf0] }
 0x377   : > { %v5207_v45 = vpop.f32.mrf.mxu2 }
 0x378   : > { %v5208_v43 = vadd.f32 %v5207_v45, %v5119_v44  ;;  %v5296_v56 = vpop.f32.mrf.mxu3  ;;  %v6926_v44 = vld [vmem:[%s9872_s7 + $0x1c8] sm:$0xf]  ;;  %v6931_v45 = vor.u32 %v9127_v11, %v6928_v52  ;;  %v9165_v11 = vld [vmem:[%s9872_s7 + $0x2f8] sm:$0xf0] }
 0x379   : > { %v5121_v37 = vpop.f32.mrf.mxu1 }
 0x37a   : > { %v5297_v6 = vadd.f32 %v5296_v56, %v5208_v43  ;;  %v5122_v25 = vadd.f32 %v5121_v37, %v10748_v60  ;;  %v6935_v43 = vor.u32 %v9140_v55, %v6934_v47  ;;  %v9619_v37 = vld [vmem:[%s11918_s1 + $0x4a8] sm:$0xff] }
 0x37b   : > { %v5388_v23 = vpop.f32.mrf.mxu0  ;;  %5870 = vmatpush.bf16.msrb.mxu2 %v9619_v37 }
 0x37c   : > { %5436 = vmatmul.bf16.gmra.mxu1 %v6823_v12  ;;  %5525 = vmatmul.bf16.gmra.mxu2 %v6827_v19  ;;  %v11063_v49 = vadd.f32 %v5385_v10, %v5297_v6  ;;  %v9139_v10 = vld [vmem:[%s9872_s7 + $0x228] sm:$0xf0] }
 0x37d   : > { %5614 = vmatmul.bf16.gmra.mxu3 %v6831_v4  ;;  %v6927_v58 = vor.u32 %v9139_v10, %v6926_v44  ;;  %v9627_v4 = vld [vmem:[%s11918_s1 + $0x4e8] sm:$0xff]  ;;  %v9152_v44 = vld [vmem:[%s9872_s7 + $0x294] sm:$0xf]  ;;  %v7028_v10 = vld [vmem:[%s9872_s7 + $0x2f4] sm:$0xf0] }
 0x37e   : > { %5703 = vmatmul.bf16.gmra.mxu0 %v6835_v17  ;;  %5959 = vmatpush.bf16.msrb.mxu3 %v9627_v4 }
 0x37f   : > { %v5210_v38 = vpop.f32.mrf.mxu2 }
 0x380   : > { %v5211_v5 = vadd.f32 %v5210_v38, %v5122_v25  ;;  %v5299_v51 = vpop.f32.mrf.mxu3 }
 0x381   : > { %v5123_v0 = vpop.f32.mrf.mxu1 }
 0x382   : > { %v5300_v29 = vadd.f32 %v5299_v51, %v5211_v5  ;;  %v5124_v60 = vadd.f32 %v5123_v0, %v10757_v26  ;;  %v9611_v51 = vld [vmem:[%s11918_s1 + $0x468] sm:$0xff] }
 0x383   : > { %v5390_v34 = vpop.f32.mrf.mxu0  ;;  %v9635_v0 = vld [vmem:[%s11918_s1 + $0x528] sm:$0xff]  ;;  %5781 = vmatpush.bf16.msrb.mxu1 %v9611_v51  ;;  %v9177_v51 = vld [vmem:[%s9872_s7 + $0x35c] sm:$0xf] }
 0x384   : > { %v11068_v31 = vadd.f32 %v5388_v23, %v5300_v29  ;;  %v9151_v29 = vld [vmem:[%s9872_s7 + $0x28c] sm:$0xf]  ;;  %6048 = vmatpush.bf16.msrb.mxu0 %v9635_v0  ;;  %v7128_v0 = vld [vmem:[%s9872_s7 + $0x3bc] sm:$0xf0] }
 0x387   : > { %v5212_v63 = vpop.f32.mrf.mxu2 }
 0x388   : > { %v5213_v59 = vadd.f32 %v5212_v63, %v5124_v60  ;;  %v5301_v15 = vpop.f32.mrf.mxu3  ;;  %v7020_v60 = vld [vmem:[%s9872_s7 + $0x2ec] sm:$0xf0] }
 0x389   : > { %v5126_v22 = vpop.f32.mrf.mxu1  ;;  %v7023_v63 = vor.u32 %v9151_v29, %v7020_v60  ;;  %v7134_v29 = vld [vmem:[%s9872_s7 + $0x360] sm:$0xf]  ;;  %v9190_v60 = vld [vmem:[%s9872_s7 + $0x3c0] sm:$0xf0] }
 0x38a   : > { %v5302_v26 = vadd.f32 %v5301_v15, %v5213_v59  ;;  %v5127_v56 = vadd.f32 %v5126_v22, %v10774_v27  ;;  %v7027_v59 = vor.u32 %v9164_v48, %v7026_v57 }
 0x38b   : > { %v5393_v12 = vpop.f32.mrf.mxu0 }
 0x38c   : > { %5441 = vmatmul.bf16.gmra.mxu1 %v6923_v3  ;;  %5530 = vmatmul.bf16.gmra.mxu2 %v6927_v58  ;;  %v11077_v19 = vadd.f32 %v5390_v34, %v5302_v26  ;;  %v7031_v3 = vor.u32 %v9152_v44, %v7028_v10 }
 0x38d   : > { %5619 = vmatmul.bf16.gmra.mxu3 %v6931_v45 }
 0x38e   : > { %5708 = vmatmul.bf16.gmra.mxu0 %v6935_v43 }
 0x38f   : > { %v5215_v17 = vpop.f32.mrf.mxu2 }
 0x390   : > { %v5216_v27 = vadd.f32 %v5215_v17, %v5127_v56  ;;  %v5304_v6 = vpop.f32.mrf.mxu3 }
 0x391   : > { %v5128_v25 = vpop.f32.mrf.mxu1 }
 0x392   : > { %v5305_v23 = vadd.f32 %v5304_v6, %v5216_v27  ;;  %v5129_v38 = vadd.f32 %v5128_v25, %v10783_v46  ;;  %v7034_v46 = vld [vmem:[%s9872_s7 + $0x298] sm:$0xf]  ;;  %v9176_v6 = vld [vmem:[%s9872_s7 + $0x354] sm:$0xf] }
 0x393   : > { %v5395_v5 = vpop.f32.mrf.mxu0  ;;  %v7035_v58 = vor.u32 %v9165_v11, %v7034_v46  ;;  %v7120_v25 = vld [vmem:[%s9872_s7 + $0x3b4] sm:$0xf0] }
 0x394   : > { %v11094_v34 = vadd.f32 %v5393_v12, %v5305_v23  ;;  %v7123_v10 = vor.u32 %v9176_v6, %v7120_v25  ;;  %v7226_v6 = vld [vmem:[%s9872_s7 + $0x420] sm:$0xf]  ;;  %v9214_v25 = vld [vmem:[%s9872_s7 + $0x480] sm:$0xf0] }
 0x397   : > { %v5217_v52 = vpop.f32.mrf.mxu2 }
 0x398   : > { %v5218_v47 = vadd.f32 %v5217_v52, %v5129_v38  ;;  %v5306_v55 = vpop.f32.mrf.mxu3  ;;  %v7126_v38 = vld [vmem:[%s9872_s7 + $0x358] sm:$0xf]  ;;  %v7131_v52 = vor.u32 %v9177_v51, %v7128_v0  ;;  %v9215_v51 = vld [vmem:[%s9872_s7 + $0x488] sm:$0xf0] }
 0x399   : > { %v5131_v15 = vpop.f32.mrf.mxu1 }
 0x39a   : > { %v5307_v22 = vadd.f32 %v5306_v55, %v5218_v47  ;;  %v5132_v45 = vadd.f32 %v5131_v15, %v10788_v61  ;;  %v7135_v47 = vor.u32 %v9190_v60, %v7134_v29  ;;  %v9618_v15 = vld [vmem:[%s11918_s1 + $0x4a0] sm:$0xff] }
 0x39b   : > { %v5398_v43 = vpop.f32.mrf.mxu0  ;;  %5871 = vmatpush.bf16.msrb.mxu2 %v9618_v15 }
 0x39c   : > { %5446 = vmatmul.bf16.gmra.mxu1 %v7023_v63  ;;  %5535 = vmatmul.bf16.gmra.mxu2 %v7027_v59  ;;  %v11103_v26 = vadd.f32 %v5395_v5, %v5307_v22  ;;  %v9189_v5 = vld [vmem:[%s9872_s7 + $0x3b8] sm:$0xf0] }
 0x39d   : > { %5624 = vmatmul.bf16.gmra.mxu3 %v7031_v3  ;;  %v7127_v46 = vor.u32 %v9189_v5, %v7126_v38  ;;  %v9626_v3 = vld [vmem:[%s11918_s1 + $0x4e0] sm:$0xff]  ;;  %v7228_v5 = vld [vmem:[%s9872_s7 + $0x484] sm:$0xf0] }
 0x39e   : > { %5713 = vmatmul.bf16.gmra.mxu0 %v7035_v58  ;;  %5960 = vmatpush.bf16.msrb.mxu3 %v9626_v3  ;;  %v9202_v38 = vld [vmem:[%s9872_s7 + $0x424] sm:$0xf] }
 0x39f   : > { %v5220_v56 = vpop.f32.mrf.mxu2 }
 0x3a0   : > { %v5221_v12 = vadd.f32 %v5220_v56, %v5132_v45  ;;  %v5309_v37 = vpop.f32.mrf.mxu3 }
 0x3a1   : > { %v5133_v4 = vpop.f32.mrf.mxu1 }
 0x3a2   : > { %v5310_v17 = vadd.f32 %v5309_v37, %v5221_v12  ;;  %v5134_v61 = vadd.f32 %v5133_v4, %v10797_v16  ;;  %v9610_v37 = vld [vmem:[%s11918_s1 + $0x460] sm:$0xff] }
 0x3a3   : > { %v5400_v27 = vpop.f32.mrf.mxu0  ;;  %v9634_v4 = vld [vmem:[%s11918_s1 + $0x520] sm:$0xff]  ;;  %5782 = vmatpush.bf16.msrb.mxu1 %v9610_v37  ;;  %v9227_v37 = vld [vmem:[%s9872_s7 + $0x4ec] sm:$0xf] }
 0x3a4   : > { %v11108_v23 = vadd.f32 %v5398_v43, %v5310_v17  ;;  %v9201_v17 = vld [vmem:[%s9872_s7 + $0x41c] sm:$0xf]  ;;  %6049 = vmatpush.bf16.msrb.mxu0 %v9634_v4  ;;  %v7328_v4 = vld [vmem:[%s9872_s7 + $0x54c] sm:$0xf0] }
 0x3a7   : > { %v5222_v57 = vpop.f32.mrf.mxu2 }
 0x3a8   : > { %v5223_v48 = vadd.f32 %v5222_v57, %v5134_v61  ;;  %v5311_v44 = vpop.f32.mrf.mxu3  ;;  %v7220_v61 = vld [vmem:[%s9872_s7 + $0x47c] sm:$0xf0] }
 0x3a9   : > { %v5136_v11 = vpop.f32.mrf.mxu1  ;;  %v7223_v57 = vor.u32 %v9201_v17, %v7220_v61  ;;  %v7334_v17 = vld [vmem:[%s9872_s7 + $0x4f0] sm:$0xf]  ;;  %v9240_v61 = vld [vmem:[%s9872_s7 + $0x550] sm:$0xf0] }
 0x3aa   : > { %v5312_v16 = vadd.f32 %v5311_v44, %v5223_v48  ;;  %v5137_v55 = vadd.f32 %v5136_v11, %v10814_v39  ;;  %v7227_v48 = vor.u32 %v9214_v25, %v7226_v6 }
 0x3ab   : > { %v5403_v63 = vpop.f32.mrf.mxu0 }
 0x3ac   : > { %5451 = vmatmul.bf16.gmra.mxu1 %v7123_v10  ;;  %5540 = vmatmul.bf16.gmra.mxu2 %v7127_v46  ;;  %v11117_v59 = vadd.f32 %v5400_v27, %v5312_v16  ;;  %v7231_v10 = vor.u32 %v9202_v38, %v7228_v5 }
 0x3ad   : > { %5629 = vmatmul.bf16.gmra.mxu3 %v7131_v52 }
 0x3ae   : > { %5718 = vmatmul.bf16.gmra.mxu0 %v7135_v47 }
 0x3af   : > { %v5225_v58 = vpop.f32.mrf.mxu2 }
 0x3b0   : > { %v5226_v39 = vadd.f32 %v5225_v58, %v5137_v55  ;;  %v5314_v22 = vpop.f32.mrf.mxu3 }
 0x3b1   : > { %v5138_v45 = vpop.f32.mrf.mxu1 }
 0x3b2   : > { %v5315_v43 = vadd.f32 %v5314_v22, %v5226_v39  ;;  %v5139_v56 = vadd.f32 %v5138_v45, %v10823_v8  ;;  %v7234_v8 = vld [vmem:[%s9872_s7 + $0x428] sm:$0xf]  ;;  %v9226_v22 = vld [vmem:[%s9872_s7 + $0x4e4] sm:$0xf] }
 0x3b3   : > { %v5405_v12 = vpop.f32.mrf.mxu0  ;;  %v7235_v46 = vor.u32 %v9215_v51, %v7234_v8  ;;  %v7320_v45 = vld [vmem:[%s9872_s7 + $0x544] sm:$0xf0] }
 0x3b4   : > { %v11134_v27 = vadd.f32 %v5403_v63, %v5315_v43  ;;  %v7323_v5 = vor.u32 %v9226_v22, %v7320_v45  ;;  %v7426_v22 = vld [vmem:[%s9872_s7 + $0x5b0] sm:$0xf]  ;;  %v9264_v45 = vld [vmem:[%s9872_s7 + $0x610] sm:$0xf0] }
 0x3b7   : > { %v5227_v0 = vpop.f32.mrf.mxu2 }
 0x3b8   : > { %v5228_v29 = vadd.f32 %v5227_v0, %v5139_v56  ;;  %v5316_v60 = vpop.f32.mrf.mxu3  ;;  %v7326_v56 = vld [vmem:[%s9872_s7 + $0x4e8] sm:$0xf]  ;;  %v7331_v0 = vor.u32 %v9227_v37, %v7328_v4  ;;  %v9265_v37 = vld [vmem:[%s9872_s7 + $0x618] sm:$0xf0] }
 0x3b9   : > { %v5141_v44 = vpop.f32.mrf.mxu1 }
 0x3ba   : > { %v5317_v11 = vadd.f32 %v5316_v60, %v5228_v29  ;;  %v5142_v52 = vadd.f32 %v5141_v44, %v10828_v35  ;;  %v7335_v29 = vor.u32 %v9240_v61, %v7334_v17  ;;  %v9617_v44 = vld [vmem:[%s11918_s1 + $0x498] sm:$0xff] }
 0x3bb   : > { %v5408_v47 = vpop.f32.mrf.mxu0  ;;  %5872 = vmatpush.bf16.msrb.mxu2 %v9617_v44 }
 0x3bc   : > { %5456 = vmatmul.bf16.gmra.mxu1 %v7223_v57  ;;  %5545 = vmatmul.bf16.gmra.mxu2 %v7227_v48  ;;  %v11143_v16 = vadd.f32 %v5405_v12, %v5317_v11  ;;  %v9239_v12 = vld [vmem:[%s9872_s7 + $0x548] sm:$0xf0] }
 0x3bd   : > { %5634 = vmatmul.bf16.gmra.mxu3 %v7231_v10  ;;  %v7327_v8 = vor.u32 %v9239_v12, %v7326_v56  ;;  %v9625_v10 = vld [vmem:[%s11918_s1 + $0x4d8] sm:$0xff]  ;;  %v9252_v56 = vld [vmem:[%s9872_s7 + $0x5b4] sm:$0xf] }
 0x3be   : > { %5723 = vmatmul.bf16.gmra.mxu0 %v7235_v46  ;;  %5961 = vmatpush.bf16.msrb.mxu3 %v9625_v10  ;;  %v7428_v12 = vld [vmem:[%s9872_s7 + $0x614] sm:$0xf0] }
 0x3bf   : > { %v5230_v55 = vpop.f32.mrf.mxu2 }
 0x3c0   : > { %v5231_v63 = vadd.f32 %v5230_v55, %v5142_v52  ;;  %v5319_v15 = vpop.f32.mrf.mxu3 }
 0x3c1   : > { %v5143_v3 = vpop.f32.mrf.mxu1 }
 0x3c2   : > { %v5320_v58 = vadd.f32 %v5319_v15, %v5231_v63  ;;  %v5144_v35 = vadd.f32 %v5143_v3, %v10837_v54  ;;  %v9609_v15 = vld [vmem:[%s11918_s1 + $0x458] sm:$0xff] }
 0x3c3   : > { %v5410_v39 = vpop.f32.mrf.mxu0  ;;  %v9633_v3 = vld [vmem:[%s11918_s1 + $0x518] sm:$0xff]  ;;  %5783 = vmatpush.bf16.msrb.mxu1 %v9609_v15 }
 0x3c4   : > { %v11148_v43 = vadd.f32 %v5408_v47, %v5320_v58  ;;  %v9251_v58 = vld [vmem:[%s9872_s7 + $0x5ac] sm:$0xf]  ;;  %6050 = vmatpush.bf16.msrb.mxu0 %v9633_v3  ;;  %v9277_v15 = vld [vmem:[%s9872_s7 + $0x67c] sm:$0xf]  ;;  %v7528_v3 = vld [vmem:[%s9872_s7 + $0x6dc] sm:$0xf0] }
 0x3c7   : > { %v5232_v6 = vpop.f32.mrf.mxu2 }
 0x3c8   : > { %v5233_v25 = vadd.f32 %v5232_v6, %v5144_v35  ;;  %v5321_v38 = vpop.f32.mrf.mxu3  ;;  %v7420_v35 = vld [vmem:[%s9872_s7 + $0x60c] sm:$0xf0] }
 0x3c9   : > { %v5146_v51 = vpop.f32.mrf.mxu1  ;;  %v7423_v6 = vor.u32 %v9251_v58, %v7420_v35  ;;  %v7534_v58 = vld [vmem:[%s9872_s7 + $0x680] sm:$0xf]  ;;  %v9290_v35 = vld [vmem:[%s9872_s7 + $0x6e0] sm:$0xf0] }
 0x3ca   : > { %v5322_v54 = vadd.f32 %v5321_v38, %v5233_v25  ;;  %v5147_v60 = vadd.f32 %v5146_v51, %v10854_v32  ;;  %v7427_v25 = vor.u32 %v9264_v45, %v7426_v22 }
 0x3cb   : > { %v5413_v57 = vpop.f32.mrf.mxu0 }
 0x3cc   : > { %5461 = vmatmul.bf16.gmra.mxu1 %v7323_v5  ;;  %5550 = vmatmul.bf16.gmra.mxu2 %v7327_v8  ;;  %v11157_v48 = vadd.f32 %v5410_v39, %v5322_v54  ;;  %v7431_v5 = vor.u32 %v9252_v56, %v7428_v12 }
 0x3cd   : > { %5639 = vmatmul.bf16.gmra.mxu3 %v7331_v0 }
 0x3ce   : > { %5728 = vmatmul.bf16.gmra.mxu0 %v7335_v29 }
 0x3cf   : > { %v5235_v46 = vpop.f32.mrf.mxu2 }
 0x3d0   : > { %v5236_v32 = vadd.f32 %v5235_v46, %v5147_v60  ;;  %v5324_v11 = vpop.f32.mrf.mxu3 }
 0x3d1   : > { %v5148_v52 = vpop.f32.mrf.mxu1 }
 0x3d2   : > { %v5325_v47 = vadd.f32 %v5324_v11, %v5236_v32  ;;  %v5149_v55 = vadd.f32 %v5148_v52, %v10863_v9  ;;  %v7434_v9 = vld [vmem:[%s9872_s7 + $0x5b8] sm:$0xf]  ;;  %v9276_v11 = vld [vmem:[%s9872_s7 + $0x674] sm:$0xf] }
 0x3d3   : > { %v5415_v63 = vpop.f32.mrf.mxu0  ;;  %v7435_v8 = vor.u32 %v9265_v37, %v7434_v9  ;;  %v7520_v52 = vld [vmem:[%s9872_s7 + $0x6d4] sm:$0xf0] }
 0x3d4   : > { %v11174_v39 = vadd.f32 %v5413_v57, %v5325_v47  ;;  %v7523_v12 = vor.u32 %v9276_v11, %v7520_v52  ;;  %v7626_v11 = vld [vmem:[%s9872_s7 + $0x740] sm:$0xf]  ;;  %v9314_v52 = vld [vmem:[%s9872_s7 + $0x7a0] sm:$0xf0] }
 0x3d7   : > { %v5237_v4 = vpop.f32.mrf.mxu2 }
 0x3d8   : > { %v5238_v17 = vadd.f32 %v5237_v4, %v5149_v55  ;;  %v5326_v61 = vpop.f32.mrf.mxu3  ;;  %v7526_v55 = vld [vmem:[%s9872_s7 + $0x678] sm:$0xf]  ;;  %v7531_v4 = vor.u32 %v9277_v15, %v7528_v3  ;;  %v9315_v15 = vld [vmem:[%s9872_s7 + $0x7a8] sm:$0xf0] }
 0x3d9   : > { %v5151_v38 = vpop.f32.mrf.mxu1 }
 0x3da   : > { %v5327_v51 = vadd.f32 %v5326_v61, %v5238_v17  ;;  %v5152_v0 = vadd.f32 %v5151_v38, %v10868_v28  ;;  %v7535_v17 = vor.u32 %v9290_v35, %v7534_v58  ;;  %v9616_v38 = vld [vmem:[%s11918_s1 + $0x490] sm:$0xff] }
 0x3db   : > { %v5418_v29 = vpop.f32.mrf.mxu0  ;;  %5873 = vmatpush.bf16.msrb.mxu2 %v9616_v38 }
 0x3dc   : > { %5466 = vmatmul.bf16.gmra.mxu1 %v7423_v6  ;;  %5555 = vmatmul.bf16.gmra.mxu2 %v7427_v25  ;;  %v11183_v54 = vadd.f32 %v5415_v63, %v5327_v51  ;;  %v9289_v63 = vld [vmem:[%s9872_s7 + $0x6d8] sm:$0xf0] }
 0x3dd   : > { %5644 = vmatmul.bf16.gmra.mxu3 %v7431_v5  ;;  %v7527_v9 = vor.u32 %v9289_v63, %v7526_v55  ;;  %v9624_v5 = vld [vmem:[%s11918_s1 + $0x4d0] sm:$0xff]  ;;  %v9302_v55 = vld [vmem:[%s9872_s7 + $0x744] sm:$0xf]  ;;  %v7628_v63 = vld [vmem:[%s9872_s7 + $0x7a4] sm:$0xf0] }
 0x3de   : > { %5733 = vmatmul.bf16.gmra.mxu0 %v7435_v8  ;;  %5962 = vmatpush.bf16.msrb.mxu3 %v9624_v5 }
 0x3df   : > { %v5240_v60 = vpop.f32.mrf.mxu2 }
 0x3e0   : > { %v5241_v57 = vadd.f32 %v5240_v60, %v5152_v0  ;;  %v5329_v44 = vpop.f32.mrf.mxu3 }
 0x3e1   : > { %v5153_v10 = vpop.f32.mrf.mxu1 }
 0x3e2   : > { %v5330_v46 = vadd.f32 %v5329_v44, %v5241_v57  ;;  %v5154_v28 = vadd.f32 %v5153_v10, %v10877_v42  ;;  %v9608_v44 = vld [vmem:[%s11918_s1 + $0x450] sm:$0xff] }
 0x3e3   : > { %v5420_v32 = vpop.f32.mrf.mxu0  ;;  %v9632_v10 = vld [vmem:[%s11918_s1 + $0x510] sm:$0xff]  ;;  %5784 = vmatpush.bf16.msrb.mxu1 %v9608_v44  ;;  %v9327_v44 = vld [vmem:[%s9872_s7 + $0x80c] sm:$0xf] }
 0x3e4   : > { %v11188_v47 = vadd.f32 %v5418_v29, %v5330_v46  ;;  %v9301_v46 = vld [vmem:[%s9872_s7 + $0x73c] sm:$0xf]  ;;  %6051 = vmatpush.bf16.msrb.mxu0 %v9632_v10  ;;  %v7728_v10 = vld [vmem:[%s9872_s7 + $0x86c] sm:$0xf0] }
 0x3e7   : > { %v5242_v22 = vpop.f32.mrf.mxu2 }
 0x3e8   : > { %v5243_v45 = vadd.f32 %v5242_v22, %v5154_v28  ;;  %v5331_v56 = vpop.f32.mrf.mxu3  ;;  %v7620_v28 = vld [vmem:[%s9872_s7 + $0x79c] sm:$0xf0] }
 0x3e9   : > { %v5432_v37 = vpop.f32.mrf.mxu1  ;;  %v7623_v22 = vor.u32 %v9301_v46, %v7620_v28  ;;  %v7734_v46 = vld [vmem:[%s9872_s7 + $0x810] sm:$0xf]  ;;  %v9340_v28 = vld [vmem:[%s9872_s7 + $0x870] sm:$0xf0] }
 0x3ea   : > { %v5332_v42 = vadd.f32 %v5331_v56, %v5243_v45  ;;  %v5433_v61 = vadd.f32 %v5432_v37, %v10894_v41  ;;  %v7627_v45 = vor.u32 %v9314_v52, %v7626_v11 }
 0x3eb   : > { %v5699_v6 = vpop.f32.mrf.mxu0 }
 0x3ec   : > { %5471 = vmatmul.bf16.gmra.mxu1 %v7523_v12  ;;  %5560 = vmatmul.bf16.gmra.mxu2 %v7527_v9  ;;  %v11197_v25 = vadd.f32 %v5420_v32, %v5332_v42  ;;  %v7631_v12 = vor.u32 %v9302_v55, %v7628_v63 }
 0x3ed   : > { %5649 = vmatmul.bf16.gmra.mxu3 %v7531_v4 }
 0x3ee   : > { %5738 = vmatmul.bf16.gmra.mxu0 %v7535_v17 }
 0x3ef   : > { %v5521_v8 = vpop.f32.mrf.mxu2 }
 0x3f0   : > { %v5522_v41 = vadd.f32 %v5521_v8, %v5433_v61  ;;  %v5610_v51 = vpop.f32.mrf.mxu3 }
 0x3f1   : > { %v5434_v0 = vpop.f32.mrf.mxu1 }
 0x3f2   : > { %v5611_v29 = vadd.f32 %v5610_v51, %v5522_v41  ;;  %v5435_v60 = vadd.f32 %v5434_v0, %v10903_v1  ;;  %v7634_v1 = vld [vmem:[%s9872_s7 + $0x748] sm:$0xf]  ;;  %v9326_v51 = vld [vmem:[%s9872_s7 + $0x804] sm:$0xf] }
 0x3f3   : > { %v5701_v57 = vpop.f32.mrf.mxu0  ;;  %v7635_v9 = vor.u32 %v9315_v15, %v7634_v1  ;;  %v7720_v0 = vld [vmem:[%s9872_s7 + $0x864] sm:$0xf0] }
 0x3f4   : > { %v11214_v32 = vadd.f32 %v5699_v6, %v5611_v29  ;;  %v7723_v63 = vor.u32 %v9326_v51, %v7720_v0  ;;  %v7826_v51 = vld [vmem:[%s9872_s7 + $0x8d0] sm:$0xf]  ;;  %v9364_v0 = vld [vmem:[%s9872_s7 + $0x930] sm:$0xf0] }
 0x3f7   : > { %v5523_v3 = vpop.f32.mrf.mxu2 }
 0x3f8   : > { %v5524_v58 = vadd.f32 %v5523_v3, %v5435_v60  ;;  %v5612_v35 = vpop.f32.mrf.mxu3  ;;  %v7726_v60 = vld [vmem:[%s9872_s7 + $0x808] sm:$0xf]  ;;  %v7731_v3 = vor.u32 %v9327_v44, %v7728_v10  ;;  %v9365_v44 = vld [vmem:[%s9872_s7 + $0x938] sm:$0xf0] }
 0x3f9   : > { %v5437_v56 = vpop.f32.mrf.mxu1 }
 0x3fa   : > { %v5613_v37 = vadd.f32 %v5612_v35, %v5524_v58  ;;  %v5438_v4 = vadd.f32 %v5437_v56, %v10908_v24  ;;  %v7735_v58 = vor.u32 %v9340_v28, %v7734_v46  ;;  %v9615_v56 = vld [vmem:[%s11918_s1 + $0x488] sm:$0xff] }
 0x3fb   : > { %v5704_v17 = vpop.f32.mrf.mxu0  ;;  %5874 = vmatpush.bf16.msrb.mxu2 %v9615_v56 }
 0x3fc   : > { %5476 = vmatmul.bf16.gmra.mxu1 %v7623_v22  ;;  %5565 = vmatmul.bf16.gmra.mxu2 %v7627_v45  ;;  %v11223_v42 = vadd.f32 %v5701_v57, %v5613_v37  ;;  %v9339_v57 = vld [vmem:[%s9872_s7 + $0x868] sm:$0xf0] }
 0x3fd   : > { %5654 = vmatmul.bf16.gmra.mxu3 %v7631_v12  ;;  %v7727_v1 = vor.u32 %v9339_v57, %v7726_v60  ;;  %v9623_v12 = vld [vmem:[%s11918_s1 + $0x4c8] sm:$0xff]  ;;  %v9352_v60 = vld [vmem:[%s9872_s7 + $0x8d4] sm:$0xf]  ;;  %v7828_v57 = vld [vmem:[%s9872_s7 + $0x934] sm:$0xf0] }
 0x3fe   : > { %5743 = vmatmul.bf16.gmra.mxu0 %v7635_v9  ;;  %5963 = vmatpush.bf16.msrb.mxu3 %v9623_v12 }
 0x3ff   : > { %v5526_v61 = vpop.f32.mrf.mxu2 }
 0x400   : > { %v5527_v6 = vadd.f32 %v5526_v61, %v5438_v4  ;;  %v5615_v38 = vpop.f32.mrf.mxu3 }
 0x401   : > { %v5439_v5 = vpop.f32.mrf.mxu1 }
 0x402   : > { %v5616_v8 = vadd.f32 %v5615_v38, %v5527_v6  ;;  %v5440_v24 = vadd.f32 %v5439_v5, %v10917_v21  ;;  %v9607_v38 = vld [vmem:[%s11918_s1 + $0x448] sm:$0xff] }
 0x403   : > { %v5706_v41 = vpop.f32.mrf.mxu0  ;;  %v9631_v5 = vld [vmem:[%s11918_s1 + $0x508] sm:$0xff]  ;;  %5785 = vmatpush.bf16.msrb.mxu1 %v9607_v38  ;;  %v9377_v38 = vld [vmem:[%s9872_s7 + $0x99c] sm:$0xf] }
 0x404   : > { %v11228_v29 = vadd.f32 %v5704_v17, %v5616_v8  ;;  %v9351_v8 = vld [vmem:[%s9872_s7 + $0x8cc] sm:$0xf]  ;;  %6052 = vmatpush.bf16.msrb.mxu0 %v9631_v5  ;;  %v7928_v5 = vld [vmem:[%s9872_s7 + $0x9fc] sm:$0xf0] }
 0x407   : > { %v5528_v11 = vpop.f32.mrf.mxu2 }
 0x408   : > { %v5529_v52 = vadd.f32 %v5528_v11, %v5440_v24  ;;  %v5617_v55 = vpop.f32.mrf.mxu3  ;;  %v7820_v24 = vld [vmem:[%s9872_s7 + $0x92c] sm:$0xf0] }
 0x409   : > { %v5442_v15 = vpop.f32.mrf.mxu1  ;;  %v7823_v11 = vor.u32 %v9351_v8, %v7820_v24  ;;  %v7934_v8 = vld [vmem:[%s9872_s7 + $0x9a0] sm:$0xf]  ;;  %v9390_v24 = vld [vmem:[%s9872_s7 + $0xa00] sm:$0xf0] }
 0x40a   : > { %v5618_v21 = vadd.f32 %v5617_v55, %v5529_v52  ;;  %v5443_v35 = vadd.f32 %v5442_v15, %v10934_v36  ;;  %v7827_v52 = vor.u32 %v9364_v0, %v7826_v51 }
 0x40b   : > { %v5709_v22 = vpop.f32.mrf.mxu0 }
 0x40c   : > { %5481 = vmatmul.bf16.gmra.mxu1 %v7723_v63  ;;  %5570 = vmatmul.bf16.gmra.mxu2 %v7727_v1  ;;  %v11237_v45 = vadd.f32 %v5706_v41, %v5618_v21  ;;  %v7831_v63 = vor.u32 %v9352_v60, %v7828_v57 }
 0x40d   : > { %5659 = vmatmul.bf16.gmra.mxu3 %v7731_v3 }
 0x40e   : > { %5748 = vmatmul.bf16.gmra.mxu0 %v7735_v58 }
 0x40f   : > { %v5531_v9 = vpop.f32.mrf.mxu2 }
 0x410   : > { %v5532_v36 = vadd.f32 %v5531_v9, %v5443_v35  ;;  %v5620_v37 = vpop.f32.mrf.mxu3 }
 0x411   : > { %v5444_v4 = vpop.f32.mrf.mxu1 }
 0x412   : > { %v5621_v17 = vadd.f32 %v5620_v37, %v5532_v36  ;;  %v5445_v61 = vadd.f32 %v5444_v4, %v10943_v33  ;;  %v7834_v33 = vld [vmem:[%s9872_s7 + $0x8d8] sm:$0xf]  ;;  %v9376_v37 = vld [vmem:[%s9872_s7 + $0x994] sm:$0xf] }
 0x413   : > { %v5711_v6 = vpop.f32.mrf.mxu0  ;;  %v7835_v1 = vor.u32 %v9365_v44, %v7834_v33  ;;  %v7920_v4 = vld [vmem:[%s9872_s7 + $0x9f4] sm:$0xf0] }
 0x414   : > { %v11254_v41 = vadd.f32 %v5709_v22, %v5621_v17  ;;  %v7923_v57 = vor.u32 %v9376_v37, %v7920_v4  ;;  %v8026_v37 = vld [vmem:[%s9872_s7 + $0xa60] sm:$0xf]  ;;  %v9414_v4 = vld [vmem:[%s9872_s7 + $0xac0] sm:$0xf0] }
 0x417   : > { %v5533_v10 = vpop.f32.mrf.mxu2 }
 0x418   : > { %v5534_v46 = vadd.f32 %v5533_v10, %v5445_v61  ;;  %v5622_v28 = vpop.f32.mrf.mxu3  ;;  %v7926_v61 = vld [vmem:[%s9872_s7 + $0x998] sm:$0xf]  ;;  %v7931_v10 = vor.u32 %v9377_v38, %v7928_v5  ;;  %v9415_v38 = vld [vmem:[%s9872_s7 + $0xac8] sm:$0xf0] }
 0x419   : > { %v5447_v55 = vpop.f32.mrf.mxu1 }
 0x41a   : > { %v5623_v15 = vadd.f32 %v5622_v28, %v5534_v46  ;;  %v5448_v3 = vadd.f32 %v5447_v55, %v10948_v7  ;;  %v7935_v46 = vor.u32 %v9390_v24, %v7934_v8  ;;  %v9614_v55 = vld [vmem:[%s11918_s1 + $0x480] sm:$0xff] }
 0x41b   : > { %v5714_v58 = vpop.f32.mrf.mxu0  ;;  %5875 = vmatpush.bf16.msrb.mxu2 %v9614_v55 }
 0x41c   : > { %5486 = vmatmul.bf16.gmra.mxu1 %v7823_v11  ;;  %5575 = vmatmul.bf16.gmra.mxu2 %v7827_v52  ;;  %v11263_v21 = vadd.f32 %v5711_v6, %v5623_v15  ;;  %v9389_v6 = vld [vmem:[%s9872_s7 + $0x9f8] sm:$0xf0] }
 0x41d   : > { %5664 = vmatmul.bf16.gmra.mxu3 %v7831_v63  ;;  %v7927_v33 = vor.u32 %v9389_v6, %v7926_v61  ;;  %v9622_v63 = vld [vmem:[%s11918_s1 + $0x4c0] sm:$0xff]  ;;  %v8028_v6 = vld [vmem:[%s9872_s7 + $0xac4] sm:$0xf0] }
 0x41e   : > { %5753 = vmatmul.bf16.gmra.mxu0 %v7835_v1  ;;  %5964 = vmatpush.bf16.msrb.mxu3 %v9622_v63  ;;  %v9402_v61 = vld [vmem:[%s9872_s7 + $0xa64] sm:$0xf] }
 0x41f   : > { %v5536_v35 = vpop.f32.mrf.mxu2 }
 0x420   : > { %v5537_v22 = vadd.f32 %v5536_v35, %v5448_v3  ;;  %v5625_v56 = vpop.f32.mrf.mxu3 }
 0x421   : > { %v5449_v12 = vpop.f32.mrf.mxu1 }
 0x422   : > { %v5626_v9 = vadd.f32 %v5625_v56, %v5537_v22  ;;  %v5450_v7 = vadd.f32 %v5449_v12, %v10957_v40  ;;  %v9606_v56 = vld [vmem:[%s11918_s1 + $0x440] sm:$0xff] }
 0x423   : > { %v5716_v36 = vpop.f32.mrf.mxu0  ;;  %v9630_v12 = vld [vmem:[%s11918_s1 + $0x500] sm:$0xff]  ;;  %5786 = vmatpush.bf16.msrb.mxu1 %v9606_v56  ;;  %v9427_v56 = vld [vmem:[%s9872_s7 + $0xb2c] sm:$0xf] }
 0x424   : > { %v11268_v17 = vadd.f32 %v5714_v58, %v5626_v9  ;;  %v9401_v9 = vld [vmem:[%s9872_s7 + $0xa5c] sm:$0xf]  ;;  %6053 = vmatpush.bf16.msrb.mxu0 %v9630_v12  ;;  %v8128_v12 = vld [vmem:[%s9872_s7 + $0xb8c] sm:$0xf0] }
 0x427   : > { %v5538_v51 = vpop.f32.mrf.mxu2 }
 0x428   : > { %v5539_v0 = vadd.f32 %v5538_v51, %v5450_v7  ;;  %v5627_v60 = vpop.f32.mrf.mxu3  ;;  %v8020_v7 = vld [vmem:[%s9872_s7 + $0xabc] sm:$0xf0] }
 0x429   : > { %v5452_v44 = vpop.f32.mrf.mxu1  ;;  %v8023_v51 = vor.u32 %v9401_v9, %v8020_v7  ;;  %v8134_v9 = vld [vmem:[%s9872_s7 + $0xb30] sm:$0xf]  ;;  %v9440_v7 = vld [vmem:[%s9872_s7 + $0xb90] sm:$0xf0] }
 0x42a   : > { %v5628_v40 = vadd.f32 %v5627_v60, %v5539_v0  ;;  %v5453_v28 = vadd.f32 %v5452_v44, %v10974_v13  ;;  %v8027_v0 = vor.u32 %v9414_v4, %v8026_v37 }
 0x42b   : > { %v5719_v11 = vpop.f32.mrf.mxu0 }
 0x42c   : > { %5491 = vmatmul.bf16.gmra.mxu1 %v7923_v57  ;;  %5580 = vmatmul.bf16.gmra.mxu2 %v7927_v33  ;;  %v11277_v52 = vadd.f32 %v5716_v36, %v5628_v40  ;;  %v8031_v57 = vor.u32 %v9402_v61, %v8028_v6 }
 0x42d   : > { %5669 = vmatmul.bf16.gmra.mxu3 %v7931_v10 }
 0x42e   : > { %5758 = vmatmul.bf16.gmra.mxu0 %v7935_v46 }
 0x42f   : > { %v5541_v1 = vpop.f32.mrf.mxu2 }
 0x430   : > { %v5542_v13 = vadd.f32 %v5541_v1, %v5453_v28  ;;  %v5630_v15 = vpop.f32.mrf.mxu3 }
 0x431   : > { %v5454_v3 = vpop.f32.mrf.mxu1 }
 0x432   : > { %v5631_v58 = vadd.f32 %v5630_v15, %v5542_v13  ;;  %v5455_v35 = vadd.f32 %v5454_v3, %v10983_v20  ;;  %v8034_v20 = vld [vmem:[%s9872_s7 + $0xa68] sm:$0xf]  ;;  %v9426_v15 = vld [vmem:[%s9872_s7 + $0xb24] sm:$0xf] }
 0x433   : > { %v5721_v22 = vpop.f32.mrf.mxu0  ;;  %v8035_v33 = vor.u32 %v9415_v38, %v8034_v20  ;;  %v8120_v3 = vld [vmem:[%s9872_s7 + $0xb84] sm:$0xf0] }
 0x434   : > { %v11294_v36 = vadd.f32 %v5719_v11, %v5631_v58  ;;  %v8123_v6 = vor.u32 %v9426_v15, %v8120_v3  ;;  %v8226_v15 = vld [vmem:[%s9872_s7 + $0xbf0] sm:$0xf]  ;;  %v9464_v3 = vld [vmem:[%s9872_s7 + $0xc50] sm:$0xf0] }
 0x437   : > { %v5543_v5 = vpop.f32.mrf.mxu2 }
 0x438   : > { %v5544_v8 = vadd.f32 %v5543_v5, %v5455_v35  ;;  %v5632_v24 = vpop.f32.mrf.mxu3  ;;  %v8126_v35 = vld [vmem:[%s9872_s7 + $0xb28] sm:$0xf]  ;;  %v8131_v5 = vor.u32 %v9427_v56, %v8128_v12  ;;  %v9465_v56 = vld [vmem:[%s9872_s7 + $0xc58] sm:$0xf0] }
 0x439   : > { %v5457_v60 = vpop.f32.mrf.mxu1 }
 0x43a   : > { %v5633_v44 = vadd.f32 %v5632_v24, %v5544_v8  ;;  %v5458_v10 = vadd.f32 %v5457_v60, %v10988_v14  ;;  %v8135_v8 = vor.u32 %v9440_v7, %v8134_v9  ;;  %v9653_v60 = vld [vmem:[%s11918_s1 + $0x5b8] sm:$0xff] }
 0x43b   : > { %v5724_v46 = vpop.f32.mrf.mxu0  ;;  %6224 = vmatpush.bf16.msra.mxu2 %v9653_v60 }
 0x43c   : > { %5496 = vmatmul.bf16.gmra.mxu1 %v8023_v51  ;;  %5585 = vmatmul.bf16.gmra.mxu2 %v8027_v0  ;;  %v11303_v40 = vadd.f32 %v5721_v22, %v5633_v44  ;;  %v9439_v22 = vld [vmem:[%s9872_s7 + $0xb88] sm:$0xf0] }
 0x43d   : > { %5674 = vmatmul.bf16.gmra.mxu3 %v8031_v57  ;;  %v8127_v20 = vor.u32 %v9439_v22, %v8126_v35  ;;  %v9661_v57 = vld [vmem:[%s11918_s1 + $0x5f8] sm:$0xff]  ;;  %v9452_v35 = vld [vmem:[%s9872_s7 + $0xbf4] sm:$0xf] }
 0x43e   : > { %5763 = vmatmul.bf16.gmra.mxu0 %v8035_v33  ;;  %6313 = vmatpush.bf16.msra.mxu3 %v9661_v57  ;;  %v8228_v22 = vld [vmem:[%s9872_s7 + $0xc54] sm:$0xf0] }
 0x43f   : > { %v5546_v28 = vpop.f32.mrf.mxu2 }
 0x440   : > { %v5547_v11 = vadd.f32 %v5546_v28, %v5458_v10  ;;  %v5635_v55 = vpop.f32.mrf.mxu3 }
 0x441   : > { %v5459_v63 = vpop.f32.mrf.mxu1 }
 0x442   : > { %v5636_v1 = vadd.f32 %v5635_v55, %v5547_v11  ;;  %v5460_v14 = vadd.f32 %v5459_v63, %v10997_v50  ;;  %v9645_v55 = vld [vmem:[%s11918_s1 + $0x578] sm:$0xff] }
 0x443   : > { %v5726_v13 = vpop.f32.mrf.mxu0  ;;  %v9665_v63 = vld [vmem:[%s11918_s1 + $0x618] sm:$0xff]  ;;  %6135 = vmatpush.bf16.msra.mxu1 %v9645_v55  ;;  %v9079_v55 = vld [vmem:[%s9872_s7 + $0x4c] sm:$0xf] }
 0x444   : > { %v11308_v58 = vadd.f32 %v5724_v46, %v5636_v1  ;;  %v9451_v1 = vld [vmem:[%s9872_s7 + $0xbec] sm:$0xf]  ;;  %6406 = vmatpush.bf16.msra.mxu0 %v9665_v63  ;;  %v6744_v63 = vld [vmem:[%s9872_s7 + $0xac] sm:$0xf0] }
 0x447   : > { %v5548_v37 = vpop.f32.mrf.mxu2 }
 0x448   : > { %v5549_v4 = vadd.f32 %v5548_v37, %v5460_v14  ;;  %v5637_v61 = vpop.f32.mrf.mxu3  ;;  %v8220_v14 = vld [vmem:[%s9872_s7 + $0xc4c] sm:$0xf0] }
 0x449   : > { %v5462_v38 = vpop.f32.mrf.mxu1  ;;  %v8223_v37 = vor.u32 %v9451_v1, %v8220_v14  ;;  %v6750_v1 = vld [vmem:[%s9872_s7 + $0x50] sm:$0xf]  ;;  %v9092_v14 = vld [vmem:[%s9872_s7 + $0xb0] sm:$0xf0] }
 0x44a   : > { %v5638_v50 = vadd.f32 %v5637_v61, %v5549_v4  ;;  %v5463_v24 = vadd.f32 %v5462_v38, %v11014_v2  ;;  %v8227_v4 = vor.u32 %v9464_v3, %v8226_v15 }
 0x44b   : > { %v5729_v51 = vpop.f32.mrf.mxu0 }
 0x44c   : > { %5501 = vmatmul.bf16.gmra.mxu1 %v8123_v6  ;;  %5590 = vmatmul.bf16.gmra.mxu2 %v8127_v20  ;;  %v11317_v0 = vadd.f32 %v5726_v13, %v5638_v50  ;;  %v8231_v6 = vor.u32 %v9452_v35, %v8228_v22 }
 0x44d   : > { %5679 = vmatmul.bf16.gmra.mxu3 %v8131_v5 }
 0x44e   : > { %5768 = vmatmul.bf16.gmra.mxu0 %v8135_v8 }
 0x44f   : > { %v5551_v33 = vpop.f32.mrf.mxu2 }
 0x450   : > { %v5552_v2 = vadd.f32 %v5551_v33, %v5463_v24  ;;  %v5640_v44 = vpop.f32.mrf.mxu3 }
 0x451   : > { %v5464_v10 = vpop.f32.mrf.mxu1 }
 0x452   : > { %v5641_v46 = vadd.f32 %v5640_v44, %v5552_v2  ;;  %v5465_v28 = vadd.f32 %v5464_v10, %v11023_v62  ;;  %v8234_v62 = vld [vmem:[%s9872_s7 + $0xbf8] sm:$0xf]  ;;  %v9078_v44 = vld [vmem:[%s9872_s7 + $0x44] sm:$0xf]  ;;  %v6736_v10 = vld [vmem:[%s9872_s7 + $0xa4] sm:$0xf0] }
 0x453   : > { %v5731_v11 = vpop.f32.mrf.mxu0  ;;  %v8235_v20 = vor.u32 %v9465_v56, %v8234_v62  ;;  %v6739_v22 = vor.u32 %v9078_v44, %v6736_v10  ;;  %v9116_v44 = vld [vmem:[%s9872_s7 + $0x170] sm:$0xf0] }
 0x454   : > { %v11334_v13 = vadd.f32 %v5729_v51, %v5641_v46  ;;  %v9104_v10 = vld [vmem:[%s9872_s7 + $0x114] sm:$0xf] }
 0x457   : > { %v5553_v12 = vpop.f32.mrf.mxu2 }
 0x458   : > { %v5554_v9 = vadd.f32 %v5553_v12, %v5465_v28  ;;  %v5642_v7 = vpop.f32.mrf.mxu3  ;;  %v6742_v28 = vld [vmem:[%s9872_s7 + $0x48] sm:$0xf]  ;;  %v6747_v12 = vor.u32 %v9079_v55, %v6744_v63  ;;  %v9117_v55 = vld [vmem:[%s9872_s7 + $0x178] sm:$0xf0] }
 0x459   : > { %v5467_v61 = vpop.f32.mrf.mxu1 }
 0x45a   : > { %v5643_v38 = vadd.f32 %v5642_v7, %v5554_v9  ;;  %v5468_v5 = vadd.f32 %v5467_v61, %v11028_v18  ;;  %v6751_v9 = vor.u32 %v9092_v14, %v6750_v1  ;;  %v9652_v61 = vld [vmem:[%s11918_s1 + $0x5b0] sm:$0xff] }
 0x45b   : > { %v5734_v8 = vpop.f32.mrf.mxu0  ;;  %6225 = vmatpush.bf16.msra.mxu2 %v9652_v61 }
 0x45c   : > { %5506 = vmatmul.bf16.gmra.mxu1 %v8223_v37  ;;  %5595 = vmatmul.bf16.gmra.mxu2 %v8227_v4  ;;  %v11343_v50 = vadd.f32 %v5731_v11, %v5643_v38  ;;  %v9091_v11 = vld [vmem:[%s9872_s7 + $0xa8] sm:$0xf0] }
 0x45d   : > { %5684 = vmatmul.bf16.gmra.mxu3 %v8231_v6  ;;  %v6743_v62 = vor.u32 %v9091_v11, %v6742_v28  ;;  %v9660_v6 = vld [vmem:[%s11918_s1 + $0x5f0] sm:$0xff]  ;;  %v6844_v28 = vld [vmem:[%s9872_s7 + $0x174] sm:$0xf0] }
 0x45e   : > { %5773 = vmatmul.bf16.gmra.mxu0 %v8235_v20  ;;  %6314 = vmatpush.bf16.msra.mxu3 %v9660_v6  ;;  %v6850_v11 = vld [vmem:[%s9872_s7 + $0x118] sm:$0xf] }
 0x45f   : > { %v5556_v24 = vpop.f32.mrf.mxu2 }
 0x460   : > { %v5557_v51 = vadd.f32 %v5556_v24, %v5468_v5  ;;  %v5645_v60 = vpop.f32.mrf.mxu3 }
 0x461   : > { %v5469_v57 = vpop.f32.mrf.mxu1 }
 0x462   : > { %v5646_v33 = vadd.f32 %v5645_v60, %v5557_v51  ;;  %v5470_v18 = vadd.f32 %v5469_v57, %v11037_v30  ;;  %v9644_v60 = vld [vmem:[%s11918_s1 + $0x570] sm:$0xff]  ;;  %v9103_v57 = vld [vmem:[%s9872_s7 + $0x10c] sm:$0xf] }
 0x463   : > { %v5736_v2 = vpop.f32.mrf.mxu0  ;;  %6136 = vmatpush.bf16.msra.mxu1 %v9644_v60  ;;  %v6944_v60 = vld [vmem:[%s9872_s7 + $0x23c] sm:$0xf0] }
 0x464   : > { %v11348_v46 = vadd.f32 %v5734_v8, %v5646_v33  ;;  %v6836_v33 = vld [vmem:[%s9872_s7 + $0x16c] sm:$0xf0] }
 0x467   : > { %v5558_v15 = vpop.f32.mrf.mxu2 }
 0x468   : > { %v5559_v3 = vadd.f32 %v5558_v15, %v5470_v18  ;;  %v5647_v35 = vpop.f32.mrf.mxu3 }
 0x469   : > { %v5472_v56 = vpop.f32.mrf.mxu1 }
 0x46a   : > { %v5648_v30 = vadd.f32 %v5647_v35, %v5559_v3  ;;  %v5473_v7 = vadd.f32 %v5472_v56, %v11054_v53  ;;  %v6847_v35 = vor.u32 %v9104_v10, %v6844_v28 }
 0x46b   : > { %v5739_v37 = vpop.f32.mrf.mxu0 }
 0x46c   : > { %5787 = vmatmul.bf16.vlgmr.msrb.gmra.mxu1 %v6739_v22  ;;  %5876 = vmatmul.bf16.vlgmr.msrb.gmra.mxu2 %v6743_v62  ;;  %v11357_v4 = vadd.f32 %v5736_v2, %v5648_v30  ;;  %v6842_v2 = vld [vmem:[%s9872_s7 + $0x110] sm:$0xf]  ;;  %v6851_v22 = vor.u32 %v9117_v55, %v6850_v11 }
 0x46d   : > { %5965 = vmatmul.bf16.vlgmr.msrb.gmra.mxu3 %v6747_v12  ;;  %v6843_v15 = vor.u32 %v9116_v44, %v6842_v2 }
 0x46e   : > { %6054 = vmatmul.bf16.vlgmr.msrb.gmra.mxu0 %v6751_v9 }
 0x46f   : > { %v5561_v53 = vpop.f32.mrf.mxu2 }
 0x470   : > { %v5562_v20 = vadd.f32 %v5561_v53, %v5473_v7  ;;  %v5650_v38 = vpop.f32.mrf.mxu3 }
 0x471   : > { %v5474_v5 = vpop.f32.mrf.mxu1 }
 0x472   : > { %v5651_v8 = vadd.f32 %v5650_v38, %v5562_v20  ;;  %v5475_v24 = vadd.f32 %v5474_v5, %v11063_v49  ;;  %v6839_v49 = vor.u32 %v9103_v57, %v6836_v33  ;;  %v9128_v20 = vld [vmem:[%s9872_s7 + $0x1d4] sm:$0xf]  ;;  %v6936_v38 = vld [vmem:[%s9872_s7 + $0x234] sm:$0xf0]  ;;  %v6950_v57 = vld [vmem:[%s9872_s7 + $0x1e0] sm:$0xf] }
 0x473   : > { %v5741_v51 = vpop.f32.mrf.mxu0  ;;  %v9142_v33 = vld [vmem:[%s9872_s7 + $0x240] sm:$0xf0]  ;;  %v6939_v28 = vor.u32 %v9128_v20, %v6936_v38  ;;  %v7042_v20 = vld [vmem:[%s9872_s7 + $0x2a0] sm:$0xf] }
 0x474   : > { %v11371_v18 = vadd.f32 %v5739_v37, %v5651_v8  ;;  %v6942_v8 = vld [vmem:[%s9872_s7 + $0x1d8] sm:$0xf]  ;;  %v9166_v38 = vld [vmem:[%s9872_s7 + $0x300] sm:$0xf0] }
 0x477   : > { %v5563_v63 = vpop.f32.mrf.mxu2 }
 0x478   : > { %v5564_v1 = vadd.f32 %v5563_v63, %v5475_v24  ;;  %v5652_v14 = vpop.f32.mrf.mxu3  ;;  %v9141_v24 = vld [vmem:[%s9872_s7 + $0x238] sm:$0xf0] }
 0x479   : > { %v5477_v3 = vpop.f32.mrf.mxu1  ;;  %v6943_v11 = vor.u32 %v9141_v24, %v6942_v8  ;;  %v9154_v8 = vld [vmem:[%s9872_s7 + $0x2a4] sm:$0xf]  ;;  %v7044_v24 = vld [vmem:[%s9872_s7 + $0x304] sm:$0xf0] }
 0x47a   : > { %v5653_v62 = vadd.f32 %v5652_v14, %v5564_v1  ;;  %v5478_v56 = vadd.f32 %v5477_v3, %v11068_v31  ;;  %v6951_v1 = vor.u32 %v9142_v33, %v6950_v57  ;;  %v9651_v3 = vld [vmem:[%s11918_s1 + $0x5a8] sm:$0xff] }
 0x47b   : > { %v5744_v12 = vpop.f32.mrf.mxu0  ;;  %6226 = vmatpush.bf16.msra.mxu2 %v9651_v3 }
 0x47c   : > { %5792 = vmatmul.bf16.gmra.mxu1 %v6839_v49  ;;  %5881 = vmatmul.bf16.gmra.mxu2 %v6843_v15  ;;  %v11380_v9 = vadd.f32 %v5741_v51, %v5653_v62  ;;  %v9129_v51 = vld [vmem:[%s9872_s7 + $0x1dc] sm:$0xf] }
 0x47d   : > { %5970 = vmatmul.bf16.gmra.mxu3 %v6847_v35  ;;  %v6947_v63 = vor.u32 %v9129_v51, %v6944_v60  ;;  %v9659_v35 = vld [vmem:[%s11918_s1 + $0x5e8] sm:$0xff] }
 0x47e   : > { %6059 = vmatmul.bf16.gmra.mxu0 %v6851_v22  ;;  %6315 = vmatpush.bf16.msra.mxu3 %v9659_v35  ;;  %v9167_v51 = vld [vmem:[%s9872_s7 + $0x308] sm:$0xf0] }
 0x47f   : > { %v5566_v30 = vpop.f32.mrf.mxu2 }
 0x480   : > { %v5567_v7 = vadd.f32 %v5566_v30, %v5478_v56  ;;  %v5655_v37 = vpop.f32.mrf.mxu3 }
 0x481   : > { %v5479_v61 = vpop.f32.mrf.mxu1 }
 0x482   : > { %v5656_v6 = vadd.f32 %v5655_v37, %v5567_v7  ;;  %v5480_v31 = vadd.f32 %v5479_v61, %v11077_v19  ;;  %v9643_v37 = vld [vmem:[%s11918_s1 + $0x568] sm:$0xff]  ;;  %v9664_v61 = vld [vmem:[%s11918_s1 + $0x610] sm:$0xff] }
 0x483   : > { %v5746_v53 = vpop.f32.mrf.mxu0  ;;  %6137 = vmatpush.bf16.msra.mxu1 %v9643_v37  ;;  %6407 = vmatpush.bf16.msra.mxu0 %v9664_v61  ;;  %v9179_v37 = vld [vmem:[%s9872_s7 + $0x36c] sm:$0xf]  ;;  %v7144_v61 = vld [vmem:[%s9872_s7 + $0x3cc] sm:$0xf0] }
 0x484   : > { %v11385_v5 = vadd.f32 %v5744_v12, %v5656_v6  ;;  %v9153_v6 = vld [vmem:[%s9872_s7 + $0x29c] sm:$0xf] }
 0x487   : > { %v5568_v2 = vpop.f32.mrf.mxu2 }
 0x488   : > { %v5569_v44 = vadd.f32 %v5568_v2, %v5480_v31  ;;  %v5657_v10 = vpop.f32.mrf.mxu3  ;;  %v7036_v31 = vld [vmem:[%s9872_s7 + $0x2fc] sm:$0xf0] }
 0x489   : > { %v5482_v55 = vpop.f32.mrf.mxu1  ;;  %v7039_v2 = vor.u32 %v9153_v6, %v7036_v31  ;;  %v7150_v6 = vld [vmem:[%s9872_s7 + $0x370] sm:$0xf]  ;;  %v9192_v31 = vld [vmem:[%s9872_s7 + $0x3d0] sm:$0xf0] }
 0x48a   : > { %v5658_v19 = vadd.f32 %v5657_v10, %v5569_v44  ;;  %v5483_v14 = vadd.f32 %v5482_v55, %v11094_v34  ;;  %v7043_v44 = vor.u32 %v9166_v38, %v7042_v20 }
 0x48b   : > { %v5749_v49 = vpop.f32.mrf.mxu0 }
 0x48c   : > { %5797 = vmatmul.bf16.gmra.mxu1 %v6939_v28  ;;  %5886 = vmatmul.bf16.gmra.mxu2 %v6943_v11  ;;  %v11394_v15 = vadd.f32 %v5746_v53, %v5658_v19  ;;  %v7047_v28 = vor.u32 %v9154_v8, %v7044_v24 }
 0x48d   : > { %5975 = vmatmul.bf16.gmra.mxu3 %v6947_v63 }
 0x48e   : > { %6064 = vmatmul.bf16.gmra.mxu0 %v6951_v1 }
 0x48f   : > { %v5571_v22 = vpop.f32.mrf.mxu2 }
 0x490   : > { %v5572_v34 = vadd.f32 %v5571_v22, %v5483_v14  ;;  %v5660_v62 = vpop.f32.mrf.mxu3 }
 0x491   : > { %v5484_v56 = vpop.f32.mrf.mxu1 }
 0x492   : > { %v5661_v12 = vadd.f32 %v5660_v62, %v5572_v34  ;;  %v5485_v30 = vadd.f32 %v5484_v56, %v11103_v26  ;;  %v7050_v26 = vld [vmem:[%s9872_s7 + $0x2a8] sm:$0xf]  ;;  %v9178_v62 = vld [vmem:[%s9872_s7 + $0x364] sm:$0xf] }
 0x493   : > { %v5751_v7 = vpop.f32.mrf.mxu0  ;;  %v7051_v11 = vor.u32 %v9167_v51, %v7050_v26  ;;  %v7136_v56 = vld [vmem:[%s9872_s7 + $0x3c4] sm:$0xf0] }
 0x494   : > { %v11411_v53 = vadd.f32 %v5749_v49, %v5661_v12  ;;  %v7139_v24 = vor.u32 %v9178_v62, %v7136_v56  ;;  %v9216_v62 = vld [vmem:[%s9872_s7 + $0x490] sm:$0xf0] }
 0x495   : > { %v9204_v56 = vld [vmem:[%s9872_s7 + $0x434] sm:$0xf] }
 0x497   : > { %v5573_v60 = vpop.f32.mrf.mxu2 }
 0x498   : > { %v5574_v57 = vadd.f32 %v5573_v60, %v5485_v30  ;;  %v5662_v33 = vpop.f32.mrf.mxu3  ;;  %v7142_v30 = vld [vmem:[%s9872_s7 + $0x368] sm:$0xf]  ;;  %v7147_v60 = vor.u32 %v9179_v37, %v7144_v61  ;;  %v9217_v37 = vld [vmem:[%s9872_s7 + $0x498] sm:$0xf0] }
 0x499   : > { %v5487_v10 = vpop.f32.mrf.mxu1 }
 0x49a   : > { %v5663_v55 = vadd.f32 %v5662_v33, %v5574_v57  ;;  %v5488_v63 = vadd.f32 %v5487_v10, %v11108_v23  ;;  %v7151_v57 = vor.u32 %v9192_v31, %v7150_v6  ;;  %v9650_v10 = vld [vmem:[%s11918_s1 + $0x5a0] sm:$0xff] }
 0x49b   : > { %v5754_v1 = vpop.f32.mrf.mxu0  ;;  %6227 = vmatpush.bf16.msra.mxu2 %v9650_v10 }
 0x49c   : > { %5802 = vmatmul.bf16.gmra.mxu1 %v7039_v2  ;;  %5891 = vmatmul.bf16.gmra.mxu2 %v7043_v44  ;;  %v11420_v19 = vadd.f32 %v5751_v7, %v5663_v55  ;;  %v9191_v7 = vld [vmem:[%s9872_s7 + $0x3c8] sm:$0xf0] }
 0x49d   : > { %5980 = vmatmul.bf16.gmra.mxu3 %v7047_v28  ;;  %v7143_v26 = vor.u32 %v9191_v7, %v7142_v30  ;;  %v9658_v28 = vld [vmem:[%s11918_s1 + $0x5e0] sm:$0xff]  ;;  %v7244_v30 = vld [vmem:[%s9872_s7 + $0x494] sm:$0xf0] }
 0x49e   : > { %6069 = vmatmul.bf16.gmra.mxu0 %v7051_v11  ;;  %6316 = vmatpush.bf16.msra.mxu3 %v9658_v28  ;;  %v7250_v7 = vld [vmem:[%s9872_s7 + $0x438] sm:$0xf] }
 0x49f   : > { %v5576_v14 = vpop.f32.mrf.mxu2 }
 0x4a0   : > { %v5577_v49 = vadd.f32 %v5576_v14, %v5488_v63  ;;  %v5665_v3 = vpop.f32.mrf.mxu3 }
 0x4a1   : > { %v5489_v35 = vpop.f32.mrf.mxu1 }
 0x4a2   : > { %v5666_v22 = vadd.f32 %v5665_v3, %v5577_v49  ;;  %v5490_v23 = vadd.f32 %v5489_v35, %v11117_v59  ;;  %v9642_v3 = vld [vmem:[%s11918_s1 + $0x560] sm:$0xff]  ;;  %v9203_v35 = vld [vmem:[%s9872_s7 + $0x42c] sm:$0xf] }
 0x4a3   : > { %v5756_v34 = vpop.f32.mrf.mxu0  ;;  %6138 = vmatpush.bf16.msra.mxu1 %v9642_v3  ;;  %v7344_v3 = vld [vmem:[%s9872_s7 + $0x55c] sm:$0xf0] }
 0x4a4   : > { %v11425_v12 = vadd.f32 %v5754_v1, %v5666_v22  ;;  %v7236_v22 = vld [vmem:[%s9872_s7 + $0x48c] sm:$0xf0] }
 0x4a7   : > { %v5578_v20 = vpop.f32.mrf.mxu2 }
 0x4a8   : > { %v5579_v38 = vadd.f32 %v5578_v20, %v5490_v23  ;;  %v5667_v8 = vpop.f32.mrf.mxu3 }
 0x4a9   : > { %v5492_v51 = vpop.f32.mrf.mxu1 }
 0x4aa   : > { %v5668_v59 = vadd.f32 %v5667_v8, %v5579_v38  ;;  %v5493_v33 = vadd.f32 %v5492_v51, %v11134_v27  ;;  %v7247_v8 = vor.u32 %v9204_v56, %v7244_v30 }
 0x4ab   : > { %v5759_v2 = vpop.f32.mrf.mxu0 }
 0x4ac   : > { %5807 = vmatmul.bf16.gmra.mxu1 %v7139_v24  ;;  %5896 = vmatmul.bf16.gmra.mxu2 %v7143_v26  ;;  %v11434_v44 = vadd.f32 %v5756_v34, %v5668_v59  ;;  %v7242_v34 = vld [vmem:[%s9872_s7 + $0x430] sm:$0xf]  ;;  %v7251_v24 = vor.u32 %v9217_v37, %v7250_v7 }
 0x4ad   : > { %5985 = vmatmul.bf16.gmra.mxu3 %v7147_v60  ;;  %v7243_v20 = vor.u32 %v9216_v62, %v7242_v34 }
 0x4ae   : > { %6074 = vmatmul.bf16.gmra.mxu0 %v7151_v57 }
 0x4af   : > { %v5581_v27 = vpop.f32.mrf.mxu2 }
 0x4b0   : > { %v5582_v11 = vadd.f32 %v5581_v27, %v5493_v33  ;;  %v5670_v55 = vpop.f32.mrf.mxu3 }
 0x4b1   : > { %v5494_v63 = vpop.f32.mrf.mxu1 }
 0x4b2   : > { %v5671_v1 = vadd.f32 %v5670_v55, %v5582_v11  ;;  %v5495_v14 = vadd.f32 %v5494_v63, %v11143_v16  ;;  %v7239_v16 = vor.u32 %v9203_v35, %v7236_v22  ;;  %v9228_v11 = vld [vmem:[%s9872_s7 + $0x4f4] sm:$0xf]  ;;  %v7336_v55 = vld [vmem:[%s9872_s7 + $0x554] sm:$0xf0]  ;;  %v7350_v35 = vld [vmem:[%s9872_s7 + $0x500] sm:$0xf] }
 0x4b3   : > { %v5761_v49 = vpop.f32.mrf.mxu0  ;;  %v9242_v22 = vld [vmem:[%s9872_s7 + $0x560] sm:$0xf0]  ;;  %v7339_v30 = vor.u32 %v9228_v11, %v7336_v55  ;;  %v7442_v11 = vld [vmem:[%s9872_s7 + $0x5c0] sm:$0xf] }
 0x4b4   : > { %v11448_v23 = vadd.f32 %v5759_v2, %v5671_v1  ;;  %v7342_v1 = vld [vmem:[%s9872_s7 + $0x4f8] sm:$0xf]  ;;  %v9266_v55 = vld [vmem:[%s9872_s7 + $0x620] sm:$0xf0] }
 0x4b7   : > { %v5583_v61 = vpop.f32.mrf.mxu2 }
 0x4b8   : > { %v5584_v6 = vadd.f32 %v5583_v61, %v5495_v14  ;;  %v5672_v31 = vpop.f32.mrf.mxu3  ;;  %v9241_v14 = vld [vmem:[%s9872_s7 + $0x558] sm:$0xf0] }
 0x4b9   : > { %v5497_v38 = vpop.f32.mrf.mxu1  ;;  %v7343_v7 = vor.u32 %v9241_v14, %v7342_v1  ;;  %v9254_v1 = vld [vmem:[%s9872_s7 + $0x5c4] sm:$0xf]  ;;  %v7444_v14 = vld [vmem:[%s9872_s7 + $0x624] sm:$0xf0] }
 0x4ba   : > { %v5673_v26 = vadd.f32 %v5672_v31, %v5584_v6  ;;  %v5498_v51 = vadd.f32 %v5497_v38, %v11148_v43  ;;  %v7351_v6 = vor.u32 %v9242_v22, %v7350_v35  ;;  %v9649_v38 = vld [vmem:[%s11918_s1 + $0x598] sm:$0xff] }
 0x4bb   : > { %v5764_v60 = vpop.f32.mrf.mxu0  ;;  %6228 = vmatpush.bf16.msra.mxu2 %v9649_v38 }
 0x4bc   : > { %5812 = vmatmul.bf16.gmra.mxu1 %v7239_v16  ;;  %5901 = vmatmul.bf16.gmra.mxu2 %v7243_v20  ;;  %v11457_v57 = vadd.f32 %v5761_v49, %v5673_v26  ;;  %v9229_v49 = vld [vmem:[%s9872_s7 + $0x4fc] sm:$0xf] }
 0x4bd   : > { %5990 = vmatmul.bf16.gmra.mxu3 %v7247_v8  ;;  %v7347_v61 = vor.u32 %v9229_v49, %v7344_v3  ;;  %v9657_v8 = vld [vmem:[%s11918_s1 + $0x5d8] sm:$0xff]  ;;  %v9267_v49 = vld [vmem:[%s9872_s7 + $0x628] sm:$0xf0] }
 0x4be   : > { %6079 = vmatmul.bf16.gmra.mxu0 %v7251_v24  ;;  %6317 = vmatpush.bf16.msra.mxu3 %v9657_v8 }
 0x4bf   : > { %v5586_v59 = vpop.f32.mrf.mxu2 }
 0x4c0   : > { %v5587_v33 = vadd.f32 %v5586_v59, %v5498_v51  ;;  %v5675_v2 = vpop.f32.mrf.mxu3 }
 0x4c1   : > { %v5499_v10 = vpop.f32.mrf.mxu1 }
 0x4c2   : > { %v5676_v28 = vadd.f32 %v5675_v2, %v5587_v33  ;;  %v5500_v43 = vadd.f32 %v5499_v10, %v11157_v48  ;;  %v9641_v2 = vld [vmem:[%s11918_s1 + $0x558] sm:$0xff]  ;;  %v9663_v10 = vld [vmem:[%s11918_s1 + $0x608] sm:$0xff] }
 0x4c3   : > { %v5766_v27 = vpop.f32.mrf.mxu0  ;;  %6139 = vmatpush.bf16.msra.mxu1 %v9641_v2  ;;  %6408 = vmatpush.bf16.msra.mxu0 %v9663_v10  ;;  %v9279_v2 = vld [vmem:[%s9872_s7 + $0x68c] sm:$0xf]  ;;  %v7544_v10 = vld [vmem:[%s9872_s7 + $0x6ec] sm:$0xf0] }
 0x4c4   : > { %v11462_v63 = vadd.f32 %v5764_v60, %v5676_v28  ;;  %v9253_v28 = vld [vmem:[%s9872_s7 + $0x5bc] sm:$0xf] }
 0x4c7   : > { %v5588_v34 = vpop.f32.mrf.mxu2 }
 0x4c8   : > { %v5589_v62 = vadd.f32 %v5588_v34, %v5500_v43  ;;  %v5677_v56 = vpop.f32.mrf.mxu3  ;;  %v7436_v43 = vld [vmem:[%s9872_s7 + $0x61c] sm:$0xf0] }
 0x4c9   : > { %v5502_v37 = vpop.f32.mrf.mxu1  ;;  %v7439_v34 = vor.u32 %v9253_v28, %v7436_v43  ;;  %v7550_v28 = vld [vmem:[%s9872_s7 + $0x690] sm:$0xf]  ;;  %v9292_v43 = vld [vmem:[%s9872_s7 + $0x6f0] sm:$0xf0] }
 0x4ca   : > { %v5678_v48 = vadd.f32 %v5677_v56, %v5589_v62  ;;  %v5503_v31 = vadd.f32 %v5502_v37, %v11174_v39  ;;  %v7443_v62 = vor.u32 %v9266_v55, %v7442_v11 }
 0x4cb   : > { %v5769_v16 = vpop.f32.mrf.mxu0 }
 0x4cc   : > { %5817 = vmatmul.bf16.gmra.mxu1 %v7339_v30  ;;  %5906 = vmatmul.bf16.gmra.mxu2 %v7343_v7  ;;  %v11471_v20 = vadd.f32 %v5766_v27, %v5678_v48  ;;  %v7447_v30 = vor.u32 %v9254_v1, %v7444_v14 }
 0x4cd   : > { %5995 = vmatmul.bf16.gmra.mxu3 %v7347_v61 }
 0x4ce   : > { %6084 = vmatmul.bf16.gmra.mxu0 %v7351_v6 }
 0x4cf   : > { %v5591_v24 = vpop.f32.mrf.mxu2 }
 0x4d0   : > { %v5592_v39 = vadd.f32 %v5591_v24, %v5503_v31  ;;  %v5680_v26 = vpop.f32.mrf.mxu3 }
 0x4d1   : > { %v5504_v51 = vpop.f32.mrf.mxu1 }
 0x4d2   : > { %v5681_v60 = vadd.f32 %v5680_v26, %v5592_v39  ;;  %v5505_v59 = vadd.f32 %v5504_v51, %v11183_v54  ;;  %v7450_v54 = vld [vmem:[%s9872_s7 + $0x5c8] sm:$0xf]  ;;  %v9278_v26 = vld [vmem:[%s9872_s7 + $0x684] sm:$0xf] }
 0x4d3   : > { %v5771_v33 = vpop.f32.mrf.mxu0  ;;  %v7451_v7 = vor.u32 %v9267_v49, %v7450_v54  ;;  %v7536_v51 = vld [vmem:[%s9872_s7 + $0x6e4] sm:$0xf0] }
 0x4d4   : > { %v11488_v27 = vadd.f32 %v5769_v16, %v5681_v60  ;;  %v7539_v14 = vor.u32 %v9278_v26, %v7536_v51  ;;  %v9316_v26 = vld [vmem:[%s9872_s7 + $0x7b0] sm:$0xf0] }
 0x4d5   : > { %v9304_v51 = vld [vmem:[%s9872_s7 + $0x754] sm:$0xf] }
 0x4d7   : > { %v5593_v3 = vpop.f32.mrf.mxu2 }
 0x4d8   : > { %v5594_v35 = vadd.f32 %v5593_v3, %v5505_v59  ;;  %v5682_v22 = vpop.f32.mrf.mxu3  ;;  %v7542_v59 = vld [vmem:[%s9872_s7 + $0x688] sm:$0xf]  ;;  %v7547_v3 = vor.u32 %v9279_v2, %v7544_v10  ;;  %v9317_v2 = vld [vmem:[%s9872_s7 + $0x7b8] sm:$0xf0] }
 0x4d9   : > { %v5507_v56 = vpop.f32.mrf.mxu1 }
 0x4da   : > { %v5683_v37 = vadd.f32 %v5682_v22, %v5594_v35  ;;  %v5508_v61 = vadd.f32 %v5507_v56, %v11188_v47  ;;  %v7551_v35 = vor.u32 %v9292_v43, %v7550_v28  ;;  %v9648_v56 = vld [vmem:[%s11918_s1 + $0x590] sm:$0xff] }
 0x4db   : > { %v5774_v6 = vpop.f32.mrf.mxu0  ;;  %6229 = vmatpush.bf16.msra.mxu2 %v9648_v56 }
 0x4dc   : > { %5822 = vmatmul.bf16.gmra.mxu1 %v7439_v34  ;;  %5911 = vmatmul.bf16.gmra.mxu2 %v7443_v62  ;;  %v11497_v48 = vadd.f32 %v5771_v33, %v5683_v37  ;;  %v9291_v33 = vld [vmem:[%s9872_s7 + $0x6e8] sm:$0xf0] }
 0x4dd   : > { %6000 = vmatmul.bf16.gmra.mxu3 %v7447_v30  ;;  %v7543_v54 = vor.u32 %v9291_v33, %v7542_v59  ;;  %v9656_v30 = vld [vmem:[%s11918_s1 + $0x5d0] sm:$0xff]  ;;  %v7644_v59 = vld [vmem:[%s9872_s7 + $0x7b4] sm:$0xf0] }
 0x4de   : > { %6089 = vmatmul.bf16.gmra.mxu0 %v7451_v7  ;;  %6318 = vmatpush.bf16.msra.mxu3 %v9656_v30  ;;  %v7650_v33 = vld [vmem:[%s9872_s7 + $0x758] sm:$0xf] }
 0x4df   : > { %v5596_v31 = vpop.f32.mrf.mxu2 }
 0x4e0   : > { %v5597_v16 = vadd.f32 %v5596_v31, %v5508_v61  ;;  %v5685_v38 = vpop.f32.mrf.mxu3 }
 0x4e1   : > { %v5509_v8 = vpop.f32.mrf.mxu1 }
 0x4e2   : > { %v5686_v24 = vadd.f32 %v5685_v38, %v5597_v16  ;;  %v5510_v47 = vadd.f32 %v5509_v8, %v11197_v25  ;;  %v9640_v38 = vld [vmem:[%s11918_s1 + $0x550] sm:$0xff]  ;;  %v9303_v8 = vld [vmem:[%s9872_s7 + $0x74c] sm:$0xf] }
 0x4e3   : > { %v5776_v39 = vpop.f32.mrf.mxu0  ;;  %6140 = vmatpush.bf16.msra.mxu1 %v9640_v38  ;;  %v7744_v38 = vld [vmem:[%s9872_s7 + $0x87c] sm:$0xf0] }
 0x4e4   : > { %v11502_v60 = vadd.f32 %v5774_v6, %v5686_v24  ;;  %v7636_v24 = vld [vmem:[%s9872_s7 + $0x7ac] sm:$0xf0] }
 0x4e7   : > { %v5598_v11 = vpop.f32.mrf.mxu2 }
 0x4e8   : > { %v5599_v55 = vadd.f32 %v5598_v11, %v5510_v47  ;;  %v5687_v1 = vpop.f32.mrf.mxu3 }
 0x4e9   : > { %v5788_v49 = vpop.f32.mrf.mxu1 }
 0x4ea   : > { %v5688_v25 = vadd.f32 %v5687_v1, %v5599_v55  ;;  %v5789_v22 = vadd.f32 %v5788_v49, %v11214_v32  ;;  %v7647_v1 = vor.u32 %v9304_v51, %v7644_v59 }
 0x4eb   : > { %v6055_v34 = vpop.f32.mrf.mxu0 }
 0x4ec   : > { %5827 = vmatmul.bf16.gmra.mxu1 %v7539_v14  ;;  %5916 = vmatmul.bf16.gmra.mxu2 %v7543_v54  ;;  %v11511_v62 = vadd.f32 %v5776_v39, %v5688_v25  ;;  %v7642_v39 = vld [vmem:[%s9872_s7 + $0x750] sm:$0xf]  ;;  %v7651_v14 = vor.u32 %v9317_v2, %v7650_v33 }
 0x4ed   : > { %6005 = vmatmul.bf16.gmra.mxu3 %v7547_v3  ;;  %v7643_v11 = vor.u32 %v9316_v26, %v7642_v39 }
 0x4ee   : > { %6094 = vmatmul.bf16.gmra.mxu0 %v7551_v35 }
 0x4ef   : > { %v5877_v32 = vpop.f32.mrf.mxu2 }
 0x4f0   : > { %v5878_v7 = vadd.f32 %v5877_v32, %v5789_v22  ;;  %v5966_v37 = vpop.f32.mrf.mxu3 }
 0x4f1   : > { %v5790_v61 = vpop.f32.mrf.mxu1 }
 0x4f2   : > { %v5967_v6 = vadd.f32 %v5966_v37, %v5878_v7  ;;  %v5791_v31 = vadd.f32 %v5790_v61, %v11223_v42  ;;  %v7639_v42 = vor.u32 %v9303_v8, %v7636_v24  ;;  %v9328_v7 = vld [vmem:[%s9872_s7 + $0x814] sm:$0xf]  ;;  %v7736_v37 = vld [vmem:[%s9872_s7 + $0x874] sm:$0xf0]  ;;  %v7750_v8 = vld [vmem:[%s9872_s7 + $0x820] sm:$0xf] }
 0x4f3   : > { %v6057_v16 = vpop.f32.mrf.mxu0  ;;  %v9342_v24 = vld [vmem:[%s9872_s7 + $0x880] sm:$0xf0]  ;;  %v7739_v59 = vor.u32 %v9328_v7, %v7736_v37  ;;  %v7842_v7 = vld [vmem:[%s9872_s7 + $0x8e0] sm:$0xf] }
 0x4f4   : > { %v11525_v47 = vadd.f32 %v6055_v34, %v5967_v6  ;;  %v7742_v6 = vld [vmem:[%s9872_s7 + $0x818] sm:$0xf]  ;;  %v9366_v37 = vld [vmem:[%s9872_s7 + $0x940] sm:$0xf0] }
 0x4f7   : > { %v5879_v10 = vpop.f32.mrf.mxu2 }
 0x4f8   : > { %v5880_v28 = vadd.f32 %v5879_v10, %v5791_v31  ;;  %v5968_v43 = vpop.f32.mrf.mxu3  ;;  %v9341_v31 = vld [vmem:[%s9872_s7 + $0x878] sm:$0xf0] }
 0x4f9   : > { %v5793_v55 = vpop.f32.mrf.mxu1  ;;  %v7743_v33 = vor.u32 %v9341_v31, %v7742_v6  ;;  %v9354_v6 = vld [vmem:[%s9872_s7 + $0x8e4] sm:$0xf]  ;;  %v7844_v31 = vld [vmem:[%s9872_s7 + $0x944] sm:$0xf0] }
 0x4fa   : > { %v5969_v54 = vadd.f32 %v5968_v43, %v5880_v28  ;;  %v5794_v49 = vadd.f32 %v5793_v55, %v11228_v29  ;;  %v7751_v28 = vor.u32 %v9342_v24, %v7750_v8  ;;  %v9647_v55 = vld [vmem:[%s11918_s1 + $0x588] sm:$0xff] }
 0x4fb   : > { %v6060_v3 = vpop.f32.mrf.mxu0  ;;  %6230 = vmatpush.bf16.msra.mxu2 %v9647_v55 }
 0x4fc   : > { %5832 = vmatmul.bf16.gmra.mxu1 %v7639_v42  ;;  %5921 = vmatmul.bf16.gmra.mxu2 %v7643_v11  ;;  %v11534_v35 = vadd.f32 %v6057_v16, %v5969_v54  ;;  %v9329_v16 = vld [vmem:[%s9872_s7 + $0x81c] sm:$0xf] }
 0x4fd   : > { %6010 = vmatmul.bf16.gmra.mxu3 %v7647_v1  ;;  %v7747_v10 = vor.u32 %v9329_v16, %v7744_v38  ;;  %v9655_v1 = vld [vmem:[%s11918_s1 + $0x5c8] sm:$0xff] }
 0x4fe   : > { %6099 = vmatmul.bf16.gmra.mxu0 %v7651_v14  ;;  %6319 = vmatpush.bf16.msra.mxu3 %v9655_v1  ;;  %v9367_v16 = vld [vmem:[%s9872_s7 + $0x948] sm:$0xf0] }
 0x4ff   : > { %v5882_v25 = vpop.f32.mrf.mxu2 }
 0x500   : > { %v5883_v22 = vadd.f32 %v5882_v25, %v5794_v49  ;;  %v5971_v34 = vpop.f32.mrf.mxu3 }
 0x501   : > { %v5795_v56 = vpop.f32.mrf.mxu1 }
 0x502   : > { %v5972_v30 = vadd.f32 %v5971_v34, %v5883_v22  ;;  %v5796_v29 = vadd.f32 %v5795_v56, %v11237_v45  ;;  %v9639_v34 = vld [vmem:[%s11918_s1 + $0x548] sm:$0xff]  ;;  %v9662_v56 = vld [vmem:[%s11918_s1 + $0x600] sm:$0xff] }
 0x503   : > { %v6062_v32 = vpop.f32.mrf.mxu0  ;;  %6141 = vmatpush.bf16.msra.mxu1 %v9639_v34  ;;  %6409 = vmatpush.bf16.msra.mxu0 %v9662_v56  ;;  %v9379_v34 = vld [vmem:[%s9872_s7 + $0x9ac] sm:$0xf]  ;;  %v7944_v56 = vld [vmem:[%s9872_s7 + $0xa0c] sm:$0xf0] }
 0x504   : > { %v11539_v61 = vadd.f32 %v6060_v3, %v5972_v30  ;;  %v9353_v30 = vld [vmem:[%s9872_s7 + $0x8dc] sm:$0xf] }
 0x507   : > { %v5884_v39 = vpop.f32.mrf.mxu2 }
 0x508   : > { %v5885_v26 = vadd.f32 %v5884_v39, %v5796_v29  ;;  %v5973_v51 = vpop.f32.mrf.mxu3  ;;  %v7836_v29 = vld [vmem:[%s9872_s7 + $0x93c] sm:$0xf0] }
 0x509   : > { %v5798_v2 = vpop.f32.mrf.mxu1  ;;  %v7839_v39 = vor.u32 %v9353_v30, %v7836_v29  ;;  %v7950_v30 = vld [vmem:[%s9872_s7 + $0x9b0] sm:$0xf]  ;;  %v9392_v29 = vld [vmem:[%s9872_s7 + $0xa10] sm:$0xf0] }
 0x50a   : > { %v5974_v45 = vadd.f32 %v5973_v51, %v5885_v26  ;;  %v5799_v43 = vadd.f32 %v5798_v2, %v11254_v41  ;;  %v7843_v26 = vor.u32 %v9366_v37, %v7842_v7 }
 0x50b   : > { %v6065_v42 = vpop.f32.mrf.mxu0 }
 0x50c   : > { %5837 = vmatmul.bf16.gmra.mxu1 %v7739_v59  ;;  %5926 = vmatmul.bf16.gmra.mxu2 %v7743_v33  ;;  %v11548_v11 = vadd.f32 %v6062_v32, %v5974_v45  ;;  %v7847_v59 = vor.u32 %v9354_v6, %v7844_v31 }
 0x50d   : > { %6015 = vmatmul.bf16.gmra.mxu3 %v7747_v10 }
 0x50e   : > { %6104 = vmatmul.bf16.gmra.mxu0 %v7751_v28 }
 0x50f   : > { %v5887_v14 = vpop.f32.mrf.mxu2 }
 0x510   : > { %v5888_v41 = vadd.f32 %v5887_v14, %v5799_v43  ;;  %v5976_v54 = vpop.f32.mrf.mxu3 }
 0x511   : > { %v5800_v49 = vpop.f32.mrf.mxu1 }
 0x512   : > { %v5977_v3 = vadd.f32 %v5976_v54, %v5888_v41  ;;  %v5801_v25 = vadd.f32 %v5800_v49, %v11263_v21  ;;  %v7850_v21 = vld [vmem:[%s9872_s7 + $0x8e8] sm:$0xf]  ;;  %v9378_v54 = vld [vmem:[%s9872_s7 + $0x9a4] sm:$0xf] }
 0x513   : > { %v6067_v22 = vpop.f32.mrf.mxu0  ;;  %v7851_v33 = vor.u32 %v9367_v16, %v7850_v21  ;;  %v7936_v49 = vld [vmem:[%s9872_s7 + $0xa04] sm:$0xf0] }
 0x514   : > { %v11565_v32 = vadd.f32 %v6065_v42, %v5977_v3  ;;  %v7939_v31 = vor.u32 %v9378_v54, %v7936_v49  ;;  %v9416_v54 = vld [vmem:[%s9872_s7 + $0xad0] sm:$0xf0] }
 0x515   : > { %v9404_v49 = vld [vmem:[%s9872_s7 + $0xa74] sm:$0xf] }
 0x517   : > { %v5889_v38 = vpop.f32.mrf.mxu2 }
 0x518   : > { %v5890_v8 = vadd.f32 %v5889_v38, %v5801_v25  ;;  %v5978_v24 = vpop.f32.mrf.mxu3  ;;  %v7942_v25 = vld [vmem:[%s9872_s7 + $0x9a8] sm:$0xf]  ;;  %v7947_v38 = vor.u32 %v9379_v34, %v7944_v56  ;;  %v9417_v34 = vld [vmem:[%s9872_s7 + $0xad8] sm:$0xf0] }
 0x519   : > { %v5803_v51 = vpop.f32.mrf.mxu1 }
 0x51a   : > { %v5979_v2 = vadd.f32 %v5978_v24, %v5890_v8  ;;  %v5804_v10 = vadd.f32 %v5803_v51, %v11268_v17  ;;  %v7951_v8 = vor.u32 %v9392_v29, %v7950_v30  ;;  %v9646_v51 = vld [vmem:[%s11918_s1 + $0x580] sm:$0xff] }
 0x51b   : > { %v6070_v28 = vpop.f32.mrf.mxu0  ;;  %6231 = vmatpush.bf16.msra.mxu2 %v9646_v51 }
 0x51c   : > { %5842 = vmatmul.bf16.gmra.mxu1 %v7839_v39  ;;  %5931 = vmatmul.bf16.gmra.mxu2 %v7843_v26  ;;  %v11574_v45 = vadd.f32 %v6067_v22, %v5979_v2  ;;  %v9391_v22 = vld [vmem:[%s9872_s7 + $0xa08] sm:$0xf0] }
 0x51d   : > { %6020 = vmatmul.bf16.gmra.mxu3 %v7847_v59  ;;  %v7943_v21 = vor.u32 %v9391_v22, %v7942_v25  ;;  %v9654_v59 = vld [vmem:[%s11918_s1 + $0x5c0] sm:$0xff]  ;;  %v8044_v25 = vld [vmem:[%s9872_s7 + $0xad4] sm:$0xf0] }
 0x51e   : > { %6109 = vmatmul.bf16.gmra.mxu0 %v7851_v33  ;;  %6320 = vmatpush.bf16.msra.mxu3 %v9654_v59  ;;  %v8050_v22 = vld [vmem:[%s9872_s7 + $0xa78] sm:$0xf] }
 0x51f   : > { %v5892_v43 = vpop.f32.mrf.mxu2 }
 0x520   : > { %v5893_v42 = vadd.f32 %v5892_v43, %v5804_v10  ;;  %v5981_v55 = vpop.f32.mrf.mxu3 }
 0x521   : > { %v5805_v1 = vpop.f32.mrf.mxu1 }
 0x522   : > { %v5982_v14 = vadd.f32 %v5981_v55, %v5893_v42  ;;  %v5806_v17 = vadd.f32 %v5805_v1, %v11277_v52  ;;  %v9638_v55 = vld [vmem:[%s11918_s1 + $0x540] sm:$0xff]  ;;  %v9403_v1 = vld [vmem:[%s9872_s7 + $0xa6c] sm:$0xf] }
 0x523   : > { %v6072_v41 = vpop.f32.mrf.mxu0  ;;  %6142 = vmatpush.bf16.msra.mxu1 %v9638_v55  ;;  %v8144_v55 = vld [vmem:[%s9872_s7 + $0xb9c] sm:$0xf0] }
 0x524   : > { %v11579_v3 = vadd.f32 %v6070_v28, %v5982_v14  ;;  %v8036_v14 = vld [vmem:[%s9872_s7 + $0xacc] sm:$0xf0] }
 0x527   : > { %v5894_v7 = vpop.f32.mrf.mxu2 }
 0x528   : > { %v5895_v37 = vadd.f32 %v5894_v7, %v5806_v17  ;;  %v5983_v6 = vpop.f32.mrf.mxu3 }
 0x529   : > { %v5808_v16 = vpop.f32.mrf.mxu1 }
 0x52a   : > { %v5984_v52 = vadd.f32 %v5983_v6, %v5895_v37  ;;  %v5809_v24 = vadd.f32 %v5808_v16, %v11294_v36  ;;  %v8047_v6 = vor.u32 %v9404_v49, %v8044_v25 }
 0x52b   : > { %v6075_v39 = vpop.f32.mrf.mxu0 }
 0x52c   : > { %5847 = vmatmul.bf16.gmra.mxu1 %v7939_v31  ;;  %5936 = vmatmul.bf16.gmra.mxu2 %v7943_v21  ;;  %v11588_v26 = vadd.f32 %v6072_v41, %v5984_v52  ;;  %v8042_v41 = vld [vmem:[%s9872_s7 + $0xa70] sm:$0xf]  ;;  %v8051_v31 = vor.u32 %v9417_v34, %v8050_v22 }
 0x52d   : > { %6025 = vmatmul.bf16.gmra.mxu3 %v7947_v38  ;;  %v8043_v7 = vor.u32 %v9416_v54, %v8042_v41 }
 0x52e   : > { %6114 = vmatmul.bf16.gmra.mxu0 %v7951_v8 }
 0x52f   : > { %v5897_v36 = vpop.f32.mrf.mxu2 }
 0x530   : > { %v5898_v33 = vadd.f32 %v5897_v36, %v5809_v24  ;;  %v5986_v2 = vpop.f32.mrf.mxu3 }
 0x531   : > { %v5810_v10 = vpop.f32.mrf.mxu1 }
 0x532   : > { %v5987_v28 = vadd.f32 %v5986_v2, %v5898_v33  ;;  %v5811_v43 = vadd.f32 %v5810_v10, %v11303_v40  ;;  %v8039_v40 = vor.u32 %v9403_v1, %v8036_v14  ;;  %v9428_v33 = vld [vmem:[%s9872_s7 + $0xb34] sm:$0xf]  ;;  %v8136_v2 = vld [vmem:[%s9872_s7 + $0xb94] sm:$0xf0]  ;;  %v8150_v1 = vld [vmem:[%s9872_s7 + $0xb40] sm:$0xf] }
 0x533   : > { %v6077_v42 = vpop.f32.mrf.mxu0  ;;  %v9442_v14 = vld [vmem:[%s9872_s7 + $0xba0] sm:$0xf0]  ;;  %v8139_v25 = vor.u32 %v9428_v33, %v8136_v2  ;;  %v8250_v33 = vld [vmem:[%s9872_s7 + $0xc08] sm:$0xf]  ;;  %v9467_v2 = vld [vmem:[%s9872_s7 + $0xc68] sm:$0xf0] }
 0x534   : > { %v11602_v17 = vadd.f32 %v6075_v39, %v5987_v28  ;;  %v8142_v28 = vld [vmem:[%s9872_s7 + $0xb38] sm:$0xf] }
 0x537   : > { %v5899_v56 = vpop.f32.mrf.mxu2 }
 0x538   : > { %v5900_v30 = vadd.f32 %v5899_v56, %v5811_v43  ;;  %v5988_v29 = vpop.f32.mrf.mxu3  ;;  %v9441_v43 = vld [vmem:[%s9872_s7 + $0xb98] sm:$0xf0] }
 0x539   : > { %v5813_v37 = vpop.f32.mrf.mxu1  ;;  %v8143_v22 = vor.u32 %v9441_v43, %v8142_v28 }
 0x53a   : > { %v5989_v21 = vadd.f32 %v5988_v29, %v5900_v30  ;;  %v5814_v16 = vadd.f32 %v5813_v37, %v11308_v58  ;;  %v8151_v30 = vor.u32 %v9442_v14, %v8150_v1 }
 0x53b   : > { %v6080_v38 = vpop.f32.mrf.mxu0 }
 0x53c   : > { %5852 = vmatmul.bf16.gmra.mxu1 %v8039_v40  ;;  %5941 = vmatmul.bf16.gmra.mxu2 %v8043_v7  ;;  %v11611_v8 = vadd.f32 %v6077_v42, %v5989_v21  ;;  %v9429_v42 = vld [vmem:[%s9872_s7 + $0xb3c] sm:$0xf] }
 0x53d   : > { %6030 = vmatmul.bf16.gmra.mxu3 %v8047_v6  ;;  %v8147_v56 = vor.u32 %v9429_v42, %v8144_v55 }
 0x53e   : > { %6119 = vmatmul.bf16.gmra.mxu0 %v8051_v31 }
 0x53f   : > { %v5902_v52 = vpop.f32.mrf.mxu2 }
 0x540   : > { %v5903_v24 = vadd.f32 %v5902_v52, %v5814_v16  ;;  %v5991_v39 = vpop.f32.mrf.mxu3  ;;  %v9453_v52 = vld [vmem:[%s9872_s7 + $0xbfc] sm:$0xf] }
 0x541   : > { %v5815_v51 = vpop.f32.mrf.mxu1 }
 0x542   : > { %v5992_v59 = vadd.f32 %v5991_v39, %v5903_v24  ;;  %v5816_v58 = vadd.f32 %v5815_v51, %v11317_v0  ;;  %v8236_v24 = vld [vmem:[%s9872_s7 + $0xc5c] sm:$0xf0] }
 0x543   : > { %v6082_v36 = vpop.f32.mrf.mxu0  ;;  %v8242_v51 = vld [vmem:[%s9872_s7 + $0xc00] sm:$0xf]  ;;  %v8239_v55 = vor.u32 %v9453_v52, %v8236_v24  ;;  %v9094_v24 = vld [vmem:[%s9872_s7 + $0xc0] sm:$0xf0] }
 0x544   : > { %v11616_v10 = vadd.f32 %v6080_v38, %v5992_v59  ;;  %v9466_v59 = vld [vmem:[%s9872_s7 + $0xc60] sm:$0xf0]  ;;  %v6766_v52 = vld [vmem:[%s9872_s7 + $0x60] sm:$0xf] }
 0x545   : > { %v8243_v1 = vor.u32 %v9466_v59, %v8242_v51 }
 0x547   : > { %v5904_v41 = vpop.f32.mrf.mxu2 }
 0x548   : > { %v5905_v54 = vadd.f32 %v5904_v41, %v5816_v58  ;;  %v5993_v49 = vpop.f32.mrf.mxu3  ;;  %v9454_v58 = vld [vmem:[%s9872_s7 + $0xc04] sm:$0xf] }
 0x549   : > { %v5818_v34 = vpop.f32.mrf.mxu1 }
 0x54a   : > { %v5994_v0 = vadd.f32 %v5993_v49, %v5905_v54  ;;  %v5819_v29 = vadd.f32 %v5818_v34, %v11334_v13  ;;  %v8251_v54 = vor.u32 %v9467_v2, %v8250_v33 }
 0x54b   : > { %v6085_v40 = vpop.f32.mrf.mxu0 }
 0x54c   : > { %5857 = vmatmul.bf16.gmra.mxu1 %v8139_v25  ;;  %5946 = vmatmul.bf16.gmra.mxu2 %v8143_v22  ;;  %v11625_v7 = vadd.f32 %v6082_v36, %v5994_v0  ;;  %v8244_v36 = vld [vmem:[%s9872_s7 + $0xc64] sm:$0xf0] }
 0x54d   : > { %6035 = vmatmul.bf16.gmra.mxu3 %v8147_v56  ;;  %v8247_v41 = vor.u32 %v9454_v58, %v8244_v36 }
 0x54e   : > { %6124 = vmatmul.bf16.gmra.mxu0 %v8151_v30 }
 0x54f   : > { %v5907_v37 = vpop.f32.mrf.mxu2 }
 0x550   : > { %v5908_v6 = vadd.f32 %v5907_v37, %v5819_v29  ;;  %v5996_v31 = vpop.f32.mrf.mxu3  ;;  %v9080_v37 = vld [vmem:[%s9872_s7 + $0x54] sm:$0xf] }
 0x551   : > { %v5820_v21 = vpop.f32.mrf.mxu1 }
 0x552   : > { %v5997_v16 = vadd.f32 %v5996_v31, %v5908_v6  ;;  %v5821_v13 = vadd.f32 %v5820_v21, %v11343_v50  ;;  %v6752_v6 = vld [vmem:[%s9872_s7 + $0xb4] sm:$0xf0] }
 0x553   : > { %v6087_v38 = vpop.f32.mrf.mxu0  ;;  %v6758_v21 = vld [vmem:[%s9872_s7 + $0x58] sm:$0xf]  ;;  %v6755_v36 = vor.u32 %v9080_v37, %v6752_v6  ;;  %v6866_v37 = vld [vmem:[%s9872_s7 + $0x128] sm:$0xf]  ;;  %v9119_v6 = vld [vmem:[%s9872_s7 + $0x188] sm:$0xf0] }
 0x554   : > { %v11630_v39 = vadd.f32 %v6085_v40, %v5997_v16  ;;  %v9093_v16 = vld [vmem:[%s9872_s7 + $0xb8] sm:$0xf0] }
 0x555   : > { %v6759_v33 = vor.u32 %v9093_v16, %v6758_v21 }
 0x557   : > { %v5909_v28 = vpop.f32.mrf.mxu2 }
 0x558   : > { %v5910_v43 = vadd.f32 %v5909_v28, %v5821_v13  ;;  %v5998_v42 = vpop.f32.mrf.mxu3  ;;  %v9081_v13 = vld [vmem:[%s9872_s7 + $0x5c] sm:$0xf] }
 0x559   : > { %v5823_v14 = vpop.f32.mrf.mxu1 }
 0x55a   : > { %v5999_v50 = vadd.f32 %v5998_v42, %v5910_v43  ;;  %v5824_v49 = vadd.f32 %v5823_v14, %v11348_v46  ;;  %v6767_v43 = vor.u32 %v9094_v24, %v6766_v52 }
 0x55b   : > { %v6090_v25 = vpop.f32.mrf.mxu0 }
 0x55c   : > { %5862 = vmatmul.bf16.gmra.mxu1 %v8239_v55  ;;  %5951 = vmatmul.bf16.gmra.mxu2 %v8243_v1  ;;  %v11639_v22 = vadd.f32 %v6087_v38, %v5999_v50  ;;  %v6760_v38 = vld [vmem:[%s9872_s7 + $0xbc] sm:$0xf0] }
 0x55d   : > { %6040 = vmatmul.bf16.gmra.mxu3 %v8247_v41  ;;  %v6763_v28 = vor.u32 %v9081_v13, %v6760_v38 }
 0x55e   : > { %6129 = vmatmul.bf16.gmra.mxu0 %v8251_v54 }
 0x55f   : > { %v5912_v34 = vpop.f32.mrf.mxu2 }
 0x560   : > { %v5913_v56 = vadd.f32 %v5912_v34, %v5824_v49  ;;  %v6001_v30 = vpop.f32.mrf.mxu3  ;;  %v9105_v34 = vld [vmem:[%s9872_s7 + $0x11c] sm:$0xf] }
 0x561   : > { %v5825_v0 = vpop.f32.mrf.mxu1 }
 0x562   : > { %v6002_v29 = vadd.f32 %v6001_v30, %v5913_v56  ;;  %v5826_v46 = vadd.f32 %v5825_v0, %v11357_v4  ;;  %v6852_v56 = vld [vmem:[%s9872_s7 + $0x17c] sm:$0xf0] }
 0x563   : > { %v6092_v40 = vpop.f32.mrf.mxu0  ;;  %v6858_v0 = vld [vmem:[%s9872_s7 + $0x120] sm:$0xf]  ;;  %v6855_v38 = vor.u32 %v9105_v34, %v6852_v56  ;;  %v6966_v34 = vld [vmem:[%s9872_s7 + $0x1f0] sm:$0xf]  ;;  %v9144_v56 = vld [vmem:[%s9872_s7 + $0x250] sm:$0xf0] }
 0x564   : > { %v11644_v31 = vadd.f32 %v6090_v25, %v6002_v29  ;;  %v9118_v29 = vld [vmem:[%s9872_s7 + $0x180] sm:$0xf0] }
 0x565   : > { %v6859_v52 = vor.u32 %v9118_v29, %v6858_v0 }
 0x567   : > { %v5914_v51 = vpop.f32.mrf.mxu2 }
 0x568   : > { %v5915_v59 = vadd.f32 %v5914_v51, %v5826_v46  ;;  %v6003_v58 = vpop.f32.mrf.mxu3  ;;  %v9106_v46 = vld [vmem:[%s9872_s7 + $0x124] sm:$0xf] }
 0x569   : > { %v5828_v2 = vpop.f32.mrf.mxu1 }
 0x56a   : > { %v6004_v4 = vadd.f32 %v6003_v58, %v5915_v59  ;;  %v5829_v42 = vadd.f32 %v5828_v2, %v11371_v18  ;;  %v6867_v59 = vor.u32 %v9119_v6, %v6866_v37 }
 0x56b   : > { %v6095_v55 = vpop.f32.mrf.mxu0 }
 0x56c   : > { %6143 = vmatmul.bf16.vlgmr.msra.gmra.mxu1 %v6755_v36  ;;  %6232 = vmatmul.bf16.vlgmr.msra.gmra.mxu2 %v6759_v33  ;;  %v11653_v1 = vadd.f32 %v6092_v40, %v6004_v4  ;;  %v6860_v40 = vld [vmem:[%s9872_s7 + $0x184] sm:$0xf0] }
 0x56d   : > { %6321 = vmatmul.bf16.vlgmr.msra.gmra.mxu3 %v6763_v28  ;;  %v6863_v51 = vor.u32 %v9106_v46, %v6860_v40 }
 0x56e   : > { %9052 = vmatmul.msk.bf16.vlgmr.msra.gmra.mxu0 %vm4217_vm0, %v6767_v43 }
 0x56f   : > { %v5917_v14 = vpop.f32.mrf.mxu2 }
 0x570   : > { %v5918_v41 = vadd.f32 %v5917_v14, %v5829_v42  ;;  %v6006_v54 = vpop.f32.mrf.mxu3  ;;  %v9130_v14 = vld [vmem:[%s9872_s7 + $0x1e4] sm:$0xf] }
 0x571   : > { %v5830_v18 = vpop.f32.mrf.mxu1 }
 0x572   : > { %v6007_v50 = vadd.f32 %v6006_v54, %v5918_v41  ;;  %v5831_v49 = vadd.f32 %v5830_v18, %v11380_v9  ;;  %v6952_v41 = vld [vmem:[%s9872_s7 + $0x244] sm:$0xf0] }
 0x573   : > { %v6097_v25 = vpop.f32.mrf.mxu0  ;;  %v6958_v18 = vld [vmem:[%s9872_s7 + $0x1e8] sm:$0xf]  ;;  %v6955_v40 = vor.u32 %v9130_v14, %v6952_v41  ;;  %v7066_v14 = vld [vmem:[%s9872_s7 + $0x2b8] sm:$0xf]  ;;  %v9169_v41 = vld [vmem:[%s9872_s7 + $0x318] sm:$0xf0] }
 0x574   : > { %v11659_v30 = vadd.f32 %v6095_v55, %v6007_v50  ;;  %v9143_v50 = vld [vmem:[%s9872_s7 + $0x248] sm:$0xf0] }
 0x575   : > { %v6959_v37 = vor.u32 %v9143_v50, %v6958_v18 }
 0x577   : > { %v5919_v21 = vpop.f32.mrf.mxu2 }
 0x578   : > { %v5920_v16 = vadd.f32 %v5919_v21, %v5831_v49  ;;  %v6008_v13 = vpop.f32.mrf.mxu3  ;;  %v9131_v49 = vld [vmem:[%s9872_s7 + $0x1ec] sm:$0xf] }
 0x579   : > { %v5833_v24 = vpop.f32.mrf.mxu1 }
 0x57a   : > { %v6009_v9 = vadd.f32 %v6008_v13, %v5920_v16  ;;  %v5834_v58 = vadd.f32 %v5833_v24, %v11385_v5  ;;  %v6967_v16 = vor.u32 %v9144_v56, %v6966_v34 }
 0x57b   : > { %v6100_v36 = vpop.f32.mrf.mxu0 }
 0x57c   : > { %6148 = vmatmul.bf16.gmra.mxu1 %v6855_v38  ;;  %6237 = vmatmul.bf16.gmra.mxu2 %v6859_v52  ;;  %v11668_v33 = vadd.f32 %v6097_v25, %v6009_v9  ;;  %v6960_v25 = vld [vmem:[%s9872_s7 + $0x24c] sm:$0xf0] }
 0x57d   : > { %6326 = vmatmul.bf16.gmra.mxu3 %v6863_v51  ;;  %v6963_v21 = vor.u32 %v9131_v49, %v6960_v25 }
 0x57e   : > { %9053 = vmatmul.msk.bf16.gmra.mxu0 %vm4217_vm0, %v6867_v59 }
 0x57f   : > { %v5922_v2 = vpop.f32.mrf.mxu2 }
 0x580   : > { %v5923_v28 = vadd.f32 %v5922_v2, %v5834_v58  ;;  %v6011_v43 = vpop.f32.mrf.mxu3  ;;  %v9155_v2 = vld [vmem:[%s9872_s7 + $0x2ac] sm:$0xf] }
 0x581   : > { %v5835_v4 = vpop.f32.mrf.mxu1 }
 0x582   : > { %v6012_v42 = vadd.f32 %v6011_v43, %v5923_v28  ;;  %v5836_v5 = vadd.f32 %v5835_v4, %v11394_v15  ;;  %v7052_v28 = vld [vmem:[%s9872_s7 + $0x30c] sm:$0xf0] }
 0x583   : > { %v6102_v55 = vpop.f32.mrf.mxu0  ;;  %v7058_v4 = vld [vmem:[%s9872_s7 + $0x2b0] sm:$0xf]  ;;  %v7055_v25 = vor.u32 %v9155_v2, %v7052_v28  ;;  %v7166_v2 = vld [vmem:[%s9872_s7 + $0x380] sm:$0xf]  ;;  %v9194_v28 = vld [vmem:[%s9872_s7 + $0x3e0] sm:$0xf0] }
 0x584   : > { %v11674_v54 = vadd.f32 %v6100_v36, %v6012_v42  ;;  %v9168_v42 = vld [vmem:[%s9872_s7 + $0x310] sm:$0xf0] }
 0x585   : > { %v7059_v34 = vor.u32 %v9168_v42, %v7058_v4 }
 0x587   : > { %v5924_v0 = vpop.f32.mrf.mxu2 }
 0x588   : > { %v5925_v29 = vadd.f32 %v5924_v0, %v5836_v5  ;;  %v6013_v46 = vpop.f32.mrf.mxu3  ;;  %v9156_v5 = vld [vmem:[%s9872_s7 + $0x2b4] sm:$0xf] }
 0x589   : > { %v5838_v6 = vpop.f32.mrf.mxu1 }
 0x58a   : > { %v6014_v15 = vadd.f32 %v6013_v46, %v5925_v29  ;;  %v5839_v13 = vadd.f32 %v5838_v6, %v11411_v53  ;;  %v7067_v29 = vor.u32 %v9169_v41, %v7066_v14 }
 0x58b   : > { %v6105_v38 = vpop.f32.mrf.mxu0 }
 0x58c   : > { %6153 = vmatmul.bf16.gmra.mxu1 %v6955_v40  ;;  %6242 = vmatmul.bf16.gmra.mxu2 %v6959_v37  ;;  %v11683_v52 = vadd.f32 %v6102_v55, %v6014_v15  ;;  %v7060_v55 = vld [vmem:[%s9872_s7 + $0x314] sm:$0xf0] }
 0x58d   : > { %6331 = vmatmul.bf16.gmra.mxu3 %v6963_v21  ;;  %v7063_v0 = vor.u32 %v9156_v5, %v7060_v55 }
 0x58e   : > { %9054 = vmatmul.msk.bf16.gmra.mxu0 %vm4217_vm0, %v6967_v16 }
 0x58f   : > { %v5927_v24 = vpop.f32.mrf.mxu2 }
 0x590   : > { %v5928_v51 = vadd.f32 %v5927_v24, %v5839_v13  ;;  %v6016_v59 = vpop.f32.mrf.mxu3  ;;  %v9180_v24 = vld [vmem:[%s9872_s7 + $0x374] sm:$0xf] }
 0x591   : > { %v5840_v9 = vpop.f32.mrf.mxu1 }
 0x592   : > { %v6017_v58 = vadd.f32 %v6016_v59, %v5928_v51  ;;  %v5841_v53 = vadd.f32 %v5840_v9, %v11420_v19  ;;  %v7152_v51 = vld [vmem:[%s9872_s7 + $0x3d4] sm:$0xf0] }
 0x593   : > { %v6107_v36 = vpop.f32.mrf.mxu0  ;;  %v7158_v9 = vld [vmem:[%s9872_s7 + $0x378] sm:$0xf]  ;;  %v7155_v55 = vor.u32 %v9180_v24, %v7152_v51  ;;  %v7266_v24 = vld [vmem:[%s9872_s7 + $0x448] sm:$0xf]  ;;  %v9219_v51 = vld [vmem:[%s9872_s7 + $0x4a8] sm:$0xf0] }
 0x594   : > { %v11689_v43 = vadd.f32 %v6105_v38, %v6017_v58  ;;  %v9193_v58 = vld [vmem:[%s9872_s7 + $0x3d8] sm:$0xf0] }
 0x595   : > { %v7159_v14 = vor.u32 %v9193_v58, %v7158_v9 }
 0x597   : > { %v5929_v18 = vpop.f32.mrf.mxu2 }
 0x598   : > { %v5930_v50 = vadd.f32 %v5929_v18, %v5841_v53  ;;  %v6018_v49 = vpop.f32.mrf.mxu3  ;;  %v9181_v53 = vld [vmem:[%s9872_s7 + $0x37c] sm:$0xf] }
 0x599   : > { %v5843_v56 = vpop.f32.mrf.mxu1 }
 0x59a   : > { %v6019_v19 = vadd.f32 %v6018_v49, %v5930_v50  ;;  %v5844_v46 = vadd.f32 %v5843_v56, %v11425_v12  ;;  %v7167_v50 = vor.u32 %v9194_v28, %v7166_v2 }
 0x59b   : > { %v6110_v40 = vpop.f32.mrf.mxu0 }
 0x59c   : > { %6158 = vmatmul.bf16.gmra.mxu1 %v7055_v25  ;;  %6247 = vmatmul.bf16.gmra.mxu2 %v7059_v34  ;;  %v11698_v37 = vadd.f32 %v6107_v36, %v6019_v19  ;;  %v7160_v36 = vld [vmem:[%s9872_s7 + $0x3dc] sm:$0xf0] }
 0x59d   : > { %6336 = vmatmul.bf16.gmra.mxu3 %v7063_v0  ;;  %v7163_v18 = vor.u32 %v9181_v53, %v7160_v36 }
 0x59e   : > { %9055 = vmatmul.msk.bf16.gmra.mxu0 %vm4217_vm0, %v7067_v29 }
 0x59f   : > { %v5932_v6 = vpop.f32.mrf.mxu2 }
 0x5a0   : > { %v5933_v21 = vadd.f32 %v5932_v6, %v5844_v46  ;;  %v6021_v16 = vpop.f32.mrf.mxu3  ;;  %v9205_v6 = vld [vmem:[%s9872_s7 + $0x43c] sm:$0xf] }
 0x5a1   : > { %v5845_v15 = vpop.f32.mrf.mxu1 }
 0x5a2   : > { %v6022_v13 = vadd.f32 %v6021_v16, %v5933_v21  ;;  %v5846_v12 = vadd.f32 %v5845_v15, %v11434_v44  ;;  %v7252_v21 = vld [vmem:[%s9872_s7 + $0x49c] sm:$0xf0] }
 0x5a3   : > { %v6112_v38 = vpop.f32.mrf.mxu0  ;;  %v7258_v15 = vld [vmem:[%s9872_s7 + $0x440] sm:$0xf]  ;;  %v7255_v36 = vor.u32 %v9205_v6, %v7252_v21  ;;  %v7366_v6 = vld [vmem:[%s9872_s7 + $0x510] sm:$0xf]  ;;  %v9244_v21 = vld [vmem:[%s9872_s7 + $0x570] sm:$0xf0] }
 0x5a4   : > { %v11704_v59 = vadd.f32 %v6110_v40, %v6022_v13  ;;  %v9218_v13 = vld [vmem:[%s9872_s7 + $0x4a0] sm:$0xf0] }
 0x5a5   : > { %v7259_v2 = vor.u32 %v9218_v13, %v7258_v15 }
 0x5a7   : > { %v5934_v4 = vpop.f32.mrf.mxu2 }
 0x5a8   : > { %v5935_v42 = vadd.f32 %v5934_v4, %v5846_v12  ;;  %v6023_v5 = vpop.f32.mrf.mxu3  ;;  %v9206_v12 = vld [vmem:[%s9872_s7 + $0x444] sm:$0xf] }
 0x5a9   : > { %v5848_v41 = vpop.f32.mrf.mxu1 }
 0x5aa   : > { %v6024_v44 = vadd.f32 %v6023_v5, %v5935_v42  ;;  %v5849_v49 = vadd.f32 %v5848_v41, %v11448_v23  ;;  %v7267_v42 = vor.u32 %v9219_v51, %v7266_v24 }
 0x5ab   : > { %v6115_v25 = vpop.f32.mrf.mxu0 }
 0x5ac   : > { %6163 = vmatmul.bf16.gmra.mxu1 %v7155_v55  ;;  %6252 = vmatmul.bf16.gmra.mxu2 %v7159_v14  ;;  %v11713_v34 = vadd.f32 %v6112_v38, %v6024_v44  ;;  %v7260_v38 = vld [vmem:[%s9872_s7 + $0x4a4] sm:$0xf0] }
 0x5ad   : > { %6341 = vmatmul.bf16.gmra.mxu3 %v7163_v18  ;;  %v7263_v4 = vor.u32 %v9206_v12, %v7260_v38 }
 0x5ae   : > { %9056 = vmatmul.msk.bf16.gmra.mxu0 %vm4217_vm0, %v7167_v50 }
 0x5af   : > { %v5937_v56 = vpop.f32.mrf.mxu2 }
 0x5b0   : > { %v5938_v0 = vadd.f32 %v5937_v56, %v5849_v49  ;;  %v6026_v29 = vpop.f32.mrf.mxu3  ;;  %v9230_v56 = vld [vmem:[%s9872_s7 + $0x504] sm:$0xf] }
 0x5b1   : > { %v5850_v19 = vpop.f32.mrf.mxu1 }
 0x5b2   : > { %v6027_v46 = vadd.f32 %v6026_v29, %v5938_v0  ;;  %v5851_v23 = vadd.f32 %v5850_v19, %v11457_v57  ;;  %v7352_v0 = vld [vmem:[%s9872_s7 + $0x564] sm:$0xf0] }
 0x5b3   : > { %v6117_v40 = vpop.f32.mrf.mxu0  ;;  %v7358_v19 = vld [vmem:[%s9872_s7 + $0x508] sm:$0xf]  ;;  %v7355_v38 = vor.u32 %v9230_v56, %v7352_v0  ;;  %v7466_v56 = vld [vmem:[%s9872_s7 + $0x5d8] sm:$0xf]  ;;  %v9269_v0 = vld [vmem:[%s9872_s7 + $0x638] sm:$0xf0] }
 0x5b4   : > { %v11719_v16 = vadd.f32 %v6115_v25, %v6027_v46  ;;  %v9243_v46 = vld [vmem:[%s9872_s7 + $0x568] sm:$0xf0] }
 0x5b5   : > { %v7359_v24 = vor.u32 %v9243_v46, %v7358_v19 }
 0x5b7   : > { %v5939_v9 = vpop.f32.mrf.mxu2 }
 0x5b8   : > { %v5940_v58 = vadd.f32 %v5939_v9, %v5851_v23  ;;  %v6028_v53 = vpop.f32.mrf.mxu3  ;;  %v9231_v23 = vld [vmem:[%s9872_s7 + $0x50c] sm:$0xf] }
 0x5b9   : > { %v5853_v28 = vpop.f32.mrf.mxu1 }
 0x5ba   : > { %v6029_v57 = vadd.f32 %v6028_v53, %v5940_v58  ;;  %v5854_v5 = vadd.f32 %v5853_v28, %v11462_v63  ;;  %v7367_v58 = vor.u32 %v9244_v21, %v7366_v6 }
 0x5bb   : > { %v6120_v55 = vpop.f32.mrf.mxu0 }
 0x5bc   : > { %6168 = vmatmul.bf16.gmra.mxu1 %v7255_v36  ;;  %6257 = vmatmul.bf16.gmra.mxu2 %v7259_v2  ;;  %v11728_v14 = vadd.f32 %v6117_v40, %v6029_v57  ;;  %v7360_v40 = vld [vmem:[%s9872_s7 + $0x56c] sm:$0xf0] }
 0x5bd   : > { %6346 = vmatmul.bf16.gmra.mxu3 %v7263_v4  ;;  %v7363_v9 = vor.u32 %v9231_v23, %v7360_v40 }
 0x5be   : > { %9057 = vmatmul.msk.bf16.gmra.mxu0 %vm4217_vm0, %v7267_v42 }
 0x5bf   : > { %v5942_v41 = vpop.f32.mrf.mxu2 }
 0x5c0   : > { %v5943_v18 = vadd.f32 %v5942_v41, %v5854_v5  ;;  %v6031_v50 = vpop.f32.mrf.mxu3  ;;  %v9255_v41 = vld [vmem:[%s9872_s7 + $0x5cc] sm:$0xf] }
 0x5c1   : > { %v5855_v44 = vpop.f32.mrf.mxu1 }
 0x5c2   : > { %v6032_v49 = vadd.f32 %v6031_v50, %v5943_v18  ;;  %v5856_v63 = vadd.f32 %v5855_v44, %v11471_v20  ;;  %v7452_v18 = vld [vmem:[%s9872_s7 + $0x62c] sm:$0xf0] }
 0x5c3   : > { %v6122_v25 = vpop.f32.mrf.mxu0  ;;  %v7458_v44 = vld [vmem:[%s9872_s7 + $0x5d0] sm:$0xf]  ;;  %v7455_v40 = vor.u32 %v9255_v41, %v7452_v18  ;;  %v7566_v41 = vld [vmem:[%s9872_s7 + $0x6a0] sm:$0xf]  ;;  %v9294_v18 = vld [vmem:[%s9872_s7 + $0x700] sm:$0xf0] }
 0x5c4   : > { %v11734_v29 = vadd.f32 %v6120_v55, %v6032_v49  ;;  %v9268_v49 = vld [vmem:[%s9872_s7 + $0x630] sm:$0xf0] }
 0x5c5   : > { %v7459_v6 = vor.u32 %v9268_v49, %v7458_v44 }
 0x5c7   : > { %v5944_v15 = vpop.f32.mrf.mxu2 }
 0x5c8   : > { %v5945_v13 = vadd.f32 %v5944_v15, %v5856_v63  ;;  %v6033_v12 = vpop.f32.mrf.mxu3  ;;  %v9256_v63 = vld [vmem:[%s9872_s7 + $0x5d4] sm:$0xf] }
 0x5c9   : > { %v5858_v51 = vpop.f32.mrf.mxu1 }
 0x5ca   : > { %v6034_v20 = vadd.f32 %v6033_v12, %v5945_v13  ;;  %v5859_v53 = vadd.f32 %v5858_v51, %v11488_v27  ;;  %v7467_v13 = vor.u32 %v9269_v0, %v7466_v56 }
 0x5cb   : > { %v6125_v36 = vpop.f32.mrf.mxu0 }
 0x5cc   : > { %6173 = vmatmul.bf16.gmra.mxu1 %v7355_v38  ;;  %6262 = vmatmul.bf16.gmra.mxu2 %v7359_v24  ;;  %v11743_v2 = vadd.f32 %v6122_v25, %v6034_v20  ;;  %v7460_v25 = vld [vmem:[%s9872_s7 + $0x634] sm:$0xf0] }
 0x5cd   : > { %6351 = vmatmul.bf16.gmra.mxu3 %v7363_v9  ;;  %v7463_v15 = vor.u32 %v9256_v63, %v7460_v25 }
 0x5ce   : > { %9058 = vmatmul.msk.bf16.gmra.mxu0 %vm4217_vm0, %v7367_v58 }
 0x5cf   : > { %v5947_v28 = vpop.f32.mrf.mxu2 }
 0x5d0   : > { %v5948_v4 = vadd.f32 %v5947_v28, %v5859_v53  ;;  %v6036_v42 = vpop.f32.mrf.mxu3  ;;  %v9280_v28 = vld [vmem:[%s9872_s7 + $0x694] sm:$0xf] }
 0x5d1   : > { %v5860_v57 = vpop.f32.mrf.mxu1 }
 0x5d2   : > { %v6037_v5 = vadd.f32 %v6036_v42, %v5948_v4  ;;  %v5861_v27 = vadd.f32 %v5860_v57, %v11497_v48  ;;  %v7552_v4 = vld [vmem:[%s9872_s7 + $0x6f4] sm:$0xf0] }
 0x5d3   : > { %v6127_v55 = vpop.f32.mrf.mxu0  ;;  %v7558_v57 = vld [vmem:[%s9872_s7 + $0x698] sm:$0xf]  ;;  %v7555_v25 = vor.u32 %v9280_v28, %v7552_v4  ;;  %v7660_v28 = vld [vmem:[%s9872_s7 + $0x7c4] sm:$0xf0]  ;;  %v9319_v4 = vld [vmem:[%s9872_s7 + $0x7c8] sm:$0xf0] }
 0x5d4   : > { %v11749_v50 = vadd.f32 %v6125_v36, %v6037_v5  ;;  %v9293_v5 = vld [vmem:[%s9872_s7 + $0x6f8] sm:$0xf0] }
 0x5d5   : > { %v7559_v56 = vor.u32 %v9293_v5, %v7558_v57 }
 0x5d7   : > { %v5949_v19 = vpop.f32.mrf.mxu2 }
 0x5d8   : > { %v5950_v46 = vadd.f32 %v5949_v19, %v5861_v27  ;;  %v6038_v23 = vpop.f32.mrf.mxu3  ;;  %v9281_v27 = vld [vmem:[%s9872_s7 + $0x69c] sm:$0xf] }
 0x5d9   : > { %v5863_v21 = vpop.f32.mrf.mxu1 }
 0x5da   : > { %v6039_v48 = vadd.f32 %v6038_v23, %v5950_v46  ;;  %v5864_v12 = vadd.f32 %v5863_v21, %v11502_v60  ;;  %v7567_v46 = vor.u32 %v9294_v18, %v7566_v41 }
 0x5db   : > { %v6130_v38 = vpop.f32.mrf.mxu0 }
 0x5dc   : > { %6178 = vmatmul.bf16.gmra.mxu1 %v7455_v40  ;;  %6267 = vmatmul.bf16.gmra.mxu2 %v7459_v6  ;;  %v11758_v24 = vadd.f32 %v6127_v55, %v6039_v48  ;;  %v7560_v55 = vld [vmem:[%s9872_s7 + $0x6fc] sm:$0xf0] }
 0x5dd   : > { %6356 = vmatmul.bf16.gmra.mxu3 %v7463_v15  ;;  %v7563_v19 = vor.u32 %v9281_v27, %v7560_v55 }
 0x5de   : > { %9059 = vmatmul.msk.bf16.gmra.mxu0 %vm4217_vm0, %v7467_v13 }
 0x5df   : > { %v5952_v51 = vpop.f32.mrf.mxu2 }
 0x5e0   : > { %v5953_v9 = vadd.f32 %v5952_v51, %v5864_v12  ;;  %v6041_v58 = vpop.f32.mrf.mxu3 }
 0x5e1   : > { %v5865_v20 = vpop.f32.mrf.mxu1 }
 0x5e2   : > { %v6042_v53 = vadd.f32 %v6041_v58, %v5953_v9  ;;  %v5866_v60 = vadd.f32 %v5865_v20, %v11511_v62  ;;  %v9305_v9 = vld [vmem:[%s9872_s7 + $0x75c] sm:$0xf]  ;;  %v7652_v58 = vld [vmem:[%s9872_s7 + $0x7bc] sm:$0xf0] }
 0x5e3   : > { %v6132_v36 = vpop.f32.mrf.mxu0  ;;  %v7658_v20 = vld [vmem:[%s9872_s7 + $0x760] sm:$0xf]  ;;  %v7655_v55 = vor.u32 %v9305_v9, %v7652_v58  ;;  %v9331_v9 = vld [vmem:[%s9872_s7 + $0x82c] sm:$0xf]  ;;  %v7760_v58 = vld [vmem:[%s9872_s7 + $0x88c] sm:$0xf0] }
 0x5e4   : > { %v11764_v42 = vadd.f32 %v6130_v38, %v6042_v53  ;;  %v9318_v53 = vld [vmem:[%s9872_s7 + $0x7c0] sm:$0xf0] }
 0x5e5   : > { %v7659_v41 = vor.u32 %v9318_v53, %v7658_v20  ;;  %v7766_v20 = vld [vmem:[%s9872_s7 + $0x830] sm:$0xf]  ;;  %v9344_v53 = vld [vmem:[%s9872_s7 + $0x890] sm:$0xf0] }
 0x5e7   : > { %v5954_v44 = vpop.f32.mrf.mxu2 }
 0x5e8   : > { %v5955_v49 = vadd.f32 %v5954_v44, %v5866_v60  ;;  %v6043_v63 = vpop.f32.mrf.mxu3  ;;  %v9306_v60 = vld [vmem:[%s9872_s7 + $0x764] sm:$0xf] }
 0x5e9   : > { %v6144_v0 = vpop.f32.mrf.mxu1  ;;  %v7663_v44 = vor.u32 %v9306_v60, %v7660_v28 }
 0x5ea   : > { %v6044_v62 = vadd.f32 %v6043_v63, %v5955_v49  ;;  %v6145_v6 = vadd.f32 %v6144_v0, %v11525_v47  ;;  %v7666_v47 = vld [vmem:[%s9872_s7 + $0x768] sm:$0xf] }
 0x5eb   : > { %v6411_v23 = vpop.f32.mrf.mxu0  ;;  %v7667_v49 = vor.u32 %v9319_v4, %v7666_v47 }
 0x5ec   : > { %6183 = vmatmul.bf16.gmra.mxu1 %v7555_v25  ;;  %6272 = vmatmul.bf16.gmra.mxu2 %v7559_v56  ;;  %v11772_v40 = vadd.f32 %v6132_v36, %v6044_v62 }
 0x5ed   : > { %6361 = vmatmul.bf16.gmra.mxu3 %v7563_v19 }
 0x5ee   : > { %9060 = vmatmul.msk.bf16.gmra.mxu0 %vm4217_vm0, %v7567_v46 }
 0x5ef   : > { %v6233_v21 = vpop.f32.mrf.mxu2 }
 0x5f0   : > { %v6234_v15 = vadd.f32 %v6233_v21, %v6145_v6  ;;  %v6322_v13 = vpop.f32.mrf.mxu3 }
 0x5f1   : > { %v6146_v48 = vpop.f32.mrf.mxu1 }
 0x5f2   : > { %v6323_v12 = vadd.f32 %v6322_v13, %v6234_v15  ;;  %v6147_v36 = vadd.f32 %v6146_v48, %v11534_v35  ;;  %v9330_v48 = vld [vmem:[%s9872_s7 + $0x824] sm:$0xf] }
 0x5f3   : > { %v6413_v38 = vpop.f32.mrf.mxu0 }
 0x5f4   : > { %v6412_v51 = vadd.f32 %v6411_v23, %v6323_v12  ;;  %v7752_v12 = vld [vmem:[%s9872_s7 + $0x884] sm:$0xf0] }
 0x5f5   : > { %v7755_v47 = vor.u32 %v9330_v48, %v7752_v12  ;;  %v7866_v48 = vld [vmem:[%s9872_s7 + $0x8f8] sm:$0xf]  ;;  %v9369_v12 = vld [vmem:[%s9872_s7 + $0x958] sm:$0xf0] }
 0x5f6   : > { %9716 = vtanh.f32 %v6412_v51  ;;  %v9343_v51 = vld [vmem:[%s9872_s7 + $0x888] sm:$0xf0] }
 0x5f7   : > { %v6235_v57 = vpop.f32.mrf.mxu2 }
 0x5f8   : > { %v6236_v5 = vadd.f32 %v6235_v57, %v6147_v36  ;;  %v6324_v27 = vpop.f32.mrf.mxu3 }
 0x5f9   : > { %v6149_v18 = vpop.f32.mrf.mxu1 }
 0x5fa   : > { %v6325_v63 = vadd.f32 %v6324_v27, %v6236_v5  ;;  %v6150_v0 = vadd.f32 %v6149_v18, %v11539_v61  ;;  %v7763_v5 = vor.u32 %v9331_v9, %v7760_v58  ;;  %v7767_v27 = vor.u32 %v9344_v53, %v7766_v20 }
 0x5fb   : > { %v6416_v35 = vpop.f32.mrf.mxu0 }
 0x5fc   : > { %v9717_v25 = vpop.eup %9716  ;;  %v6414_v56 = vadd.f32 %v6413_v38, %v6325_v63  ;;  %6188 = vmatmul.bf16.gmra.mxu1 %v7655_v55  ;;  %6277 = vmatmul.bf16.gmra.mxu2 %v7659_v41  ;;  %v7758_v38 = vld [vmem:[%s9872_s7 + $0x828] sm:$0xf] }
 0x5fd   : > { %6523 = vst [vmem:[%s11789_s20] sm:$0xff] %v9717_v25  ;;  %6366 = vmatmul.bf16.gmra.mxu3 %v7663_v44  ;;  %v7759_v4 = vor.u32 %v9343_v51, %v7758_v38 }
 0x5fe   : > { %9061 = vmatmul.msk.bf16.gmra.mxu0 %vm4217_vm0, %v7667_v49  ;;  %9718 = vtanh.f32 %v6414_v56 }
 0x5ff   : > { %v6238_v19 = vpop.f32.mrf.mxu2 }
 0x600   : > { %v6239_v46 = vadd.f32 %v6238_v19, %v6150_v0  ;;  %v6327_v62 = vpop.f32.mrf.mxu3 }
 0x601   : > { %v6151_v23 = vpop.f32.mrf.mxu1 }
 0x602   : > { %v6328_v6 = vadd.f32 %v6327_v62, %v6239_v46  ;;  %v6152_v61 = vadd.f32 %v6151_v23, %v11548_v11  ;;  %v9355_v62 = vld [vmem:[%s9872_s7 + $0x8ec] sm:$0xf]  ;;  %v7852_v23 = vld [vmem:[%s9872_s7 + $0x94c] sm:$0xf0] }
 0x603   : > { %v6418_v21 = vpop.f32.mrf.mxu0 }
 0x604   : > { %v9719_v15 = vpop.eup %9718  ;;  %v6417_v13 = vadd.f32 %v6416_v35, %v6328_v6  ;;  %v7858_v6 = vld [vmem:[%s9872_s7 + $0x8f0] sm:$0xf] }
 0x605   : > { %6524 = vst [vmem:[%s11789_s20 + $0x8] sm:$0xff] %v9719_v15  ;;  %v9356_v15 = vld [vmem:[%s9872_s7 + $0x8f4] sm:$0xf] }
 0x606   : > { %9720 = vtanh.f32 %v6417_v13  ;;  %v7860_v13 = vld [vmem:[%s9872_s7 + $0x954] sm:$0xf0] }
 0x607   : > { %v6240_v60 = vpop.f32.mrf.mxu2  ;;  %v7863_v53 = vor.u32 %v9356_v15, %v7860_v13 }
 0x608   : > { %v6241_v36 = vadd.f32 %v6240_v60, %v6152_v61  ;;  %v6329_v28 = vpop.f32.mrf.mxu3  ;;  %v7855_v61 = vor.u32 %v9355_v62, %v7852_v23  ;;  %v7867_v60 = vor.u32 %v9369_v12, %v7866_v48 }
 0x609   : > { %v6154_v57 = vpop.f32.mrf.mxu1 }
 0x60a   : > { %v6330_v55 = vadd.f32 %v6329_v28, %v6241_v36  ;;  %v6155_v11 = vadd.f32 %v6154_v57, %v11565_v32 }
 0x60b   : > { %v6421_v41 = vpop.f32.mrf.mxu0 }
 0x60c   : > { %v9721_v18 = vpop.eup %9720  ;;  %v6419_v44 = vadd.f32 %v6418_v21, %v6330_v55  ;;  %6193 = vmatmul.bf16.gmra.mxu1 %v7755_v47  ;;  %6282 = vmatmul.bf16.gmra.mxu2 %v7759_v4  ;;  %v9368_v21 = vld [vmem:[%s9872_s7 + $0x950] sm:$0xf0] }
 0x60d   : > { %6525 = vst [vmem:[%s11789_s20 + $0x10] sm:$0xff] %v9721_v18  ;;  %6371 = vmatmul.bf16.gmra.mxu3 %v7763_v5  ;;  %v7859_v58 = vor.u32 %v9368_v21, %v7858_v6 }
 0x60e   : > { %9062 = vmatmul.msk.bf16.gmra.mxu0 %vm4217_vm0, %v7767_v27  ;;  %9722 = vtanh.f32 %v6419_v44 }
 0x60f   : > { %v6243_v49 = vpop.f32.mrf.mxu2 }
 0x610   : > { %v6244_v63 = vadd.f32 %v6243_v49, %v6155_v11  ;;  %v6332_v35 = vpop.f32.mrf.mxu3  ;;  %v9380_v49 = vld [vmem:[%s9872_s7 + $0x9b4] sm:$0xf] }
 0x611   : > { %v6156_v25 = vpop.f32.mrf.mxu1 }
 0x612   : > { %v6333_v56 = vadd.f32 %v6332_v35, %v6244_v63  ;;  %v6157_v32 = vadd.f32 %v6156_v25, %v11574_v45  ;;  %v7952_v63 = vld [vmem:[%s9872_s7 + $0xa14] sm:$0xf0]  ;;  %v9393_v25 = vld [vmem:[%s9872_s7 + $0xa18] sm:$0xf0] }
 0x613   : > { %v6423_v0 = vpop.f32.mrf.mxu0  ;;  %v7958_v35 = vld [vmem:[%s9872_s7 + $0x9b8] sm:$0xf]  ;;  %v7955_v21 = vor.u32 %v9380_v49, %v7952_v63 }
 0x614   : > { %v9723_v19 = vpop.eup %9722  ;;  %v6422_v46 = vadd.f32 %v6421_v41, %v6333_v56  ;;  %v9381_v56 = vld [vmem:[%s9872_s7 + $0x9bc] sm:$0xf]  ;;  %v7959_v15 = vor.u32 %v9393_v25, %v7958_v35 }
 0x615   : > { %6526 = vst [vmem:[%s11789_s20 + $0x18] sm:$0xff] %v9723_v19  ;;  %v7966_v19 = vld [vmem:[%s9872_s7 + $0x9c0] sm:$0xf] }
 0x616   : > { %9724 = vtanh.f32 %v6422_v46  ;;  %v9394_v46 = vld [vmem:[%s9872_s7 + $0xa20] sm:$0xf0] }
 0x617   : > { %v6245_v38 = vpop.f32.mrf.mxu2  ;;  %v7967_v48 = vor.u32 %v9394_v46, %v7966_v19 }
 0x618   : > { %v6246_v51 = vadd.f32 %v6245_v38, %v6157_v32  ;;  %v6334_v9 = vpop.f32.mrf.mxu3 }
 0x619   : > { %v6159_v20 = vpop.f32.mrf.mxu1 }
 0x61a   : > { %v6335_v36 = vadd.f32 %v6334_v9, %v6246_v51  ;;  %v6160_v45 = vadd.f32 %v6159_v20, %v11579_v3 }
 0x61b   : > { %v6426_v28 = vpop.f32.mrf.mxu0 }
 0x61c   : > { %v9725_v47 = vpop.eup %9724  ;;  %v6424_v4 = vadd.f32 %v6423_v0, %v6335_v36  ;;  %6198 = vmatmul.bf16.gmra.mxu1 %v7855_v61  ;;  %6287 = vmatmul.bf16.gmra.mxu2 %v7859_v58  ;;  %v7960_v0 = vld [vmem:[%s9872_s7 + $0xa1c] sm:$0xf0] }
 0x61d   : > { %6527 = vst [vmem:[%s11789_s20 + $0x20] sm:$0xff] %v9725_v47  ;;  %6376 = vmatmul.bf16.gmra.mxu3 %v7863_v53  ;;  %v7963_v13 = vor.u32 %v9381_v56, %v7960_v0 }
 0x61e   : > { %9063 = vmatmul.msk.bf16.gmra.mxu0 %vm4217_vm0, %v7867_v60  ;;  %9726 = vtanh.f32 %v6424_v4  ;;  %v9405_v4 = vld [vmem:[%s9872_s7 + $0xa7c] sm:$0xf] }
 0x61f   : > { %v6248_v57 = vpop.f32.mrf.mxu2 }
 0x620   : > { %v6249_v5 = vadd.f32 %v6248_v57, %v6160_v45  ;;  %v6337_v27 = vpop.f32.mrf.mxu3  ;;  %v8052_v45 = vld [vmem:[%s9872_s7 + $0xadc] sm:$0xf0] }
 0x621   : > { %v6161_v55 = vpop.f32.mrf.mxu1  ;;  %v8058_v57 = vld [vmem:[%s9872_s7 + $0xa80] sm:$0xf]  ;;  %v8055_v63 = vor.u32 %v9405_v4, %v8052_v45 }
 0x622   : > { %v6338_v41 = vadd.f32 %v6337_v27, %v6249_v5  ;;  %v6162_v3 = vadd.f32 %v6161_v55, %v11588_v26  ;;  %v9418_v5 = vld [vmem:[%s9872_s7 + $0xae0] sm:$0xf0]  ;;  %v8060_v55 = vld [vmem:[%s9872_s7 + $0xae4] sm:$0xf0] }
 0x623   : > { %v6428_v18 = vpop.f32.mrf.mxu0  ;;  %v9406_v27 = vld [vmem:[%s9872_s7 + $0xa84] sm:$0xf]  ;;  %v8059_v35 = vor.u32 %v9418_v5, %v8058_v57 }
 0x624   : > { %v9727_v44 = vpop.eup %9726  ;;  %v6427_v11 = vadd.f32 %v6426_v28, %v6338_v41  ;;  %v8066_v41 = vld [vmem:[%s9872_s7 + $0xa88] sm:$0xf]  ;;  %v8063_v56 = vor.u32 %v9406_v27, %v8060_v55 }
 0x625   : > { %6528 = vst [vmem:[%s11789_s20 + $0x28] sm:$0xff] %v9727_v44 }
 0x626   : > { %9728 = vtanh.f32 %v6427_v11 }
 0x627   : > { %v6250_v62 = vpop.f32.mrf.mxu2 }
 0x628   : > { %v6251_v23 = vadd.f32 %v6250_v62, %v6162_v3  ;;  %v6339_v6 = vpop.f32.mrf.mxu3 }
 0x629   : > { %v6164_v32 = vpop.f32.mrf.mxu1 }
 0x62a   : > { %v6340_v12 = vadd.f32 %v6339_v6, %v6251_v23  ;;  %v6165_v26 = vadd.f32 %v6164_v32, %v11602_v17 }
 0x62b   : > { %v6431_v38 = vpop.f32.mrf.mxu0 }
 0x62c   : > { %v9729_v51 = vpop.eup %9728  ;;  %v6429_v9 = vadd.f32 %v6428_v18, %v6340_v12  ;;  %6203 = vmatmul.bf16.gmra.mxu1 %v7955_v21  ;;  %6292 = vmatmul.bf16.gmra.mxu2 %v7959_v15  ;;  %v9419_v18 = vld [vmem:[%s9872_s7 + $0xae8] sm:$0xf0] }
 0x62d   : > { %6529 = vst [vmem:[%s11789_s20 + $0x30] sm:$0xff] %v9729_v51  ;;  %6381 = vmatmul.bf16.gmra.mxu3 %v7963_v13  ;;  %v8067_v3 = vor.u32 %v9419_v18, %v8066_v41  ;;  %v8152_v51 = vld [vmem:[%s9872_s7 + $0xba4] sm:$0xf0] }
 0x62e   : > { %9064 = vmatmul.msk.bf16.gmra.mxu0 %vm4217_vm0, %v7967_v48  ;;  %9730 = vtanh.f32 %v6429_v9  ;;  %v8158_v9 = vld [vmem:[%s9872_s7 + $0xb48] sm:$0xf] }
 0x62f   : > { %v6253_v61 = vpop.f32.mrf.mxu2 }
 0x630   : > { %v6254_v58 = vadd.f32 %v6253_v61, %v6165_v26  ;;  %v6342_v20 = vpop.f32.mrf.mxu3  ;;  %v9443_v26 = vld [vmem:[%s9872_s7 + $0xba8] sm:$0xf0] }
 0x631   : > { %v6166_v53 = vpop.f32.mrf.mxu1  ;;  %v9431_v61 = vld [vmem:[%s9872_s7 + $0xb4c] sm:$0xf]  ;;  %v8159_v4 = vor.u32 %v9443_v26, %v8158_v9 }
 0x632   : > { %v6343_v60 = vadd.f32 %v6342_v20, %v6254_v58  ;;  %v6167_v17 = vadd.f32 %v6166_v53, %v11611_v8  ;;  %v8160_v58 = vld [vmem:[%s9872_s7 + $0xbac] sm:$0xf0]  ;;  %v9444_v53 = vld [vmem:[%s9872_s7 + $0xbb0] sm:$0xf0] }
 0x633   : > { %v6433_v36 = vpop.f32.mrf.mxu0  ;;  %v8166_v20 = vld [vmem:[%s9872_s7 + $0xb50] sm:$0xf]  ;;  %v8163_v57 = vor.u32 %v9431_v61, %v8160_v58 }
 0x634   : > { %v9731_v28 = vpop.eup %9730  ;;  %v6432_v47 = vadd.f32 %v6431_v38, %v6343_v60  ;;  %v9430_v38 = vld [vmem:[%s9872_s7 + $0xb44] sm:$0xf]  ;;  %v8167_v5 = vor.u32 %v9444_v53, %v8166_v20 }
 0x635   : > { %6530 = vst [vmem:[%s11789_s20 + $0x38] sm:$0xff] %v9731_v28 }
 0x636   : > { %9732 = vtanh.f32 %v6432_v47  ;;  %v8155_v47 = vor.u32 %v9430_v38, %v8152_v51 }
 0x637   : > { %v6255_v44 = vpop.f32.mrf.mxu2 }
 0x638   : > { %v6256_v11 = vadd.f32 %v6255_v44, %v6167_v17  ;;  %v6344_v49 = vpop.f32.mrf.mxu3 }
 0x639   : > { %v6169_v25 = vpop.f32.mrf.mxu1 }
 0x63a   : > { %v6345_v0 = vadd.f32 %v6344_v49, %v6256_v11  ;;  %v6170_v8 = vadd.f32 %v6169_v25, %v11616_v10 }
 0x63b   : > { %v6436_v19 = vpop.f32.mrf.mxu0 }
 0x63c   : > { %v9733_v46 = vpop.eup %9732  ;;  %v6434_v62 = vadd.f32 %v6433_v36, %v6345_v0  ;;  %6208 = vmatmul.bf16.gmra.mxu1 %v8055_v63  ;;  %6297 = vmatmul.bf16.gmra.mxu2 %v8059_v35  ;;  %v8252_v0 = vld [vmem:[%s9872_s7 + $0xc6c] sm:$0xf0] }
 0x63d   : > { %6531 = vst [vmem:[%s11789_s20 + $0x40] sm:$0xff] %v9733_v46  ;;  %6386 = vmatmul.bf16.gmra.mxu3 %v8063_v56  ;;  %v9468_v46 = vld [vmem:[%s9872_s7 + $0xc70] sm:$0xf0] }
 0x63e   : > { %9065 = vmatmul.msk.bf16.gmra.mxu0 %vm4217_vm0, %v8067_v3  ;;  %9734 = vtanh.f32 %v6434_v62  ;;  %v9455_v3 = vld [vmem:[%s9872_s7 + $0xc0c] sm:$0xf]  ;;  %v9456_v62 = vld [vmem:[%s9872_s7 + $0xc14] sm:$0xf] }
 0x63f   : > { %v6258_v23 = vpop.f32.mrf.mxu2 }
 0x640   : > { %v6259_v6 = vadd.f32 %v6258_v23, %v6170_v8  ;;  %v6347_v21 = vpop.f32.mrf.mxu3  ;;  %v8260_v8 = vld [vmem:[%s9872_s7 + $0xc74] sm:$0xf0] }
 0x641   : > { %v6171_v15 = vpop.f32.mrf.mxu1  ;;  %v8266_v23 = vld [vmem:[%s9872_s7 + $0xc18] sm:$0xf]  ;;  %v8263_v38 = vor.u32 %v9456_v62, %v8260_v8 }
 0x642   : > { %v6348_v32 = vadd.f32 %v6347_v21, %v6259_v6  ;;  %v6172_v10 = vadd.f32 %v6171_v15, %v11625_v7  ;;  %v9469_v6 = vld [vmem:[%s9872_s7 + $0xc78] sm:$0xf0] }
 0x643   : > { %v6438_v13 = vpop.f32.mrf.mxu0  ;;  %v8267_v51 = vor.u32 %v9469_v6, %v8266_v23 }
 0x644   : > { %v9735_v48 = vpop.eup %9734  ;;  %v6437_v12 = vadd.f32 %v6436_v19, %v6348_v32  ;;  %v8258_v19 = vld [vmem:[%s9872_s7 + $0xc10] sm:$0xf] }
 0x645   : > { %6532 = vst [vmem:[%s11789_s20 + $0x48] sm:$0xff] %v9735_v48  ;;  %v8259_v48 = vor.u32 %v9468_v46, %v8258_v19 }
 0x646   : > { %9736 = vtanh.f32 %v6437_v12 }
 0x647   : > { %v6260_v60 = vpop.f32.mrf.mxu2 }
 0x648   : > { %v6261_v36 = vadd.f32 %v6260_v60, %v6172_v10  ;;  %v6349_v28 = vpop.f32.mrf.mxu3 }
 0x649   : > { %v6174_v45 = vpop.f32.mrf.mxu1 }
 0x64a   : > { %v6350_v27 = vadd.f32 %v6349_v28, %v6261_v36  ;;  %v6175_v7 = vadd.f32 %v6174_v45, %v11630_v39 }
 0x64b   : > { %v6441_v17 = vpop.f32.mrf.mxu0 }
 0x64c   : > { %v9737_v55 = vpop.eup %9736  ;;  %v6439_v41 = vadd.f32 %v6438_v13, %v6350_v27  ;;  %6213 = vmatmul.bf16.gmra.mxu1 %v8155_v47  ;;  %6302 = vmatmul.bf16.gmra.mxu2 %v8159_v4  ;;  %v8255_v13 = vor.u32 %v9455_v3, %v8252_v0 }
 0x64d   : > { %6533 = vst [vmem:[%s11789_s20 + $0x50] sm:$0xff] %v9737_v55  ;;  %6391 = vmatmul.bf16.gmra.mxu3 %v8163_v57 }
 0x64e   : > { %9066 = vmatmul.msk.bf16.gmra.mxu0 %vm4217_vm0, %v8167_v5  ;;  %9738 = vtanh.f32 %v6439_v41 }
 0x64f   : > { %v6263_v18 = vpop.f32.mrf.mxu2 }
 0x650   : > { %v6264_v44 = vadd.f32 %v6263_v18, %v6175_v7  ;;  %v6352_v11 = vpop.f32.mrf.mxu3 }
 0x651   : > { %v6176_v49 = vpop.f32.mrf.mxu1 }
 0x652   : > { %v6353_v63 = vadd.f32 %v6352_v11, %v6264_v44  ;;  %v6177_v39 = vadd.f32 %v6176_v49, %v11639_v22 }
 0x653   : > { %v6443_v35 = vpop.f32.mrf.mxu0 }
 0x654   : > { %v9739_v25 = vpop.eup %9738  ;;  %v6442_v56 = vadd.f32 %v6441_v17, %v6353_v63 }
 0x655   : > { %6534 = vst [vmem:[%s11789_s20 + $0x58] sm:$0xff] %v9739_v25 }
 0x656   : > { %9740 = vtanh.f32 %v6442_v56 }
 0x657   : > { %v6265_v21 = vpop.f32.mrf.mxu2 }
 0x658   : > { %v6266_v15 = vadd.f32 %v6265_v21, %v6177_v39  ;;  %v6354_v32 = vpop.f32.mrf.mxu3 }
 0x659   : > { %v6179_v12 = vpop.f32.mrf.mxu1 }
 0x65a   : > { %v6355_v9 = vadd.f32 %v6354_v32, %v6266_v15  ;;  %v6180_v22 = vadd.f32 %v6179_v12, %v11644_v31 }
 0x65b   : > { %v6446_v26 = vpop.f32.mrf.mxu0 }
 0x65c   : > { %v9741_v61 = vpop.eup %9740  ;;  %v6444_v10 = vadd.f32 %v6443_v35, %v6355_v9  ;;  %6218 = vmatmul.bf16.gmra.mxu1 %v8255_v13  ;;  %6307 = vmatmul.bf16.gmra.mxu2 %v8259_v48 }
 0x65d   : > { %6535 = vst [vmem:[%s11789_s20 + $0x60] sm:$0xff] %v9741_v61  ;;  %6396 = vmatmul.bf16.gmra.mxu3 %v8263_v38 }
 0x65e   : > { %9067 = vmatmul.msk.bf16.gmra.mxu0 %vm4217_vm0, %v8267_v51  ;;  %9742 = vtanh.f32 %v6444_v10 }
 0x65f   : > { %v6268_v58 = vpop.f32.mrf.mxu2 }
 0x660   : > { %v6269_v20 = vadd.f32 %v6268_v58, %v6180_v22  ;;  %v6357_v53 = vpop.f32.mrf.mxu3 }
 0x661   : > { %v6181_v60 = vpop.f32.mrf.mxu1 }
 0x662   : > { %v6358_v36 = vadd.f32 %v6357_v53, %v6269_v20  ;;  %v6182_v45 = vadd.f32 %v6181_v60, %v11653_v1 }
 0x663   : > { %v6448_v28 = vpop.f32.mrf.mxu0 }
 0x664   : > { %v9743_v47 = vpop.eup %9742  ;;  %v6447_v4 = vadd.f32 %v6446_v26, %v6358_v36 }
 0x665   : > { %6536 = vst [vmem:[%s11789_s20 + $0x68] sm:$0xff] %v9743_v47 }
 0x666   : > { %9744 = vtanh.f32 %v6447_v4 }
 0x667   : > { %v6270_v57 = vpop.f32.mrf.mxu2 }
 0x668   : > { %v6271_v5 = vadd.f32 %v6270_v57, %v6182_v45  ;;  %v6359_v27 = vpop.f32.mrf.mxu3 }
 0x669   : > { %v6184_v17 = vpop.f32.mrf.mxu1 }
 0x66a   : > { %v6360_v55 = vadd.f32 %v6359_v27, %v6271_v5  ;;  %v6185_v18 = vadd.f32 %v6184_v17, %v11659_v30 }
 0x66b   : > { %v6451_v31 = vpop.f32.mrf.mxu0 }
 0x66c   : > { %v9745_v41 = vpop.eup %9744  ;;  %v6449_v7 = vadd.f32 %v6448_v28, %v6360_v55 }
 0x66d   : > { %6537 = vst [vmem:[%s11789_s20 + $0x70] sm:$0xff] %v9745_v41 }
 0x66e   : > { %9746 = vtanh.f32 %v6449_v7 }
 0x66f   : > { %v6273_v44 = vpop.f32.mrf.mxu2 }
 0x670   : > { %v6274_v11 = vadd.f32 %v6273_v44, %v6185_v18  ;;  %v6362_v49 = vpop.f32.mrf.mxu3 }
 0x671   : > { %v6186_v63 = vpop.f32.mrf.mxu1 }
 0x672   : > { %v6363_v35 = vadd.f32 %v6362_v49, %v6274_v11  ;;  %v6187_v3 = vadd.f32 %v6186_v63, %v11668_v33 }
 0x673   : > { %v6453_v1 = vpop.f32.mrf.mxu0 }
 0x674   : > { %v9747_v25 = vpop.eup %9746  ;;  %v6452_v56 = vadd.f32 %v6451_v31, %v6363_v35 }
 0x675   : > { %6538 = vst [vmem:[%s11789_s20 + $0x78] sm:$0xff] %v9747_v25 }
 0x676   : > { %9748 = vtanh.f32 %v6452_v56 }
 0x677   : > { %v6275_v0 = vpop.f32.mrf.mxu2 }
 0x678   : > { %v6276_v19 = vadd.f32 %v6275_v0, %v6187_v3  ;;  %v6364_v46 = vpop.f32.mrf.mxu3 }
 0x679   : > { %v6189_v62 = vpop.f32.mrf.mxu1 }
 0x67a   : > { %v6365_v39 = vadd.f32 %v6364_v46, %v6276_v19  ;;  %v6190_v6 = vadd.f32 %v6189_v62, %v11674_v54 }
 0x67b   : > { %v6456_v30 = vpop.f32.mrf.mxu0 }
 0x67c   : > { %v9749_v8 = vpop.eup %9748  ;;  %v6454_v23 = vadd.f32 %v6453_v1, %v6365_v39 }
 0x67d   : > { %6539 = vst [vmem:[%s11789_s20 + $0x80] sm:$0xff] %v9749_v8 }
 0x67e   : > { %9750 = vtanh.f32 %v6454_v23 }
 0x67f   : > { %v6278_v21 = vpop.f32.mrf.mxu2 }
 0x680   : > { %v6279_v15 = vadd.f32 %v6278_v21, %v6190_v6  ;;  %v6367_v32 = vpop.f32.mrf.mxu3 }
 0x681   : > { %v6191_v13 = vpop.f32.mrf.mxu1 }
 0x682   : > { %v6368_v48 = vadd.f32 %v6367_v32, %v6279_v15  ;;  %v6192_v51 = vadd.f32 %v6191_v13, %v11683_v52 }
 0x683   : > { %v6458_v33 = vpop.f32.mrf.mxu0 }
 0x684   : > { %v9751_v12 = vpop.eup %9750  ;;  %v6457_v38 = vadd.f32 %v6456_v30, %v6368_v48 }
 0x685   : > { %6540 = vst [vmem:[%s11789_s20 + $0x88] sm:$0xff] %v9751_v12 }
 0x686   : > { %9752 = vtanh.f32 %v6457_v38 }
 0x687   : > { %v6280_v9 = vpop.f32.mrf.mxu2 }
 0x688   : > { %v6281_v26 = vadd.f32 %v6280_v9, %v6192_v51  ;;  %v6369_v61 = vpop.f32.mrf.mxu3 }
 0x689   : > { %v6194_v10 = vpop.f32.mrf.mxu1 }
 0x68a   : > { %v6370_v22 = vadd.f32 %v6369_v61, %v6281_v26  ;;  %v6195_v53 = vadd.f32 %v6194_v10, %v11689_v43 }
 0x68b   : > { %v6461_v54 = vpop.f32.mrf.mxu0 }
 0x68c   : > { %v9753_v58 = vpop.eup %9752  ;;  %v6459_v20 = vadd.f32 %v6458_v33, %v6370_v22 }
 0x68d   : > { %6541 = vst [vmem:[%s11789_s20 + $0x90] sm:$0xff] %v9753_v58 }
 0x68e   : > { %9754 = vtanh.f32 %v6459_v20 }
 0x68f   : > { %v6283_v60 = vpop.f32.mrf.mxu2 }
 0x690   : > { %v6284_v36 = vadd.f32 %v6283_v60, %v6195_v53  ;;  %v6372_v28 = vpop.f32.mrf.mxu3 }
 0x691   : > { %v6196_v47 = vpop.f32.mrf.mxu1 }
 0x692   : > { %v6373_v4 = vadd.f32 %v6372_v28, %v6284_v36  ;;  %v6197_v5 = vadd.f32 %v6196_v47, %v11698_v37 }
 0x693   : > { %v6463_v52 = vpop.f32.mrf.mxu0 }
 0x694   : > { %v9755_v45 = vpop.eup %9754  ;;  %v6462_v57 = vadd.f32 %v6461_v54, %v6373_v4 }
 0x695   : > { %6542 = vst [vmem:[%s11789_s20 + $0x98] sm:$0xff] %v9755_v45 }
 0x696   : > { %9756 = vtanh.f32 %v6462_v57 }
 0x697   : > { %v6285_v27 = vpop.f32.mrf.mxu2 }
 0x698   : > { %v6286_v17 = vadd.f32 %v6285_v27, %v6197_v5  ;;  %v6374_v55 = vpop.f32.mrf.mxu3 }
 0x699   : > { %v6199_v31 = vpop.f32.mrf.mxu1 }
 0x69a   : > { %v6375_v41 = vadd.f32 %v6374_v55, %v6286_v17  ;;  %v6200_v44 = vadd.f32 %v6199_v31, %v11704_v59 }
 0x69b   : > { %v6466_v43 = vpop.f32.mrf.mxu0 }
 0x69c   : > { %v9757_v7 = vpop.eup %9756  ;;  %v6464_v18 = vadd.f32 %v6463_v52, %v6375_v41 }
 0x69d   : > { %6543 = vst [vmem:[%s11789_s20 + $0xa0] sm:$0xff] %v9757_v7 }
 0x69e   : > { %9758 = vtanh.f32 %v6464_v18 }
 0x69f   : > { %v6288_v11 = vpop.f32.mrf.mxu2 }
 0x6a0   : > { %v6289_v49 = vadd.f32 %v6288_v11, %v6200_v44  ;;  %v6377_v63 = vpop.f32.mrf.mxu3 }
 0x6a1   : > { %v6201_v35 = vpop.f32.mrf.mxu1 }
 0x6a2   : > { %v6378_v1 = vadd.f32 %v6377_v63, %v6289_v49  ;;  %v6202_v3 = vadd.f32 %v6201_v35, %v11713_v34 }
 0x6a3   : > { %v6468_v37 = vpop.f32.mrf.mxu0 }
 0x6a4   : > { %v9759_v25 = vpop.eup %9758  ;;  %v6467_v56 = vadd.f32 %v6466_v43, %v6378_v1 }
 0x6a5   : > { %6544 = vst [vmem:[%s11789_s20 + $0xa8] sm:$0xff] %v9759_v25 }
 0x6a6   : > { %9760 = vtanh.f32 %v6467_v56 }
 0x6a7   : > { %v6290_v0 = vpop.f32.mrf.mxu2 }
 0x6a8   : > { %v6291_v19 = vadd.f32 %v6290_v0, %v6202_v3  ;;  %v6379_v46 = vpop.f32.mrf.mxu3 }
 0x6a9   : > { %v6204_v62 = vpop.f32.mrf.mxu1 }
 0x6aa   : > { %v6380_v39 = vadd.f32 %v6379_v46, %v6291_v19  ;;  %v6205_v23 = vadd.f32 %v6204_v62, %v11719_v16 }
 0x6ab   : > { %v6471_v59 = vpop.f32.mrf.mxu0 }
 0x6ac   : > { %v9761_v30 = vpop.eup %9760  ;;  %v6469_v8 = vadd.f32 %v6468_v37, %v6380_v39 }
 0x6ad   : > { %6545 = vst [vmem:[%s11789_s20 + $0xb0] sm:$0xff] %v9761_v30 }
 0x6ae   : > { %9762 = vtanh.f32 %v6469_v8 }
 0x6af   : > { %v6293_v6 = vpop.f32.mrf.mxu2 }
 0x6b0   : > { %v6294_v21 = vadd.f32 %v6293_v6, %v6205_v23  ;;  %v6382_v15 = vpop.f32.mrf.mxu3 }
 0x6b1   : > { %v6206_v32 = vpop.f32.mrf.mxu1 }
 0x6b2   : > { %v6383_v13 = vadd.f32 %v6382_v15, %v6294_v21  ;;  %v6207_v12 = vadd.f32 %v6206_v32, %v11728_v14 }
 0x6b3   : > { %v6473_v34 = vpop.f32.mrf.mxu0 }
 0x6b4   : > { %v9763_v48 = vpop.eup %9762  ;;  %v6472_v33 = vadd.f32 %v6471_v59, %v6383_v13 }
 0x6b5   : > { %6546 = vst [vmem:[%s11789_s20 + $0xb8] sm:$0xff] %v9763_v48 }
 0x6b6   : > { %9764 = vtanh.f32 %v6472_v33 }
 0x6b7   : > { %v6295_v38 = vpop.f32.mrf.mxu2 }
 0x6b8   : > { %v6296_v51 = vadd.f32 %v6295_v38, %v6207_v12  ;;  %v6384_v9 = vpop.f32.mrf.mxu3 }
 0x6b9   : > { %v6209_v26 = vpop.f32.mrf.mxu1 }
 0x6ba   : > { %v6385_v61 = vadd.f32 %v6384_v9, %v6296_v51  ;;  %v6210_v54 = vadd.f32 %v6209_v26, %v11734_v29 }
 0x6bb   : > { %v6476_v16 = vpop.f32.mrf.mxu0 }
 0x6bc   : > { %v9765_v10 = vpop.eup %9764  ;;  %v6474_v22 = vadd.f32 %v6473_v34, %v6385_v61 }
 0x6bd   : > { %6547 = vst [vmem:[%s11789_s20 + $0xc0] sm:$0xff] %v9765_v10 }
 0x6be   : > { %9766 = vtanh.f32 %v6474_v22 }
 0x6bf   : > { %v6298_v58 = vpop.f32.mrf.mxu2 }
 0x6c0   : > { %v6299_v20 = vadd.f32 %v6298_v58, %v6210_v54  ;;  %v6387_v53 = vpop.f32.mrf.mxu3 }
 0x6c1   : > { %v6211_v60 = vpop.f32.mrf.mxu1 }
 0x6c2   : > { %v6388_v36 = vadd.f32 %v6387_v53, %v6299_v20  ;;  %v6212_v4 = vadd.f32 %v6211_v60, %v11743_v2 }
 0x6c3   : > { %v6478_v14 = vpop.f32.mrf.mxu0 }
 0x6c4   : > { %v9767_v28 = vpop.eup %9766  ;;  %v6477_v47 = vadd.f32 %v6476_v16, %v6388_v36 }
 0x6c5   : > { %6548 = vst [vmem:[%s11789_s20 + $0xc8] sm:$0xff] %v9767_v28 }
 0x6c6   : > { %9768 = vtanh.f32 %v6477_v47 }
 0x6c7   : > { %v6300_v52 = vpop.f32.mrf.mxu2 }
 0x6c8   : > { %v6301_v45 = vadd.f32 %v6300_v52, %v6212_v4  ;;  %v6389_v57 = vpop.f32.mrf.mxu3 }
 0x6c9   : > { %v6214_v5 = vpop.f32.mrf.mxu1 }
 0x6ca   : > { %v6390_v27 = vadd.f32 %v6389_v57, %v6301_v45  ;;  %v6215_v31 = vadd.f32 %v6214_v5, %v11749_v50 }
 0x6cb   : > { %v6481_v55 = vpop.f32.mrf.mxu0 }
 0x6cc   : > { %v9769_v29 = vpop.eup %9768  ;;  %v6479_v17 = vadd.f32 %v6478_v14, %v6390_v27 }
 0x6cd   : > { %6549 = vst [vmem:[%s11789_s20 + $0xd0] sm:$0xff] %v9769_v29 }
 0x6ce   : > { %9770 = vtanh.f32 %v6479_v17 }
 0x6cf   : > { %v6303_v41 = vpop.f32.mrf.mxu2 }
 0x6d0   : > { %v6304_v43 = vadd.f32 %v6303_v41, %v6215_v31  ;;  %v6392_v7 = vpop.f32.mrf.mxu3 }
 0x6d1   : > { %v6216_v18 = vpop.f32.mrf.mxu1 }
 0x6d2   : > { %v6393_v44 = vadd.f32 %v6392_v7, %v6304_v43  ;;  %v6217_v49 = vadd.f32 %v6216_v18, %v11758_v24 }
 0x6d3   : > { %v6483_v63 = vpop.f32.mrf.mxu0 }
 0x6d4   : > { %v9771_v2 = vpop.eup %9770  ;;  %v6482_v11 = vadd.f32 %v6481_v55, %v6393_v44 }
 0x6d5   : > { %6550 = vst [vmem:[%s11789_s20 + $0xd8] sm:$0xff] %v9771_v2 }
 0x6d6   : > { %9772 = vtanh.f32 %v6482_v11 }
 0x6d7   : > { %v6305_v35 = vpop.f32.mrf.mxu2 }
 0x6d8   : > { %v6306_v1 = vadd.f32 %v6305_v35, %v6217_v49  ;;  %v6394_v37 = vpop.f32.mrf.mxu3 }
 0x6d9   : > { %v6219_v25 = vpop.f32.mrf.mxu1 }
 0x6da   : > { %v6395_v56 = vadd.f32 %v6394_v37, %v6306_v1  ;;  %v6220_v0 = vadd.f32 %v6219_v25, %v11764_v42 }
 0x6db   : > { %v6486_v39 = vpop.f32.mrf.mxu0 }
 0x6dc   : > { %v9773_v50 = vpop.eup %9772  ;;  %v6484_v3 = vadd.f32 %v6483_v63, %v6395_v56 }
 0x6dd   : > { %6551 = vst [vmem:[%s11789_s20 + $0xe0] sm:$0xff] %v9773_v50 }
 0x6de   : > { %9774 = vtanh.f32 %v6484_v3 }
 0x6df   : > { %v6308_v19 = vpop.f32.mrf.mxu2 }
 0x6e0   : > { %v6309_v46 = vadd.f32 %v6308_v19, %v6220_v0  ;;  %v6397_v62 = vpop.f32.mrf.mxu3 }
 0x6e1   : > { %v6221_v24 = vpop.f32.mrf.mxu1 }
 0x6e2   : > { %v6398_v59 = vadd.f32 %v6397_v62, %v6309_v46  ;;  %v6222_v23 = vadd.f32 %v6221_v24, %v11772_v40 }
 0x6e3   : > { %v6488_v13 = vpop.f32.mrf.mxu0 }
 0x6e4   : > { %v9775_v30 = vpop.eup %9774  ;;  %v6487_v8 = vadd.f32 %v6486_v39, %v6398_v59 }
 0x6e5   : > { %6552 = vst [vmem:[%s11789_s20 + $0xe8] sm:$0xff] %v9775_v30 }
 0x6e6   : > { %9776 = vtanh.f32 %v6487_v8 }
 0x6e7   : > { %v6310_v6 = vpop.f32.mrf.mxu2 }
 0x6e8   : > { %v6311_v21 = vadd.f32 %v6310_v6, %v6222_v23  ;;  %v6399_v15 = vpop.f32.mrf.mxu3 }
 0x6ea   : > { %v6400_v32 = vadd.f32 %v6399_v15, %v6311_v21 }
 0x6ec   : > { %v9777_v42 = vpop.eup %9776  ;;  %v6489_v34 = vadd.f32 %v6488_v13, %v6400_v32 }
 0x6ed   : > { %6553 = vst [vmem:[%s11789_s20 + $0xf0] sm:$0xff] %v9777_v42 }
 0x6ee   : > { %9778 = vtanh.f32 %v6489_v34 }
 0x6f4   : > { %v9779_v48 = vpop.eup %9778 }
 0x6f5   : > { %6554 = vst [vmem:[%s11789_s20 + $0xf8] sm:$0xff] %v9779_v48 }
 0x6f6 PF: > { %s13_s14 = sadd.s32 1, %s9802_s14   ;;  %s11921_s12 = smov %s9798_s13 }
 0x6f7   : > { %p10_p5 = scmp.ge.s32.totalorder %s13_s14, 4   ;;  %s11922_s13 = smov %s11924_s15 }
 0x6f9   :  { %12 = sbr.rel (!%p10_p5) target bundleno = 2 (0x2), region = 68 }

</bundles_post_ra>
